<compile_context>
chip_gen: v7x
topology: tpu7x:2x2x1
jax: 0.10.0
libtpu: 0.0.40
codegen_flags: <defaults>
</compile_context>

<pallas_src>
import functools
from collections import namedtuple

import jax
import jax.numpy as jnp
from jax import lax
from jax.experimental import pallas as pl
from jax.experimental.pallas import tpu as pltpu

# ----------------------------------------------------------------------------
# Genotype
# ----------------------------------------------------------------------------
Genotype = namedtuple("Genotype", "normal normal_concat reduce reduce_concat")

DARTS_V2 = Genotype(
    normal=[("sep_conv_3x3", 0), ("sep_conv_3x3", 1),
            ("sep_conv_3x3", 0), ("sep_conv_3x3", 1),
            ("sep_conv_3x3", 1), ("skip_connect", 0),
            ("skip_connect", 0), ("dil_conv_3x3", 2)],
    normal_concat=[2, 3, 4, 5],
    reduce=[("max_pool_3x3", 0), ("max_pool_3x3", 1),
            ("skip_connect", 2), ("max_pool_3x3", 1),
            ("max_pool_3x3", 0), ("skip_connect", 2),
            ("skip_connect", 2), ("max_pool_3x3", 1)],
    reduce_concat=[2, 3, 4, 5],
)

BN_EPS = 1e-5

# Production setting per perf review: jnp.bfloat16 (MXU-native on v5e/v6e/v7x).
# Kept f32 here so the tight f32-reference tolerance below stays valid.
MATMUL_DTYPE = jnp.float32


# ----------------------------------------------------------------------------
# Static execution plan (shared by the packer and the kernel)
#
# plan: tuple over nodes; each node is a tuple of "groups"; a group is
#   (kind, srcs, w_slot, dw_slot, dil, op_ids)
# kind in {"sep", "dil", "skip"}.  A group with 2 srcs is a fused pair of
# parallel branches (block-diagonal 1x1 weights, channel-stacked dw planes).
# ----------------------------------------------------------------------------
def build_plan(meta):
    op_names, indices = meta["op_names"], meta["indices"]
    steps = len(op_names) // 2
    nodes = []
    w_slot, dw_slot = 1, 0          # slot 0 = fused preprocess0+preprocess1
    for i in range(steps):
        specs = [(op_names[2 * i], indices[2 * i], 2 * i),
                 (op_names[2 * i + 1], indices[2 * i + 1], 2 * i + 1)]
        groups = []
        fusable = (specs[0][0] == specs[1][0]
                   and specs[0][0] in ("sep_conv_3x3", "dil_conv_3x3"))
        if fusable:
            name = specs[0][0]
            srcs = (specs[0][1], specs[1][1])
            op_ids = (specs[0][2], specs[1][2])
            if name == "sep_conv_3x3":
                groups.append(("sep", srcs, w_slot, dw_slot, 1, op_ids))
                w_slot += 2; dw_slot += 2
            else:
                groups.append(("dil", srcs, w_slot, dw_slot, 2, op_ids))
                w_slot += 1; dw_slot += 1
        else:
            for name, src, oid in specs:
                if name == "skip_connect":
                    groups.append(("skip", (src,), -1, -1, 0, (oid,)))
                elif name == "sep_conv_3x3":
                    groups.append(("sep", (src,), w_slot, dw_slot, 1, (oid,)))
                    w_slot += 2; dw_slot += 2
                elif name == "dil_conv_3x3":
                    groups.append(("dil", (src,), w_slot, dw_slot, 2, (oid,)))
                    w_slot += 1; dw_slot += 1
                else:
                    raise NotImplementedError(name)
        nodes.append(tuple(groups))
    return tuple(nodes), w_slot, dw_slot


# ----------------------------------------------------------------------------
# Fused cell kernel (one grid step == NB batch elements)
#
# Layout inside the kernel: every state is (C, L) float32 with L = NB*HW on the
# 128-lane axis (each image's HW contiguous) and channels on sublanes.
#   1x1 conv + folded BN : y = W(G,G) @ x(G,L) + b(G,1)      (G = C or 2C)
#   depthwise 3x3 (dil d): 9 taps; each tap is a static lane rotation combined
#                          with a pack-time masked-weight plane (G,L).
# ----------------------------------------------------------------------------
def _cell_kernel(xin_ref, w11_ref, b11_ref, dwp_ref, o_ref, *,
                 C, W, L, plan, concat):
    f32 = jnp.float32
    Gmax = w11_ref.shape[1]

    def relu(x):
        return jnp.maximum(x, 0.0)

    def pw_bn(x, slot, gc):
        w = w11_ref[slot]                              # (Gmax, Gmax), BN folded
        if gc != Gmax:
            w = w[:gc, :gc]
        y = jnp.dot(w, x.astype(w.dtype), preferred_element_type=f32)
        b = b11_ref[slot]                              # (Gmax, 1)
        if gc != Gmax:
            b = b[:gc]
        return y + b

    def dw3x3(x, slot, gc, dil):
        acc = jnp.zeros((gc, L), f32)
        for kh in range(3):
            for kw in range(3):
                k = kh * 3 + kw
                off = dil * ((kh - 1) * W + (kw - 1))    # tap offset in lanes
                if off == 0:
                    tap = x
                else:
                    # tap[:, m] = x[:, m + off]; any lane that wraps (image or
                    # block boundary) is a zero-padding position => plane == 0.
                    tap = pltpu.roll(x, shift=(-off) % L, axis=1)
                plane = dwp_ref[slot, k]                 # (Gmax, L) masked weights
                if gc != Gmax:
                    plane = plane[:gc]
                acc = acc + tap * plane
        return acc

    # Fused preprocess0 + preprocess1 (ReLUConvBN 1x1, block-diagonal weights).
    x_all = xin_ref[...].astype(f32)                    # (2C, L)
    y = pw_bn(relu(x_all), 0, 2 * C)
    states = [y[:C], y[C:2 * C]]
    stacked = {(0, 1): y}                               # cached channel stacks

    def get_input(srcs):
        if len(srcs) == 1:
            return states[srcs[0]]
        if srcs not in stacked:
            stacked[srcs] = jnp.concatenate([states[s] for s in srcs], axis=0)
        return stacked[srcs]

    for node_id, node_groups in enumerate(plan, start=2):
        parts = []
        for (kind, srcs, w_slot, dw_slot, dil, _op_ids) in node_groups:
            if kind == "skip":
                parts.append(states[srcs[0]])
                continue
            gc = len(srcs) * C
            x = get_input(srcs)
            if kind == "sep":                 # ReLU-dw-pw-BN-ReLU-dw-pw-BN
                t = dw3x3(relu(x), dw_slot, gc, dil)
                t = pw_bn(t, w_slot, gc)
                t = dw3x3(relu(t), dw_slot + 1, gc, dil)
                t = pw_bn(t, w_slot + 1, gc)
            elif kind == "dil":               # ReLU-dw(dil=2)-pw-BN
                t = dw3x3(relu(x), dw_slot, gc, dil)
                t = pw_bn(t, w_slot, gc)
            else:
                raise NotImplementedError(kind)
            for b in range(len(srcs)):
                parts.append(t[b * C:(b + 1) * C])
        node_val = parts[0]
        for p in parts[1:]:
            node_val = node_val + p
        states.append(node_val)
        # TODO(synk): drop_path branch (training mode) not implemented.
        # Stream the finished node straight into its lane-dense output slab.
        if node_id in concat:
            pos = concat.index(node_id)
            o_ref[pos * C:(pos + 1) * C, :] = node_val.astype(o_ref.dtype)

    # Genotypes that concat s0/s1 directly (not the case for DARTS_V2).
    for pos, n in enumerate(concat):
        if n < 2:
            o_ref[pos * C:(pos + 1) * C, :] = states[n].astype(o_ref.dtype)


# ----------------------------------------------------------------------------
# Wrapper (NCHW in / NCHW out; only cheap reshapes/transposes outside)
# ----------------------------------------------------------------------------
def cell_forward_pallas(packed, plan, meta, s0_nchw, s1_nchw, drop_prob=0.0):
    del drop_prob  # eval mode: drop_path inactive
    w11, b11, dwp = packed
    N, Cpp, H, W = s0_nchw.shape
    _, Cp, H1, W1 = s1_nchw.shape
    assert (H, W) == (H1, W1)
    Gmax = w11.shape[1]
    C = Gmax // 2
    assert Cpp + Cp == 2 * C, "fused packing assumes C_prev_prev == C_prev == C"
    HW = H * W
    NB = dwp.shape[-1] // HW          # batch block baked into the packed planes
    L = NB * HW
    assert N % NB == 0, (N, NB)
    n_cat = len(meta["concat"])

    # Lane-dense 2D views: (channels, N*HW), each image's HW contiguous.
    s0 = s0_nchw.reshape(N, Cpp, HW).transpose(1, 0, 2).reshape(Cpp, N * HW)
    s1 = s1_nchw.reshape(N, Cp, HW).transpose(1, 0, 2).reshape(Cp, N * HW)
    xin = jnp.concatenate([s0, s1], axis=0)             # (2C, N*HW)

    # Crude VMEM guard (v7x has only 64 MiB phys / 32 MiB scoped default):
    # double-buffered I/O + resident weights/planes + ~12 live states.
    work_bytes = 4 * (2 * 2 * C * L + 2 * n_cat * C * L + 12 * C * L
                      + w11.size + b11.size + 2 * dwp.size)
    assert work_bytes < 24 * 1024 * 1024, (
        "per-step working set too large for VMEM; lower NB or tile HW")

    kernel = functools.partial(
        _cell_kernel, C=C, W=W, L=L,
        plan=plan, concat=tuple(meta["concat"]))

    out = pl.pallas_call(
        kernel,
        out_shape=jax.ShapeDtypeStruct((n_cat * C, N * HW), s0_nchw.dtype),
        grid_spec=pltpu.PrefetchScalarGridSpec(
            num_scalar_prefetch=0,
            grid=(N // NB,),   # one NB-image block per step; both TCs on v7x
            in_specs=[
                pl.BlockSpec((2 * C, L), lambda b: (0, b)),
                pl.BlockSpec(w11.shape, lambda b: (0, 0, 0)),        # resident
                pl.BlockSpec(b11.shape, lambda b: (0, 0, 0)),        # resident
                pl.BlockSpec(dwp.shape, lambda b: (0, 0, 0, 0)),     # resident
            ],
            out_specs=pl.BlockSpec((n_cat * C, L), lambda b: (0, b)),
        ),
        # NOTE(v7x): if xprof shows one TensorCore idle, switch to
        # pltpu.CORE_PARALLEL on this axis.
        compiler_params=pltpu.CompilerParams(
            dimension_semantics=("parallel",),
            vmem_limit_bytes=32 * 1024 * 1024),
    )(xin, w11, b11, dwp)

    return (out.reshape(n_cat * C, N, HW)
               .transpose(1, 0, 2)
               .reshape(N, n_cat * C, H, W))


# ----------------------------------------------------------------------------
# Parameter init (torch-like raw tensors) + packing for the fused kernel
# ----------------------------------------------------------------------------
class KeyGen:
    def __init__(self, key):
        self._key = key

    def __call__(self):
        self._key, sub = jax.random.split(self._key)
        return sub


def _bn_fold(kg, C):
    gamma = jax.random.uniform(kg(), (C,), jnp.float32, 0.5, 1.5)
    beta = 0.1 * jax.random.normal(kg(), (C,), jnp.float32)
    mean = 0.1 * jax.random.normal(kg(), (C,), jnp.float32)
    var = jax.random.uniform(kg(), (C,), jnp.float32, 0.5, 1.5)
    scale = gamma / jnp.sqrt(var + BN_EPS)
    bias = beta - mean * scale
    return scale, bias


def _init_relu_conv_bn(kg, Cin, Cout):
    w = 0.1 * jax.random.normal(kg(), (Cin, Cout), jnp.float32)
    s, b = _bn_fold(kg, Cout)
    return {"w": w, "scale": s, "bias": b}


def _init_sep_conv(kg, C):
    p = {}
    p["dw1"] = 0.2 * jax.random.normal(kg(), (3, 3, C), jnp.float32)
    p["pw1"] = 0.2 * jax.random.normal(kg(), (C, C), jnp.float32)
    p["s1"], p["b1"] = _bn_fold(kg, C)
    p["dw2"] = 0.2 * jax.random.normal(kg(), (3, 3, C), jnp.float32)
    p["pw2"] = 0.2 * jax.random.normal(kg(), (C, C), jnp.float32)
    p["s2"], p["b2"] = _bn_fold(kg, C)
    return p


def _init_dil_conv(kg, C):
    p = {}
    p["dw"] = 0.2 * jax.random.normal(kg(), (3, 3, C), jnp.float32)
    p["pw"] = 0.2 * jax.random.normal(kg(), (C, C), jnp.float32)
    p["s"], p["b"] = _bn_fold(kg, C)
    return p


OP_INIT = {
    "sep_conv_3x3": _init_sep_conv,
    "dil_conv_3x3": _init_dil_conv,
    "skip_connect": lambda kg, C: {},
}


def init_cell(key, genotype, C_prev_prev, C_prev, C,
              reduction=False, reduction_prev=False):
    assert not reduction and not reduction_prev, \
        "this synthetic instantiation uses the normal cell (stride-1 ops)"
    kg = KeyGen(key)
    op_names, indices = zip(*genotype.normal)
    concat = genotype.normal_concat
    params = {
        "preprocess0": _init_relu_conv_bn(kg, C_prev_prev, C),
        "preprocess1": _init_relu_conv_bn(kg, C_prev, C),
        "ops": [OP_INIT[name](kg, C) for name in op_names],
    }
    meta = {"op_names": op_names, "indices": indices,
            "concat": list(concat), "steps": len(op_names) // 2}
    return params, meta


def _make_tap_masks(H, W):
    """(2, 9, H*W) f32 masks implementing zero padding for dilation 1 and 2."""
    hh = jnp.repeat(jnp.arange(H), W)
    ww = jnp.tile(jnp.arange(W), H)
    rows = []
    for dil in (1, 2):
        for kh in range(3):
            for kw in range(3):
                dh = (kh - 1) * dil
                dw = (kw - 1) * dil
                valid = ((hh + dh >= 0) & (hh + dh < H) &
                         (ww + dw >= 0) & (ww + dw < W))
                rows.append(valid.astype(jnp.float32))
    return jnp.stack(rows).reshape(2, 9, H * W)


def pack_cell_params(params, meta, C, H, W, NB, matmul_dtype=MATMUL_DTYPE):
    """Pack weights in kernel-slot order following the fused execution plan.

    w11: (n_w, 2C, 2C)  1x1 weights, block-diagonal for fused branch pairs,
                        eval-mode BN scale folded in, zero-padded for g=1 slots.
    b11: (n_w, 2C, 1)   folded BN biases (f32).
    dwp: (n_dw, 9, 2C, NB*HW) masked-weight planes: plane[k] = w[:,k] * mask[k],
                        so each dw tap is a single multiply-add in the kernel.
    """
    plan, n_w, n_dw = build_plan(meta)
    Gmax = 2 * C
    HW = H * W
    masks = jnp.tile(_make_tap_masks(H, W), (1, 1, NB))     # (2, 9, NB*HW)

    w11 = [None] * n_w
    b11 = [None] * n_w
    dwp = [None] * n_dw

    def fold(w, scale, bias):                    # w: (Cin, Cout)
        assert w.shape == (C, C), \
            "fused packing assumes C_prev_prev == C_prev == C"
        return w.T * scale[:, None], bias[:, None]   # (Cout, Cin), (Cout, 1)

    def put_1x1(slot, folded):                   # folded: list of (w, b)
        g = len(folded)
        rows = []
        for r in range(g):
            rows.append(jnp.concatenate(
                [folded[r][0] if c == r else jnp.zeros((C, C), jnp.float32)
                 for c in range(g)], axis=1))
        wbd = jnp.concatenate(rows, axis=0)                      # (gC, gC)
        bbd = jnp.concatenate([f[1] for f in folded], axis=0)    # (gC, 1)
        w11[slot] = jnp.zeros((Gmax, Gmax), jnp.float32).at[:g * C, :g * C].set(wbd)
        b11[slot] = jnp.zeros((Gmax, 1), jnp.float32).at[:g * C].set(bbd)

    def put_dw(slot, dws, dil):                  # dws: list of (3, 3, C)
        g = len(dws)
        wk = jnp.concatenate([d.reshape(9, C) for d in dws], axis=1)   # (9, gC)
        planes = wk[:, :, None] * masks[0 if dil == 1 else 1][:, None, :]
        dwp[slot] = jnp.pad(planes, ((0, 0), (0, Gmax - g * C), (0, 0)))

    p0, p1 = params["preprocess0"], params["preprocess1"]
    put_1x1(0, [fold(p0["w"], p0["scale"], p0["bias"]),
                fold(p1["w"], p1["scale"], p1["bias"])])

    ops = params["ops"]
    for node_groups in plan:
        for (kind, _srcs, w_slot, dw_slot, dil, op_ids) in node_groups:
            if kind == "skip":
                continue
            ps = [ops[oid] for oid in op_ids]
            if kind == "sep":
                put_dw(dw_slot, [p["dw1"] for p in ps], dil)
                put_1x1(w_slot, [fold(p["pw1"], p["s1"], p["b1"]) for p in ps])
                put_dw(dw_slot + 1, [p["dw2"] for p in ps], dil)
                put_1x1(w_slot + 1, [fold(p["pw2"], p["s2"], p["b2"]) for p in ps])
            elif kind == "dil":
                put_dw(dw_slot, [p["dw"] for p in ps], dil)
                put_1x1(w_slot, [fold(p["pw"], p["s"], p["b"]) for p in ps])

    packed = (jnp.stack(w11).astype(matmul_dtype),   # matmul operands
              jnp.stack(b11),                        # f32 biases
              jnp.stack(dwp))                        # f32 masked planes (VPU)
    return packed, plan


# ----------------------------------------------------------------------------
# Pure-JAX (NCHW) reference of the eval-mode Cell forward, for validation
# ----------------------------------------------------------------------------
_HI = lax.Precision.HIGHEST


def _ref_conv1x1_bn(x, w, scale, bias):
    y = jnp.einsum("nchw,cd->ndhw", x, w, precision=_HI)
    return y * scale[None, :, None, None] + bias[None, :, None, None]


def _ref_relu_conv_bn_1x1(x, p):
    return _ref_conv1x1_bn(jnp.maximum(x, 0.0), p["w"], p["scale"], p["bias"])


def _ref_dw3x3(x, wdw, pad, dil):
    x = jnp.maximum(x, 0.0)
    N, C, H, W = x.shape
    xp = jnp.pad(x, ((0, 0), (0, 0), (pad, pad), (pad, pad)))
    acc = jnp.zeros_like(x)
    for kh in range(3):
        for kw in range(3):
            tap = xp[:, :, kh * dil:kh * dil + H, kw * dil:kw * dil + W]
            acc = acc + tap * wdw[kh, kw][None, :, None, None]
    return acc


def _ref_sep_conv(x, p):
    t = _ref_dw3x3(x, p["dw1"], 1, 1)
    t = _ref_conv1x1_bn(t, p["pw1"], p["s1"], p["b1"])
    t = _ref_dw3x3(t, p["dw2"], 1, 1)
    return _ref_conv1x1_bn(t, p["pw2"], p["s2"], p["b2"])


def _ref_dil_conv(x, p):
    t = _ref_dw3x3(x, p["dw"], 2, 2)
    return _ref_conv1x1_bn(t, p["pw"], p["s"], p["b"])


def cell_forward_reference(params, meta, s0, s1):
    s0 = _ref_relu_conv_bn_1x1(s0, params["preprocess0"])
    s1 = _ref_relu_conv_bn_1x1(s1, params["preprocess1"])
    states = [s0, s1]
    for i in range(meta["steps"]):
        hs = []
        for j in (0, 1):
            name = meta["op_names"][2 * i + j]
            src = states[meta["indices"][2 * i + j]]
            p = params["ops"][2 * i + j]
            if name == "sep_conv_3x3":
                hs.append(_ref_sep_conv(src, p))
            elif name == "dil_conv_3x3":
                hs.append(_ref_dil_conv(src, p))
            elif name == "skip_connect":
                hs.append(src)
        states.append(hs[0] + hs[1])
    return jnp.concatenate([states[i] for i in meta["concat"]], axis=1)


# ----------------------------------------------------------------------------
# Main
# ----------------------------------------------------------------------------
if __name__ == "__main__":
    key = jax.random.PRNGKey(0)
    k_param, k_s0, k_s1 = jax.random.split(key, 3)

    # Small shapes; N=8 with NB=4 exercises the batch-blocked grid (grid=(2,)).
    N, H, W = 8, 16, 16
    C_prev_prev, C_prev, C = 8, 8, 8
    NB = 4

    params, meta = init_cell(k_param, DARTS_V2, C_prev_prev, C_prev, C,
                             reduction=False, reduction_prev=False)
    packed, plan = pack_cell_params(params, meta, C, H, W, NB)

    s0 = jax.random.normal(k_s0, (N, C_prev_prev, H, W), jnp.float32)
    s1 = jax.random.normal(k_s1, (N, C_prev, H, W), jnp.float32)

    cell_fn = jax.jit(lambda a, b: cell_forward_pallas(packed, plan, meta, a, b))
    out = jax.block_until_ready(cell_fn(s0, s1))

    expected_shape = (N, C * len(meta["concat"]), H, W)
    assert out.shape == expected_shape, (out.shape, expected_shape)
    assert bool(jnp.all(jnp.isfinite(out)))

    ref = cell_forward_reference(params, meta, s0, s1)
    max_err = float(jnp.max(jnp.abs(out - ref)))
    # Kernel matmuls run at default MXU precision (f32 operands here); with
    # MATMUL_DTYPE = bfloat16 (production setting) loosen atol to ~2e-2.
    assert bool(jnp.allclose(out, ref, rtol=5e-2, atol=5e-3)), max_err

    print("KERNEL_OK")
</pallas_src>

<mosaic_0001>
module attributes {stable_mosaic.version = 11 : i64} {
  func.func @_cell_kernel(%arg0: i32, %arg1: memref<16x1024xf32, #tpu.memory_space<vmem>>, %arg2: memref<8x16x16xf32, #tpu.memory_space<vmem>>, %arg3: memref<8x16x1xf32, #tpu.memory_space<vmem>>, %arg4: memref<7x9x16x1024xf32, #tpu.memory_space<vmem>>, %arg5: memref<32x1024xf32, #tpu.memory_space<vmem>>) attributes {dimension_semantics = [#tpu.dimension_semantics<parallel>], iteration_bounds = array<i64: 2>, scalar_prefetch = 0 : i64, scratch_operands = 0 : i64, tpu.core_type = #tpu.core_type<tc>, window_params = [{transform_indices = @transform_0, window_bounds = array<i64: 16, 1024>}, {pipeline_mode = #tpu.pipeline_mode<synchronous>, transform_indices = @transform_1, window_bounds = array<i64: 8, 16, 16>}, {pipeline_mode = #tpu.pipeline_mode<synchronous>, transform_indices = @transform_2, window_bounds = array<i64: 8, 16, 1>}, {pipeline_mode = #tpu.pipeline_mode<synchronous>, transform_indices = @transform_3, window_bounds = array<i64: 7, 9, 16, 1024>}, {transform_indices = @transform_4, window_bounds = array<i64: 32, 1024>}]} {
    %c0 = arith.constant 0 : index
    %c0_0 = arith.constant 0 : index
    %0 = vector.load %arg1[%c0, %c0_0] : memref<16x1024xf32, #tpu.memory_space<vmem>>, vector<16x1024xf32>
    %cst = arith.constant 0.000000e+00 : f32
    %1 = vector.broadcast %cst : f32 to vector<16x1024xf32>
    %2 = arith.maximumf %0, %1 : vector<16x1024xf32>
    %c0_1 = arith.constant 0 : index
    %c0_2 = arith.constant 0 : index
    %c0_3 = arith.constant 0 : index
    %3 = vector.load %arg2[%c0_1, %c0_2, %c0_3] : memref<8x16x16xf32, #tpu.memory_space<vmem>>, vector<1x16x16xf32>
    %4 = vector.shape_cast %3 : vector<1x16x16xf32> to vector<16x16xf32>
    %cst_4 = arith.constant dense<0.000000e+00> : vector<16x1024xf32>
    %5 = tpu.matmul %4, %2, %cst_4 {dimension_numbers = #tpu.dot_dimension_numbers<[1], [0], [0], [1], [0, 0, 1, 1], [], []>} : vector<16x16xf32>, vector<16x1024xf32>, vector<16x1024xf32> -> vector<16x1024xf32>
    %c0_5 = arith.constant 0 : index
    %c0_6 = arith.constant 0 : index
    %c0_7 = arith.constant 0 : index
    %6 = vector.load %arg3[%c0_5, %c0_6, %c0_7] : memref<8x16x1xf32, #tpu.memory_space<vmem>>, vector<1x16x1xf32>
    %7 = vector.shape_cast %6 : vector<1x16x1xf32> to vector<16x1xf32>
    %8 = vector.broadcast %7 : vector<16x1xf32> to vector<16x1024xf32>
    %9 = arith.addf %5, %8 : vector<16x1024xf32>
    %10 = vector.extract_strided_slice %9 {offsets = [0, 0], sizes = [8, 1024], strides = [1, 1]} : vector<16x1024xf32> to vector<8x1024xf32>
    %11 = vector.extract_strided_slice %9 {offsets = [8, 0], sizes = [8, 1024], strides = [1, 1]} : vector<16x1024xf32> to vector<8x1024xf32>
    %cst_8 = arith.constant 0.000000e+00 : f32
    %12 = vector.broadcast %cst_8 : f32 to vector<16x1024xf32>
    %13 = arith.maximumf %9, %12 : vector<16x1024xf32>
    %cst_9 = arith.constant 0.000000e+00 : f32
    %14 = vector.broadcast %cst_9 : f32 to vector<16x1024xf32>
    %c17_i32 = arith.constant 17 : i32
    %15 = tpu.dynamic_rotate %13 by %c17_i32 dim 1 : vector<16x1024xf32>, i32 -> vector<16x1024xf32>
    %c0_10 = arith.constant 0 : index
    %c0_11 = arith.constant 0 : index
    %c0_12 = arith.constant 0 : index
    %c0_13 = arith.constant 0 : index
    %16 = vector.load %arg4[%c0_10, %c0_11, %c0_12, %c0_13] : memref<7x9x16x1024xf32, #tpu.memory_space<vmem>>, vector<1x1x16x1024xf32>
    %17 = vector.shape_cast %16 : vector<1x1x16x1024xf32> to vector<16x1024xf32>
    %18 = arith.mulf %15, %17 : vector<16x1024xf32>
    %19 = arith.addf %14, %18 : vector<16x1024xf32>
    %c16_i32 = arith.constant 16 : i32
    %20 = tpu.dynamic_rotate %13 by %c16_i32 dim 1 : vector<16x1024xf32>, i32 -> vector<16x1024xf32>
    %c0_14 = arith.constant 0 : index
    %c1 = arith.constant 1 : index
    %c0_15 = arith.constant 0 : index
    %c0_16 = arith.constant 0 : index
    %21 = vector.load %arg4[%c0_14, %c1, %c0_15, %c0_16] : memref<7x9x16x1024xf32, #tpu.memory_space<vmem>>, vector<1x1x16x1024xf32>
    %22 = vector.shape_cast %21 : vector<1x1x16x1024xf32> to vector<16x1024xf32>
    %23 = arith.mulf %20, %22 : vector<16x1024xf32>
    %24 = arith.addf %19, %23 : vector<16x1024xf32>
    %c15_i32 = arith.constant 15 : i32
    %25 = tpu.dynamic_rotate %13 by %c15_i32 dim 1 : vector<16x1024xf32>, i32 -> vector<16x1024xf32>
    %c0_17 = arith.constant 0 : index
    %c2 = arith.constant 2 : index
    %c0_18 = arith.constant 0 : index
    %c0_19 = arith.constant 0 : index
    %26 = vector.load %arg4[%c0_17, %c2, %c0_18, %c0_19] : memref<7x9x16x1024xf32, #tpu.memory_space<vmem>>, vector<1x1x16x1024xf32>
    %27 = vector.shape_cast %26 : vector<1x1x16x1024xf32> to vector<16x1024xf32>
    %28 = arith.mulf %25, %27 : vector<16x1024xf32>
    %29 = arith.addf %24, %28 : vector<16x1024xf32>
    %c1_i32 = arith.constant 1 : i32
    %30 = tpu.dynamic_rotate %13 by %c1_i32 dim 1 : vector<16x1024xf32>, i32 -> vector<16x1024xf32>
    %c0_20 = arith.constant 0 : index
    %c3 = arith.constant 3 : index
    %c0_21 = arith.constant 0 : index
    %c0_22 = arith.constant 0 : index
    %31 = vector.load %arg4[%c0_20, %c3, %c0_21, %c0_22] : memref<7x9x16x1024xf32, #tpu.memory_space<vmem>>, vector<1x1x16x1024xf32>
    %32 = vector.shape_cast %31 : vector<1x1x16x1024xf32> to vector<16x1024xf32>
    %33 = arith.mulf %30, %32 : vector<16x1024xf32>
    %34 = arith.addf %29, %33 : vector<16x1024xf32>
    %c0_23 = arith.constant 0 : index
    %c4 = arith.constant 4 : index
    %c0_24 = arith.constant 0 : index
    %c0_25 = arith.constant 0 : index
    %35 = vector.load %arg4[%c0_23, %c4, %c0_24, %c0_25] : memref<7x9x16x1024xf32, #tpu.memory_space<vmem>>, vector<1x1x16x1024xf32>
    %36 = vector.shape_cast %35 : vector<1x1x16x1024xf32> to vector<16x1024xf32>
    %37 = arith.mulf %13, %36 : vector<16x1024xf32>
    %38 = arith.addf %34, %37 : vector<16x1024xf32>
    %c1023_i32 = arith.constant 1023 : i32
    %39 = tpu.dynamic_rotate %13 by %c1023_i32 dim 1 : vector<16x1024xf32>, i32 -> vector<16x1024xf32>
    %c0_26 = arith.constant 0 : index
    %c5 = arith.constant 5 : index
    %c0_27 = arith.constant 0 : index
    %c0_28 = arith.constant 0 : index
    %40 = vector.load %arg4[%c0_26, %c5, %c0_27, %c0_28] : memref<7x9x16x1024xf32, #tpu.memory_space<vmem>>, vector<1x1x16x1024xf32>
    %41 = vector.shape_cast %40 : vector<1x1x16x1024xf32> to vector<16x1024xf32>
    %42 = arith.mulf %39, %41 : vector<16x1024xf32>
    %43 = arith.addf %38, %42 : vector<16x1024xf32>
    %c1009_i32 = arith.constant 1009 : i32
    %44 = tpu.dynamic_rotate %13 by %c1009_i32 dim 1 : vector<16x1024xf32>, i32 -> vector<16x1024xf32>
    %c0_29 = arith.constant 0 : index
    %c6 = arith.constant 6 : index
    %c0_30 = arith.constant 0 : index
    %c0_31 = arith.constant 0 : index
    %45 = vector.load %arg4[%c0_29, %c6, %c0_30, %c0_31] : memref<7x9x16x1024xf32, #tpu.memory_space<vmem>>, vector<1x1x16x1024xf32>
    %46 = vector.shape_cast %45 : vector<1x1x16x1024xf32> to vector<16x1024xf32>
    %47 = arith.mulf %44, %46 : vector<16x1024xf32>
    %48 = arith.addf %43, %47 : vector<16x1024xf32>
    %c1008_i32 = arith.constant 1008 : i32
    %49 = tpu.dynamic_rotate %13 by %c1008_i32 dim 1 : vector<16x1024xf32>, i32 -> vector<16x1024xf32>
    %c0_32 = arith.constant 0 : index
    %c7 = arith.constant 7 : index
    %c0_33 = arith.constant 0 : index
    %c0_34 = arith.constant 0 : index
    %50 = vector.load %arg4[%c0_32, %c7, %c0_33, %c0_34] : memref<7x9x16x1024xf32, #tpu.memory_space<vmem>>, vector<1x1x16x1024xf32>
    %51 = vector.shape_cast %50 : vector<1x1x16x1024xf32> to vector<16x1024xf32>
    %52 = arith.mulf %49, %51 : vector<16x1024xf32>
    %53 = arith.addf %48, %52 : vector<16x1024xf32>
    %c1007_i32 = arith.constant 1007 : i32
    %54 = tpu.dynamic_rotate %13 by %c1007_i32 dim 1 : vector<16x1024xf32>, i32 -> vector<16x1024xf32>
    %c0_35 = arith.constant 0 : index
    %c8 = arith.constant 8 : index
    %c0_36 = arith.constant 0 : index
    %c0_37 = arith.constant 0 : index
    %55 = vector.load %arg4[%c0_35, %c8, %c0_36, %c0_37] : memref<7x9x16x1024xf32, #tpu.memory_space<vmem>>, vector<1x1x16x1024xf32>
    %56 = vector.shape_cast %55 : vector<1x1x16x1024xf32> to vector<16x1024xf32>
    %57 = arith.mulf %54, %56 : vector<16x1024xf32>
    %58 = arith.addf %53, %57 : vector<16x1024xf32>
    %c1_38 = arith.constant 1 : index
    %c0_39 = arith.constant 0 : index
    %c0_40 = arith.constant 0 : index
    %59 = vector.load %arg2[%c1_38, %c0_39, %c0_40] : memref<8x16x16xf32, #tpu.memory_space<vmem>>, vector<1x16x16xf32>
    %60 = vector.shape_cast %59 : vector<1x16x16xf32> to vector<16x16xf32>
    %cst_41 = arith.constant dense<0.000000e+00> : vector<16x1024xf32>
    %61 = tpu.matmul %60, %58, %cst_41 {dimension_numbers = #tpu.dot_dimension_numbers<[1], [0], [0], [1], [0, 0, 1, 1], [], []>} : vector<16x16xf32>, vector<16x1024xf32>, vector<16x1024xf32> -> vector<16x1024xf32>
    %c1_42 = arith.constant 1 : index
    %c0_43 = arith.constant 0 : index
    %c0_44 = arith.constant 0 : index
    %62 = vector.load %arg3[%c1_42, %c0_43, %c0_44] : memref<8x16x1xf32, #tpu.memory_space<vmem>>, vector<1x16x1xf32>
    %63 = vector.shape_cast %62 : vector<1x16x1xf32> to vector<16x1xf32>
    %64 = vector.broadcast %63 : vector<16x1xf32> to vector<16x1024xf32>
    %65 = arith.addf %61, %64 : vector<16x1024xf32>
    %cst_45 = arith.constant 0.000000e+00 : f32
    %66 = vector.broadcast %cst_45 : f32 to vector<16x1024xf32>
    %67 = arith.maximumf %65, %66 : vector<16x1024xf32>
    %cst_46 = arith.constant 0.000000e+00 : f32
    %68 = vector.broadcast %cst_46 : f32 to vector<16x1024xf32>
    %c17_i32_47 = arith.constant 17 : i32
    %69 = tpu.dynamic_rotate %67 by %c17_i32_47 dim 1 : vector<16x1024xf32>, i32 -> vector<16x1024xf32>
    %c1_48 = arith.constant 1 : index
    %c0_49 = arith.constant 0 : index
    %c0_50 = arith.constant 0 : index
    %c0_51 = arith.constant 0 : index
    %70 = vector.load %arg4[%c1_48, %c0_49, %c0_50, %c0_51] : memref<7x9x16x1024xf32, #tpu.memory_space<vmem>>, vector<1x1x16x1024xf32>
    %71 = vector.shape_cast %70 : vector<1x1x16x1024xf32> to vector<16x1024xf32>
    %72 = arith.mulf %69, %71 : vector<16x1024xf32>
    %73 = arith.addf %68, %72 : vector<16x1024xf32>
    %c16_i32_52 = arith.constant 16 : i32
    %74 = tpu.dynamic_rotate %67 by %c16_i32_52 dim 1 : vector<16x1024xf32>, i32 -> vector<16x1024xf32>
    %c1_53 = arith.constant 1 : index
    %c1_54 = arith.constant 1 : index
    %c0_55 = arith.constant 0 : index
    %c0_56 = arith.constant 0 : index
    %75 = vector.load %arg4[%c1_53, %c1_54, %c0_55, %c0_56] : memref<7x9x16x1024xf32, #tpu.memory_space<vmem>>, vector<1x1x16x1024xf32>
    %76 = vector.shape_cast %75 : vector<1x1x16x1024xf32> to vector<16x1024xf32>
    %77 = arith.mulf %74, %76 : vector<16x1024xf32>
    %78 = arith.addf %73, %77 : vector<16x1024xf32>
    %c15_i32_57 = arith.constant 15 : i32
    %79 = tpu.dynamic_rotate %67 by %c15_i32_57 dim 1 : vector<16x1024xf32>, i32 -> vector<16x1024xf32>
    %c1_58 = arith.constant 1 : index
    %c2_59 = arith.constant 2 : index
    %c0_60 = arith.constant 0 : index
    %c0_61 = arith.constant 0 : index
    %80 = vector.load %arg4[%c1_58, %c2_59, %c0_60, %c0_61] : memref<7x9x16x1024xf32, #tpu.memory_space<vmem>>, vector<1x1x16x1024xf32>
    %81 = vector.shape_cast %80 : vector<1x1x16x1024xf32> to vector<16x1024xf32>
    %82 = arith.mulf %79, %81 : vector<16x1024xf32>
    %83 = arith.addf %78, %82 : vector<16x1024xf32>
    %c1_i32_62 = arith.constant 1 : i32
    %84 = tpu.dynamic_rotate %67 by %c1_i32_62 dim 1 : vector<16x1024xf32>, i32 -> vector<16x1024xf32>
    %c1_63 = arith.constant 1 : index
    %c3_64 = arith.constant 3 : index
    %c0_65 = arith.constant 0 : index
    %c0_66 = arith.constant 0 : index
    %85 = vector.load %arg4[%c1_63, %c3_64, %c0_65, %c0_66] : memref<7x9x16x1024xf32, #tpu.memory_space<vmem>>, vector<1x1x16x1024xf32>
    %86 = vector.shape_cast %85 : vector<1x1x16x1024xf32> to vector<16x1024xf32>
    %87 = arith.mulf %84, %86 : vector<16x1024xf32>
    %88 = arith.addf %83, %87 : vector<16x1024xf32>
    %c1_67 = arith.constant 1 : index
    %c4_68 = arith.constant 4 : index
    %c0_69 = arith.constant 0 : index
    %c0_70 = arith.constant 0 : index
    %89 = vector.load %arg4[%c1_67, %c4_68, %c0_69, %c0_70] : memref<7x9x16x1024xf32, #tpu.memory_space<vmem>>, vector<1x1x16x1024xf32>
    %90 = vector.shape_cast %89 : vector<1x1x16x1024xf32> to vector<16x1024xf32>
    %91 = arith.mulf %67, %90 : vector<16x1024xf32>
    %92 = arith.addf %88, %91 : vector<16x1024xf32>
    %c1023_i32_71 = arith.constant 1023 : i32
    %93 = tpu.dynamic_rotate %67 by %c1023_i32_71 dim 1 : vector<16x1024xf32>, i32 -> vector<16x1024xf32>
    %c1_72 = arith.constant 1 : index
    %c5_73 = arith.constant 5 : index
    %c0_74 = arith.constant 0 : index
    %c0_75 = arith.constant 0 : index
    %94 = vector.load %arg4[%c1_72, %c5_73, %c0_74, %c0_75] : memref<7x9x16x1024xf32, #tpu.memory_space<vmem>>, vector<1x1x16x1024xf32>
    %95 = vector.shape_cast %94 : vector<1x1x16x1024xf32> to vector<16x1024xf32>
    %96 = arith.mulf %93, %95 : vector<16x1024xf32>
    %97 = arith.addf %92, %96 : vector<16x1024xf32>
    %c1009_i32_76 = arith.constant 1009 : i32
    %98 = tpu.dynamic_rotate %67 by %c1009_i32_76 dim 1 : vector<16x1024xf32>, i32 -> vector<16x1024xf32>
    %c1_77 = arith.constant 1 : index
    %c6_78 = arith.constant 6 : index
    %c0_79 = arith.constant 0 : index
    %c0_80 = arith.constant 0 : index
    %99 = vector.load %arg4[%c1_77, %c6_78, %c0_79, %c0_80] : memref<7x9x16x1024xf32, #tpu.memory_space<vmem>>, vector<1x1x16x1024xf32>
    %100 = vector.shape_cast %99 : vector<1x1x16x1024xf32> to vector<16x1024xf32>
    %101 = arith.mulf %98, %100 : vector<16x1024xf32>
    %102 = arith.addf %97, %101 : vector<16x1024xf32>
    %c1008_i32_81 = arith.constant 1008 : i32
    %103 = tpu.dynamic_rotate %67 by %c1008_i32_81 dim 1 : vector<16x1024xf32>, i32 -> vector<16x1024xf32>
    %c1_82 = arith.constant 1 : index
    %c7_83 = arith.constant 7 : index
    %c0_84 = arith.constant 0 : index
    %c0_85 = arith.constant 0 : index
    %104 = vector.load %arg4[%c1_82, %c7_83, %c0_84, %c0_85] : memref<7x9x16x1024xf32, #tpu.memory_space<vmem>>, vector<1x1x16x1024xf32>
    %105 = vector.shape_cast %104 : vector<1x1x16x1024xf32> to vector<16x1024xf32>
    %106 = arith.mulf %103, %105 : vector<16x1024xf32>
    %107 = arith.addf %102, %106 : vector<16x1024xf32>
    %c1007_i32_86 = arith.constant 1007 : i32
    %108 = tpu.dynamic_rotate %67 by %c1007_i32_86 dim 1 : vector<16x1024xf32>, i32 -> vector<16x1024xf32>
    %c1_87 = arith.constant 1 : index
    %c8_88 = arith.constant 8 : index
    %c0_89 = arith.constant 0 : index
    %c0_90 = arith.constant 0 : index
    %109 = vector.load %arg4[%c1_87, %c8_88, %c0_89, %c0_90] : memref<7x9x16x1024xf32, #tpu.memory_space<vmem>>, vector<1x1x16x1024xf32>
    %110 = vector.shape_cast %109 : vector<1x1x16x1024xf32> to vector<16x1024xf32>
    %111 = arith.mulf %108, %110 : vector<16x1024xf32>
    %112 = arith.addf %107, %111 : vector<16x1024xf32>
    %c2_91 = arith.constant 2 : index
    %c0_92 = arith.constant 0 : index
    %c0_93 = arith.constant 0 : index
    %113 = vector.load %arg2[%c2_91, %c0_92, %c0_93] : memref<8x16x16xf32, #tpu.memory_space<vmem>>, vector<1x16x16xf32>
    %114 = vector.shape_cast %113 : vector<1x16x16xf32> to vector<16x16xf32>
    %cst_94 = arith.constant dense<0.000000e+00> : vector<16x1024xf32>
    %115 = tpu.matmul %114, %112, %cst_94 {dimension_numbers = #tpu.dot_dimension_numbers<[1], [0], [0], [1], [0, 0, 1, 1], [], []>} : vector<16x16xf32>, vector<16x1024xf32>, vector<16x1024xf32> -> vector<16x1024xf32>
    %c2_95 = arith.constant 2 : index
    %c0_96 = arith.constant 0 : index
    %c0_97 = arith.constant 0 : index
    %116 = vector.load %arg3[%c2_95, %c0_96, %c0_97] : memref<8x16x1xf32, #tpu.memory_space<vmem>>, vector<1x16x1xf32>
    %117 = vector.shape_cast %116 : vector<1x16x1xf32> to vector<16x1xf32>
    %118 = vector.broadcast %117 : vector<16x1xf32> to vector<16x1024xf32>
    %119 = arith.addf %115, %118 : vector<16x1024xf32>
    %120 = vector.extract_strided_slice %119 {offsets = [0, 0], sizes = [8, 1024], strides = [1, 1]} : vector<16x1024xf32> to vector<8x1024xf32>
    %121 = vector.extract_strided_slice %119 {offsets = [8, 0], sizes = [8, 1024], strides = [1, 1]} : vector<16x1024xf32> to vector<8x1024xf32>
    %122 = arith.addf %120, %121 : vector<8x1024xf32>
    %c0_98 = arith.constant 0 : index
    %c0_99 = arith.constant 0 : index
    %123 = vector.load %arg5[%c0_98, %c0_99] : memref<32x1024xf32, #tpu.memory_space<vmem>>, vector<8x1024xf32>
    tpu.vector_store %arg5[%c0_98, %c0_99], %122 {strides = array<i32>} : memref<32x1024xf32, #tpu.memory_space<vmem>>, vector<8x1024xf32>,
    %cst_100 = arith.constant 0.000000e+00 : f32
    %124 = vector.broadcast %cst_100 : f32 to vector<16x1024xf32>
    %125 = arith.maximumf %9, %124 : vector<16x1024xf32>
    %cst_101 = arith.constant 0.000000e+00 : f32
    %126 = vector.broadcast %cst_101 : f32 to vector<16x1024xf32>
    %c17_i32_102 = arith.constant 17 : i32
    %127 = tpu.dynamic_rotate %125 by %c17_i32_102 dim 1 : vector<16x1024xf32>, i32 -> vector<16x1024xf32>
    %c2_103 = arith.constant 2 : index
    %c0_104 = arith.constant 0 : index
    %c0_105 = arith.constant 0 : index
    %c0_106 = arith.constant 0 : index
    %128 = vector.load %arg4[%c2_103, %c0_104, %c0_105, %c0_106] : memref<7x9x16x1024xf32, #tpu.memory_space<vmem>>, vector<1x1x16x1024xf32>
    %129 = vector.shape_cast %128 : vector<1x1x16x1024xf32> to vector<16x1024xf32>
    %130 = arith.mulf %127, %129 : vector<16x1024xf32>
    %131 = arith.addf %126, %130 : vector<16x1024xf32>
    %c16_i32_107 = arith.constant 16 : i32
    %132 = tpu.dynamic_rotate %125 by %c16_i32_107 dim 1 : vector<16x1024xf32>, i32 -> vector<16x1024xf32>
    %c2_108 = arith.constant 2 : index
    %c1_109 = arith.constant 1 : index
    %c0_110 = arith.constant 0 : index
    %c0_111 = arith.constant 0 : index
    %133 = vector.load %arg4[%c2_108, %c1_109, %c0_110, %c0_111] : memref<7x9x16x1024xf32, #tpu.memory_space<vmem>>, vector<1x1x16x1024xf32>
    %134 = vector.shape_cast %133 : vector<1x1x16x1024xf32> to vector<16x1024xf32>
    %135 = arith.mulf %132, %134 : vector<16x1024xf32>
    %136 = arith.addf %131, %135 : vector<16x1024xf32>
    %c15_i32_112 = arith.constant 15 : i32
    %137 = tpu.dynamic_rotate %125 by %c15_i32_112 dim 1 : vector<16x1024xf32>, i32 -> vector<16x1024xf32>
    %c2_113 = arith.constant 2 : index
    %c2_114 = arith.constant 2 : index
    %c0_115 = arith.constant 0 : index
    %c0_116 = arith.constant 0 : index
    %138 = vector.load %arg4[%c2_113, %c2_114, %c0_115, %c0_116] : memref<7x9x16x1024xf32, #tpu.memory_space<vmem>>, vector<1x1x16x1024xf32>
    %139 = vector.shape_cast %138 : vector<1x1x16x1024xf32> to vector<16x1024xf32>
    %140 = arith.mulf %137, %139 : vector<16x1024xf32>
    %141 = arith.addf %136, %140 : vector<16x1024xf32>
    %c1_i32_117 = arith.constant 1 : i32
    %142 = tpu.dynamic_rotate %125 by %c1_i32_117 dim 1 : vector<16x1024xf32>, i32 -> vector<16x1024xf32>
    %c2_118 = arith.constant 2 : index
    %c3_119 = arith.constant 3 : index
    %c0_120 = arith.constant 0 : index
    %c0_121 = arith.constant 0 : index
    %143 = vector.load %arg4[%c2_118, %c3_119, %c0_120, %c0_121] : memref<7x9x16x1024xf32, #tpu.memory_space<vmem>>, vector<1x1x16x1024xf32>
    %144 = vector.shape_cast %143 : vector<1x1x16x1024xf32> to vector<16x1024xf32>
    %145 = arith.mulf %142, %144 : vector<16x1024xf32>
    %146 = arith.addf %141, %145 : vector<16x1024xf32>
    %c2_122 = arith.constant 2 : index
    %c4_123 = arith.constant 4 : index
    %c0_124 = arith.constant 0 : index
    %c0_125 = arith.constant 0 : index
    %147 = vector.load %arg4[%c2_122, %c4_123, %c0_124, %c0_125] : memref<7x9x16x1024xf32, #tpu.memory_space<vmem>>, vector<1x1x16x1024xf32>
    %148 = vector.shape_cast %147 : vector<1x1x16x1024xf32> to vector<16x1024xf32>
    %149 = arith.mulf %125, %148 : vector<16x1024xf32>
    %150 = arith.addf %146, %149 : vector<16x1024xf32>
    %c1023_i32_126 = arith.constant 1023 : i32
    %151 = tpu.dynamic_rotate %125 by %c1023_i32_126 dim 1 : vector<16x1024xf32>, i32 -> vector<16x1024xf32>
    %c2_127 = arith.constant 2 : index
    %c5_128 = arith.constant 5 : index
    %c0_129 = arith.constant 0 : index
    %c0_130 = arith.constant 0 : index
    %152 = vector.load %arg4[%c2_127, %c5_128, %c0_129, %c0_130] : memref<7x9x16x1024xf32, #tpu.memory_space<vmem>>, vector<1x1x16x1024xf32>
    %153 = vector.shape_cast %152 : vector<1x1x16x1024xf32> to vector<16x1024xf32>
    %154 = arith.mulf %151, %153 : vector<16x1024xf32>
    %155 = arith.addf %150, %154 : vector<16x1024xf32>
    %c1009_i32_131 = arith.constant 1009 : i32
    %156 = tpu.dynamic_rotate %125 by %c1009_i32_131 dim 1 : vector<16x1024xf32>, i32 -> vector<16x1024xf32>
    %c2_132 = arith.constant 2 : index
    %c6_133 = arith.constant 6 : index
    %c0_134 = arith.constant 0 : index
    %c0_135 = arith.constant 0 : index
    %157 = vector.load %arg4[%c2_132, %c6_133, %c0_134, %c0_135] : memref<7x9x16x1024xf32, #tpu.memory_space<vmem>>, vector<1x1x16x1024xf32>
    %158 = vector.shape_cast %157 : vector<1x1x16x1024xf32> to vector<16x1024xf32>
    %159 = arith.mulf %156, %158 : vector<16x1024xf32>
    %160 = arith.addf %155, %159 : vector<16x1024xf32>
    %c1008_i32_136 = arith.constant 1008 : i32
    %161 = tpu.dynamic_rotate %125 by %c1008_i32_136 dim 1 : vector<16x1024xf32>, i32 -> vector<16x1024xf32>
    %c2_137 = arith.constant 2 : index
    %c7_138 = arith.constant 7 : index
    %c0_139 = arith.constant 0 : index
    %c0_140 = arith.constant 0 : index
    %162 = vector.load %arg4[%c2_137, %c7_138, %c0_139, %c0_140] : memref<7x9x16x1024xf32, #tpu.memory_space<vmem>>, vector<1x1x16x1024xf32>
    %163 = vector.shape_cast %162 : vector<1x1x16x1024xf32> to vector<16x1024xf32>
    %164 = arith.mulf %161, %163 : vector<16x1024xf32>
    %165 = arith.addf %160, %164 : vector<16x1024xf32>
    %c1007_i32_141 = arith.constant 1007 : i32
    %166 = tpu.dynamic_rotate %125 by %c1007_i32_141 dim 1 : vector<16x1024xf32>, i32 -> vector<16x1024xf32>
    %c2_142 = arith.constant 2 : index
    %c8_143 = arith.constant 8 : index
    %c0_144 = arith.constant 0 : index
    %c0_145 = arith.constant 0 : index
    %167 = vector.load %arg4[%c2_142, %c8_143, %c0_144, %c0_145] : memref<7x9x16x1024xf32, #tpu.memory_space<vmem>>, vector<1x1x16x1024xf32>
    %168 = vector.shape_cast %167 : vector<1x1x16x1024xf32> to vector<16x1024xf32>
    %169 = arith.mulf %166, %168 : vector<16x1024xf32>
    %170 = arith.addf %165, %169 : vector<16x1024xf32>
    %c3_146 = arith.constant 3 : index
    %c0_147 = arith.constant 0 : index
    %c0_148 = arith.constant 0 : index
    %171 = vector.load %arg2[%c3_146, %c0_147, %c0_148] : memref<8x16x16xf32, #tpu.memory_space<vmem>>, vector<1x16x16xf32>
    %172 = vector.shape_cast %171 : vector<1x16x16xf32> to vector<16x16xf32>
    %cst_149 = arith.constant dense<0.000000e+00> : vector<16x1024xf32>
    %173 = tpu.matmul %172, %170, %cst_149 {dimension_numbers = #tpu.dot_dimension_numbers<[1], [0], [0], [1], [0, 0, 1, 1], [], []>} : vector<16x16xf32>, vector<16x1024xf32>, vector<16x1024xf32> -> vector<16x1024xf32>
    %c3_150 = arith.constant 3 : index
    %c0_151 = arith.constant 0 : index
    %c0_152 = arith.constant 0 : index
    %174 = vector.load %arg3[%c3_150, %c0_151, %c0_152] : memref<8x16x1xf32, #tpu.memory_space<vmem>>, vector<1x16x1xf32>
    %175 = vector.shape_cast %174 : vector<1x16x1xf32> to vector<16x1xf32>
    %176 = vector.broadcast %175 : vector<16x1xf32> to vector<16x1024xf32>
    %177 = arith.addf %173, %176 : vector<16x1024xf32>
    %cst_153 = arith.constant 0.000000e+00 : f32
    %178 = vector.broadcast %cst_153 : f32 to vector<16x1024xf32>
    %179 = arith.maximumf %177, %178 : vector<16x1024xf32>
    %cst_154 = arith.constant 0.000000e+00 : f32
    %180 = vector.broadcast %cst_154 : f32 to vector<16x1024xf32>
    %c17_i32_155 = arith.constant 17 : i32
    %181 = tpu.dynamic_rotate %179 by %c17_i32_155 dim 1 : vector<16x1024xf32>, i32 -> vector<16x1024xf32>
    %c3_156 = arith.constant 3 : index
    %c0_157 = arith.constant 0 : index
    %c0_158 = arith.constant 0 : index
    %c0_159 = arith.constant 0 : index
    %182 = vector.load %arg4[%c3_156, %c0_157, %c0_158, %c0_159] : memref<7x9x16x1024xf32, #tpu.memory_space<vmem>>, vector<1x1x16x1024xf32>
    %183 = vector.shape_cast %182 : vector<1x1x16x1024xf32> to vector<16x1024xf32>
    %184 = arith.mulf %181, %183 : vector<16x1024xf32>
    %185 = arith.addf %180, %184 : vector<16x1024xf32>
    %c16_i32_160 = arith.constant 16 : i32
    %186 = tpu.dynamic_rotate %179 by %c16_i32_160 dim 1 : vector<16x1024xf32>, i32 -> vector<16x1024xf32>
    %c3_161 = arith.constant 3 : index
    %c1_162 = arith.constant 1 : index
    %c0_163 = arith.constant 0 : index
    %c0_164 = arith.constant 0 : index
    %187 = vector.load %arg4[%c3_161, %c1_162, %c0_163, %c0_164] : memref<7x9x16x1024xf32, #tpu.memory_space<vmem>>, vector<1x1x16x1024xf32>
    %188 = vector.shape_cast %187 : vector<1x1x16x1024xf32> to vector<16x1024xf32>
    %189 = arith.mulf %186, %188 : vector<16x1024xf32>
    %190 = arith.addf %185, %189 : vector<16x1024xf32>
    %c15_i32_165 = arith.constant 15 : i32
    %191 = tpu.dynamic_rotate %179 by %c15_i32_165 dim 1 : vector<16x1024xf32>, i32 -> vector<16x1024xf32>
    %c3_166 = arith.constant 3 : index
    %c2_167 = arith.constant 2 : index
    %c0_168 = arith.constant 0 : index
    %c0_169 = arith.constant 0 : index
    %192 = vector.load %arg4[%c3_166, %c2_167, %c0_168, %c0_169] : memref<7x9x16x1024xf32, #tpu.memory_space<vmem>>, vector<1x1x16x1024xf32>
    %193 = vector.shape_cast %192 : vector<1x1x16x1024xf32> to vector<16x1024xf32>
    %194 = arith.mulf %191, %193 : vector<16x1024xf32>
    %195 = arith.addf %190, %194 : vector<16x1024xf32>
    %c1_i32_170 = arith.constant 1 : i32
    %196 = tpu.dynamic_rotate %179 by %c1_i32_170 dim 1 : vector<16x1024xf32>, i32 -> vector<16x1024xf32>
    %c3_171 = arith.constant 3 : index
    %c3_172 = arith.constant 3 : index
    %c0_173 = arith.constant 0 : index
    %c0_174 = arith.constant 0 : index
    %197 = vector.load %arg4[%c3_171, %c3_172, %c0_173, %c0_174] : memref<7x9x16x1024xf32, #tpu.memory_space<vmem>>, vector<1x1x16x1024xf32>
    %198 = vector.shape_cast %197 : vector<1x1x16x1024xf32> to vector<16x1024xf32>
    %199 = arith.mulf %196, %198 : vector<16x1024xf32>
    %200 = arith.addf %195, %199 : vector<16x1024xf32>
    %c3_175 = arith.constant 3 : index
    %c4_176 = arith.constant 4 : index
    %c0_177 = arith.constant 0 : index
    %c0_178 = arith.constant 0 : index
    %201 = vector.load %arg4[%c3_175, %c4_176, %c0_177, %c0_178] : memref<7x9x16x1024xf32, #tpu.memory_space<vmem>>, vector<1x1x16x1024xf32>
    %202 = vector.shape_cast %201 : vector<1x1x16x1024xf32> to vector<16x1024xf32>
    %203 = arith.mulf %179, %202 : vector<16x1024xf32>
    %204 = arith.addf %200, %203 : vector<16x1024xf32>
    %c1023_i32_179 = arith.constant 1023 : i32
    %205 = tpu.dynamic_rotate %179 by %c1023_i32_179 dim 1 : vector<16x1024xf32>, i32 -> vector<16x1024xf32>
    %c3_180 = arith.constant 3 : index
    %c5_181 = arith.constant 5 : index
    %c0_182 = arith.constant 0 : index
    %c0_183 = arith.constant 0 : index
    %206 = vector.load %arg4[%c3_180, %c5_181, %c0_182, %c0_183] : memref<7x9x16x1024xf32, #tpu.memory_space<vmem>>, vector<1x1x16x1024xf32>
    %207 = vector.shape_cast %206 : vector<1x1x16x1024xf32> to vector<16x1024xf32>
    %208 = arith.mulf %205, %207 : vector<16x1024xf32>
    %209 = arith.addf %204, %208 : vector<16x1024xf32>
    %c1009_i32_184 = arith.constant 1009 : i32
    %210 = tpu.dynamic_rotate %179 by %c1009_i32_184 dim 1 : vector<16x1024xf32>, i32 -> vector<16x1024xf32>
    %c3_185 = arith.constant 3 : index
    %c6_186 = arith.constant 6 : index
    %c0_187 = arith.constant 0 : index
    %c0_188 = arith.constant 0 : index
    %211 = vector.load %arg4[%c3_185, %c6_186, %c0_187, %c0_188] : memref<7x9x16x1024xf32, #tpu.memory_space<vmem>>, vector<1x1x16x1024xf32>
    %212 = vector.shape_cast %211 : vector<1x1x16x1024xf32> to vector<16x1024xf32>
    %213 = arith.mulf %210, %212 : vector<16x1024xf32>
    %214 = arith.addf %209, %213 : vector<16x1024xf32>
    %c1008_i32_189 = arith.constant 1008 : i32
    %215 = tpu.dynamic_rotate %179 by %c1008_i32_189 dim 1 : vector<16x1024xf32>, i32 -> vector<16x1024xf32>
    %c3_190 = arith.constant 3 : index
    %c7_191 = arith.constant 7 : index
    %c0_192 = arith.constant 0 : index
    %c0_193 = arith.constant 0 : index
    %216 = vector.load %arg4[%c3_190, %c7_191, %c0_192, %c0_193] : memref<7x9x16x1024xf32, #tpu.memory_space<vmem>>, vector<1x1x16x1024xf32>
    %217 = vector.shape_cast %216 : vector<1x1x16x1024xf32> to vector<16x1024xf32>
    %218 = arith.mulf %215, %217 : vector<16x1024xf32>
    %219 = arith.addf %214, %218 : vector<16x1024xf32>
    %c1007_i32_194 = arith.constant 1007 : i32
    %220 = tpu.dynamic_rotate %179 by %c1007_i32_194 dim 1 : vector<16x1024xf32>, i32 -> vector<16x1024xf32>
    %c3_195 = arith.constant 3 : index
    %c8_196 = arith.constant 8 : index
    %c0_197 = arith.constant 0 : index
    %c0_198 = arith.constant 0 : index
    %221 = vector.load %arg4[%c3_195, %c8_196, %c0_197, %c0_198] : memref<7x9x16x1024xf32, #tpu.memory_space<vmem>>, vector<1x1x16x1024xf32>
    %222 = vector.shape_cast %221 : vector<1x1x16x1024xf32> to vector<16x1024xf32>
    %223 = arith.mulf %220, %222 : vector<16x1024xf32>
    %224 = arith.addf %219, %223 : vector<16x1024xf32>
    %c4_199 = arith.constant 4 : index
    %c0_200 = arith.constant 0 : index
    %c0_201 = arith.constant 0 : index
    %225 = vector.load %arg2[%c4_199, %c0_200, %c0_201] : memref<8x16x16xf32, #tpu.memory_space<vmem>>, vector<1x16x16xf32>
    %226 = vector.shape_cast %225 : vector<1x16x16xf32> to vector<16x16xf32>
    %cst_202 = arith.constant dense<0.000000e+00> : vector<16x1024xf32>
    %227 = tpu.matmul %226, %224, %cst_202 {dimension_numbers = #tpu.dot_dimension_numbers<[1], [0], [0], [1], [0, 0, 1, 1], [], []>} : vector<16x16xf32>, vector<16x1024xf32>, vector<16x1024xf32> -> vector<16x1024xf32>
    %c4_203 = arith.constant 4 : index
    %c0_204 = arith.constant 0 : index
    %c0_205 = arith.constant 0 : index
    %228 = vector.load %arg3[%c4_203, %c0_204, %c0_205] : memref<8x16x1xf32, #tpu.memory_space<vmem>>, vector<1x16x1xf32>
    %229 = vector.shape_cast %228 : vector<1x16x1xf32> to vector<16x1xf32>
    %230 = vector.broadcast %229 : vector<16x1xf32> to vector<16x1024xf32>
    %231 = arith.addf %227, %230 : vector<16x1024xf32>
    %232 = vector.extract_strided_slice %231 {offsets = [0, 0], sizes = [8, 1024], strides = [1, 1]} : vector<16x1024xf32> to vector<8x1024xf32>
    %233 = vector.extract_strided_slice %231 {offsets = [8, 0], sizes = [8, 1024], strides = [1, 1]} : vector<16x1024xf32> to vector<8x1024xf32>
    %234 = arith.addf %232, %233 : vector<8x1024xf32>
    %c8_206 = arith.constant 8 : index
    %c0_207 = arith.constant 0 : index
    %235 = vector.load %arg5[%c8_206, %c0_207] : memref<32x1024xf32, #tpu.memory_space<vmem>>, vector<8x1024xf32>
    tpu.vector_store %arg5[%c8_206, %c0_207], %234 {strides = array<i32>} : memref<32x1024xf32, #tpu.memory_space<vmem>>, vector<8x1024xf32>,
    %cst_208 = arith.constant 0.000000e+00 : f32
    %236 = vector.broadcast %cst_208 : f32 to vector<8x1024xf32>
    %237 = arith.maximumf %11, %236 : vector<8x1024xf32>
    %cst_209 = arith.constant 0.000000e+00 : f32
    %238 = vector.broadcast %cst_209 : f32 to vector<8x1024xf32>
    %c17_i32_210 = arith.constant 17 : i32
    %239 = tpu.dynamic_rotate %237 by %c17_i32_210 dim 1 : vector<8x1024xf32>, i32 -> vector<8x1024xf32>
    %c4_211 = arith.constant 4 : index
    %c0_212 = arith.constant 0 : index
    %c0_213 = arith.constant 0 : index
    %c0_214 = arith.constant 0 : index
    %240 = vector.load %arg4[%c4_211, %c0_212, %c0_213, %c0_214] : memref<7x9x16x1024xf32, #tpu.memory_space<vmem>>, vector<1x1x16x1024xf32>
    %241 = vector.shape_cast %240 : vector<1x1x16x1024xf32> to vector<16x1024xf32>
    %242 = vector.extract_strided_slice %241 {offsets = [0, 0], sizes = [8, 1024], strides = [1, 1]} : vector<16x1024xf32> to vector<8x1024xf32>
    %243 = arith.mulf %239, %242 : vector<8x1024xf32>
    %244 = arith.addf %238, %243 : vector<8x1024xf32>
    %c16_i32_215 = arith.constant 16 : i32
    %245 = tpu.dynamic_rotate %237 by %c16_i32_215 dim 1 : vector<8x1024xf32>, i32 -> vector<8x1024xf32>
    %c4_216 = arith.constant 4 : index
    %c1_217 = arith.constant 1 : index
    %c0_218 = arith.constant 0 : index
    %c0_219 = arith.constant 0 : index
    %246 = vector.load %arg4[%c4_216, %c1_217, %c0_218, %c0_219] : memref<7x9x16x1024xf32, #tpu.memory_space<vmem>>, vector<1x1x16x1024xf32>
    %247 = vector.shape_cast %246 : vector<1x1x16x1024xf32> to vector<16x1024xf32>
    %248 = vector.extract_strided_slice %247 {offsets = [0, 0], sizes = [8, 1024], strides = [1, 1]} : vector<16x1024xf32> to vector<8x1024xf32>
    %249 = arith.mulf %245, %248 : vector<8x1024xf32>
    %250 = arith.addf %244, %249 : vector<8x1024xf32>
    %c15_i32_220 = arith.constant 15 : i32
    %251 = tpu.dynamic_rotate %237 by %c15_i32_220 dim 1 : vector<8x1024xf32>, i32 -> vector<8x1024xf32>
    %c4_221 = arith.constant 4 : index
    %c2_222 = arith.constant 2 : index
    %c0_223 = arith.constant 0 : index
    %c0_224 = arith.constant 0 : index
    %252 = vector.load %arg4[%c4_221, %c2_222, %c0_223, %c0_224] : memref<7x9x16x1024xf32, #tpu.memory_space<vmem>>, vector<1x1x16x1024xf32>
    %253 = vector.shape_cast %252 : vector<1x1x16x1024xf32> to vector<16x1024xf32>
    %254 = vector.extract_strided_slice %253 {offsets = [0, 0], sizes = [8, 1024], strides = [1, 1]} : vector<16x1024xf32> to vector<8x1024xf32>
    %255 = arith.mulf %251, %254 : vector<8x1024xf32>
    %256 = arith.addf %250, %255 : vector<8x1024xf32>
    %c1_i32_225 = arith.constant 1 : i32
    %257 = tpu.dynamic_rotate %237 by %c1_i32_225 dim 1 : vector<8x1024xf32>, i32 -> vector<8x1024xf32>
    %c4_226 = arith.constant 4 : index
    %c3_227 = arith.constant 3 : index
    %c0_228 = arith.constant 0 : index
    %c0_229 = arith.constant 0 : index
    %258 = vector.load %arg4[%c4_226, %c3_227, %c0_228, %c0_229] : memref<7x9x16x1024xf32, #tpu.memory_space<vmem>>, vector<1x1x16x1024xf32>
    %259 = vector.shape_cast %258 : vector<1x1x16x1024xf32> to vector<16x1024xf32>
    %260 = vector.extract_strided_slice %259 {offsets = [0, 0], sizes = [8, 1024], strides = [1, 1]} : vector<16x1024xf32> to vector<8x1024xf32>
    %261 = arith.mulf %257, %260 : vector<8x1024xf32>
    %262 = arith.addf %256, %261 : vector<8x1024xf32>
    %c4_230 = arith.constant 4 : index
    %c4_231 = arith.constant 4 : index
    %c0_232 = arith.constant 0 : index
    %c0_233 = arith.constant 0 : index
    %263 = vector.load %arg4[%c4_230, %c4_231, %c0_232, %c0_233] : memref<7x9x16x1024xf32, #tpu.memory_space<vmem>>, vector<1x1x16x1024xf32>
    %264 = vector.shape_cast %263 : vector<1x1x16x1024xf32> to vector<16x1024xf32>
    %265 = vector.extract_strided_slice %264 {offsets = [0, 0], sizes = [8, 1024], strides = [1, 1]} : vector<16x1024xf32> to vector<8x1024xf32>
    %266 = arith.mulf %237, %265 : vector<8x1024xf32>
    %267 = arith.addf %262, %266 : vector<8x1024xf32>
    %c1023_i32_234 = arith.constant 1023 : i32
    %268 = tpu.dynamic_rotate %237 by %c1023_i32_234 dim 1 : vector<8x1024xf32>, i32 -> vector<8x1024xf32>
    %c4_235 = arith.constant 4 : index
    %c5_236 = arith.constant 5 : index
    %c0_237 = arith.constant 0 : index
    %c0_238 = arith.constant 0 : index
    %269 = vector.load %arg4[%c4_235, %c5_236, %c0_237, %c0_238] : memref<7x9x16x1024xf32, #tpu.memory_space<vmem>>, vector<1x1x16x1024xf32>
    %270 = vector.shape_cast %269 : vector<1x1x16x1024xf32> to vector<16x1024xf32>
    %271 = vector.extract_strided_slice %270 {offsets = [0, 0], sizes = [8, 1024], strides = [1, 1]} : vector<16x1024xf32> to vector<8x1024xf32>
    %272 = arith.mulf %268, %271 : vector<8x1024xf32>
    %273 = arith.addf %267, %272 : vector<8x1024xf32>
    %c1009_i32_239 = arith.constant 1009 : i32
    %274 = tpu.dynamic_rotate %237 by %c1009_i32_239 dim 1 : vector<8x1024xf32>, i32 -> vector<8x1024xf32>
    %c4_240 = arith.constant 4 : index
    %c6_241 = arith.constant 6 : index
    %c0_242 = arith.constant 0 : index
    %c0_243 = arith.constant 0 : index
    %275 = vector.load %arg4[%c4_240, %c6_241, %c0_242, %c0_243] : memref<7x9x16x1024xf32, #tpu.memory_space<vmem>>, vector<1x1x16x1024xf32>
    %276 = vector.shape_cast %275 : vector<1x1x16x1024xf32> to vector<16x1024xf32>
    %277 = vector.extract_strided_slice %276 {offsets = [0, 0], sizes = [8, 1024], strides = [1, 1]} : vector<16x1024xf32> to vector<8x1024xf32>
    %278 = arith.mulf %274, %277 : vector<8x1024xf32>
    %279 = arith.addf %273, %278 : vector<8x1024xf32>
    %c1008_i32_244 = arith.constant 1008 : i32
    %280 = tpu.dynamic_rotate %237 by %c1008_i32_244 dim 1 : vector<8x1024xf32>, i32 -> vector<8x1024xf32>
    %c4_245 = arith.constant 4 : index
    %c7_246 = arith.constant 7 : index
    %c0_247 = arith.constant 0 : index
    %c0_248 = arith.constant 0 : index
    %281 = vector.load %arg4[%c4_245, %c7_246, %c0_247, %c0_248] : memref<7x9x16x1024xf32, #tpu.memory_space<vmem>>, vector<1x1x16x1024xf32>
    %282 = vector.shape_cast %281 : vector<1x1x16x1024xf32> to vector<16x1024xf32>
    %283 = vector.extract_strided_slice %282 {offsets = [0, 0], sizes = [8, 1024], strides = [1, 1]} : vector<16x1024xf32> to vector<8x1024xf32>
    %284 = arith.mulf %280, %283 : vector<8x1024xf32>
    %285 = arith.addf %279, %284 : vector<8x1024xf32>
    %c1007_i32_249 = arith.constant 1007 : i32
    %286 = tpu.dynamic_rotate %237 by %c1007_i32_249 dim 1 : vector<8x1024xf32>, i32 -> vector<8x1024xf32>
    %c4_250 = arith.constant 4 : index
    %c8_251 = arith.constant 8 : index
    %c0_252 = arith.constant 0 : index
    %c0_253 = arith.constant 0 : index
    %287 = vector.load %arg4[%c4_250, %c8_251, %c0_252, %c0_253] : memref<7x9x16x1024xf32, #tpu.memory_space<vmem>>, vector<1x1x16x1024xf32>
    %288 = vector.shape_cast %287 : vector<1x1x16x1024xf32> to vector<16x1024xf32>
    %289 = vector.extract_strided_slice %288 {offsets = [0, 0], sizes = [8, 1024], strides = [1, 1]} : vector<16x1024xf32> to vector<8x1024xf32>
    %290 = arith.mulf %286, %289 : vector<8x1024xf32>
    %291 = arith.addf %285, %290 : vector<8x1024xf32>
    %c5_254 = arith.constant 5 : index
    %c0_255 = arith.constant 0 : index
    %c0_256 = arith.constant 0 : index
    %292 = vector.load %arg2[%c5_254, %c0_255, %c0_256] : memref<8x16x16xf32, #tpu.memory_space<vmem>>, vector<1x16x16xf32>
    %293 = vector.shape_cast %292 : vector<1x16x16xf32> to vector<16x16xf32>
    %294 = vector.extract_strided_slice %293 {offsets = [0, 0], sizes = [8, 8], strides = [1, 1]} : vector<16x16xf32> to vector<8x8xf32>
    %cst_257 = arith.constant dense<0.000000e+00> : vector<8x1024xf32>
    %295 = tpu.matmul %294, %291, %cst_257 {dimension_numbers = #tpu.dot_dimension_numbers<[1], [0], [0], [1], [0, 0, 1, 1], [], []>} : vector<8x8xf32>, vector<8x1024xf32>, vector<8x1024xf32> -> vector<8x1024xf32>
    %c5_258 = arith.constant 5 : index
    %c0_259 = arith.constant 0 : index
    %c0_260 = arith.constant 0 : index
    %296 = vector.load %arg3[%c5_258, %c0_259, %c0_260] : memref<8x16x1xf32, #tpu.memory_space<vmem>>, vector<1x16x1xf32>
    %297 = vector.shape_cast %296 : vector<1x16x1xf32> to vector<16x1xf32>
    %298 = vector.extract_strided_slice %297 {offsets = [0, 0], sizes = [8, 1], strides = [1, 1]} : vector<16x1xf32> to vector<8x1xf32>
    %299 = vector.broadcast %298 : vector<8x1xf32> to vector<8x1024xf32>
    %300 = arith.addf %295, %299 : vector<8x1024xf32>
    %cst_261 = arith.constant 0.000000e+00 : f32
    %301 = vector.broadcast %cst_261 : f32 to vector<8x1024xf32>
    %302 = arith.maximumf %300, %301 : vector<8x1024xf32>
    %cst_262 = arith.constant 0.000000e+00 : f32
    %303 = vector.broadcast %cst_262 : f32 to vector<8x1024xf32>
    %c17_i32_263 = arith.constant 17 : i32
    %304 = tpu.dynamic_rotate %302 by %c17_i32_263 dim 1 : vector<8x1024xf32>, i32 -> vector<8x1024xf32>
    %c5_264 = arith.constant 5 : index
    %c0_265 = arith.constant 0 : index
    %c0_266 = arith.constant 0 : index
    %c0_267 = arith.constant 0 : index
    %305 = vector.load %arg4[%c5_264, %c0_265, %c0_266, %c0_267] : memref<7x9x16x1024xf32, #tpu.memory_space<vmem>>, vector<1x1x16x1024xf32>
    %306 = vector.shape_cast %305 : vector<1x1x16x1024xf32> to vector<16x1024xf32>
    %307 = vector.extract_strided_slice %306 {offsets = [0, 0], sizes = [8, 1024], strides = [1, 1]} : vector<16x1024xf32> to vector<8x1024xf32>
    %308 = arith.mulf %304, %307 : vector<8x1024xf32>
    %309 = arith.addf %303, %308 : vector<8x1024xf32>
    %c16_i32_268 = arith.constant 16 : i32
    %310 = tpu.dynamic_rotate %302 by %c16_i32_268 dim 1 : vector<8x1024xf32>, i32 -> vector<8x1024xf32>
    %c5_269 = arith.constant 5 : index
    %c1_270 = arith.constant 1 : index
    %c0_271 = arith.constant 0 : index
    %c0_272 = arith.constant 0 : index
    %311 = vector.load %arg4[%c5_269, %c1_270, %c0_271, %c0_272] : memref<7x9x16x1024xf32, #tpu.memory_space<vmem>>, vector<1x1x16x1024xf32>
    %312 = vector.shape_cast %311 : vector<1x1x16x1024xf32> to vector<16x1024xf32>
    %313 = vector.extract_strided_slice %312 {offsets = [0, 0], sizes = [8, 1024], strides = [1, 1]} : vector<16x1024xf32> to vector<8x1024xf32>
    %314 = arith.mulf %310, %313 : vector<8x1024xf32>
    %315 = arith.addf %309, %314 : vector<8x1024xf32>
    %c15_i32_273 = arith.constant 15 : i32
    %316 = tpu.dynamic_rotate %302 by %c15_i32_273 dim 1 : vector<8x1024xf32>, i32 -> vector<8x1024xf32>
    %c5_274 = arith.constant 5 : index
    %c2_275 = arith.constant 2 : index
    %c0_276 = arith.constant 0 : index
    %c0_277 = arith.constant 0 : index
    %317 = vector.load %arg4[%c5_274, %c2_275, %c0_276, %c0_277] : memref<7x9x16x1024xf32, #tpu.memory_space<vmem>>, vector<1x1x16x1024xf32>
    %318 = vector.shape_cast %317 : vector<1x1x16x1024xf32> to vector<16x1024xf32>
    %319 = vector.extract_strided_slice %318 {offsets = [0, 0], sizes = [8, 1024], strides = [1, 1]} : vector<16x1024xf32> to vector<8x1024xf32>
    %320 = arith.mulf %316, %319 : vector<8x1024xf32>
    %321 = arith.addf %315, %320 : vector<8x1024xf32>
    %c1_i32_278 = arith.constant 1 : i32
    %322 = tpu.dynamic_rotate %302 by %c1_i32_278 dim 1 : vector<8x1024xf32>, i32 -> vector<8x1024xf32>
    %c5_279 = arith.constant 5 : index
    %c3_280 = arith.constant 3 : index
    %c0_281 = arith.constant 0 : index
    %c0_282 = arith.constant 0 : index
    %323 = vector.load %arg4[%c5_279, %c3_280, %c0_281, %c0_282] : memref<7x9x16x1024xf32, #tpu.memory_space<vmem>>, vector<1x1x16x1024xf32>
    %324 = vector.shape_cast %323 : vector<1x1x16x1024xf32> to vector<16x1024xf32>
    %325 = vector.extract_strided_slice %324 {offsets = [0, 0], sizes = [8, 1024], strides = [1, 1]} : vector<16x1024xf32> to vector<8x1024xf32>
    %326 = arith.mulf %322, %325 : vector<8x1024xf32>
    %327 = arith.addf %321, %326 : vector<8x1024xf32>
    %c5_283 = arith.constant 5 : index
    %c4_284 = arith.constant 4 : index
    %c0_285 = arith.constant 0 : index
    %c0_286 = arith.constant 0 : index
    %328 = vector.load %arg4[%c5_283, %c4_284, %c0_285, %c0_286] : memref<7x9x16x1024xf32, #tpu.memory_space<vmem>>, vector<1x1x16x1024xf32>
    %329 = vector.shape_cast %328 : vector<1x1x16x1024xf32> to vector<16x1024xf32>
    %330 = vector.extract_strided_slice %329 {offsets = [0, 0], sizes = [8, 1024], strides = [1, 1]} : vector<16x1024xf32> to vector<8x1024xf32>
    %331 = arith.mulf %302, %330 : vector<8x1024xf32>
    %332 = arith.addf %327, %331 : vector<8x1024xf32>
    %c1023_i32_287 = arith.constant 1023 : i32
    %333 = tpu.dynamic_rotate %302 by %c1023_i32_287 dim 1 : vector<8x1024xf32>, i32 -> vector<8x1024xf32>
    %c5_288 = arith.constant 5 : index
    %c5_289 = arith.constant 5 : index
    %c0_290 = arith.constant 0 : index
    %c0_291 = arith.constant 0 : index
    %334 = vector.load %arg4[%c5_288, %c5_289, %c0_290, %c0_291] : memref<7x9x16x1024xf32, #tpu.memory_space<vmem>>, vector<1x1x16x1024xf32>
    %335 = vector.shape_cast %334 : vector<1x1x16x1024xf32> to vector<16x1024xf32>
    %336 = vector.extract_strided_slice %335 {offsets = [0, 0], sizes = [8, 1024], strides = [1, 1]} : vector<16x1024xf32> to vector<8x1024xf32>
    %337 = arith.mulf %333, %336 : vector<8x1024xf32>
    %338 = arith.addf %332, %337 : vector<8x1024xf32>
    %c1009_i32_292 = arith.constant 1009 : i32
    %339 = tpu.dynamic_rotate %302 by %c1009_i32_292 dim 1 : vector<8x1024xf32>, i32 -> vector<8x1024xf32>
    %c5_293 = arith.constant 5 : index
    %c6_294 = arith.constant 6 : index
    %c0_295 = arith.constant 0 : index
    %c0_296 = arith.constant 0 : index
    %340 = vector.load %arg4[%c5_293, %c6_294, %c0_295, %c0_296] : memref<7x9x16x1024xf32, #tpu.memory_space<vmem>>, vector<1x1x16x1024xf32>
    %341 = vector.shape_cast %340 : vector<1x1x16x1024xf32> to vector<16x1024xf32>
    %342 = vector.extract_strided_slice %341 {offsets = [0, 0], sizes = [8, 1024], strides = [1, 1]} : vector<16x1024xf32> to vector<8x1024xf32>
    %343 = arith.mulf %339, %342 : vector<8x1024xf32>
    %344 = arith.addf %338, %343 : vector<8x1024xf32>
    %c1008_i32_297 = arith.constant 1008 : i32
    %345 = tpu.dynamic_rotate %302 by %c1008_i32_297 dim 1 : vector<8x1024xf32>, i32 -> vector<8x1024xf32>
    %c5_298 = arith.constant 5 : index
    %c7_299 = arith.constant 7 : index
    %c0_300 = arith.constant 0 : index
    %c0_301 = arith.constant 0 : index
    %346 = vector.load %arg4[%c5_298, %c7_299, %c0_300, %c0_301] : memref<7x9x16x1024xf32, #tpu.memory_space<vmem>>, vector<1x1x16x1024xf32>
    %347 = vector.shape_cast %346 : vector<1x1x16x1024xf32> to vector<16x1024xf32>
    %348 = vector.extract_strided_slice %347 {offsets = [0, 0], sizes = [8, 1024], strides = [1, 1]} : vector<16x1024xf32> to vector<8x1024xf32>
    %349 = arith.mulf %345, %348 : vector<8x1024xf32>
    %350 = arith.addf %344, %349 : vector<8x1024xf32>
    %c1007_i32_302 = arith.constant 1007 : i32
    %351 = tpu.dynamic_rotate %302 by %c1007_i32_302 dim 1 : vector<8x1024xf32>, i32 -> vector<8x1024xf32>
    %c5_303 = arith.constant 5 : index
    %c8_304 = arith.constant 8 : index
    %c0_305 = arith.constant 0 : index
    %c0_306 = arith.constant 0 : index
    %352 = vector.load %arg4[%c5_303, %c8_304, %c0_305, %c0_306] : memref<7x9x16x1024xf32, #tpu.memory_space<vmem>>, vector<1x1x16x1024xf32>
    %353 = vector.shape_cast %352 : vector<1x1x16x1024xf32> to vector<16x1024xf32>
    %354 = vector.extract_strided_slice %353 {offsets = [0, 0], sizes = [8, 1024], strides = [1, 1]} : vector<16x1024xf32> to vector<8x1024xf32>
    %355 = arith.mulf %351, %354 : vector<8x1024xf32>
    %356 = arith.addf %350, %355 : vector<8x1024xf32>
    %c6_307 = arith.constant 6 : index
    %c0_308 = arith.constant 0 : index
    %c0_309 = arith.constant 0 : index
    %357 = vector.load %arg2[%c6_307, %c0_308, %c0_309] : memref<8x16x16xf32, #tpu.memory_space<vmem>>, vector<1x16x16xf32>
    %358 = vector.shape_cast %357 : vector<1x16x16xf32> to vector<16x16xf32>
    %359 = vector.extract_strided_slice %358 {offsets = [0, 0], sizes = [8, 8], strides = [1, 1]} : vector<16x16xf32> to vector<8x8xf32>
    %cst_310 = arith.constant dense<0.000000e+00> : vector<8x1024xf32>
    %360 = tpu.matmul %359, %356, %cst_310 {dimension_numbers = #tpu.dot_dimension_numbers<[1], [0], [0], [1], [0, 0, 1, 1], [], []>} : vector<8x8xf32>, vector<8x1024xf32>, vector<8x1024xf32> -> vector<8x1024xf32>
    %c6_311 = arith.constant 6 : index
    %c0_312 = arith.constant 0 : index
    %c0_313 = arith.constant 0 : index
    %361 = vector.load %arg3[%c6_311, %c0_312, %c0_313] : memref<8x16x1xf32, #tpu.memory_space<vmem>>, vector<1x16x1xf32>
    %362 = vector.shape_cast %361 : vector<1x16x1xf32> to vector<16x1xf32>
    %363 = vector.extract_strided_slice %362 {offsets = [0, 0], sizes = [8, 1], strides = [1, 1]} : vector<16x1xf32> to vector<8x1xf32>
    %364 = vector.broadcast %363 : vector<8x1xf32> to vector<8x1024xf32>
    %365 = arith.addf %360, %364 : vector<8x1024xf32>
    %366 = arith.addf %365, %10 : vector<8x1024xf32>
    %c16 = arith.constant 16 : index
    %c0_314 = arith.constant 0 : index
    %367 = vector.load %arg5[%c16, %c0_314] : memref<32x1024xf32, #tpu.memory_space<vmem>>, vector<8x1024xf32>
    tpu.vector_store %arg5[%c16, %c0_314], %366 {strides = array<i32>} : memref<32x1024xf32, #tpu.memory_space<vmem>>, vector<8x1024xf32>,
    %cst_315 = arith.constant 0.000000e+00 : f32
    %368 = vector.broadcast %cst_315 : f32 to vector<8x1024xf32>
    %369 = arith.maximumf %122, %368 : vector<8x1024xf32>
    %cst_316 = arith.constant 0.000000e+00 : f32
    %370 = vector.broadcast %cst_316 : f32 to vector<8x1024xf32>
    %c34_i32 = arith.constant 34 : i32
    %371 = tpu.dynamic_rotate %369 by %c34_i32 dim 1 : vector<8x1024xf32>, i32 -> vector<8x1024xf32>
    %c6_317 = arith.constant 6 : index
    %c0_318 = arith.constant 0 : index
    %c0_319 = arith.constant 0 : index
    %c0_320 = arith.constant 0 : index
    %372 = vector.load %arg4[%c6_317, %c0_318, %c0_319, %c0_320] : memref<7x9x16x1024xf32, #tpu.memory_space<vmem>>, vector<1x1x16x1024xf32>
    %373 = vector.shape_cast %372 : vector<1x1x16x1024xf32> to vector<16x1024xf32>
    %374 = vector.extract_strided_slice %373 {offsets = [0, 0], sizes = [8, 1024], strides = [1, 1]} : vector<16x1024xf32> to vector<8x1024xf32>
    %375 = arith.mulf %371, %374 : vector<8x1024xf32>
    %376 = arith.addf %370, %375 : vector<8x1024xf32>
    %c32_i32 = arith.constant 32 : i32
    %377 = tpu.dynamic_rotate %369 by %c32_i32 dim 1 : vector<8x1024xf32>, i32 -> vector<8x1024xf32>
    %c6_321 = arith.constant 6 : index
    %c1_322 = arith.constant 1 : index
    %c0_323 = arith.constant 0 : index
    %c0_324 = arith.constant 0 : index
    %378 = vector.load %arg4[%c6_321, %c1_322, %c0_323, %c0_324] : memref<7x9x16x1024xf32, #tpu.memory_space<vmem>>, vector<1x1x16x1024xf32>
    %379 = vector.shape_cast %378 : vector<1x1x16x1024xf32> to vector<16x1024xf32>
    %380 = vector.extract_strided_slice %379 {offsets = [0, 0], sizes = [8, 1024], strides = [1, 1]} : vector<16x1024xf32> to vector<8x1024xf32>
    %381 = arith.mulf %377, %380 : vector<8x1024xf32>
    %382 = arith.addf %376, %381 : vector<8x1024xf32>
    %c30_i32 = arith.constant 30 : i32
    %383 = tpu.dynamic_rotate %369 by %c30_i32 dim 1 : vector<8x1024xf32>, i32 -> vector<8x1024xf32>
    %c6_325 = arith.constant 6 : index
    %c2_326 = arith.constant 2 : index
    %c0_327 = arith.constant 0 : index
    %c0_328 = arith.constant 0 : index
    %384 = vector.load %arg4[%c6_325, %c2_326, %c0_327, %c0_328] : memref<7x9x16x1024xf32, #tpu.memory_space<vmem>>, vector<1x1x16x1024xf32>
    %385 = vector.shape_cast %384 : vector<1x1x16x1024xf32> to vector<16x1024xf32>
    %386 = vector.extract_strided_slice %385 {offsets = [0, 0], sizes = [8, 1024], strides = [1, 1]} : vector<16x1024xf32> to vector<8x1024xf32>
    %387 = arith.mulf %383, %386 : vector<8x1024xf32>
    %388 = arith.addf %382, %387 : vector<8x1024xf32>
    %c2_i32 = arith.constant 2 : i32
    %389 = tpu.dynamic_rotate %369 by %c2_i32 dim 1 : vector<8x1024xf32>, i32 -> vector<8x1024xf32>
    %c6_329 = arith.constant 6 : index
    %c3_330 = arith.constant 3 : index
    %c0_331 = arith.constant 0 : index
    %c0_332 = arith.constant 0 : index
    %390 = vector.load %arg4[%c6_329, %c3_330, %c0_331, %c0_332] : memref<7x9x16x1024xf32, #tpu.memory_space<vmem>>, vector<1x1x16x1024xf32>
    %391 = vector.shape_cast %390 : vector<1x1x16x1024xf32> to vector<16x1024xf32>
    %392 = vector.extract_strided_slice %391 {offsets = [0, 0], sizes = [8, 1024], strides = [1, 1]} : vector<16x1024xf32> to vector<8x1024xf32>
    %393 = arith.mulf %389, %392 : vector<8x1024xf32>
    %394 = arith.addf %388, %393 : vector<8x1024xf32>
    %c6_333 = arith.constant 6 : index
    %c4_334 = arith.constant 4 : index
    %c0_335 = arith.constant 0 : index
    %c0_336 = arith.constant 0 : index
    %395 = vector.load %arg4[%c6_333, %c4_334, %c0_335, %c0_336] : memref<7x9x16x1024xf32, #tpu.memory_space<vmem>>, vector<1x1x16x1024xf32>
    %396 = vector.shape_cast %395 : vector<1x1x16x1024xf32> to vector<16x1024xf32>
    %397 = vector.extract_strided_slice %396 {offsets = [0, 0], sizes = [8, 1024], strides = [1, 1]} : vector<16x1024xf32> to vector<8x1024xf32>
    %398 = arith.mulf %369, %397 : vector<8x1024xf32>
    %399 = arith.addf %394, %398 : vector<8x1024xf32>
    %c1022_i32 = arith.constant 1022 : i32
    %400 = tpu.dynamic_rotate %369 by %c1022_i32 dim 1 : vector<8x1024xf32>, i32 -> vector<8x1024xf32>
    %c6_337 = arith.constant 6 : index
    %c5_338 = arith.constant 5 : index
    %c0_339 = arith.constant 0 : index
    %c0_340 = arith.constant 0 : index
    %401 = vector.load %arg4[%c6_337, %c5_338, %c0_339, %c0_340] : memref<7x9x16x1024xf32, #tpu.memory_space<vmem>>, vector<1x1x16x1024xf32>
    %402 = vector.shape_cast %401 : vector<1x1x16x1024xf32> to vector<16x1024xf32>
    %403 = vector.extract_strided_slice %402 {offsets = [0, 0], sizes = [8, 1024], strides = [1, 1]} : vector<16x1024xf32> to vector<8x1024xf32>
    %404 = arith.mulf %400, %403 : vector<8x1024xf32>
    %405 = arith.addf %399, %404 : vector<8x1024xf32>
    %c994_i32 = arith.constant 994 : i32
    %406 = tpu.dynamic_rotate %369 by %c994_i32 dim 1 : vector<8x1024xf32>, i32 -> vector<8x1024xf32>
    %c6_341 = arith.constant 6 : index
    %c6_342 = arith.constant 6 : index
    %c0_343 = arith.constant 0 : index
    %c0_344 = arith.constant 0 : index
    %407 = vector.load %arg4[%c6_341, %c6_342, %c0_343, %c0_344] : memref<7x9x16x1024xf32, #tpu.memory_space<vmem>>, vector<1x1x16x1024xf32>
    %408 = vector.shape_cast %407 : vector<1x1x16x1024xf32> to vector<16x1024xf32>
    %409 = vector.extract_strided_slice %408 {offsets = [0, 0], sizes = [8, 1024], strides = [1, 1]} : vector<16x1024xf32> to vector<8x1024xf32>
    %410 = arith.mulf %406, %409 : vector<8x1024xf32>
    %411 = arith.addf %405, %410 : vector<8x1024xf32>
    %c992_i32 = arith.constant 992 : i32
    %412 = tpu.dynamic_rotate %369 by %c992_i32 dim 1 : vector<8x1024xf32>, i32 -> vector<8x1024xf32>
    %c6_345 = arith.constant 6 : index
    %c7_346 = arith.constant 7 : index
    %c0_347 = arith.constant 0 : index
    %c0_348 = arith.constant 0 : index
    %413 = vector.load %arg4[%c6_345, %c7_346, %c0_347, %c0_348] : memref<7x9x16x1024xf32, #tpu.memory_space<vmem>>, vector<1x1x16x1024xf32>
    %414 = vector.shape_cast %413 : vector<1x1x16x1024xf32> to vector<16x1024xf32>
    %415 = vector.extract_strided_slice %414 {offsets = [0, 0], sizes = [8, 1024], strides = [1, 1]} : vector<16x1024xf32> to vector<8x1024xf32>
    %416 = arith.mulf %412, %415 : vector<8x1024xf32>
    %417 = arith.addf %411, %416 : vector<8x1024xf32>
    %c990_i32 = arith.constant 990 : i32
    %418 = tpu.dynamic_rotate %369 by %c990_i32 dim 1 : vector<8x1024xf32>, i32 -> vector<8x1024xf32>
    %c6_349 = arith.constant 6 : index
    %c8_350 = arith.constant 8 : index
    %c0_351 = arith.constant 0 : index
    %c0_352 = arith.constant 0 : index
    %419 = vector.load %arg4[%c6_349, %c8_350, %c0_351, %c0_352] : memref<7x9x16x1024xf32, #tpu.memory_space<vmem>>, vector<1x1x16x1024xf32>
    %420 = vector.shape_cast %419 : vector<1x1x16x1024xf32> to vector<16x1024xf32>
    %421 = vector.extract_strided_slice %420 {offsets = [0, 0], sizes = [8, 1024], strides = [1, 1]} : vector<16x1024xf32> to vector<8x1024xf32>
    %422 = arith.mulf %418, %421 : vector<8x1024xf32>
    %423 = arith.addf %417, %422 : vector<8x1024xf32>
    %c7_353 = arith.constant 7 : index
    %c0_354 = arith.constant 0 : index
    %c0_355 = arith.constant 0 : index
    %424 = vector.load %arg2[%c7_353, %c0_354, %c0_355] : memref<8x16x16xf32, #tpu.memory_space<vmem>>, vector<1x16x16xf32>
    %425 = vector.shape_cast %424 : vector<1x16x16xf32> to vector<16x16xf32>
    %426 = vector.extract_strided_slice %425 {offsets = [0, 0], sizes = [8, 8], strides = [1, 1]} : vector<16x16xf32> to vector<8x8xf32>
    %cst_356 = arith.constant dense<0.000000e+00> : vector<8x1024xf32>
    %427 = tpu.matmul %426, %423, %cst_356 {dimension_numbers = #tpu.dot_dimension_numbers<[1], [0], [0], [1], [0, 0, 1, 1], [], []>} : vector<8x8xf32>, vector<8x1024xf32>, vector<8x1024xf32> -> vector<8x1024xf32>
    %c7_357 = arith.constant 7 : index
    %c0_358 = arith.constant 0 : index
    %c0_359 = arith.constant 0 : index
    %428 = vector.load %arg3[%c7_357, %c0_358, %c0_359] : memref<8x16x1xf32, #tpu.memory_space<vmem>>, vector<1x16x1xf32>
    %429 = vector.shape_cast %428 : vector<1x16x1xf32> to vector<16x1xf32>
    %430 = vector.extract_strided_slice %429 {offsets = [0, 0], sizes = [8, 1], strides = [1, 1]} : vector<16x1xf32> to vector<8x1xf32>
    %431 = vector.broadcast %430 : vector<8x1xf32> to vector<8x1024xf32>
    %432 = arith.addf %427, %431 : vector<8x1024xf32>
    %433 = arith.addf %10, %432 : vector<8x1024xf32>
    %c24 = arith.constant 24 : index
    %c0_360 = arith.constant 0 : index
    %434 = vector.load %arg5[%c24, %c0_360] : memref<32x1024xf32, #tpu.memory_space<vmem>>, vector<8x1024xf32>
    tpu.vector_store %arg5[%c24, %c0_360], %433 {strides = array<i32>} : memref<32x1024xf32, #tpu.memory_space<vmem>>, vector<8x1024xf32>,
    return
  }
  func.func @transform_0(%arg0: i32) -> (i32, i32) {
    %c0_i32 = arith.constant 0 : i32
    %c0_i32_0 = arith.constant 0 : i32
    return %c0_i32, %arg0 : i32, i32
  }
  func.func @transform_1(%arg0: i32) -> (i32, i32, i32) {
    %c0_i32 = arith.constant 0 : i32
    %c0_i32_0 = arith.constant 0 : i32
    %c0_i32_1 = arith.constant 0 : i32
    %c0_i32_2 = arith.constant 0 : i32
    return %c0_i32, %c0_i32_0, %c0_i32_1 : i32, i32, i32
  }
  func.func @transform_2(%arg0: i32) -> (i32, i32, i32) {
    %c0_i32 = arith.constant 0 : i32
    %c0_i32_0 = arith.constant 0 : i32
    %c0_i32_1 = arith.constant 0 : i32
    %c0_i32_2 = arith.constant 0 : i32
    return %c0_i32, %c0_i32_0, %c0_i32_1 : i32, i32, i32
  }
  func.func @transform_3(%arg0: i32) -> (i32, i32, i32, i32) {
    %c0_i32 = arith.constant 0 : i32
    %c0_i32_0 = arith.constant 0 : i32
    %c0_i32_1 = arith.constant 0 : i32
    %c0_i32_2 = arith.constant 0 : i32
    %c0_i32_3 = arith.constant 0 : i32
    return %c0_i32, %c0_i32_0, %c0_i32_1, %c0_i32_2 : i32, i32, i32, i32
  }
  func.func @transform_4(%arg0: i32) -> (i32, i32) {
    %c0_i32 = arith.constant 0 : i32
    %c0_i32_0 = arith.constant 0 : i32
    return %c0_i32, %arg0 : i32, i32
  }
}

</mosaic_0001>

<bundles_post_ra>
// kernel: _lambda_.1
= control target key start
LH: loop header
LB: loop body
LE: loop exit
PB: predicated region body
PF: predicated region fallthrough
CT: control target
= control target key end

     0   :  { %9 = vsyncpa [#allocation4], 0  ;;  %s13020_s0 = inlined_call_operand.vmem [shape: f32[16,2048], index: 0, kind: input, shape index: {}]   ;;  %s13021_s1 = inlined_call_operand.hbm [shape: f32[8,16,16], index: 1, kind: input, shape index: {}]   ;;  %s13022_s2 = inlined_call_operand.hbm [shape: f32[8,16,1], index: 2, kind: input, shape index: {}]   ;;  %s13023_s3 = inlined_call_operand.hbm [shape: f32[7,9,16,1024], index: 3, kind: input, shape index: {}]   ;;  %s13024_s4 = inlined_call_operand.vmem [shape: f32[32,2048], index: 4, kind: output, shape index: {}]  }
   0x1   :  { %10 = vsyncpa [#allocation6], 0  ;;  %s7604_s15 = smov 0   ;;  %s7606_s16 = smov 0  }
   0x2   :  { %s7608_s17 = smov 0  }
   0x3 LB: > { %s7620_s18 = sadd.s32 4294967295, %s7552_s17   ;;  %s7623_s19 = sadd.s32 1, %s7552_s17   ;;  %s7552_s17 = sphi %s7608_s17, %s14004_s17   ;;  %s7548_s16 = sphi %s7606_s16, %s14003_s16   ;;  %s7544_s15 = sphi %s7604_s15, %s14002_s15  }
   0x4   : > { %s20_s20 = ssub.s32 %s7552_s17, %s7623_s19  ;;  %s23_s21 = sadd.s32 1, %s7548_s16 }
   0x5   : > { %p21_p0 = scmp.eq.s32.totalorder %s20_s20, 0  ;;  %p30_p1 = scmp.ne.s32.totalorder %s7548_s16, %s7544_s15 }
   0x6   : > { %p31_p2 = scmp.eq.s32.totalorder %s7552_s17, 0  ;;  %p123_p3 = scmp.eq.s32.totalorder %s7620_s18, 1 }
   0x7   : > { %s7633_s22 = scalar_select %p21_p0, %s7548_s16, %s23_s21  }
   0x8   : > { %p7635_p4 = por %p31_p2, %p30_p1  ;;  %p7639_p5 = por %p123_p3, %p30_p1 }
   0x9   : > { %p7156_p6 = scmp.ge.s32.totalorder %s7552_s17, 1  ;;  %p136_p7 = scmp.lt.s32.totalorder %s7552_s17, 3 }
   0xa   : > { %s13303_s23 = scalar_select %p7635_p4, 1, 0 }
   0xb   : > { %s13304_s24 = scalar_select %p7639_p5, 1, 0 }
   0xc   : > { %p13025_p8 = scmp.eq.s32.totalorder %s7620_s18, 0  ;;  %p7646_p9 = pnand %p7156_p6, %p136_p7 }
   0xd   : > { %s7554_s26 = smov [#allocation5]   ;;  %s7555_s29 = smov [#allocation3]  }
   0xe   : > { %s13305_s25 = scalar_select %p7646_p9, 1, 0 }
   0xf   : > { %p7369_p10 = pneg %p7646_p9  ;;  %s161_s27 = sshll.u32 %s7554_s26, 4  ;;  %s7652_s27 = int_to_ptr.vmem [resolvable:$true] %s161_s27 }
  0x10   : > { %s148_s30 = sshll.u32 %s7555_s29, 4  ;;  %s7556_s5 = smov [#allocation7]   ;;  %s7660_s30 = int_to_ptr.vmem [resolvable:$true] %s148_s30 }
  0x11   : > { %p7656_p11 = pnand %p13025_p8, %p7369_p10  ;;  %s7662_s6 = sshll.u32 %s7556_s5, 4  ;;  %s175_s6 = int_to_ptr.vmem [resolvable:$true] %s7662_s6 }
  0x12   : > { %s7438_s9 = scalar_lea.hbm %s13022_s2, 2048 }
  0x13   : > { %p7439_p12 = scmp.ne.s32.totalorder %s13022_s2, %s7438_s9  ;;  %p7672_p13 = pneg %p7656_p11 }
  0x14   : > { %p7445_p2 = scmp.lt.u32.totalorder %s7438_s9, %s13022_s2 }
  0x15   : > { %p7441_p0 = pnand %p7672_p13, %p7439_p12 }
  0x17   : > { %p7442_p1 = pneg %p7441_p0 }
  0x19   : > { %p7447_p3 = pnand %p7445_p2, %p7442_p1 }
  0x1b   : > { %7450 = shalt.err (!%p7447_p3)
}
  0x1c   : > { %s7451_s20 = scalar_lea.vmem %s7652_s27, 2048  ;;  %p7459_p8 = scmp.lt.s32.totalorder %s7652_s27, %s7652_s27 }
  0x1d   : > { %p7452_p6 = scmp.ne.s32.totalorder %s7652_s27, %s7451_s20  ;;  %p7460_p5 = scmp.lt.s32.totalorder %s7451_s20, %s7451_s20 }
  0x1f   : > { %p7454_p7 = pnand %p7452_p6, %p7672_p13  ;;  %p7461_p12 = por %p7460_p5, %p7459_p8 }
  0x21   : > { %p7455_p10 = pneg %p7454_p7 }
  0x23   : > { %p7462_p0 = pnand %p7461_p12, %p7455_p10 }
  0x25   : > { %7465 = shalt.err (!%p7462_p0)
}
  0x26   : > { %s7557_s21 = smov 128   ;;  %s7558_s26 = smov 8  }
  0x27   : > { %7375 = dma.hbm_to_vmem [thread:$0]  (!%p7656_p11), %s13022_s2, 2048, %s7652_s27, [#allocation6], %s7557_s21, %s7557_s21, %s7558_s26  }
  0x28   : > { %s7466_s9 = scalar_lea.hbm %s13021_s1, 2048 }
  0x29   : > { %p7467_p5 = scmp.ne.s32.totalorder %s13021_s1, %s7466_s9  ;;  %p7473_p2 = scmp.lt.u32.totalorder %s7466_s9, %s13021_s1 }
  0x2b   : > { %p7469_p8 = pnand %p7467_p5, %p7672_p13 }
  0x2d   : > { %p7470_p1 = pneg %p7469_p8 }
  0x2f   : > { %p7475_p3 = pnand %p7473_p2, %p7470_p1 }
  0x31   : > { %7478 = shalt.err (!%p7475_p3)
}
  0x32   : > { %s7479_s27 = scalar_lea.vmem %s7660_s30, 2048  ;;  %p7487_p12 = scmp.lt.s32.totalorder %s7660_s30, %s7660_s30 }
  0x33   : > { %p7480_p6 = scmp.ne.s32.totalorder %s7660_s30, %s7479_s27  ;;  %p7488_p0 = scmp.lt.s32.totalorder %s7479_s27, %s7479_s27 }
  0x35   : > { %p7482_p7 = pnand %p7480_p6, %p7672_p13  ;;  %p7489_p5 = por %p7488_p0, %p7487_p12 }
  0x37   : > { %p7483_p10 = pneg %p7482_p7 }
  0x39   : > { %p7490_p8 = pnand %p7489_p5, %p7483_p10 }
  0x3b   : > { %7493 = shalt.err (!%p7490_p8)
}
  0x3c   : > { %7372 = dma.hbm_to_vmem [thread:$0]  (!%p7656_p11), %s13021_s1, 2048, %s7660_s30, [#allocation4], %s7557_s21, %s7557_s21, %s7558_s26  }
  0x3d   : > { %s7494_s8 = scalar_lea.hbm %s13023_s3, 129024 }
  0x3e   : > { %p7495_p1 = scmp.ne.s32.totalorder %s13023_s3, %s7494_s8  ;;  %p7501_p6 = scmp.lt.u32.totalorder %s7494_s8, %s13023_s3 }
  0x40   : > { %p7497_p2 = pnand %p7495_p1, %p7672_p13 }
  0x42   : > { %p7498_p3 = pneg %p7497_p2 }
  0x44   : > { %p7503_p7 = pnand %p7501_p6, %p7498_p3 }
  0x46   : > { %7506 = shalt.err (!%p7503_p7)
}
  0x47   : > { %s7507_s14 = scalar_lea.vmem %s175_s6, 129024  ;;  %p7515_p5 = scmp.lt.s32.totalorder %s175_s6, %s175_s6 }
  0x48   : > { %p7508_p10 = scmp.ne.s32.totalorder %s175_s6, %s7507_s14  ;;  %p7516_p8 = scmp.lt.s32.totalorder %s7507_s14, %s7507_s14 }
  0x4a   : > { %p7510_p12 = pnand %p7508_p10, %p7672_p13  ;;  %p7517_p9 = por %p7516_p8, %p7515_p5 }
  0x4c   : > { %p7511_p0 = pneg %p7510_p12 }
  0x4e   : > { %p7518_p4 = pnand %p7517_p9, %p7511_p0 }
  0x50   : > { %7521 = shalt.err (!%p7518_p4)
}
  0x51   : > { %s7559_s30 = smov 1024   ;;  %s7560_s21 = smov 64  }
  0x52   : > { %7378 = dma.hbm_to_vmem [thread:$0]  (!%p7656_p11), %s13023_s3, 129024, %s175_s6, [#allocation6], %s7559_s30, %s7559_s30, %s7560_s21  }
  0x53   : > { %p7160_p1 = scmp.ge.s32.totalorder %s7552_s17, 2 }
  0x54   : > { %p13308_p2 = scmp.ne.s32.totalorder (!%p7160_p1), %s13303_s23, 0 }
  0x55   : > { %184 = sbr.rel (%p7160_p1) target bundleno = 104 (0x68), region = 28 }
  0x5c   : > { %187 = sbr.rel (!%p13308_p2) target bundleno = 104 (0x68), region = 32  ;;  %s189_s12 = sand.u32 (%p13308_p2), 1, %s7548_s16  }
  0x5d   : > { %s7227_s20 = sshll.u32 (%p13308_p2), %s7552_s17, 6  ;;  %s7161_s29 = sshll.u32 (%p13308_p2), %s189_s12, 7 }
  0x5e   : > { %s7743_s8 = scalar_lea.vmem (%p13308_p2), %s13020_s0, %s7227_s20  ;;  %s191_s23 = scalar_lea.vmem (%p13308_p2), [#allocation2], %s7161_s29 }
  0x5f   : > { %v207_v0 = vld [vmem:[%s7743_s8] sm:$0xff] (%p13308_p2)  ;;  %v209_v1 = vld [vmem:[%s7743_s8 + $0x8] sm:$0xff] (%p13308_p2)  ;;  %v211_v2 = vld [vmem:[%s7743_s8 + $0x10] sm:$0xff] (%p13308_p2) }
  0x60   : > { %208 = vst [vmem:[%s191_s23] sm:$0xff] (%p13308_p2), %v207_v0  ;;  %210 = vst [vmem:[%s191_s23 + $0x8] sm:$0xff] (%p13308_p2), %v209_v1  ;;  %v213_v3 = vld [vmem:[%s7743_s8 + $0x18] sm:$0xff] (%p13308_p2)  ;;  %v215_v4 = vld [vmem:[%s7743_s8 + $0x20] sm:$0xff] (%p13308_p2) }
  0x61   : > { %212 = vst [vmem:[%s191_s23 + $0x10] sm:$0xff] (%p13308_p2), %v211_v2  ;;  %v217_v5 = vld [vmem:[%s7743_s8 + $0x28] sm:$0xff] (%p13308_p2)  ;;  %214 = vst [vmem:[%s191_s23 + $0x18] sm:$0xff] (%p13308_p2), %v213_v3  ;;  %v219_v6 = vld [vmem:[%s7743_s8 + $0x30] sm:$0xff] (%p13308_p2) }
  0x62   : > { %216 = vst [vmem:[%s191_s23 + $0x20] sm:$0xff] (%p13308_p2), %v215_v4  ;;  %218 = vst [vmem:[%s191_s23 + $0x28] sm:$0xff] (%p13308_p2), %v217_v5  ;;  %v221_v7 = vld [vmem:[%s7743_s8 + $0x38] sm:$0xff] (%p13308_p2)  ;;  %v223_v8 = vld [vmem:[%s7743_s8 + $0x80] sm:$0xff] (%p13308_p2) }
  0x63   : > { %220 = vst [vmem:[%s191_s23 + $0x30] sm:$0xff] %v219_v6  ;;  %222 = vst [vmem:[%s191_s23 + $0x38] sm:$0xff] %v221_v7  ;;  %v225_v9 = vld [vmem:[%s7743_s8 + $0x88] sm:$0xff]  ;;  %v227_v10 = vld [vmem:[%s7743_s8 + $0x90] sm:$0xff] }
  0x64   : > { %224 = vst [vmem:[%s191_s23 + $0x40] sm:$0xff] %v223_v8  ;;  %v229_v11 = vld [vmem:[%s7743_s8 + $0x98] sm:$0xff]  ;;  %226 = vst [vmem:[%s191_s23 + $0x48] sm:$0xff] %v225_v9  ;;  %v231_v12 = vld [vmem:[%s7743_s8 + $0xa0] sm:$0xff] }
  0x65   : > { %228 = vst [vmem:[%s191_s23 + $0x50] sm:$0xff] %v227_v10  ;;  %230 = vst [vmem:[%s191_s23 + $0x58] sm:$0xff] %v229_v11  ;;  %v233_v13 = vld [vmem:[%s7743_s8 + $0xa8] sm:$0xff]  ;;  %v235_v14 = vld [vmem:[%s7743_s8 + $0xb0] sm:$0xff] }
  0x66   : > { %232 = vst [vmem:[%s191_s23 + $0x60] sm:$0xff] %v231_v12  ;;  %234 = vst [vmem:[%s191_s23 + $0x68] sm:$0xff] %v233_v13  ;;  %v237_v15 = vld [vmem:[%s7743_s8 + $0xb8] sm:$0xff] }
  0x67   : > { %236 = vst [vmem:[%s191_s23 + $0x70] sm:$0xff] %v235_v14  ;;  %238 = vst [vmem:[%s191_s23 + $0x78] sm:$0xff] %v237_v15 }
  0x68 PF: > { %p13309_p4 = scmp.ne.s32.totalorder %s13305_s25, 0 }
  0x6a   : > { %247 = sbr.rel (%p13309_p4) target bundleno = 2582 (0xa16), region = 55 }
  0x71   : > { %s250_s17 = sand.u32 1, %s7544_s15   ;;  %p13310_p9 = scmp.eq.s32.totalorder %s7620_s18, 0 }
  0x72   : > { %s7165_s28 = sshll.u32 %s250_s17, 7 }
  0x73   : > { %s7766_s6 = scalar_lea.vmem [#allocation2], %s7165_s28 }
  0x74   : > { %7535 = dma.done.wait (%p13310_p9), [#allocation4], 2048   ;;  %p13311_p11 = pmov %p13310_p9 }
  0x75   : > { %p13312_p13 = pmov %p13310_p9 }
  0x76   : > { %7537 = vsyncadd (%p13311_p11), [#allocation4], 4294965248 }
  0x77   : > { %7539 = dma.done.wait (%p13312_p13), [#allocation6], 131072   ;;  %p13313_p3 = pmov %p13310_p9 }
  0x78   : > { %v13027_v16 = vmov 0.0   ;;  %v7562_v17 = vmov 0   ;;  %v289_v18 = vld [vmem:[%s7766_s6 + $0x8] sm:$0xff]  ;;  %v291_v20 = vld [vmem:[%s7766_s6 + $0x18] sm:$0xff]  ;;  %v288_v25 = vld [vmem:[%s7766_s6] sm:$0xff]  ;;  %vm334_vm0 = vcmask 130048  }
  0x79   : > { %7541 = vsyncadd (%p13313_p3), [#allocation6], 4294836224  ;;  %405 = vmatprep.mubr.f32.mxu0 %v13027_v16  ;;  %482 = vmatprep.mubr.f32.mxu1 %v13027_v16  ;;  %v297_v19 = vld [vmem:[%s7766_s6 + $0x48] sm:$0xff]  ;;  %v305_v21 = vmax.f32 %v289_v18, 0.0  ;;  %v299_v23 = vld [vmem:[%s7766_s6 + $0x58] sm:$0xff]  ;;  %v307_v24 = vmax.f32 %v291_v20, 0.0 }
  0x7a   : > { %7434 = vset.pattern.permute.xlu0 %v7562_v17  ;;  %7435 = vset.pattern.permute.xlu1 %v7562_v17  ;;  %v313_v22 = vmax.f32 %v297_v19, 0.0  ;;  %v296_v26 = vld [vmem:[%s7766_s6 + $0x40] sm:$0xff]  ;;  %v315_v27 = vmax.f32 %v299_v23, 0.0  ;;  %v304_v28 = vmax.f32 %v288_v25, 0.0  ;;  %v290_v30 = vld [vmem:[%s7766_s6 + $0x10] sm:$0xff]  ;;  %v293_v35 = vld [vmem:[%s7766_s6 + $0x28] sm:$0xff] }
  0x7b   : > { %v312_v29 = vmax.f32 %v296_v26, 0.0  ;;  %v298_v31 = vld [vmem:[%s7766_s6 + $0x50] sm:$0xff]  ;;  %v306_v33 = vmax.f32 %v290_v30, 0.0  ;;  %v301_v36 = vld [vmem:[%s7766_s6 + $0x68] sm:$0xff]  ;;  %v309_v39 = vmax.f32 %v293_v35, 0.0  ;;  %v295_v41 = vld [vmem:[%s7766_s6 + $0x38] sm:$0xff] }
  0x7c   : > { %v7229_v32 = vpack.c.bf16 %v313_v22, %v305_v21  ;;  %v314_v34 = vmax.f32 %v298_v31, 0.0  ;;  %v7233_v37 = vpack.c.bf16 %v315_v27, %v307_v24  ;;  %v317_v40 = vmax.f32 %v301_v36, 0.0  ;;  %v303_v42 = vld [vmem:[%s7766_s6 + $0x78] sm:$0xff]  ;;  %v292_v43 = vld [vmem:[%s7766_s6 + $0x20] sm:$0xff]  ;;  %v294_v49 = vld [vmem:[%s7766_s6 + $0x30] sm:$0xff]  ;;  %s7563_s25 = smov 16  }
  0x7d   : > { %v7231_v38 = vpack.c.bf16 %v312_v29, %v304_v28  ;;  %v311_v45 = vmax.f32 %v295_v41, 0.0  ;;  %v319_v46 = vmax.f32 %v303_v42, 0.0  ;;  %v300_v47 = vld [vmem:[%s7766_s6 + $0x60] sm:$0xff]  ;;  %v308_v48 = vmax.f32 %v292_v43, 0.0  ;;  %v302_v50 = vld [vmem:[%s7766_s6 + $0x70] sm:$0xff]  ;;  %v323_v60 = vld [vmem:[#allocation5 + $0x8] sm:$0xff] }
  0x7e   : > { %7230 = vmatprep.subr.bf16.mxu0 %v7229_v32  ;;  %v7235_v44 = vpack.c.bf16 %v314_v34, %v306_v33  ;;  %7234 = vmatprep.subr.bf16.mxu1 %v7233_v37  ;;  %v320_v51 = vld [vmem:[#allocation3] sm:$0xff]  ;;  %v7237_v52 = vpack.c.bf16 %v317_v40, %v309_v39  ;;  %v316_v53 = vmax.f32 %v300_v47, 0.0  ;;  %v310_v54 = vmax.f32 %v294_v49, 0.0  ;;  %v321_v61 = vld [vmem:[#allocation3 + $0x8] sm:$0xff]  ;;  %s7564_s9 = smov 17   ;;  %s7565_s10 = smov 15  }
  0x7f   : > { %7232 = vmatpush1.bf16.msra.mxu0 %v7231_v38  ;;  %v318_v55 = vmax.f32 %v302_v50, 0.0  ;;  %v322_v56 = vld [vmem:[#allocation5] sm:$0xff]  ;;  %v7241_v57 = vpack.c.bf16 %v319_v46, %v311_v45  ;;  %s7566_s11 = smov 1   ;;  %s7567_s13 = smov 127   ;;  %vm5208_vm9 = vcmask 64512  }
  0x80   : > { %7236 = vmatpush1.bf16.msra.mxu1 %v7235_v44  ;;  %326 = vperm.xlu0 %7434, %v322_v56   ;;  %v7239_v58 = vpack.c.bf16 %v316_v53, %v308_v48  ;;  %s7568_s14 = smov 113   ;;  %s7569_s30 = smov 112  }
  0x81   : > { %7238 = vmatprep.subr.bf16.mxu0 %v7237_v52  ;;  %v7243_v59 = vpack.c.bf16 %v318_v55, %v310_v54  ;;  %7242 = vmatprep.subr.bf16.mxu1 %v7241_v57  ;;  %s7570_s21 = smov 111   ;;  %s7169_s26 = sshll.u32 %s250_s17, 8 }
  0x82   : > { %7170 = vmatmul.mubr.msk.f32.vlgmr.msra.gmra.mrb[0].mxu0 %vm334_vm0, %v320_v51  ;;  %s11864_s15 = scalar_lea.vmem [#allocation8], %s7169_s26  ;;  %s7571_s27 = smov 34  }
  0x83   : > { %7172 = vmatmul.mubr.msk.f32.vlgmr.msra.gmra.mrb[0].mxu1 %vm334_vm0, %v320_v51  ;;  %411 = vmatprep.mubr.f32.mxu0 %v13027_v16  ;;  %s7572_s12 = smov 32   ;;  %s7573_s20 = smov 30  }
  0x84   : > { %488 = vmatprep.mubr.f32.mxu1 %v13027_v16  ;;  %7240 = vmatpush1.bf16.msra.mxu0 %v7239_v58  ;;  %s7574_s29 = smov 2   ;;  %s7575_s5 = smov 126  }
  0x85   : > { %7244 = vmatpush1.bf16.msra.mxu1 %v7243_v59  ;;  %331 = vperm.xlu0 %7434, %v323_v60   ;;  %s7576_s7 = smov 98   ;;  %s7577_s8 = smov 96  }
  0x86   : > { %7171 = vmatmul.mubr.msk.f32.gmra.mrb[2].mxu0 %vm334_vm0, %v321_v61  ;;  %s7578_s23 = smov 94   ;;  %p14001_p6 = scmp.ne.s32.totalorder %s13304_s24, 0 }
  0x87   : > { %7173 = vmatmul.mubr.msk.f32.gmra.mrb[2].mxu1 %vm334_vm0, %v321_v61  ;;  %559 = vmatprep.mubr.f32.mxu0 %v13027_v16  ;;  %s7228_s17 = sshll.u32 (%p14001_p6), %s7620_s18, 6 }
  0x88   : > { %636 = vmatprep.mubr.f32.mxu1 %v13027_v16 }
  0x8a   : > { %7174 = vmatmul.mubr.msk.f32.vlgmr.msra.gmra.mrb[4].mxu0 %vm334_vm0, %v320_v51 }
  0x8b   : > { %7176 = vmatmul.mubr.msk.f32.vlgmr.msra.gmra.mrb[4].mxu1 %vm334_vm0, %v320_v51  ;;  %565 = vmatprep.mubr.f32.mxu0 %v13027_v16 }
  0x8c   : > { %642 = vmatprep.mubr.f32.mxu1 %v13027_v16 }
  0x8e   : > { %7175 = vmatmul.mubr.msk.f32.gmra.mrb[6].mxu0 %vm334_vm0, %v321_v61 }
  0x8f   : > { %7177 = vmatmul.mubr.msk.f32.gmra.mrb[6].mxu1 %vm334_vm0, %v321_v61  ;;  %1585 = vmatprep.mubr.f32.mxu0 %v13027_v16 }
  0x90   : > { %1662 = vmatprep.mubr.f32.mxu1 %v13027_v16 }
  0xff   : > { %v7810_v62 = vpop.permute.xlu0 %326 }
 0x104   : > { %v7817_v4 = vpop.permute.xlu0 %331 }
 0x155   : > { %v407_v63 = vpop.f32.mrb[0].mxu0 }
 0x156   : > { %v484_v0 = vpop.f32.mrb[0].mxu1  ;;  %v7812_v1 = vpop.f32.mrb[1].mxu0  ;;  %v7830_v11 = vadd.f32 %v407_v63, %v7810_v62 }
 0x157   : > { %v7815_v2 = vadd.f32 %v484_v0, %v7810_v62  ;;  %v486_v3 = vpop.f32.mrb[1].mxu1  ;;  %v7924_v27 = vadd.f32 %v7812_v1, %v7810_v62 }
 0x158   : > { %13315 = vst [vmem:[#allocation12_spill] sm:$0xff] %v7830_v11  ;;  %v7847_v18 = vmax.f32 %v7830_v11, 0.0  ;;  %v7909_v25 = vadd.f32 %v486_v3, %v7810_v62  ;;  %v3028_v11 = vld [vmem:[#allocation7 + $0x958] sm:$0xff] }
 0x159   : > { %13314 = vst [vmem:[#allocation11_spill] sm:$0xff] %v7815_v2  ;;  %v7820_v5 = vmax.f32 %v7815_v2, 0.0  ;;  %v413_v6 = vpop.f32.mrb[2].mxu0  ;;  %13320 = vst [vmem:[#allocation17_spill] sm:$0xff] %v7924_v27  ;;  %v7932_v29 = vmax.f32 %v7924_v27, 0.0 }
 0x15a   : > { %v490_v7 = vpop.f32.mrb[2].mxu1  ;;  %v7822_v8 = vpop.f32.mrb[3].mxu0  ;;  %13316 = vst [vmem:[#allocation13_spill] sm:$0xff] %v7847_v18  ;;  %v414_v23 = vadd.f32 %v413_v6, %v7817_v4  ;;  %13318 = vst [vmem:[#allocation15_spill] sm:$0xff] %v7909_v25  ;;  %v7916_v26 = vmax.f32 %v7909_v25, 0.0 }
 0x15b   : > { %v491_v9 = vadd.f32 %v490_v7, %v7817_v4  ;;  %v492_v10 = vpop.f32.mrb[3].mxu1  ;;  %772 = vrot.lane.b32.xlu0 %v7820_v5, %s7563_s25  ;;  %673 = vrot.lane.b32.xlu1 %v7820_v5, %s7564_s9  ;;  %v416_v31 = vadd.f32 %v7822_v8, %v7817_v4 }
 0x15c   : > { %v7866_v24 = vmax.f32 %v414_v23, 0.0  ;;  %13319 = vst [vmem:[#allocation16_spill] sm:$0xff] %v7916_v26  ;;  %v493_v28 = vadd.f32 %v492_v10, %v7817_v4  ;;  %v3020_v23 = vld [vmem:[#allocation7 + $0x918] sm:$0xff] }
 0x15d   : > { %v7832_v12 = vmax.f32 %v491_v9, 0.0  ;;  %v7834_v13 = vpop.f32.mrb[4].mxu0  ;;  %v7946_v32 = vmax.f32 %v416_v31, 0.0  ;;  %v697_v9 = vlaneseq  ;;  %v3069_v31 = vld [vmem:[#allocation7 + $0x998] sm:$0xff] }
 0x15e   : > { %v7836_v14 = vpop.f32.mrb[4].mxu1  ;;  %v7838_v15 = vpop.f32.mrb[5].mxu0  ;;  %13317 = vst [vmem:[#allocation14_spill] sm:$0xff] %v7866_v24  ;;  %v7934_v30 = vmax.f32 %v493_v28, 0.0  ;;  %v8021_v41 = vadd.f32 %v7834_v13, %v7810_v62 }
 0x15f   : > { %v7840_v17 = vpop.f32.mrb[5].mxu1  ;;  %870 = vrot.lane.b32.xlu0 %v7820_v5, %s7565_s10  ;;  %675 = vrot.lane.b32.xlu1 %v7832_v12, %s7564_s9  ;;  %13322 = vst [vmem:[#allocation19_spill] sm:$0xff] %v7946_v32  ;;  %v7998_v35 = vadd.f32 %v7836_v14, %v7810_v62  ;;  %v8126_v14 = vand.u32 127, %v697_v9 }
 0x160   : > { %13321 = vst [vmem:[#allocation18_spill] sm:$0xff] %v7934_v30  ;;  %13326 = vst [vmem:[#allocation23_spill] sm:$0xff] %v8021_v41  ;;  %v8034_v45 = vmax.f32 %v8021_v41, 0.0  ;;  %v8154_v9 = vadd.f32 %v7840_v17, %v7810_v62 }
 0x161   : > { %v7849_v19 = vpop.f32.mrb[6].mxu0  ;;  %13323 = vst [vmem:[#allocation20_spill] sm:$0xff] %v7998_v35  ;;  %v8009_v38 = vmax.f32 %v7998_v35, 0.0  ;;  %vm699_vm1 = vcmp.lt.s32.totalorder %v8126_v14, 17  ;;  %vm796_vm2 = vcmp.lt.s32.totalorder %v8126_v14, 16  ;;  %vm894_vm3 = vcmp.lt.s32.totalorder %v8126_v14, 15 }
 0x162   : > { %v7851_v20 = vpop.f32.mrb[6].mxu1  ;;  %v7853_v21 = vpop.f32.mrb[7].mxu0  ;;  %13328 = vst [vmem:[#allocation25_spill] sm:$0xff] %v8034_v45  ;;  %v568_v49 = vadd.f32 %v7849_v19, %v7817_v4  ;;  %13351 = vst [vmem:[#allocation48_spill] sm:$0xff] %v8154_v9  ;;  %v8173_v27 = vmax.f32 %v8154_v9, 0.0  ;;  %vm992_vm4 = vcmp.lt.s32.totalorder %v8126_v14, 1 }
 0x163   : > { %v7855_v22 = vpop.f32.mrb[7].mxu1  ;;  %774 = vrot.lane.b32.xlu1 %v7832_v12, %s7563_s25  ;;  %665 = vrot.lane.b32.xlu0 %v7847_v18, %s7564_s9  ;;  %13324 = vst [vmem:[#allocation21_spill] sm:$0xff] %v8009_v38  ;;  %v645_v42 = vadd.f32 %v7851_v20, %v7817_v4  ;;  %vm1139_vm5 = vcmp.lt.s32.totalorder %v8126_v14, 127  ;;  %vm1237_vm6 = vcmp.lt.s32.totalorder %v8126_v14, 113  ;;  %vm1335_vm7 = vcmp.lt.s32.totalorder %v8126_v14, 112 }
 0x164   : > { %v8056_v52 = vmax.f32 %v568_v49, 0.0  ;;  %v647_v9 = vadd.f32 %v7855_v22, %v7817_v4  ;;  %vm1433_vm8 = vcmp.lt.s32.totalorder %v8126_v14, 111  ;;  %vm6307_vm10 = vcmp.lt.s32.totalorder %v8126_v14, 32 }
 0x165   : > { %v8036_v46 = vmax.f32 %v645_v42, 0.0  ;;  %vm6257_vm11 = vcmp.lt.s32.totalorder %v8126_v14, 34  ;;  %vm6357_vm12 = vcmp.lt.s32.totalorder %v8126_v14, 30  ;;  %vm6407_vm13 = vcmp.lt.s32.totalorder %v8126_v14, 2 }
 0x166   : > { %13333 = vst [vmem:[#allocation30_spill] sm:$0xff] %v8056_v52  ;;  %vm6482_vm14 = vcmp.lt.s32.totalorder %v8126_v14, 126  ;;  %vm6532_vm15 = vcmp.lt.s32.totalorder %v8126_v14, 98 }
 0x167   : > { %872 = vrot.lane.b32.xlu1 %v7832_v12, %s7565_s10  ;;  %764 = vrot.lane.b32.xlu0 %v7847_v18, %s7563_s25  ;;  %13329 = vst [vmem:[#allocation26_spill] sm:$0xff] %v8036_v46 }
 0x16b   : > { %667 = vrot.lane.b32.xlu1 %v7866_v24, %s7564_s9  ;;  %968 = vrot.lane.b32.xlu0 %v7820_v5, %s7566_s11 }
 0x16f   : > { %766 = vrot.lane.b32.xlu1 %v7866_v24, %s7563_s25  ;;  %862 = vrot.lane.b32.xlu0 %v7847_v18, %s7565_s10 }
 0x173   : > { %970 = vrot.lane.b32.xlu1 %v7832_v12, %s7566_s11  ;;  %960 = vrot.lane.b32.xlu0 %v7847_v18, %s7566_s11 }
 0x177   : > { %864 = vrot.lane.b32.xlu1 %v7866_v24, %s7565_s10  ;;  %1115 = vrot.lane.b32.xlu0 %v7820_v5, %s7567_s13 }
 0x17b   : > { %962 = vrot.lane.b32.xlu1 %v7866_v24, %s7566_s11  ;;  %1213 = vrot.lane.b32.xlu0 %v7820_v5, %s7568_s14 }
 0x17f   : > { %1117 = vrot.lane.b32.xlu1 %v7832_v12, %s7567_s13  ;;  %1107 = vrot.lane.b32.xlu0 %v7847_v18, %s7567_s13 }
 0x183   : > { %1215 = vrot.lane.b32.xlu1 %v7832_v12, %s7568_s14  ;;  %1311 = vrot.lane.b32.xlu0 %v7820_v5, %s7569_s30 }
 0x187   : > { %1109 = vrot.lane.b32.xlu1 %v7866_v24, %s7567_s13  ;;  %1205 = vrot.lane.b32.xlu0 %v7847_v18, %s7568_s14 }
 0x18b   : > { %1313 = vrot.lane.b32.xlu1 %v7832_v12, %s7569_s30  ;;  %1409 = vrot.lane.b32.xlu0 %v7820_v5, %s7570_s21 }
 0x18f   : > { %1207 = vrot.lane.b32.xlu1 %v7866_v24, %s7568_s14  ;;  %1303 = vrot.lane.b32.xlu0 %v7847_v18, %s7569_s30 }
 0x193   : > { %1411 = vrot.lane.b32.xlu1 %v7832_v12, %s7570_s21  ;;  %1401 = vrot.lane.b32.xlu0 %v7847_v18, %s7570_s21 }
 0x197   : > { %1305 = vrot.lane.b32.xlu1 %v7866_v24, %s7569_s30  ;;  %677 = vrot.lane.b32.xlu0 %v7916_v26, %s7564_s9 }
 0x19b   : > { %1403 = vrot.lane.b32.xlu1 %v7866_v24, %s7570_s21  ;;  %776 = vrot.lane.b32.xlu0 %v7916_v26, %s7563_s25 }
 0x19f   : > { %679 = vrot.lane.b32.xlu1 %v7934_v30, %s7564_s9  ;;  %669 = vrot.lane.b32.xlu0 %v7932_v29, %s7564_s9 }
 0x1a3   : > { %778 = vrot.lane.b32.xlu1 %v7934_v30, %s7563_s25  ;;  %768 = vrot.lane.b32.xlu0 %v7932_v29, %s7563_s25 }
 0x1a7   : > { %671 = vrot.lane.b32.xlu1 %v7946_v32, %s7564_s9  ;;  %874 = vrot.lane.b32.xlu0 %v7916_v26, %s7565_s10 }
 0x1ab   : > { %770 = vrot.lane.b32.xlu1 %v7946_v32, %s7563_s25  ;;  %866 = vrot.lane.b32.xlu0 %v7932_v29, %s7565_s10 }
 0x1af   : > { %876 = vrot.lane.b32.xlu1 %v7934_v30, %s7565_s10  ;;  %972 = vrot.lane.b32.xlu0 %v7916_v26, %s7566_s11 }
 0x1b3   : > { %868 = vrot.lane.b32.xlu1 %v7946_v32, %s7565_s10  ;;  %964 = vrot.lane.b32.xlu0 %v7932_v29, %s7566_s11 }
 0x1b7   : > { %974 = vrot.lane.b32.xlu1 %v7934_v30, %s7566_s11  ;;  %1119 = vrot.lane.b32.xlu0 %v7916_v26, %s7567_s13 }
 0x1bb   : > { %966 = vrot.lane.b32.xlu1 %v7946_v32, %s7566_s11  ;;  %1217 = vrot.lane.b32.xlu0 %v7916_v26, %s7568_s14 }
 0x1bf   : > { %1121 = vrot.lane.b32.xlu1 %v7934_v30, %s7567_s13  ;;  %1111 = vrot.lane.b32.xlu0 %v7932_v29, %s7567_s13 }
 0x1c3   : > { %1219 = vrot.lane.b32.xlu1 %v7934_v30, %s7568_s14  ;;  %1315 = vrot.lane.b32.xlu0 %v7916_v26, %s7569_s30 }
 0x1c7   : > { %1113 = vrot.lane.b32.xlu1 %v7946_v32, %s7567_s13  ;;  %1209 = vrot.lane.b32.xlu0 %v7932_v29, %s7568_s14 }
 0x1cb   : > { %1317 = vrot.lane.b32.xlu1 %v7934_v30, %s7569_s30  ;;  %1413 = vrot.lane.b32.xlu0 %v7916_v26, %s7570_s21  ;;  %v5053_v26 = vld [vmem:[#allocation7 + $0x1398] sm:$0xff] }
 0x1cd   : > { %v7988_v33 = vpop.permute.xlu0 %772  ;;  %v7990_v34 = vpop.permute.xlu1 %673 }
 0x1cf   : > { %1211 = vrot.lane.b32.xlu1 %v7946_v32, %s7568_s14  ;;  %1307 = vrot.lane.b32.xlu0 %v7932_v29, %s7569_s30 }
 0x1d1   : > { %v8000_v36 = vpop.permute.xlu0 %870  ;;  %v8002_v37 = vpop.permute.xlu1 %675 }
 0x1d3   : > { %1415 = vrot.lane.b32.xlu1 %v7934_v30, %s7570_s21  ;;  %1405 = vrot.lane.b32.xlu0 %v7932_v29, %s7570_s21  ;;  %v3167_v30 = vld [vmem:[#allocation7 + $0xa98] sm:$0xff] }
 0x1d5   : > { %v8011_v39 = vpop.permute.xlu1 %774  ;;  %v8013_v40 = vpop.permute.xlu0 %665 }
 0x1d6   : > { %13325 = vst [vmem:[#allocation22_spill] sm:$0xff] %v8013_v40 }
 0x1d7   : > { %1309 = vrot.lane.b32.xlu1 %v7946_v32, %s7569_s30  ;;  %689 = vrot.lane.b32.xlu0 %v8009_v38, %s7564_s9 }
 0x1d9   : > { %v8025_v43 = vpop.permute.xlu1 %872  ;;  %v8027_v44 = vpop.permute.xlu0 %764 }
 0x1da   : > { %13327 = vst [vmem:[#allocation24_spill] sm:$0xff] %v8027_v44 }
 0x1db   : > { %1407 = vrot.lane.b32.xlu1 %v7946_v32, %s7570_s21  ;;  %788 = vrot.lane.b32.xlu0 %v8009_v38, %s7563_s25 }
 0x1dd   : > { %v8038_v47 = vpop.permute.xlu1 %667  ;;  %v8040_v48 = vpop.permute.xlu0 %968 }
 0x1de   : > { %13330 = vst [vmem:[#allocation27_spill] sm:$0xff] %v8038_v47 }
 0x1df   : > { %691 = vrot.lane.b32.xlu1 %v8036_v46, %s7564_s9  ;;  %1123 = vrot.lane.b32.xlu0 %v8034_v45, %s7567_s13 }
 0x1e1   : > { %v8048_v50 = vpop.permute.xlu1 %766  ;;  %v8050_v51 = vpop.permute.xlu0 %862 }
 0x1e2   : > { %13331 = vst [vmem:[#allocation28_spill] sm:$0xff] %v8048_v50  ;;  %13332 = vst [vmem:[#allocation29_spill] sm:$0xff] %v8050_v51 }
 0x1e3   : > { %790 = vrot.lane.b32.xlu1 %v8036_v46, %s7563_s25  ;;  %886 = vrot.lane.b32.xlu0 %v8009_v38, %s7565_s10 }
 0x1e5   : > { %v8058_v53 = vpop.permute.xlu1 %970  ;;  %v8060_v54 = vpop.permute.xlu0 %960 }
 0x1e6   : > { %13334 = vst [vmem:[#allocation31_spill] sm:$0xff] %v8060_v54 }
 0x1e7   : > { %1125 = vrot.lane.b32.xlu1 %v8056_v52, %s7567_s13  ;;  %1221 = vrot.lane.b32.xlu0 %v8034_v45, %s7568_s14 }
 0x1e9   : > { %v8066_v55 = vpop.permute.xlu1 %864  ;;  %v8068_v56 = vpop.permute.xlu0 %1115 }
 0x1ea   : > { %13335 = vst [vmem:[#allocation32_spill] sm:$0xff] %v8066_v55 }
 0x1eb   : > { %888 = vrot.lane.b32.xlu1 %v8036_v46, %s7565_s10  ;;  %681 = vrot.lane.b32.xlu0 %v8034_v45, %s7564_s9 }
 0x1ed   : > { %v8074_v57 = vpop.permute.xlu1 %962  ;;  %v8076_v58 = vpop.permute.xlu0 %1213 }
 0x1ee   : > { %13336 = vst [vmem:[#allocation33_spill] sm:$0xff] %v8074_v57 }
 0x1ef   : > { %1223 = vrot.lane.b32.xlu1 %v8056_v52, %s7568_s14  ;;  %780 = vrot.lane.b32.xlu0 %v8034_v45, %s7563_s25 }
 0x1f1   : > { %v8082_v59 = vpop.permute.xlu1 %1117  ;;  %v8084_v60 = vpop.permute.xlu0 %1107 }
 0x1f2   : > { %13337 = vst [vmem:[#allocation34_spill] sm:$0xff] %v8084_v60 }
 0x1f3   : > { %683 = vrot.lane.b32.xlu1 %v8056_v52, %s7564_s9  ;;  %984 = vrot.lane.b32.xlu0 %v8009_v38, %s7566_s11 }
 0x1f5   : > { %v8090_v61 = vpop.permute.xlu1 %1215  ;;  %v8092_v63 = vpop.permute.xlu0 %1311 }
 0x1f7   : > { %782 = vrot.lane.b32.xlu1 %v8056_v52, %s7563_s25  ;;  %1319 = vrot.lane.b32.xlu0 %v8034_v45, %s7569_s30 }
 0x1f9   : > { %v8098_v0 = vpop.permute.xlu1 %1109  ;;  %v8100_v1 = vpop.permute.xlu0 %1205 }
 0x1fa   : > { %13338 = vst [vmem:[#allocation35_spill] sm:$0xff] %v8098_v0  ;;  %13339 = vst [vmem:[#allocation36_spill] sm:$0xff] %v8100_v1  ;;  %v3067_v1 = vld [vmem:[#allocation7 + $0x988] sm:$0xff]  ;;  %v3068_v0 = vld [vmem:[#allocation7 + $0x990] sm:$0xff] }
 0x1fb   : > { %986 = vrot.lane.b32.xlu1 %v8036_v46, %s7566_s11  ;;  %878 = vrot.lane.b32.xlu0 %v8034_v45, %s7565_s10 }
 0x1fd   : > { %v8106_v3 = vpop.permute.xlu1 %1313  ;;  %v8108_v6 = vpop.permute.xlu0 %1409 }
 0x1fe   : > { %13340 = vst [vmem:[#allocation37_spill] sm:$0xff] %v8106_v3  ;;  %13341 = vst [vmem:[#allocation38_spill] sm:$0xff] %v8108_v6 }
 0x1ff   : > { %1321 = vrot.lane.b32.xlu1 %v8056_v52, %s7569_s30  ;;  %1417 = vrot.lane.b32.xlu0 %v8034_v45, %s7570_s21 }
 0x201   : > { %v8114_v7 = vpop.permute.xlu1 %1207  ;;  %v8116_v8 = vpop.permute.xlu0 %1303 }
 0x202   : > { %13342 = vst [vmem:[#allocation39_spill] sm:$0xff] %v8114_v7  ;;  %13343 = vst [vmem:[#allocation40_spill] sm:$0xff] %v8116_v8 }
 0x203   : > { %880 = vrot.lane.b32.xlu1 %v8056_v52, %s7565_s10  ;;  %976 = vrot.lane.b32.xlu0 %v8034_v45, %s7566_s11 }
 0x205   : > { %v8122_v10 = vpop.permute.xlu1 %1411  ;;  %v8124_v13 = vpop.permute.xlu0 %1401 }
 0x206   : > { %13344 = vst [vmem:[#allocation41_spill] sm:$0xff] %v8122_v10  ;;  %13345 = vst [vmem:[#allocation42_spill] sm:$0xff] %v8124_v13  ;;  %v816_v10 = vld [vmem:[#allocation7 + $0x90] sm:$0xff] }
 0x207   : > { %1419 = vrot.lane.b32.xlu1 %v8056_v52, %s7570_s21  ;;  %1131 = vrot.lane.b32.xlu0 %v8009_v38, %s7567_s13 }
 0x209   : > { %v8132_v19 = vpop.permute.xlu1 %1305  ;;  %v8135_v20 = vpop.permute.xlu0 %677 }
 0x20a   : > { %13346 = vst [vmem:[#allocation43_spill] sm:$0xff] %v8132_v19  ;;  %13347 = vst [vmem:[#allocation44_spill] sm:$0xff] %v8135_v20  ;;  %v8146_v28 = vsel %vm699_vm1, %v7990_v34, %v8135_v20  ;;  %v3019_v19 = vld [vmem:[#allocation7 + $0x910] sm:$0xff]  ;;  %v5028_v20 = vld [vmem:[#allocation7 + $0x1318] sm:$0xff] }
 0x20b   : > { %978 = vrot.lane.b32.xlu1 %v8056_v52, %s7566_s11  ;;  %1229 = vrot.lane.b32.xlu0 %v8009_v38, %s7568_s14  ;;  %13348 = vst [vmem:[#allocation45_spill] sm:$0xff] %v8146_v28  ;;  %v3036_v41 = vmul.f32 %v3020_v23, %v8146_v28 }
 0x20d   : > { %v8148_v42 = vpop.permute.xlu1 %1403  ;;  %v8150_v49 = vpop.permute.xlu0 %776 }
 0x20e   : > { %13349 = vst [vmem:[#allocation46_spill] sm:$0xff] %v8148_v42  ;;  %13350 = vst [vmem:[#allocation47_spill] sm:$0xff] %v8150_v49  ;;  %v8160_v16 = vsel %vm796_vm2, %v7988_v33, %v8150_v49  ;;  %v4978_v42 = vld [vmem:[#allocation7 + $0x1218] sm:$0xff] }
 0x20f   : > { %13352 = vst [vmem:[#allocation49_spill] sm:$0xff] %v8160_v16  ;;  %v3085_v35 = vmul.f32 %v3069_v31, %v8160_v16  ;;  %1133 = vrot.lane.b32.xlu1 %v8036_v46, %s7567_s13  ;;  %1327 = vrot.lane.b32.xlu0 %v8009_v38, %s7569_s30  ;;  %v3018_v31 = vld [vmem:[#allocation7 + $0x908] sm:$0xff] }
 0x211   : > { %v8168_v25 = vadd.f32 %v3085_v35, %v3036_v41  ;;  %v8170_v17 = vpop.permute.xlu1 %679  ;;  %v670_v2 = vpop.permute.xlu0 %669  ;;  %v3077_v35 = vld [vmem:[#allocation7 + $0x9d8] sm:$0xff] }
 0x212   : > { %13353 = vst [vmem:[#allocation50_spill] sm:$0xff] %v8170_v17  ;;  %v8181_v23 = vsel %vm699_vm1, %v8002_v37, %v8170_v17  ;;  %v5003_v41 = vld [vmem:[#allocation7 + $0x1298] sm:$0xff]  ;;  %v8190_v13 = vsel %vm699_vm1, %v670_v2, %v7990_v34  ;;  %v8195_v8 = vsel %vm699_vm1, %v8013_v40, %v670_v2 }
 0x213   : > { %1231 = vrot.lane.b32.xlu1 %v8036_v46, %s7568_s14  ;;  %13354 = vst [vmem:[#allocation51_spill] sm:$0xff] %v8181_v23  ;;  %693 = vrot.lane.b32.xlu0 %v8173_v27, %s7564_s9  ;;  %v3044_v40 = vmul.f32 %v3028_v11, %v8181_v23  ;;  %v4986_v52 = vmul.f32 %v4978_v42, %v8181_v23  ;;  %v8227_v11 = vmax.f32 %v647_v9, 0.0  ;;  %v3027_v23 = vld [vmem:[#allocation7 + $0x950] sm:$0xff]  ;;  %v3026_v9 = vld [vmem:[#allocation7 + $0x948] sm:$0xff] }
 0x215   : > { %v8197_v7 = vpop.permute.xlu1 %778  ;;  %v769_v60 = vpop.permute.xlu0 %768 }
 0x216   : > { %13355 = vst [vmem:[#allocation52_spill] sm:$0xff] %v8197_v7  ;;  %v8203_v22 = vsel %vm796_vm2, %v8011_v39, %v8197_v7  ;;  %v8208_v34 = vsel %vm796_vm2, %v769_v60, %v7988_v33  ;;  %v8213_v2 = vsel %vm796_vm2, %v8027_v44, %v769_v60  ;;  %v3034_v7 = vmul.f32 %v3018_v31, %v8195_v8 }
 0x217   : > { %13356 = vst [vmem:[#allocation53_spill] sm:$0xff] %v8203_v22  ;;  %v3093_v45 = vmul.f32 %v3077_v35, %v8203_v22  ;;  %v5011_v17 = vmul.f32 %v5003_v41, %v8203_v22  ;;  %1329 = vrot.lane.b32.xlu1 %v8036_v46, %s7569_s30  ;;  %v3035_v33 = vmul.f32 %v3019_v19, %v8190_v13  ;;  %v4977_v22 = vld [vmem:[#allocation7 + $0x1210] sm:$0xff] }
 0x218   : > { %v3083_v24 = vmul.f32 %v3067_v1, %v8213_v2  ;;  %v3084_v60 = vmul.f32 %v3068_v0, %v8208_v34  ;;  %792 = vrot.lane.b32.xlu0 %v8173_v27, %s7563_s25  ;;  %v3118_v1 = vld [vmem:[#allocation7 + $0xa18] sm:$0xff] }
 0x219   : > { %v8229_v42 = vadd.f32 %v3093_v45, %v3044_v40  ;;  %v8231_v35 = vadd.f32 %v5011_v17, %v4986_v52  ;;  %v672_v41 = vpop.permute.xlu1 %671  ;;  %v8234_v44 = vpop.permute.xlu0 %874  ;;  %v4976_v45 = vld [vmem:[#allocation7 + $0x1208] sm:$0xff]  ;;  %v8258_v52 = vadd.f32 %v7838_v15, %v7810_v62 }
 0x21a   : > { %13357 = vst [vmem:[#allocation54_spill] sm:$0xff] %v8234_v44  ;;  %v3099_v31 = vadd.f32 %v3083_v24, %v3034_v7  ;;  %v3100_v19 = vadd.f32 %v3084_v60, %v3035_v33  ;;  %v8239_v0 = vsel %vm699_vm1, %v672_v41, %v8002_v37  ;;  %v8244_v40 = vsel %vm699_vm1, %v8038_v47, %v672_v41  ;;  %v3075_v37 = vld [vmem:[#allocation7 + $0x9c8] sm:$0xff]  ;;  %v3076_v33 = vld [vmem:[#allocation7 + $0x9d0] sm:$0xff] }
 0x21b   : > { %695 = vrot.lane.b32.xlu1 %v8227_v11, %s7564_s9  ;;  %v8252_v24 = vsel %vm894_vm3, %v8000_v36, %v8234_v44  ;;  %13359 = vst [vmem:[#allocation56_spill] sm:$0xff] %v8258_v52  ;;  %v3043_v7 = vmul.f32 %v3027_v23, %v8239_v0  ;;  %v5001_v60 = vld [vmem:[#allocation7 + $0x1288] sm:$0xff]  ;;  %v5002_v41 = vld [vmem:[#allocation7 + $0x1290] sm:$0xff]  ;;  %v3042_v44 = vmul.f32 %v3026_v9, %v8244_v40 }
 0x21c   : > { %13358 = vst [vmem:[#allocation55_spill] sm:$0xff] %v8252_v24  ;;  %890 = vrot.lane.b32.xlu0 %v8173_v27, %s7565_s10  ;;  %v3134_v17 = vmul.f32 %v3118_v1, %v8252_v24  ;;  %v4985_v18 = vmul.f32 %v4977_v22, %v8239_v0  ;;  %v4984_v15 = vmul.f32 %v4976_v45, %v8244_v40  ;;  %v3116_v45 = vld [vmem:[#allocation7 + $0xa08] sm:$0xff]  ;;  %v3126_v24 = vld [vmem:[#allocation7 + $0xa58] sm:$0xff] }
 0x21d   : > { %v771_v47 = vpop.permute.xlu1 %770  ;;  %v867_v28 = vpop.permute.xlu0 %866 }
 0x21e   : > { %v8267_v16 = vsel %vm796_vm2, %v771_v47, %v8011_v39  ;;  %v8272_v62 = vsel %vm796_vm2, %v8048_v50, %v771_v47  ;;  %v3150_v23 = vadd.f32 %v3134_v17, %v8168_v25  ;;  %v8279_v1 = vsel %vm894_vm3, %v867_v28, %v8000_v36  ;;  %v3117_v17 = vld [vmem:[#allocation7 + $0xa10] sm:$0xff] }
 0x21f   : > { %v8284_v22 = vsel %vm894_vm3, %v8050_v51, %v867_v28  ;;  %794 = vrot.lane.b32.xlu1 %v8227_v11, %s7563_s25  ;;  %v3091_v39 = vmul.f32 %v3075_v37, %v8272_v62  ;;  %v3092_v47 = vmul.f32 %v3076_v33, %v8267_v16  ;;  %v5009_v9 = vmul.f32 %v5001_v60, %v8272_v62 }
 0x220   : > { %v5010_v25 = vmul.f32 %v5002_v41, %v8267_v16  ;;  %988 = vrot.lane.b32.xlu0 %v8173_v27, %s7566_s11  ;;  %v8295_v36 = vmax.f32 %v8258_v52, 0.0  ;;  %v3132_v41 = vmul.f32 %v3116_v45, %v8284_v22  ;;  %v3133_v49 = vmul.f32 %v3117_v17, %v8279_v1  ;;  %v3124_v17 = vld [vmem:[#allocation7 + $0xa48] sm:$0xff] }
 0x221   : > { %v8297_v28 = vpop.permute.xlu1 %876  ;;  %v8300_v50 = vpop.permute.xlu0 %972  ;;  %v3107_v37 = vadd.f32 %v3091_v39, %v3042_v44  ;;  %v3108_v33 = vadd.f32 %v3092_v47, %v3043_v7  ;;  %v5017_v51 = vadd.f32 %v5009_v9, %v4984_v15  ;;  %v570_v44 = vadd.f32 %v7853_v21, %v7817_v4  ;;  %v5027_v21 = vld [vmem:[#allocation7 + $0x1310] sm:$0xff] }
 0x222   : > { %13360 = vst [vmem:[#allocation57_spill] sm:$0xff] %v8297_v28  ;;  %13361 = vst [vmem:[#allocation58_spill] sm:$0xff] %v8300_v50  ;;  %v5018_v60 = vadd.f32 %v5010_v25, %v4985_v18  ;;  %v8310_v52 = vsel %vm894_vm3, %v8025_v43, %v8297_v28  ;;  %v8316_v18 = vsel %vm992_vm4, %v8040_v48, %v8300_v50  ;;  %v3125_v28 = vld [vmem:[#allocation7 + $0xa50] sm:$0xff]  ;;  %v5026_v50 = vld [vmem:[#allocation7 + $0x1308] sm:$0xff] }
 0x223   : > { %892 = vrot.lane.b32.xlu1 %v8227_v11, %s7565_s10  ;;  %13362 = vst [vmem:[#allocation59_spill] sm:$0xff] %v8310_v52  ;;  %13363 = vst [vmem:[#allocation60_spill] sm:$0xff] %v8316_v18  ;;  %v3148_v7 = vadd.f32 %v3132_v41, %v3099_v31  ;;  %v3149_v15 = vadd.f32 %v3133_v49, %v3100_v19  ;;  %v3142_v39 = vmul.f32 %v3126_v24, %v8310_v52  ;;  %v3165_v24 = vld [vmem:[#allocation7 + $0xa88] sm:$0xff]  ;;  %v3166_v41 = vld [vmem:[#allocation7 + $0xa90] sm:$0xff] }
 0x224   : > { %685 = vrot.lane.b32.xlu0 %v8295_v36, %s7564_s9  ;;  %v5036_v25 = vmul.f32 %v5028_v20, %v8310_v52  ;;  %v3183_v45 = vmul.f32 %v3167_v30, %v8316_v18  ;;  %v3222_v18 = vld [vmem:[#allocation7 + $0xb48] sm:$0xff] }
 0x225   : > { %v869_v47 = vpop.permute.xlu1 %868  ;;  %v965_v9 = vpop.permute.xlu0 %964  ;;  %v8331_v4 = vadd.f32 %v3142_v39, %v8229_v42 }
 0x226   : > { %v8328_v46 = vsel %vm894_vm3, %v869_v47, %v8025_v43  ;;  %v8336_v49 = vsel %vm894_vm3, %v8066_v55, %v869_v47  ;;  %v8341_v30 = vadd.f32 %v5036_v25, %v8231_v35  ;;  %v8343_v20 = vadd.f32 %v3183_v45, %v3150_v23  ;;  %v1061_v47 = vld [vmem:[#allocation7 + $0x210] sm:$0xff]  ;;  %v3214_v25 = vld [vmem:[#allocation7 + $0xb08] sm:$0xff] }
 0x227   : > { %990 = vrot.lane.b32.xlu1 %v8227_v11, %s7566_s11  ;;  %v8347_v43 = vmax.f32 %v570_v44, 0.0  ;;  %v3140_v42 = vmul.f32 %v3124_v17, %v8336_v49  ;;  %v3141_v31 = vmul.f32 %v3125_v28, %v8328_v46  ;;  %v5034_v19 = vmul.f32 %v5026_v50, %v8336_v49  ;;  %v3215_v50 = vld [vmem:[#allocation7 + $0xb10] sm:$0xff] }
 0x228   : > { %13364 = vst [vmem:[#allocation61_spill] sm:$0xff] %v8343_v20  ;;  %784 = vrot.lane.b32.xlu0 %v8295_v36, %s7563_s25  ;;  %v5035_v23 = vmul.f32 %v5027_v21, %v8328_v46  ;;  %v8360_v44 = vsel %vm992_vm4, %v965_v9, %v8040_v48  ;;  %v8365_v28 = vsel %vm992_vm4, %v8060_v54, %v965_v9  ;;  %v3223_v48 = vld [vmem:[#allocation7 + $0xb50] sm:$0xff]  ;;  %v3175_v20 = vld [vmem:[#allocation7 + $0xad8] sm:$0xff] }
 0x229   : > { %v8352_v39 = vpop.permute.xlu1 %974  ;;  %v8354_v35 = vpop.permute.xlu0 %1119  ;;  %v8368_v45 = vadd.f32 %v3140_v42, %v3107_v37  ;;  %v8370_v17 = vadd.f32 %v3141_v31, %v3108_v33  ;;  %v8372_v55 = vadd.f32 %v5034_v19, %v5017_v51  ;;  %v5077_v21 = vld [vmem:[#allocation7 + $0x1410] sm:$0xff]  ;;  %v3181_v9 = vmul.f32 %v3165_v24, %v8365_v28 }
 0x22a   : > { %13365 = vst [vmem:[#allocation62_spill] sm:$0xff] %v8352_v39  ;;  %13366 = vst [vmem:[#allocation63_spill] sm:$0xff] %v8354_v35  ;;  %v8376_v52 = vadd.f32 %v5035_v23, %v5018_v60  ;;  %v3182_v54 = vmul.f32 %v3166_v41, %v8360_v44  ;;  %v8381_v37 = vmul.f32 %v1061_v47, %v7820_v5  ;;  %v3264_v33 = vld [vmem:[#allocation7 + $0xb90] sm:$0xff]  ;;  %v5076_v41 = vld [vmem:[#allocation7 + $0x1408] sm:$0xff] }
 0x22b   : > { %687 = vrot.lane.b32.xlu1 %v8347_v43, %s7564_s9  ;;  %v8389_v51 = vsel %vm992_vm4, %v8058_v53, %v8352_v39  ;;  %v3231_v60 = vmul.f32 %v3215_v50, %v7820_v5  ;;  %v8396_v42 = vsel %vm1139_vm5, %v8068_v56, %v8354_v35  ;;  %v8401_v24 = vmul.f32 %v3214_v25, %v7932_v29  ;;  %v815_v47 = vld [vmem:[#allocation7 + $0x88] sm:$0xff] }
 0x22c   : > { %13367 = vst [vmem:[#allocation64_spill] sm:$0xff] %v8381_v37  ;;  %882 = vrot.lane.b32.xlu0 %v8295_v36, %s7565_s10  ;;  %13368 = vst [vmem:[#allocation65_spill] sm:$0xff] %v8389_v51  ;;  %v8403_v23 = vadd.f32 %v3181_v9, %v3148_v7  ;;  %v3198_v39 = vadd.f32 %v3182_v54, %v3149_v15  ;;  %v3239_v38 = vmul.f32 %v3223_v48, %v7832_v12  ;;  %v717_v50 = vld [vmem:[#allocation7 + $0x8] sm:$0xff]  ;;  %v3174_v15 = vld [vmem:[#allocation7 + $0xad0] sm:$0xff] }
 0x22d   : > { %v967_v31 = vpop.permute.xlu1 %966  ;;  %v8398_v19 = vpop.permute.xlu0 %1217  ;;  %v5085_v5 = vmul.f32 %v5077_v21, %v7832_v12  ;;  %v3191_v35 = vmul.f32 %v3175_v20, %v8389_v51  ;;  %v5061_v6 = vmul.f32 %v5053_v26, %v8389_v51  ;;  %v3280_v3 = vmul.f32 %v3264_v33, %v8396_v42  ;;  %v3173_v37 = vld [vmem:[#allocation7 + $0xac8] sm:$0xff]  ;;  %v5052_v48 = vld [vmem:[#allocation7 + $0x1390] sm:$0xff] }
 0x22e   : > { %13369 = vst [vmem:[#allocation66_spill] sm:$0xff] %v8398_v19  ;;  %v8413_v7 = vmul.f32 %v3222_v18, %v7946_v32  ;;  %v3247_v54 = vadd.f32 %v3231_v60, %v3198_v39  ;;  %v5051_v25 = vld [vmem:[#allocation7 + $0x1388] sm:$0xff]  ;;  %v8418_v21 = vsel %vm992_vm4, %v967_v31, %v8058_v53  ;;  %v8424_v26 = vmul.f32 %v5076_v41, %v7946_v32  ;;  %v718_v20 = vld [vmem:[#allocation7 + $0x10] sm:$0xff] }
 0x22f   : > { %786 = vrot.lane.b32.xlu1 %v8347_v43, %s7563_s25  ;;  %v831_v18 = vmul.f32 %v815_v47, %v8213_v2  ;;  %v8428_v39 = vadd.f32 %v3191_v35, %v8331_v4  ;;  %v8431_v9 = vadd.f32 %v5061_v6, %v8341_v30  ;;  %v8436_v53 = vsel %vm992_vm4, %v8074_v57, %v967_v31  ;;  %v914_v6 = vld [vmem:[#allocation7 + $0x110] sm:$0xff] }
 0x230   : > { %980 = vrot.lane.b32.xlu0 %v8295_v36, %s7566_s11  ;;  %v832_v41 = vmul.f32 %v816_v10, %v8208_v34  ;;  %v3296_v51 = vadd.f32 %v3280_v3, %v3247_v54  ;;  %v3189_v2 = vmul.f32 %v3173_v37, %v8436_v53  ;;  %v733_v4 = vmul.f32 %v717_v50, %v8195_v8  ;;  %v3313_v47 = vld [vmem:[#allocation7 + $0xc10] sm:$0xff] }
 0x231   : > { %13370 = vst [vmem:[#allocation67_spill] sm:$0xff] %v8428_v39  ;;  %13371 = vst [vmem:[#allocation68_spill] sm:$0xff] %v8431_v9  ;;  %v8438_v33 = vpop.permute.xlu1 %1121  ;;  %v8440_v60 = vpop.permute.xlu0 %1111  ;;  %v3190_v30 = vmul.f32 %v3174_v15, %v8418_v21  ;;  %v5059_v35 = vmul.f32 %v5051_v25, %v8436_v53  ;;  %v5060_v31 = vmul.f32 %v5052_v48, %v8418_v21  ;;  %v3272_v57 = vld [vmem:[#allocation7 + $0xbd0] sm:$0xff] }
 0x232   : > { %13372 = vst [vmem:[#allocation69_spill] sm:$0xff] %v8438_v33  ;;  %v734_v3 = vmul.f32 %v718_v20, %v8190_v13  ;;  %v824_v10 = vld [vmem:[#allocation7 + $0xd0] sm:$0xff]  ;;  %v8453_v34 = vadd.f32 %v3189_v2, %v8368_v45  ;;  %v8459_v8 = vsel %vm1237_vm6, %v8076_v58, %v8398_v19  ;;  %v8465_v50 = vsel %vm1139_vm5, %v8082_v59, %v8438_v33  ;;  %v823_v45 = vld [vmem:[#allocation7 + $0xc8] sm:$0xff] }
 0x233   : > { %884 = vrot.lane.b32.xlu1 %v8347_v43, %s7565_s10  ;;  %v5102_v37 = vld [vmem:[#allocation7 + $0x1490] sm:$0xff]  ;;  %v847_v13 = vadd.f32 %v831_v18, %v733_v4  ;;  %v3206_v25 = vadd.f32 %v3190_v30, %v8370_v17  ;;  %v8471_v48 = vadd.f32 %v5059_v35, %v8372_v55  ;;  %v5068_v20 = vadd.f32 %v5060_v31, %v8376_v52  ;;  %v913_v19 = vld [vmem:[#allocation7 + $0x108] sm:$0xff] }
 0x234   : > { %1135 = vrot.lane.b32.xlu0 %v8173_v27, %s7567_s13  ;;  %v726_v54 = vld [vmem:[#allocation7 + $0x50] sm:$0xff]  ;;  %v848_v39 = vadd.f32 %v832_v41, %v734_v3  ;;  %v930_v33 = vmul.f32 %v914_v6, %v8279_v1  ;;  %v3329_v18 = vmul.f32 %v3313_v47, %v8459_v8  ;;  %v3288_v4 = vmul.f32 %v3272_v57, %v8465_v50  ;;  %v3263_v52 = vld [vmem:[#allocation7 + $0xb88] sm:$0xff] }
 0x235   : > { %v1012_v15 = vld [vmem:[#allocation7 + $0x190] sm:$0xff]  ;;  %v8474_v2 = vpop.permute.xlu1 %1219  ;;  %v8476_v9 = vpop.permute.xlu0 %1315  ;;  %v840_v32 = vmul.f32 %v824_v10, %v8267_v16  ;;  %v3255_v30 = vadd.f32 %v3239_v38, %v3206_v25  ;;  %v5093_v55 = vadd.f32 %v5085_v5, %v5068_v20  ;;  %v5110_v35 = vmul.f32 %v5102_v37, %v8465_v50  ;;  %v725_v31 = vld [vmem:[#allocation7 + $0x48] sm:$0xff] }
 0x236   : > { %v922_v17 = vld [vmem:[#allocation7 + $0x150] sm:$0xff]  ;;  %v742_v41 = vmul.f32 %v726_v54, %v8239_v0  ;;  %v839_v1 = vmul.f32 %v823_v45, %v8272_v62  ;;  %v1028_v6 = vmul.f32 %v1012_v15, %v8360_v44  ;;  %v3345_v47 = vadd.f32 %v3329_v18, %v3296_v51  ;;  %v921_v15 = vld [vmem:[#allocation7 + $0x148] sm:$0xff] }
 0x237   : > { %982 = vrot.lane.b32.xlu1 %v8347_v43, %s7566_s11  ;;  %v929_v16 = vmul.f32 %v913_v19, %v8284_v22  ;;  %v1020_v38 = vld [vmem:[#allocation7 + $0x1d0] sm:$0xff]  ;;  %v3304_v57 = vadd.f32 %v3288_v4, %v3255_v30  ;;  %v5118_v5 = vadd.f32 %v5110_v35, %v5093_v55  ;;  %v8495_v3 = vsel %vm1139_vm5, %v8440_v60, %v8068_v56  ;;  %v3271_v30 = vld [vmem:[#allocation7 + $0xbc8] sm:$0xff] }
 0x238   : > { %1233 = vrot.lane.b32.xlu0 %v8173_v27, %s7568_s14  ;;  %v3321_v0 = vld [vmem:[#allocation7 + $0xc50] sm:$0xff]  ;;  %v946_v44 = vadd.f32 %v930_v33, %v848_v39  ;;  %v938_v51 = vmul.f32 %v922_v17, %v8328_v46  ;;  %v3246_v22 = vadd.f32 %v8401_v24, %v8403_v23  ;;  %v3279_v19 = vmul.f32 %v3263_v52, %v8495_v3  ;;  %v1011_v24 = vld [vmem:[#allocation7 + $0x188] sm:$0xff] }
 0x239   : > { %v8497_v10 = vpop.permute.xlu1 %1113  ;;  %v8499_v62 = vpop.permute.xlu0 %1209  ;;  %v5127_v37 = vld [vmem:[#allocation7 + $0x1510] sm:$0xff]  ;;  %v741_v56 = vmul.f32 %v725_v31, %v8244_v40  ;;  %v856_v45 = vadd.f32 %v840_v32, %v742_v41  ;;  %v8511_v25 = vsel %vm1237_vm6, %v8090_v61, %v8474_v2  ;;  %v8517_v46 = vsel %vm1335_vm7, %v8092_v63, %v8476_v9  ;;  %v5101_v41 = vld [vmem:[#allocation7 + $0x1488] sm:$0xff] }
 0x23a   : > { %v3362_v54 = vld [vmem:[#allocation7 + $0xc90] sm:$0xff]  ;;  %v1044_v23 = vadd.f32 %v1028_v6, %v946_v44  ;;  %v1036_v32 = vmul.f32 %v1020_v38, %v8418_v21  ;;  %v3295_v39 = vadd.f32 %v3279_v19, %v3246_v22  ;;  %v3337_v33 = vmul.f32 %v3321_v0, %v8511_v25 }
 0x23b   : > { %1137 = vrot.lane.b32.xlu1 %v8227_v11, %s7567_s13  ;;  %v1159_v40 = vld [vmem:[#allocation7 + $0x290] sm:$0xff]  ;;  %v855_v20 = vadd.f32 %v839_v1, %v741_v56  ;;  %v945_v18 = vadd.f32 %v929_v16, %v847_v13  ;;  %v5135_v4 = vmul.f32 %v5127_v37, %v8511_v25  ;;  %v3378_v17 = vmul.f32 %v3362_v54, %v8517_v46  ;;  %v1019_v16 = vld [vmem:[#allocation7 + $0x1c8] sm:$0xff] }
 0x23c   : > { %1127 = vrot.lane.b32.xlu0 %v8295_v36, %s7567_s13  ;;  %v937_v52 = vmul.f32 %v921_v15, %v8336_v49  ;;  %v954_v21 = vadd.f32 %v938_v51, %v856_v45  ;;  %v3353_v31 = vadd.f32 %v3337_v33, %v3304_v57  ;;  %v8536_v1 = vsel %vm1139_vm5, %v8497_v10, %v8082_v59  ;;  %v1069_v38 = vld [vmem:[#allocation7 + $0x250] sm:$0xff]  ;;  %v13373_v49 = vld [vmem:[#allocation64_spill] sm:$0xff] }
 0x23d   : > { %v8527_v55 = vpop.permute.xlu1 %1317  ;;  %v8529_v35 = vpop.permute.xlu0 %1413  ;;  %v1027_v13 = vmul.f32 %v1011_v24, %v8365_v28  ;;  %v1175_v6 = vmul.f32 %v1159_v40, %v8396_v42  ;;  %v5143_v0 = vadd.f32 %v5135_v4, %v5118_v5  ;;  %v3394_v44 = vadd.f32 %v3378_v17, %v3345_v47  ;;  %v1257_v22 = vld [vmem:[#allocation7 + $0x310] sm:$0xff]  ;;  %v3312_v37 = vld [vmem:[#allocation7 + $0xc08] sm:$0xff] }
 0x23e   : > { %v1093_v57 = vadd.f32 %v13373_v49, %v1044_v23  ;;  %v1052_v51 = vadd.f32 %v1036_v32, %v954_v21  ;;  %v3254_v19 = vadd.f32 %v8413_v7, %v8453_v34  ;;  %v3287_v59 = vmul.f32 %v3271_v30, %v8536_v1  ;;  %v3370_v5 = vld [vmem:[#allocation7 + $0xcd0] sm:$0xff]  ;;  %v1060_v30 = vld [vmem:[#allocation7 + $0x208] sm:$0xff] }
 0x23f   : > { %1235 = vrot.lane.b32.xlu1 %v8227_v11, %s7568_s14  ;;  %v5092_v28 = vadd.f32 %v8424_v26, %v8471_v48  ;;  %v5109_v42 = vmul.f32 %v5101_v41, %v8536_v1  ;;  %v8555_v47 = vsel %vm1237_vm6, %v8499_v62, %v8076_v58  ;;  %v5152_v54 = vld [vmem:[#allocation7 + $0x1590] sm:$0xff]  ;;  %v953_v26 = vadd.f32 %v937_v52, %v855_v20  ;;  %v1158_v21 = vld [vmem:[#allocation7 + $0x288] sm:$0xff]  ;;  %v13375_v52 = vld [vmem:[#allocation38_spill] sm:$0xff] }
 0x240   : > { %1331 = vrot.lane.b32.xlu0 %v8173_v27, %s7569_s30  ;;  %v13374_v7 = vld [vmem:[#allocation37_spill] sm:$0xff]  ;;  %v1035_v48 = vmul.f32 %v1019_v16, %v8436_v53  ;;  %v1085_v15 = vmul.f32 %v1069_v38, %v7832_v12  ;;  %v3303_v58 = vadd.f32 %v3287_v59, %v3254_v19  ;;  %v1043_v40 = vadd.f32 %v1027_v13, %v945_v18  ;;  %v1068_v20 = vld [vmem:[#allocation7 + $0x248] sm:$0xff] }
 0x241   : > { %v8561_v34 = vsel %vm1335_vm7, %v13374_v7, %v8527_v55  ;;  %v8563_v56 = vpop.permute.xlu1 %1211  ;;  %v8565_v45 = vpop.permute.xlu0 %1307  ;;  %v1167_v24 = vld [vmem:[#allocation7 + $0x2d0] sm:$0xff]  ;;  %v1273_v32 = vmul.f32 %v1257_v22, %v8459_v8  ;;  %v5117_v33 = vadd.f32 %v5109_v42, %v5092_v28  ;;  %v3328_v4 = vmul.f32 %v3312_v37, %v8555_v47  ;;  %v3320_v38 = vld [vmem:[#allocation7 + $0xc48] sm:$0xff]  ;;  %v13376_v42 = vld [vmem:[#allocation19_spill] sm:$0xff] }
 0x242   : > { %v3411_v23 = vld [vmem:[#allocation7 + $0xd10] sm:$0xff]  ;;  %v1191_v17 = vadd.f32 %v1175_v6, %v1093_v57  ;;  %v3386_v53 = vmul.f32 %v3370_v5, %v8561_v34  ;;  %v5160_v12 = vmul.f32 %v5152_v54, %v8561_v34  ;;  %v8579_v18 = vsel %vm1433_vm8, %v13375_v52, %v8529_v35  ;;  %v5126_v49 = vld [vmem:[#allocation7 + $0x1508] sm:$0xff] }
 0x243   : > { %1129 = vrot.lane.b32.xlu1 %v8347_v43, %s7567_s13  ;;  %v1101_v8 = vadd.f32 %v1085_v15, %v1052_v51  ;;  %v1183_v41 = vmul.f32 %v1167_v24, %v8465_v50  ;;  %v1265_v13 = vld [vmem:[#allocation7 + $0x350] sm:$0xff]  ;;  %v3344_v6 = vadd.f32 %v3328_v4, %v3295_v39  ;;  %v3427_v16 = vmul.f32 %v3411_v23, %v8579_v18  ;;  %v1166_v54 = vld [vmem:[#allocation7 + $0x2c8] sm:$0xff] }
 0x244   : > { %1225 = vrot.lane.b32.xlu0 %v8295_v36, %s7568_s14  ;;  %v1051_v19 = vadd.f32 %v1035_v48, %v953_v26  ;;  %v3402_v59 = vadd.f32 %v3386_v53, %v3353_v31  ;;  %v8589_v37 = vadd.f32 %v5160_v12, %v5143_v0  ;;  %v1249_v51 = vsel %vm1237_vm6, %v8563_v56, %v8090_v61  ;;  %v1355_v28 = vld [vmem:[#allocation7 + $0x390] sm:$0xff]  ;;  %v3361_v61 = vld [vmem:[#allocation7 + $0xc88] sm:$0xff] }
 0x245   : > { %v8585_v57 = vpop.permute.xlu1 %1415  ;;  %v8587_v22 = vpop.permute.xlu0 %1405  ;;  %v1289_v50 = vadd.f32 %v1273_v32, %v1191_v17  ;;  %v1076_v39 = vmul.f32 %v1060_v30, %v7932_v29  ;;  %v1084_v5 = vmul.f32 %v1068_v20, %v13376_v42  ;;  %v8597_v15 = vadd.f32 %v3427_v16, %v3394_v44  ;;  %v1363_v26 = vld [vmem:[#allocation7 + $0x3d0] sm:$0xff]  ;;  %v1256_v4 = vld [vmem:[#allocation7 + $0x308] sm:$0xff] }
 0x246   : > { %v1174_v31 = vmul.f32 %v1158_v21, %v8495_v3  ;;  %v1281_v0 = vmul.f32 %v1265_v13, %v8511_v25  ;;  %v3336_v48 = vmul.f32 %v3320_v38, %v1249_v51  ;;  %v5134_v24 = vmul.f32 %v5126_v49, %v1249_v51  ;;  %v3419_v23 = vld [vmem:[#allocation7 + $0xd50] sm:$0xff]  ;;  %v1264_v44 = vld [vmem:[#allocation7 + $0x348] sm:$0xff] }
 0x247   : > { %13377 = vst [vmem:[#allocation64_spill] sm:$0xff] %v8597_v15  ;;  %1333 = vrot.lane.b32.xlu1 %v8227_v11, %s7569_s30  ;;  %v1199_v29 = vadd.f32 %v1183_v41, %v1101_v8  ;;  %v1092_v32 = vadd.f32 %v1076_v39, %v1043_v40  ;;  %v1346_v17 = vsel %vm1335_vm7, %v8565_v45, %v8092_v63  ;;  %v13378_v3 = vld [vmem:[#allocation41_spill] sm:$0xff]  ;;  %v1354_v16 = vld [vmem:[#allocation7 + $0x388] sm:$0xff]  ;;  %v825_v15 = vld [vmem:[#allocation7 + $0xd8] sm:$0xff] }
 0x248   : > { %1429 = vrot.lane.b32.xlu0 %v8173_v27, %s7570_s21  ;;  %v1443_v25 = vsel %vm1433_vm8, %v13378_v3, %v8585_v57  ;;  %v1100_v20 = vadd.f32 %v1084_v5, %v1051_v19  ;;  %v1182_v53 = vmul.f32 %v1166_v54, %v8536_v1  ;;  %v3352_v40 = vadd.f32 %v3336_v48, %v3303_v58  ;;  %v1461_v8 = vld [vmem:[#allocation7 + $0x450] sm:$0xff]  ;;  %v1362_v58 = vld [vmem:[#allocation7 + $0x3c8] sm:$0xff]  ;;  %v3216_v48 = vld [vmem:[#allocation7 + $0xb18] sm:$0xff] }
 0x249   : > { %v8613_v30 = vpop.permute.xlu1 %1309  ;;  %v8615_v21 = vpop.permute.xlu0 %689  ;;  %v8618_v12 = vadd.f32 %v5134_v24, %v5117_v33  ;;  %v1371_v41 = vmul.f32 %v1355_v28, %v8517_v46  ;;  %v1379_v63 = vmul.f32 %v1363_v26, %v8561_v34  ;;  %v1453_v13 = vld [vmem:[#allocation7 + $0x410] sm:$0xff]  ;;  %v3377_v38 = vmul.f32 %v3361_v61, %v1346_v17  ;;  %v3369_v33 = vld [vmem:[#allocation7 + $0xcc8] sm:$0xff] }
 0x24a   : > { %v3435_v49 = vmul.f32 %v3419_v23, %v1443_v25  ;;  %v1190_v39 = vadd.f32 %v1174_v31, %v1092_v32  ;;  %v1297_v42 = vadd.f32 %v1281_v0, %v1199_v29  ;;  %v1272_v19 = vmul.f32 %v1256_v4, %v8555_v47  ;;  %v1452_v5 = vld [vmem:[#allocation7 + $0x408] sm:$0xff] }
 0x24b   : > { %1227 = vrot.lane.b32.xlu1 %v8347_v43, %s7568_s14  ;;  %v1280_v1 = vmul.f32 %v1264_v44, %v1249_v51  ;;  %v3393_v46 = vadd.f32 %v3377_v38, %v3344_v6  ;;  %v1477_v28 = vmul.f32 %v1461_v8, %v1443_v25  ;;  %v1444_v54 = vsel %vm1433_vm8, %v8587_v22, %v13375_v52  ;;  %v3410_v23 = vld [vmem:[#allocation7 + $0xd08] sm:$0xff]  ;;  %v5177_v44 = vld [vmem:[#allocation7 + $0x1610] sm:$0xff]  ;;  %v3265_v38 = vld [vmem:[#allocation7 + $0xb98] sm:$0xff] }
 0x24c   : > { %1323 = vrot.lane.b32.xlu0 %v8295_v36, %s7569_s30  ;;  %v8627_v34 = vadd.f32 %v3435_v49, %v3402_v59  ;;  %v1198_v47 = vadd.f32 %v1182_v53, %v1100_v20  ;;  %v1469_v51 = vmul.f32 %v1453_v13, %v8579_v18  ;;  %v1370_v26 = vmul.f32 %v1354_v16, %v1346_v17  ;;  %v1460_v59 = vld [vmem:[#allocation7 + $0x448] sm:$0xff] }
 0x24d   : > { %v8633_v31 = vpop.permute.xlu1 %1407  ;;  %v8635_v0 = vpop.permute.xlu0 %788  ;;  %v1347_v6 = vsel %vm1335_vm7, %v8613_v30, %v13374_v7  ;;  %v1387_v24 = vadd.f32 %v1371_v41, %v1289_v50  ;;  %v1395_v61 = vadd.f32 %v1379_v63, %v1297_v42  ;;  %v1288_v32 = vadd.f32 %v1272_v19, %v1190_v39  ;;  %v5151_v17 = vld [vmem:[#allocation7 + $0x1588] sm:$0xff]  ;;  %v13381_v50 = vld [vmem:[#allocation21_spill] sm:$0xff] }
 0x24e   : > { %13379 = vst [vmem:[#allocation37_spill] sm:$0xff] %v8627_v34  ;;  %13380 = vst [vmem:[#allocation38_spill] sm:$0xff] %v8635_v0  ;;  %v1378_v29 = vmul.f32 %v1362_v58, %v1347_v6  ;;  %v3385_v52 = vmul.f32 %v3369_v33, %v1347_v6  ;;  %v1296_v4 = vadd.f32 %v1280_v1, %v1198_v47  ;;  %v3418_v20 = vld [vmem:[#allocation7 + $0xd48] sm:$0xff]  ;;  %v13386_v47 = vld [vmem:[#allocation61_spill] sm:$0xff] }
 0x24f   : > { %1431 = vrot.lane.b32.xlu1 %v8227_v11, %s7570_s21  ;;  %v1468_v18 = vmul.f32 %v1452_v5, %v1444_v54  ;;  %v1445_v7 = vsel %vm1433_vm8, %v8633_v31, %v13378_v3  ;;  %v8650_v53 = vadd.f32 %v1477_v28, %v1395_v61  ;;  %v13383_v13 = vld [vmem:[#allocation16_spill] sm:$0xff]  ;;  %v8657_v39 = vadd.f32 %v1469_v51, %v1387_v24  ;;  %v13385_v28 = vld [vmem:[#allocation63_spill] sm:$0xff]  ;;  %v1503_v24 = vld [vmem:[#allocation5 + $0x10] sm:$0xff] }
 0x250   : > { %1425 = vrot.lane.b32.xlu0 %v13381_v50, %s7570_s21  ;;  %v3401_v8 = vadd.f32 %v3385_v52, %v3352_v40  ;;  %v1476_v41 = vmul.f32 %v1460_v59, %v1445_v7  ;;  %v3232_v16 = vmul.f32 %v3216_v48, %v13383_v13  ;;  %v1386_v42 = vadd.f32 %v1370_v26, %v1288_v32  ;;  %v5176_v3 = vld [vmem:[#allocation7 + $0x1608] sm:$0xff]  ;;  %v3224_v32 = vld [vmem:[#allocation7 + $0xb58] sm:$0xff] }
 0x251   : > { %v8652_v63 = vpop.permute.xlu1 %691  ;;  %v8655_v49 = vpop.permute.xlu0 %1123  ;;  %v3426_v19 = vmul.f32 %v3410_v23, %v1444_v54  ;;  %v1394_v1 = vadd.f32 %v1378_v29, %v1296_v4  ;;  %v5185_v58 = vmul.f32 %v5177_v44, %v1443_v25  ;;  %v5159_v33 = vmul.f32 %v5151_v17, %v1347_v6  ;;  %v5078_v4 = vld [vmem:[#allocation7 + $0x1418] sm:$0xff]  ;;  %v13426_v0 = vld [vmem:[#allocation60_spill] sm:$0xff] }
 0x252   : > { %13382 = vst [vmem:[#allocation19_spill] sm:$0xff] %v8652_v63  ;;  %13384 = vst [vmem:[#allocation41_spill] sm:$0xff] %v8655_v49  ;;  %v3434_v5 = vmul.f32 %v3418_v20, %v1445_v7  ;;  %v8663_v40 = vsel %vm1139_vm5, %v13385_v28, %v8655_v49  ;;  %v3248_v59 = vadd.f32 %v3232_v16, %v13386_v47  ;;  %v5103_v16 = vld [vmem:[#allocation7 + $0x1498] sm:$0xff]  ;;  %v13399_v28 = vld [vmem:[#allocation67_spill] sm:$0xff] }
 0x253   : > { %1325 = vrot.lane.b32.xlu1 %v8347_v43, %s7569_s30  ;;  %v3281_v51 = vmul.f32 %v3265_v38, %v8663_v40  ;;  %v1484_v54 = vadd.f32 %v1468_v18, %v1386_v42  ;;  %v1492_v25 = vadd.f32 %v1476_v41, %v1394_v1  ;;  %v5184_v26 = vmul.f32 %v5176_v3, %v1445_v7  ;;  %v13390_v18 = vld [vmem:[#allocation26_spill] sm:$0xff] }
 0x254   : > { %1421 = vrot.lane.b32.xlu0 %v8295_v36, %s7570_s21  ;;  %v8679_v44 = vadd.f32 %v3426_v19, %v3393_v46  ;;  %v8683_v17 = vadd.f32 %v3434_v5, %v3401_v8  ;;  %v8686_v20 = vadd.f32 %v5185_v58, %v8589_v37  ;;  %v5167_v7 = vadd.f32 %v5159_v33, %v8618_v12  ;;  %v3273_v41 = vld [vmem:[#allocation7 + $0xbd8] sm:$0xff]  ;;  %v13397_v12 = vld [vmem:[#allocation69_spill] sm:$0xff]  ;;  %v3213_v8 = vld [vmem:[#allocation7 + $0xb00] sm:$0xff] }
 0x255   : > { %v8671_v6 = vpop.permute.xlu1 %790  ;;  %v8673_v48 = vpop.permute.xlu0 %886  ;;  %v3297_v29 = vadd.f32 %v3281_v51, %v3248_v59  ;;  %v7245_v52 = vpack.c.bf16 %v1492_v25, %v1484_v54  ;;  %v13393_v38 = vld [vmem:[#allocation18_spill] sm:$0xff]  ;;  %v13400_v59 = vld [vmem:[#allocation68_spill] sm:$0xff] }
 0x256   : > { %13387 = vst [vmem:[#allocation21_spill] sm:$0xff] %v8671_v6  ;;  %13388 = vst [vmem:[#allocation16_spill] sm:$0xff] %v8673_v48  ;;  %v3240_v42 = vmul.f32 %v3224_v32, %v13393_v38  ;;  %v5086_v1 = vmul.f32 %v5078_v4, %v13393_v38  ;;  %v3314_v19 = vld [vmem:[#allocation7 + $0xc18] sm:$0xff]  ;;  %v8697_v37 = vadd.f32 %v5184_v26, %v5167_v7  ;;  %v4979_v6 = vld [vmem:[#allocation7 + $0x1220] sm:$0xff] }
 0x257   : > { %13389 = vst [vmem:[#allocation63_spill] sm:$0xff] %v8679_v44  ;;  %1427 = vrot.lane.b32.xlu1 %v13390_v18, %s7570_s21  ;;  %13391 = vst [vmem:[#allocation61_spill] sm:$0xff] %v8683_v17  ;;  %7246 = vmatprep.subr.bf16.mxu0 %v7245_v52  ;;  %v13398_v33 = vld [vmem:[#allocation66_spill] sm:$0xff]  ;;  %v13407_v44 = vld [vmem:[#allocation49_spill] sm:$0xff] }
 0x258   : > { %13392 = vst [vmem:[#allocation26_spill] sm:$0xff] %v8686_v20  ;;  %1507 = vperm.xlu0 %7434, %v1503_v24   ;;  %13396 = vst [vmem:[#allocation71_spill] sm:$0xff] %v8697_v37  ;;  %v3256_v47 = vadd.f32 %v3240_v42, %v13399_v28  ;;  %v5094_v51 = vadd.f32 %v5086_v1, %v13400_v59  ;;  %v3322_v42 = vld [vmem:[#allocation7 + $0xc58] sm:$0xff]  ;;  %v3021_v1 = vld [vmem:[#allocation7 + $0x920] sm:$0xff] }
 0x259   : > { %v8691_v46 = vpop.permute.xlu1 %1125  ;;  %v8693_v3 = vpop.permute.xlu0 %1221  ;;  %v13406_v59 = vld [vmem:[#allocation47_spill] sm:$0xff]  ;;  %v719_v23 = vld [vmem:[#allocation7 + $0x18] sm:$0xff] }
 0x25a   : > { %13394 = vst [vmem:[#allocation18_spill] sm:$0xff] %v8691_v46  ;;  %13395 = vst [vmem:[#allocation70_spill] sm:$0xff] %v8693_v3  ;;  %v8703_v58 = vsel %vm1139_vm5, %v13397_v12, %v8691_v46  ;;  %v8709_v5 = vsel %vm1237_vm6, %v13398_v33, %v8693_v3  ;;  %v5128_v12 = vld [vmem:[#allocation7 + $0x1518] sm:$0xff]  ;;  %v1067_v20 = vld [vmem:[#allocation7 + $0x240] sm:$0xff] }
 0x25b   : > { %v3289_v54 = vmul.f32 %v3273_v41, %v8703_v58  ;;  %v5111_v25 = vmul.f32 %v5103_v16, %v8703_v58  ;;  %1423 = vrot.lane.b32.xlu1 %v8347_v43, %s7570_s21  ;;  %v3330_v26 = vmul.f32 %v3314_v19, %v8709_v5  ;;  %v13403_v41 = vld [vmem:[#allocation44_spill] sm:$0xff]  ;;  %v3070_v19 = vld [vmem:[#allocation7 + $0x9a0] sm:$0xff]  ;;  %v1070_v61 = vld [vmem:[#allocation7 + $0x258] sm:$0xff] }
 0x25c   : > { %v5075_v3 = vld [vmem:[#allocation7 + $0x1400] sm:$0xff]  ;;  %v727_v46 = vld [vmem:[#allocation7 + $0x58] sm:$0xff] }
 0x25d   : > { %v3305_v24 = vadd.f32 %v3289_v54, %v3256_v47  ;;  %v5119_v52 = vadd.f32 %v5111_v25, %v5094_v51  ;;  %v8718_v32 = vpop.permute.xlu1 %888  ;;  %v8720_v4 = vpop.permute.xlu0 %681  ;;  %v8722_v7 = vadd.f32 %v3330_v26, %v3297_v29  ;;  %v817_v47 = vld [vmem:[#allocation7 + $0x98] sm:$0xff] }
 0x25e   : > { %13401 = vst [vmem:[#allocation69_spill] sm:$0xff] %v8718_v32  ;;  %13402 = vst [vmem:[#allocation66_spill] sm:$0xff] %v8720_v4  ;;  %v8728_v16 = vsel %vm699_vm1, %v13403_v41, %v8720_v4  ;;  %v1062_v54 = vld [vmem:[#allocation7 + $0x218] sm:$0xff]  ;;  %v1059_v41 = vld [vmem:[#allocation7 + $0x200] sm:$0xff]  ;;  %v833_v17 = vmul.f32 %v817_v47, %v13407_v44  ;;  %v8772_v32 = vmul.f32 %v1070_v61, %v13393_v38 }
 0x25f   : > { %v3037_v37 = vmul.f32 %v3021_v1, %v8728_v16  ;;  %v915_v49 = vld [vmem:[#allocation7 + $0x118] sm:$0xff]  ;;  %v13410_v1 = vld [vmem:[#allocation13_spill] sm:$0xff]  ;;  %v8769_v4 = vmul.f32 %v1062_v54, %v13383_v13 }
 0x260   : > { %v8765_v44 = vmul.f32 %v3213_v8, %v13410_v1  ;;  %v13413_v47 = vld [vmem:[#allocation45_spill] sm:$0xff]  ;;  %v13417_v8 = vld [vmem:[#allocation50_spill] sm:$0xff] }
 0x261   : > { %v8730_v33 = vpop.permute.xlu1 %1223  ;;  %v8732_v28 = vpop.permute.xlu0 %780  ;;  %v3363_v48 = vld [vmem:[#allocation7 + $0xc98] sm:$0xff] }
 0x262   : > { %13404 = vst [vmem:[#allocation67_spill] sm:$0xff] %v8730_v33  ;;  %13405 = vst [vmem:[#allocation68_spill] sm:$0xff] %v8732_v28  ;;  %v8738_v29 = vsel %vm1237_vm6, %v8474_v2, %v8730_v33  ;;  %v8744_v51 = vsel %vm796_vm2, %v13406_v59, %v8732_v28 }
 0x263   : > { %v3338_v25 = vmul.f32 %v3322_v42, %v8738_v29  ;;  %v5136_v26 = vmul.f32 %v5128_v12, %v8738_v29  ;;  %v3086_v2 = vmul.f32 %v3070_v19, %v8744_v51  ;;  %v3221_v12 = vld [vmem:[#allocation7 + $0xb40] sm:$0xff]  ;;  %v8762_v19 = vmul.f32 %v1059_v41, %v13410_v1  ;;  %13412 = vst [vmem:[#allocation13_spill] sm:$0xff] %v8765_v44  ;;  %v13416_v41 = vld [vmem:[#allocation53_spill] sm:$0xff] }
 0x264   : > { %v3078_v1 = vld [vmem:[#allocation7 + $0x9e0] sm:$0xff] }
 0x265   : > { %v8751_v34 = vadd.f32 %v3338_v25, %v3305_v24  ;;  %v8753_v59 = vadd.f32 %v5136_v26, %v5119_v52  ;;  %v8755_v33 = vpop.permute.xlu1 %683  ;;  %v8757_v42 = vpop.permute.xlu0 %984  ;;  %v8759_v28 = vadd.f32 %v3086_v2, %v3037_v37  ;;  %13411 = vst [vmem:[#allocation49_spill] sm:$0xff] %v8762_v19  ;;  %v1065_v24 = vld [vmem:[#allocation7 + $0x230] sm:$0xff]  ;;  %v735_v52 = vmul.f32 %v719_v23, %v13413_v47  ;;  %v923_v25 = vld [vmem:[#allocation7 + $0x158] sm:$0xff]  ;;  %v5004_v47 = vld [vmem:[#allocation7 + $0x12a0] sm:$0xff] }
 0x266   : > { %13408 = vst [vmem:[#allocation44_spill] sm:$0xff] %v8755_v33  ;;  %13409 = vst [vmem:[#allocation47_spill] sm:$0xff] %v8757_v42  ;;  %v1013_v26 = vld [vmem:[#allocation7 + $0x198] sm:$0xff]  ;;  %v3029_v42 = vld [vmem:[#allocation7 + $0x960] sm:$0xff]  ;;  %v841_v19 = vmul.f32 %v825_v15, %v13416_v41  ;;  %v8782_v23 = vsel %vm699_vm1, %v13417_v8, %v8755_v33  ;;  %v8797_v33 = vmul.f32 %v1065_v24, %v13381_v50 }
 0x267   : > { %v13414_v37 = vld [vmem:[#allocation14_spill] sm:$0xff]  ;;  %v849_v38 = vadd.f32 %v833_v17, %v735_v52  ;;  %v13427_v17 = vld [vmem:[#allocation52_spill] sm:$0xff]  ;;  %v3219_v52 = vld [vmem:[#allocation7 + $0xb30] sm:$0xff]  ;;  %v3045_v24 = vmul.f32 %v3029_v42, %v8782_v23 }
 0x268   : > { %v8775_v2 = vmul.f32 %v1067_v20, %v13414_v37  ;;  %v8785_v13 = vmul.f32 %v3221_v12, %v13414_v37  ;;  %v8788_v61 = vmul.f32 %v5075_v3, %v13414_v37  ;;  %v13420_v20 = vld [vmem:[#allocation51_spill] sm:$0xff]  ;;  %v1021_v41 = vld [vmem:[#allocation7 + $0x1d8] sm:$0xff]  ;;  %v1029_v3 = vmul.f32 %v1013_v26, %v13426_v0 }
 0x269   : > { %v743_v54 = vmul.f32 %v727_v46, %v13420_v20  ;;  %v8792_v44 = vpop.permute.xlu1 %782  ;;  %v8794_v63 = vpop.permute.xlu0 %1319  ;;  %v1066_v8 = vld [vmem:[#allocation7 + $0x238] sm:$0xff]  ;;  %v13425_v12 = vld [vmem:[#allocation59_spill] sm:$0xff]  ;;  %v4987_v37 = vmul.f32 %v4979_v6, %v8782_v23  ;;  %v13428_v20 = vld [vmem:[#allocation65_spill] sm:$0xff] }
 0x26a   : > { %13415 = vst [vmem:[#allocation45_spill] sm:$0xff] %v8775_v2  ;;  %13418 = vst [vmem:[#allocation14_spill] sm:$0xff] %v8785_v13  ;;  %v13421_v2 = vld [vmem:[#allocation55_spill] sm:$0xff]  ;;  %v939_v13 = vmul.f32 %v923_v25, %v13425_v12  ;;  %v8805_v46 = vsel %vm796_vm2, %v13427_v17, %v8792_v44  ;;  %v3220_v26 = vld [vmem:[#allocation7 + $0xb38] sm:$0xff]  ;;  %v1037_v12 = vmul.f32 %v1021_v41, %v13428_v20 }
 0x26b   : > { %13419 = vst [vmem:[#allocation53_spill] sm:$0xff] %v8788_v61  ;;  %v931_v15 = vmul.f32 %v915_v49, %v13421_v2  ;;  %13422 = vst [vmem:[#allocation50_spill] sm:$0xff] %v8792_v44  ;;  %v8811_v49 = vsel %vm1335_vm7, %v8476_v9, %v8794_v63  ;;  %v3094_v25 = vmul.f32 %v3078_v1, %v8805_v46  ;;  %v1073_v9 = vld [vmem:[#allocation7 + $0x270] sm:$0xff] }
 0x26c   : > { %13423 = vst [vmem:[#allocation51_spill] sm:$0xff] %v8794_v63  ;;  %13424 = vst [vmem:[#allocation55_spill] sm:$0xff] %v8797_v33  ;;  %v5012_v0 = vmul.f32 %v5004_v47, %v8805_v46  ;;  %v857_v2 = vadd.f32 %v841_v19, %v743_v54  ;;  %v3379_v17 = vmul.f32 %v3363_v48, %v8811_v49  ;;  %v3119_v33 = vld [vmem:[#allocation7 + $0xa20] sm:$0xff]  ;;  %v3227_v63 = vld [vmem:[#allocation7 + $0xb70] sm:$0xff] }
 0x26d   : > { %v8820_v44 = vmul.f32 %v1066_v8, %v8173_v27  ;;  %v947_v61 = vadd.f32 %v931_v15, %v849_v38  ;;  %v8822_v42 = vadd.f32 %v3094_v25, %v3045_v24  ;;  %v8826_v1 = vpop.permute.xlu1 %986  ;;  %v8828_v47 = vpop.permute.xlu0 %878  ;;  %v8831_v19 = vmul.f32 %v3219_v52, %v13381_v50  ;;  %v1074_v54 = vld [vmem:[#allocation7 + $0x278] sm:$0xff]  ;;  %v5081_v41 = vld [vmem:[#allocation7 + $0x1430] sm:$0xff]  ;;  %v1063_v25 = vld [vmem:[#allocation7 + $0x220] sm:$0xff] }
 0x26e   : > { %v8824_v6 = vadd.f32 %v5012_v0, %v4987_v37  ;;  %13430 = vst [vmem:[#allocation60_spill] sm:$0xff] %v8828_v47  ;;  %v3228_v48 = vld [vmem:[#allocation7 + $0xb78] sm:$0xff]  ;;  %v955_v20 = vadd.f32 %v939_v13, %v857_v2  ;;  %v8841_v24 = vmul.f32 %v3220_v26, %v8173_v27  ;;  %v8845_v0 = vmul.f32 %v1073_v9, %v13390_v18  ;;  %v3217_v2 = vld [vmem:[#allocation7 + $0xb20] sm:$0xff] }
 0x26f   : > { %13429 = vst [vmem:[#allocation59_spill] sm:$0xff] %v8820_v44  ;;  %13431 = vst [vmem:[#allocation52_spill] sm:$0xff] %v8831_v19  ;;  %v1160_v8 = vld [vmem:[#allocation7 + $0x298] sm:$0xff]  ;;  %v3395_v44 = vadd.f32 %v3379_v17, %v8722_v7  ;;  %v1045_v50 = vadd.f32 %v1029_v3, %v947_v61  ;;  %v8848_v13 = vmul.f32 %v3227_v63, %v13390_v18  ;;  %v1064_v7 = vld [vmem:[#allocation7 + $0x228] sm:$0xff] }
 0x270   : > { %v13432_v38 = vld [vmem:[#allocation54_spill] sm:$0xff]  ;;  %13433 = vst [vmem:[#allocation65_spill] sm:$0xff] %v8845_v0  ;;  %v1053_v17 = vadd.f32 %v1037_v12, %v955_v20  ;;  %v8851_v27 = vmul.f32 %v1074_v54, %v8227_v11  ;;  %v8854_v26 = vmul.f32 %v3228_v48, %v8227_v11  ;;  %v1176_v61 = vmul.f32 %v1160_v8, %v8663_v40  ;;  %v5054_v0 = vld [vmem:[#allocation7 + $0x13a0] sm:$0xff] }
 0x271   : > { %v8838_v15 = vsel %vm894_vm3, %v13432_v38, %v8828_v47  ;;  %v5082_v37 = vld [vmem:[#allocation7 + $0x1438] sm:$0xff]  ;;  %13434 = vst [vmem:[#allocation54_spill] sm:$0xff] %v8848_v13  ;;  %v8863_v9 = vpop.permute.xlu1 %1321  ;;  %v8865_v20 = vpop.permute.xlu0 %1417  ;;  %v13441_v13 = vld [vmem:[#allocation25_spill] sm:$0xff]  ;;  %v1094_v8 = vadd.f32 %v8769_v4, %v1045_v50  ;;  %v3168_v50 = vld [vmem:[#allocation7 + $0xaa0] sm:$0xff] }
 0x272   : > { %v3135_v52 = vmul.f32 %v3119_v33, %v8838_v15  ;;  %v1168_v19 = vld [vmem:[#allocation7 + $0x2d8] sm:$0xff]  ;;  %13435 = vst [vmem:[#allocation72_spill] sm:$0xff] %v8851_v27  ;;  %13436 = vst [vmem:[#allocation73_spill] sm:$0xff] %v8854_v26  ;;  %v8857_v33 = vmul.f32 %v5081_v41, %v13390_v18  ;;  %v8868_v54 = vmul.f32 %v5082_v37, %v8227_v11  ;;  %v3218_v26 = vld [vmem:[#allocation7 + $0xb28] sm:$0xff] }
 0x273   : > { %v3371_v38 = vld [vmem:[#allocation7 + $0xcd8] sm:$0xff]  ;;  %13438 = vst [vmem:[#allocation75_spill] sm:$0xff] %v8863_v9  ;;  %13439 = vst [vmem:[#allocation76_spill] sm:$0xff] %v8865_v20  ;;  %v8871_v48 = vmul.f32 %v1063_v25, %v13441_v13  ;;  %v1343_v40 = vsel %vm1335_vm7, %v8527_v55, %v8863_v9  ;;  %v8882_v41 = vmul.f32 %v1064_v7, %v8295_v36 }
 0x274   : > { %v5153_v47 = vld [vmem:[#allocation7 + $0x1598] sm:$0xff]  ;;  %13437 = vst [vmem:[#allocation74_spill] sm:$0xff] %v8857_v33  ;;  %v8861_v63 = vadd.f32 %v3135_v52, %v8759_v28  ;;  %13440 = vst [vmem:[#allocation77_spill] sm:$0xff] %v8868_v54  ;;  %v1440_v28 = vsel %vm1433_vm8, %v8529_v35, %v8865_v20  ;;  %v8885_v11 = vmul.f32 %v3217_v2, %v13441_v13  ;;  %v3127_v35 = vld [vmem:[#allocation7 + $0xa60] sm:$0xff] }
 0x275   : > { %v1258_v3 = vld [vmem:[#allocation7 + $0x318] sm:$0xff]  ;;  %13442 = vst [vmem:[#allocation25_spill] sm:$0xff] %v8882_v41  ;;  %v1184_v37 = vmul.f32 %v1168_v19, %v8703_v58  ;;  %v3387_v54 = vmul.f32 %v3371_v38, %v1343_v40  ;;  %v5161_v33 = vmul.f32 %v5153_v47, %v1343_v40  ;;  %v1102_v55 = vadd.f32 %v8772_v32, %v1053_v17  ;;  %v5029_v20 = vld [vmem:[#allocation7 + $0x1320] sm:$0xff]  ;;  %v8896_v19 = vpop.permute.xlu1 %880  ;;  %v8898_v47 = vpop.permute.xlu0 %976  ;;  %v1072_v17 = vld [vmem:[#allocation7 + $0x268] sm:$0xff] }
 0x276   : > { %v3412_v12 = vld [vmem:[#allocation7 + $0xd18] sm:$0xff]  ;;  %v1274_v9 = vmul.f32 %v1258_v3, %v8709_v5  ;;  %v8892_v7 = vmul.f32 %v3218_v26, %v8295_v36  ;;  %v1192_v2 = vadd.f32 %v1176_v61, %v1094_v8  ;;  %v1071_v32 = vld [vmem:[#allocation7 + $0x260] sm:$0xff]  ;;  %v13444_v26 = vld [vmem:[#allocation57_spill] sm:$0xff] }
 0x277   : > { %v1266_v18 = vld [vmem:[#allocation7 + $0x358] sm:$0xff]  ;;  %v3428_v27 = vmul.f32 %v3412_v12, %v1440_v28  ;;  %v3403_v58 = vadd.f32 %v3387_v54, %v8751_v34  ;;  %v5169_v5 = vadd.f32 %v5161_v33, %v8753_v59  ;;  %v1200_v12 = vadd.f32 %v1184_v37, %v1102_v55  ;;  %v3225_v33 = vld [vmem:[#allocation7 + $0xb60] sm:$0xff] }
 0x278   : > { %v1356_v25 = vld [vmem:[#allocation7 + $0x398] sm:$0xff]  ;;  %13443 = vst [vmem:[#allocation78_spill] sm:$0xff] %v8892_v7  ;;  %v1282_v4 = vmul.f32 %v1266_v18, %v8738_v29  ;;  %v8906_v29 = vsel %vm894_vm3, %v13444_v26, %v8896_v19  ;;  %v1290_v18 = vadd.f32 %v1274_v9, %v1192_v2  ;;  %v5079_v55 = vld [vmem:[#allocation7 + $0x1420] sm:$0xff] }
 0x279   : > { %v1364_v52 = vld [vmem:[#allocation7 + $0x3d8] sm:$0xff]  ;;  %v1372_v38 = vmul.f32 %v1356_v25, %v8811_v49  ;;  %v8914_v3 = vadd.f32 %v3428_v27, %v3395_v44  ;;  %v3143_v59 = vmul.f32 %v3127_v35, %v8906_v29  ;;  %v5037_v49 = vmul.f32 %v5029_v20, %v8906_v29  ;;  %v8927_v20 = vpop.permute.xlu1 %1419  ;;  %v8929_v9 = vpop.permute.xlu0 %1131  ;;  %v5080_v35 = vld [vmem:[#allocation7 + $0x1428] sm:$0xff] }
 0x27a   : > { %v1504_v13 = vld [vmem:[#allocation5 + $0x18] sm:$0xff]  ;;  %v1380_v54 = vmul.f32 %v1364_v52, %v1343_v40  ;;  %v1298_v44 = vadd.f32 %v1282_v4, %v1200_v12  ;;  %v3226_v52 = vld [vmem:[#allocation7 + $0xb68] sm:$0xff] }
 0x27b   : > { %1512 = vperm.xlu1 %7435, %v1504_v13   ;;  %v1454_v36 = vld [vmem:[#allocation7 + $0x418] sm:$0xff]  ;;  %13446 = vst [vmem:[#allocation57_spill] sm:$0xff] %v8914_v3  ;;  %v3159_v40 = vadd.f32 %v3143_v59, %v8822_v42  ;;  %v5045_v37 = vadd.f32 %v5037_v49, %v8824_v6  ;;  %v1441_v42 = vsel %vm1433_vm8, %v8585_v57, %v8927_v20  ;;  %v1157_v6 = vld [vmem:[#allocation7 + $0x280] sm:$0xff] }
 0x27c   : > { %v13445_v34 = vld [vmem:[#allocation58_spill] sm:$0xff]  ;;  %v1470_v27 = vmul.f32 %v1454_v36, %v1440_v28  ;;  %v3262_v28 = vld [vmem:[#allocation7 + $0xb80] sm:$0xff]  ;;  %v1396_v36 = vadd.f32 %v1380_v54, %v1298_v44  ;;  %v8952_v57 = vmul.f32 %v5080_v35, %v8347_v43 }
 0x27d   : > { %v8912_v61 = vsel %vm992_vm4, %v13445_v34, %v8898_v47  ;;  %v1462_v25 = vld [vmem:[#allocation7 + $0x458] sm:$0xff]  ;;  %v8923_v34 = vmul.f32 %v1072_v17, %v8347_v43  ;;  %v818_v17 = vld [vmem:[#allocation7 + $0xa0] sm:$0xff]  ;;  %v8954_v54 = vpop.permute.xlu1 %978 }
 0x27e   : > { %v3184_v8 = vmul.f32 %v3168_v50, %v8912_v61  ;;  %v3420_v13 = vld [vmem:[#allocation7 + $0xd58] sm:$0xff]  ;;  %v1478_v12 = vmul.f32 %v1462_v25, %v1441_v42  ;;  %13452 = vst [vmem:[#allocation79_spill] sm:$0xff] %v8952_v57  ;;  %v8956_v25 = vpop.permute.xlu0 %1229  ;;  %v3270_v57 = vld [vmem:[#allocation7 + $0xbc0] sm:$0xff] }
 0x27f   : > { %v5178_v26 = vld [vmem:[#allocation7 + $0x1618] sm:$0xff]  ;;  %13448 = vst [vmem:[#allocation58_spill] sm:$0xff] %v8923_v34  ;;  %v3436_v59 = vmul.f32 %v3420_v13, %v1441_v42  ;;  %v3176_v34 = vld [vmem:[#allocation7 + $0xae0] sm:$0xff] }
 0x280   : > { %v13447_v7 = vld [vmem:[#allocation30_spill] sm:$0xff]  ;;  %v8936_v4 = vadd.f32 %v3184_v8, %v8861_v63  ;;  %v5186_v49 = vmul.f32 %v5178_v26, %v1441_v42  ;;  %v8946_v63 = vmul.f32 %v3226_v52, %v8347_v43  ;;  %v916_v8 = vld [vmem:[#allocation7 + $0x120] sm:$0xff]  ;;  %v1494_v26 = vadd.f32 %v1478_v12, %v1396_v36 }
 0x281   : > { %v8920_v41 = vmul.f32 %v1071_v32, %v13447_v7  ;;  %13449 = vst [vmem:[#allocation30_spill] sm:$0xff] %v8927_v20  ;;  %v13450_v2 = vld [vmem:[#allocation34_spill] sm:$0xff]  ;;  %v1388_v32 = vadd.f32 %v1372_v38, %v1290_v18  ;;  %v8949_v38 = vmul.f32 %v5079_v55, %v13447_v7  ;;  %v720_v18 = vld [vmem:[#allocation7 + $0x20] sm:$0xff]  ;;  %v8958_v44 = vadd.f32 %v3436_v59, %v3403_v58 }
 0x282   : > { %v1152_v50 = vsel %vm1139_vm5, %v13450_v2, %v8440_v60  ;;  %v8943_v60 = vmul.f32 %v3225_v33, %v13447_v7  ;;  %13451 = vst [vmem:[#allocation34_spill] sm:$0xff] %v8946_v63  ;;  %v8960_v33 = vadd.f32 %v5186_v49, %v5169_v5  ;;  %v1165_v7 = vld [vmem:[#allocation7 + $0x2c0] sm:$0xff]  ;;  %v834_v43 = vmul.f32 %v818_v17, %v8744_v51  ;;  %v13455_v35 = vld [vmem:[#allocation62_spill] sm:$0xff]  ;;  %v13457_v51 = vld [vmem:[#allocation36_spill] sm:$0xff] }
 0x283   : > { %v1486_v13 = vadd.f32 %v1470_v27, %v1388_v32  ;;  %13453 = vst [vmem:[#allocation80_spill] sm:$0xff] %v8958_v44  ;;  %v8962_v52 = vmul.f32 %v1157_v6, %v1152_v50  ;;  %v8964_v42 = vmul.f32 %v3262_v28, %v1152_v50  ;;  %v826_v55 = vld [vmem:[#allocation7 + $0xe0] sm:$0xff]  ;;  %v1000_v20 = vsel %vm992_vm4, %v13455_v35, %v8954_v54 }
 0x284   : > { %13454 = vst [vmem:[#allocation81_spill] sm:$0xff] %v8960_v33  ;;  %v5100_v27 = vld [vmem:[#allocation7 + $0x1480] sm:$0xff]  ;;  %v3192_v6 = vmul.f32 %v3176_v34, %v1000_v20  ;;  %v5062_v50 = vmul.f32 %v5054_v0, %v1000_v20  ;;  %v1250_v17 = vsel %vm1237_vm6, %v13457_v51, %v8499_v62  ;;  %v736_v12 = vmul.f32 %v720_v18, %v8728_v16  ;;  %v8992_v16 = vpop.permute.xlu1 %1133 }
 0x285   : > { %v13456_v58 = vld [vmem:[#allocation35_spill] sm:$0xff]  ;;  %v7249_v28 = vpack.c.bf16 %v1494_v26, %v1486_v13  ;;  %v932_v49 = vmul.f32 %v916_v8, %v8838_v15  ;;  %v842_v13 = vmul.f32 %v826_v55, %v8805_v46  ;;  %13459 = vst [vmem:[#allocation62_spill] sm:$0xff] %v8992_v16  ;;  %v8994_v15 = vpop.permute.xlu0 %1327  ;;  %v9004_v46 = vld [vmem:[#allocation3 + $0x10] sm:$0xff] }
 0x286   : > { %v1153_v5 = vsel %vm1139_vm5, %v13456_v58, %v8497_v10  ;;  %v1014_v32 = vld [vmem:[#allocation7 + $0x1a0] sm:$0xff]  ;;  %v8988_v26 = vadd.f32 %v3192_v6, %v3159_v40  ;;  %v8990_v62 = vadd.f32 %v5062_v50, %v5045_v37  ;;  %13460 = vst [vmem:[#allocation82_spill] sm:$0xff] %v8994_v15  ;;  %v850_v33 = vadd.f32 %v834_v43, %v736_v12  ;;  %v13496_v58 = vld [vmem:[#allocation21_spill] sm:$0xff] }
 0x287   : > { %v1255_v36 = vld [vmem:[#allocation7 + $0x300] sm:$0xff]  ;;  %7250 = vmatprep.subr.bf16.mxu1 %v7249_v28  ;;  %v8996_v18 = vmul.f32 %v1165_v7, %v1153_v5  ;;  %v8998_v8 = vmul.f32 %v3270_v57, %v1153_v5  ;;  %v1030_v3 = vmul.f32 %v1014_v32, %v8912_v61  ;;  %13462 = vst [vmem:[#allocation83_spill] sm:$0xff] %v9004_v46 }
 0x288   : > { %v728_v59 = vld [vmem:[#allocation7 + $0x60] sm:$0xff]  ;;  %v9006_v40 = vmul.f32 %v5100_v27, %v1153_v5  ;;  %v9008_v37 = vmul.f32 %v1255_v36, %v1250_v17  ;;  %v948_v5 = vadd.f32 %v932_v49, %v850_v33  ;;  %v13465_v36 = vld [vmem:[#allocation42_spill] sm:$0xff] }
 0x289   : > { %v924_v35 = vld [vmem:[#allocation7 + $0x160] sm:$0xff]  ;;  %v744_v7 = vmul.f32 %v728_v59, %v8782_v23  ;;  %v1446_v23 = vsel %vm1433_vm8, %v13465_v36, %v8587_v22 }
 0x28a   : > { %v3311_v10 = vld [vmem:[#allocation7 + $0xc00] sm:$0xff]  ;;  %v940_v57 = vmul.f32 %v924_v35, %v8906_v29 }
 0x28b   : > { %v1263_v63 = vld [vmem:[#allocation7 + $0x340] sm:$0xff]  ;;  %v9012_v43 = vmul.f32 %v3311_v10, %v1250_v17  ;;  %v858_v59 = vadd.f32 %v842_v13, %v744_v7  ;;  %v9028_v10 = vpop.permute.xlu1 %1231  ;;  %v694_v13 = vpop.permute.xlu0 %693 }
 0x28c   : > { %v13458_v0 = vld [vmem:[#allocation39_spill] sm:$0xff]  ;;  %13467 = vst [vmem:[#allocation85_spill] sm:$0xff] %v9028_v10 }
 0x28d   : > { %v1251_v34 = vsel %vm1237_vm6, %v13458_v0, %v8563_v56  ;;  %v1022_v44 = vld [vmem:[#allocation7 + $0x1e0] sm:$0xff]  ;;  %v13461_v56 = vpack.c.bf16 %v8650_v53, %v8657_v39  ;;  %v13464_v53 = vld [vmem:[#allocation40_spill] sm:$0xff] }
 0x28e   : > { %v3319_v55 = vld [vmem:[#allocation7 + $0xc40] sm:$0xff]  ;;  %v9014_v61 = vmul.f32 %v1263_v63, %v1251_v34  ;;  %v1348_v39 = vsel %vm1335_vm7, %v13464_v53, %v8565_v45  ;;  %v1038_v35 = vmul.f32 %v1022_v44, %v1000_v20  ;;  %v13472_v20 = vmov 0.0   ;;  %v9043_v44 = vld [vmem:[#allocation3 + $0x18] sm:$0xff] }
 0x28f   : > { %7252 = vmatpush1.bf16.msra.mxu1 %v13461_v56  ;;  %v5125_v6 = vld [vmem:[#allocation7 + $0x1500] sm:$0xff]  ;;  %v9032_v45 = vmul.f32 %v3319_v55, %v1251_v34  ;;  %v13470_v56 = vld [vmem:[#allocation46_spill] sm:$0xff]  ;;  %13473 = vst [vmem:[#allocation89_spill] sm:$0xff] %v9043_v44 }
 0x290   : > { %13463 = vst [vmem:[#allocation84_spill] sm:$0xff] %v9014_v61  ;;  %v1353_v32 = vld [vmem:[#allocation7 + $0x380] sm:$0xff]  ;;  %v9034_v33 = vmul.f32 %v5125_v6, %v1251_v34  ;;  %v9040_v36 = vsel %vm1433_vm8, %v13470_v56, %v8633_v31  ;;  %v723_v6 = vld [vmem:[#allocation7 + $0x38] sm:$0xff] }
 0x291   : > { %v3360_v50 = vld [vmem:[#allocation7 + $0xc80] sm:$0xff]  ;;  %13468 = vst [vmem:[#allocation86_spill] sm:$0xff] %v9032_v45  ;;  %13471 = vst [vmem:[#allocation88_spill] sm:$0xff] %v9040_v36  ;;  %v9045_v7 = vmul.f32 %v1353_v32, %v1348_v39  ;;  %v956_v45 = vadd.f32 %v940_v57, %v858_v59  ;;  %v3024_v57 = vld [vmem:[#allocation7 + $0x938] sm:$0xff] }
 0x292   : > { %v1451_v27 = vld [vmem:[#allocation7 + $0x400] sm:$0xff]  ;;  %7180 = vmatmul.mubr.msk.f32.vlgmr.msra.gmra.mrb[8].mxu1 %vm334_vm0, %v9004_v46  ;;  %13469 = vst [vmem:[#allocation87_spill] sm:$0xff] %v9034_v33  ;;  %v700_v33 = vsel %vm699_vm1, %v8615_v21, %v694_v13 }
 0x293   : > { %v3409_v28 = vld [vmem:[#allocation7 + $0xd00] sm:$0xff]  ;;  %1668 = vmatprep.mubr.f32.mxu1 %v13472_v20  ;;  %13474 = vst [vmem:[#allocation90_spill] sm:$0xff] %v9045_v7  ;;  %v1054_v10 = vadd.f32 %v1038_v35, %v956_v45  ;;  %v3040_v45 = vmul.f32 %v3024_v57, %v700_v33  ;;  %v3171_v7 = vld [vmem:[#allocation7 + $0xab8] sm:$0xff] }
 0x294   : > { %v1361_v29 = vld [vmem:[#allocation7 + $0x3c0] sm:$0xff]  ;;  %v9057_v56 = vmul.f32 %v3409_v28, %v1446_v23 }
 0x295   : > { %v3368_v17 = vld [vmem:[#allocation7 + $0xcc0] sm:$0xff] }
 0x296   : > { %v13466_v63 = vld [vmem:[#allocation43_spill] sm:$0xff]  ;;  %13478 = vst [vmem:[#allocation92_spill] sm:$0xff] %v9057_v56  ;;  %7181 = vmatmul.mubr.msk.f32.gmra.mrb[10].mxu1 %vm334_vm0, %v9043_v44  ;;  %v731_v56 = vld [vmem:[#allocation7 + $0x78] sm:$0xff] }
 0x297   : > { %v1349_v12 = vsel %vm1335_vm7, %v13466_v63, %v8613_v30  ;;  %v5150_v49 = vld [vmem:[#allocation7 + $0x1580] sm:$0xff]  ;;  %v1046_v30 = vadd.f32 %v1030_v3, %v948_v5  ;;  %v13475_v63 = vld [vmem:[#allocation22_spill] sm:$0xff]  ;;  %v9053_v3 = vmul.f32 %v3360_v50, %v1348_v39  ;;  %v9055_v5 = vmul.f32 %v1451_v27, %v1446_v23  ;;  %1816 = vmatprep.mubr.f32.mxu1 %v13472_v20 }
 0x298   : > { %v1459_v22 = vld [vmem:[#allocation7 + $0x440] sm:$0xff]  ;;  %v714_v31 = vsel %vm699_vm1, %v694_v13, %v13475_v63  ;;  %v9059_v32 = vmul.f32 %v1361_v29, %v1349_v12  ;;  %v9061_v15 = vmul.f32 %v3368_v17, %v1349_v12  ;;  %v9063_v46 = vmul.f32 %v5150_v49, %v1349_v12  ;;  %v9068_v63 = vpop.permute.xlu1 %1329  ;;  %v821_v50 = vld [vmem:[#allocation7 + $0xb8] sm:$0xff]  ;;  %v793_v17 = vpop.permute.xlu0 %792  ;;  %v13487_v13 = vld [vmem:[#allocation24_spill] sm:$0xff] }
 0x299   : > { %v3417_v55 = vld [vmem:[#allocation7 + $0xd40] sm:$0xff]  ;;  %13476 = vst [vmem:[#allocation22_spill] sm:$0xff] %v9053_v3  ;;  %13477 = vst [vmem:[#allocation91_spill] sm:$0xff] %v9055_v5  ;;  %v9066_v0 = vmul.f32 %v1459_v22, %v9040_v36  ;;  %v3073_v27 = vld [vmem:[#allocation7 + $0x9b8] sm:$0xff]  ;;  %v739_v29 = vmul.f32 %v723_v6, %v700_v33  ;;  %v9076_v12 = vadd.f32 %v8871_v48, %v1046_v30 }
 0x29a   : > { %v716_v34 = vld [vmem:[#allocation7] sm:$0xff]  ;;  %13479 = vst [vmem:[#allocation93_spill] sm:$0xff] %v9059_v32  ;;  %13480 = vst [vmem:[#allocation94_spill] sm:$0xff] %v9061_v15  ;;  %v9073_v28 = vmul.f32 %v3417_v55, %v9040_v36  ;;  %v13486_v49 = vld [vmem:[#allocation38_spill] sm:$0xff]  ;;  %v9090_v33 = vadd.f32 %v8920_v41, %v1054_v10 }
 0x29b   : > { %v3017_v53 = vld [vmem:[#allocation7 + $0x900] sm:$0xff]  ;;  %13481 = vst [vmem:[#allocation95_spill] sm:$0xff] %v9063_v46  ;;  %13482 = vst [vmem:[#allocation96_spill] sm:$0xff] %v9066_v0  ;;  %v732_v23 = vmul.f32 %v716_v34, %v714_v31  ;;  %v797_v22 = vsel %vm796_vm2, %v13486_v49, %v793_v17  ;;  %v811_v46 = vsel %vm796_vm2, %v793_v17, %v13487_v13  ;;  %v3032_v30 = vld [vmem:[#allocation7 + $0x978] sm:$0xff] }
 0x29c   : > { %v814_v59 = vld [vmem:[#allocation7 + $0x80] sm:$0xff]  ;;  %13483 = vst [vmem:[#allocation97_spill] sm:$0xff] %v9068_v63  ;;  %13484 = vst [vmem:[#allocation98_spill] sm:$0xff] %v9073_v28  ;;  %v3033_v35 = vmul.f32 %v3017_v53, %v714_v31  ;;  %v837_v36 = vmul.f32 %v821_v50, %v797_v22  ;;  %v3089_v6 = vmul.f32 %v3073_v27, %v797_v22  ;;  %v696_v3 = vpop.permute.xlu1 %695  ;;  %v4982_v27 = vld [vmem:[#allocation7 + $0x1238] sm:$0xff] }
 0x29d   : > { %v3066_v39 = vld [vmem:[#allocation7 + $0x980] sm:$0xff]  ;;  %13485 = vst [vmem:[#allocation99_spill] sm:$0xff] %v9076_v12  ;;  %v830_v55 = vmul.f32 %v814_v59, %v811_v46  ;;  %v9087_v53 = vadd.f32 %v8885_v11, %v8936_v4  ;;  %13489 = vst [vmem:[#allocation24_spill] sm:$0xff] %v9090_v33  ;;  %v9094_v31 = vadd.f32 %v8943_v60, %v8988_v26  ;;  %v919_v22 = vld [vmem:[#allocation7 + $0x138] sm:$0xff]  ;;  %v891_v11 = vpop.permute.xlu0 %890 }
 0x29e   : > { %v3082_v34 = vmul.f32 %v3066_v39, %v811_v46  ;;  %v724_v28 = vld [vmem:[#allocation7 + $0x40] sm:$0xff]  ;;  %v9098_v46 = vadd.f32 %v8949_v38, %v8990_v62  ;;  %v853_v59 = vadd.f32 %v837_v36, %v739_v29  ;;  %v3105_v39 = vadd.f32 %v3089_v6, %v3040_v45  ;;  %v3122_v13 = vld [vmem:[#allocation7 + $0xa38] sm:$0xff]  ;;  %v13494_v38 = vld [vmem:[#allocation16_spill] sm:$0xff] }
 0x29f   : > { %v3025_v48 = vld [vmem:[#allocation7 + $0x940] sm:$0xff]  ;;  %13488 = vst [vmem:[#allocation38_spill] sm:$0xff] %v9087_v53  ;;  %13490 = vst [vmem:[#allocation100_spill] sm:$0xff] %v9094_v31  ;;  %v846_v57 = vadd.f32 %v830_v55, %v732_v23  ;;  %v895_v62 = vsel %vm894_vm3, %v13494_v38, %v891_v11  ;;  %v13495_v36 = vld [vmem:[#allocation29_spill] sm:$0xff] }
 0x2a0   : > { %v4975_v15 = vld [vmem:[#allocation7 + $0x1200] sm:$0xff]  ;;  %13491 = vst [vmem:[#allocation101_spill] sm:$0xff] %v9098_v46  ;;  %v3098_v50 = vadd.f32 %v3082_v34, %v3033_v35  ;;  %v909_v23 = vsel %vm894_vm3, %v891_v11, %v13495_v36  ;;  %v829_v6 = vld [vmem:[#allocation7 + $0xf8] sm:$0xff]  ;;  %v795_v44 = vpop.permute.xlu1 %794  ;;  %v3138_v53 = vmul.f32 %v3122_v13, %v895_v62 }
 0x2a1   : > { %v912_v17 = vld [vmem:[#allocation7 + $0x100] sm:$0xff]  ;;  %v3081_v33 = vld [vmem:[#allocation7 + $0x9f8] sm:$0xff] }
 0x2a2   : > { %v13492_v4 = vld [vmem:[#allocation19_spill] sm:$0xff]  ;;  %v928_v31 = vmul.f32 %v912_v17, %v909_v23  ;;  %v5007_v0 = vld [vmem:[#allocation7 + $0x12b8] sm:$0xff] }
 0x2a3   : > { %v701_v41 = vsel %vm699_vm1, %v13492_v4, %v696_v3  ;;  %v13493_v10 = vld [vmem:[#allocation27_spill] sm:$0xff] }
 0x2a4   : > { %v715_v60 = vsel %vm699_vm1, %v696_v3, %v13493_v10  ;;  %v3115_v26 = vld [vmem:[#allocation7 + $0xa00] sm:$0xff]  ;;  %v747_v35 = vmul.f32 %v731_v56, %v701_v41  ;;  %v3048_v55 = vmul.f32 %v3032_v30, %v701_v41  ;;  %v4990_v46 = vmul.f32 %v4982_v27, %v701_v41  ;;  %v13497_v56 = vld [vmem:[#allocation28_spill] sm:$0xff]  ;;  %v989_v30 = vpop.permute.xlu0 %988  ;;  %v893_v61 = vpop.permute.xlu1 %892 }
 0x2a5   : > { %v740_v29 = vmul.f32 %v724_v28, %v715_v60  ;;  %v3041_v45 = vmul.f32 %v3025_v48, %v715_v60  ;;  %v822_v34 = vld [vmem:[#allocation7 + $0xc0] sm:$0xff]  ;;  %v4983_v63 = vmul.f32 %v4975_v15, %v715_v60  ;;  %v935_v3 = vmul.f32 %v919_v22, %v895_v62  ;;  %v1017_v62 = vld [vmem:[#allocation7 + $0x1b8] sm:$0xff] }
 0x2a6   : > { %v3074_v10 = vld [vmem:[#allocation7 + $0x9c0] sm:$0xff]  ;;  %v3131_v20 = vmul.f32 %v3115_v26, %v909_v23  ;;  %v798_v28 = vsel %vm796_vm2, %v13496_v58, %v795_v44  ;;  %v812_v48 = vsel %vm796_vm2, %v795_v44, %v13497_v56  ;;  %v944_v15 = vadd.f32 %v928_v31, %v846_v57 }
 0x2a7   : > { %v5000_v12 = vld [vmem:[#allocation7 + $0x1280] sm:$0xff]  ;;  %v951_v27 = vadd.f32 %v935_v3, %v853_v59  ;;  %v838_v17 = vmul.f32 %v822_v34, %v812_v48  ;;  %v845_v22 = vmul.f32 %v829_v6, %v798_v28  ;;  %v3154_v41 = vadd.f32 %v3138_v53, %v3105_v39  ;;  %v13500_v6 = vld [vmem:[#allocation69_spill] sm:$0xff] }
 0x2a8   : > { %v3147_v11 = vadd.f32 %v3131_v20, %v3098_v50  ;;  %v3090_v60 = vmul.f32 %v3074_v10, %v812_v48  ;;  %v3097_v26 = vmul.f32 %v3081_v33, %v798_v28  ;;  %v1010_v13 = vld [vmem:[#allocation7 + $0x180] sm:$0xff]  ;;  %v5008_v16 = vmul.f32 %v5000_v12, %v812_v48  ;;  %v927_v33 = vld [vmem:[#allocation7 + $0x178] sm:$0xff]  ;;  %v686_v59 = vpop.permute.xlu0 %685  ;;  %v13501_v10 = vld [vmem:[#allocation32_spill] sm:$0xff] }
 0x2a9   : > { %v854_v36 = vadd.f32 %v838_v17, %v740_v29  ;;  %v861_v23 = vadd.f32 %v845_v22, %v747_v35  ;;  %v5015_v5 = vmul.f32 %v5007_v0, %v798_v28  ;;  %v3164_v32 = vld [vmem:[#allocation7 + $0xa80] sm:$0xff]  ;;  %v3130_v35 = vld [vmem:[#allocation7 + $0xa78] sm:$0xff]  ;;  %v896_v3 = vsel %vm894_vm3, %v13500_v6, %v893_v61 }
 0x2aa   : > { %v3106_v51 = vadd.f32 %v3090_v60, %v3041_v45  ;;  %v3113_v44 = vadd.f32 %v3097_v26, %v3048_v55  ;;  %v13498_v56 = vld [vmem:[#allocation47_spill] sm:$0xff]  ;;  %v5016_v50 = vadd.f32 %v5008_v16, %v4983_v63  ;;  %v910_v28 = vsel %vm894_vm3, %v893_v61, %v13501_v10  ;;  %v5032_v16 = vld [vmem:[#allocation7 + $0x1338] sm:$0xff]  ;;  %v13502_v60 = vld [vmem:[#allocation49_spill] sm:$0xff] }
 0x2ab   : > { %v993_v31 = vsel %vm992_vm4, %v13498_v56, %v989_v30  ;;  %v13499_v57 = vld [vmem:[#allocation31_spill] sm:$0xff]  ;;  %v5023_v39 = vadd.f32 %v5015_v5, %v4990_v46  ;;  %v943_v63 = vmul.f32 %v927_v33, %v896_v3  ;;  %v991_v46 = vpop.permute.xlu1 %990  ;;  %v13503_v61 = vld [vmem:[#allocation13_spill] sm:$0xff] }
 0x2ac   : > { %v1007_v20 = vsel %vm992_vm4, %v989_v30, %v13499_v57  ;;  %v920_v53 = vld [vmem:[#allocation7 + $0x140] sm:$0xff]  ;;  %v1033_v0 = vmul.f32 %v1017_v62, %v993_v31  ;;  %v3187_v45 = vmul.f32 %v3171_v7, %v993_v31  ;;  %v721_v57 = vld [vmem:[#allocation7 + $0x28] sm:$0xff]  ;;  %v3023_v33 = vld [vmem:[#allocation7 + $0x930] sm:$0xff]  ;;  %v785_v10 = vpop.permute.xlu0 %784 }
 0x2ad   : > { %v1026_v12 = vmul.f32 %v1010_v13, %v1007_v20  ;;  %v3123_v29 = vld [vmem:[#allocation7 + $0xa40] sm:$0xff]  ;;  %v3180_v34 = vmul.f32 %v3164_v32, %v1007_v20  ;;  %v936_v5 = vmul.f32 %v920_v53, %v910_v28  ;;  %v3146_v32 = vmul.f32 %v3130_v35, %v896_v3  ;;  %v722_v20 = vld [vmem:[#allocation7 + $0x30] sm:$0xff]  ;;  %v3022_v53 = vld [vmem:[#allocation7 + $0x928] sm:$0xff] }
 0x2ae   : > { %v5025_v55 = vld [vmem:[#allocation7 + $0x1300] sm:$0xff]  ;;  %v9130_v30 = vadd.f32 %v1033_v0, %v951_v27  ;;  %v9132_v22 = vadd.f32 %v3187_v45, %v3154_v41  ;;  %v3139_v7 = vmul.f32 %v3123_v29, %v910_v28  ;;  %v959_v62 = vadd.f32 %v943_v63, %v861_v23  ;;  %v3179_v45 = vld [vmem:[#allocation7 + $0xaf8] sm:$0xff] }
 0x2af   : > { %v1042_v48 = vadd.f32 %v1026_v12, %v944_v15  ;;  %v3196_v17 = vadd.f32 %v3180_v34, %v3147_v11  ;;  %v952_v13 = vadd.f32 %v936_v5, %v854_v36  ;;  %v5033_v31 = vmul.f32 %v5025_v55, %v910_v28  ;;  %v13504_v36 = vld [vmem:[#allocation66_spill] sm:$0xff]  ;;  %v1018_v35 = vld [vmem:[#allocation7 + $0x1c0] sm:$0xff] }
 0x2b0   : > { %v3155_v27 = vadd.f32 %v3139_v7, %v3106_v51  ;;  %v3162_v12 = vadd.f32 %v3146_v32, %v3113_v44  ;;  %v5040_v0 = vmul.f32 %v5032_v16, %v896_v3  ;;  %v702_v29 = vsel %vm699_vm1, %v686_v59, %v8615_v21  ;;  %v1025_v34 = vld [vmem:[#allocation7 + $0x1f8] sm:$0xff]  ;;  %v688_v51 = vpop.permute.xlu1 %687  ;;  %v819_v32 = vld [vmem:[#allocation7 + $0xa8] sm:$0xff] }
 0x2b1   : > { %v1091_v26 = vadd.f32 %v13502_v60, %v1042_v48  ;;  %v3245_v15 = vadd.f32 %v13503_v61, %v3196_v17  ;;  %v5041_v41 = vadd.f32 %v5033_v31, %v5016_v50  ;;  %v704_v23 = vsel %vm699_vm1, %v13504_v36, %v686_v59  ;;  %v3172_v48 = vld [vmem:[#allocation7 + $0xac0] sm:$0xff]  ;;  %v5057_v50 = vld [vmem:[#allocation7 + $0x13b8] sm:$0xff]  ;;  %v13506_v17 = vld [vmem:[#allocation33_spill] sm:$0xff] }
 0x2b2   : > { %v5048_v55 = vadd.f32 %v5040_v0, %v5023_v39  ;;  %v737_v3 = vmul.f32 %v721_v57, %v704_v23  ;;  %v738_v28 = vmul.f32 %v722_v20, %v702_v29  ;;  %v3038_v21 = vmul.f32 %v3022_v53, %v704_v23  ;;  %v820_v57 = vld [vmem:[#allocation7 + $0xb0] sm:$0xff]  ;;  %v3071_v20 = vld [vmem:[#allocation7 + $0x9a8] sm:$0xff] }
 0x2b3   : > { %v1189_v11 = vadd.f32 %v8962_v52, %v1091_v26  ;;  %v3294_v44 = vadd.f32 %v8964_v42, %v3245_v15  ;;  %v5050_v52 = vld [vmem:[#allocation7 + $0x1380] sm:$0xff]  ;;  %v3039_v5 = vmul.f32 %v3023_v33, %v702_v29  ;;  %v994_v59 = vsel %vm992_vm4, %v8826_v1, %v991_v46  ;;  %v3072_v61 = vld [vmem:[#allocation7 + $0x9b0] sm:$0xff]  ;;  %v13507_v53 = vld [vmem:[#allocation68_spill] sm:$0xff]  ;;  %v883_v33 = vpop.permute.xlu0 %882 }
 0x2b4   : > { %v1008_v42 = vsel %vm992_vm4, %v991_v46, %v13506_v17  ;;  %v1041_v39 = vmul.f32 %v1025_v34, %v994_v59  ;;  %v3195_v7 = vmul.f32 %v3179_v45, %v994_v59  ;;  %v5065_v31 = vmul.f32 %v5057_v50, %v994_v59  ;;  %v13509_v50 = vld [vmem:[#allocation14_spill] sm:$0xff]  ;;  %v13510_v59 = vld [vmem:[#allocation53_spill] sm:$0xff] }
 0x2b5   : > { %v9145_v16 = vadd.f32 %v9008_v37, %v1189_v11  ;;  %v9151_v63 = vadd.f32 %v9012_v43, %v3294_v44  ;;  %v1034_v60 = vmul.f32 %v1018_v35, %v1008_v42  ;;  %v3188_v26 = vmul.f32 %v3172_v48, %v1008_v42  ;;  %v787_v11 = vpop.permute.xlu1 %786  ;;  %v729_v44 = vld [vmem:[#allocation7 + $0x68] sm:$0xff]  ;;  %v13508_v48 = vld [vmem:[#allocation45_spill] sm:$0xff] }
 0x2b6   : > { %v5058_v37 = vmul.f32 %v5050_v52, %v1008_v42  ;;  %v9156_v15 = vadd.f32 %v1041_v39, %v959_v62  ;;  %v9158_v0 = vadd.f32 %v3195_v7, %v3162_v12  ;;  %v799_v43 = vsel %vm796_vm2, %v785_v10, %v13486_v49  ;;  %v730_v42 = vld [vmem:[#allocation7 + $0x70] sm:$0xff] }
 0x2b7   : > { %13505 = vst [vmem:[#allocation19_spill] sm:$0xff] %v9151_v63  ;;  %v801_v46 = vsel %vm796_vm2, %v13507_v53, %v785_v10  ;;  %v1050_v29 = vadd.f32 %v1034_v60, %v952_v13  ;;  %v3204_v36 = vadd.f32 %v3188_v26, %v3155_v27  ;;  %v9166_v35 = vadd.f32 %v5065_v31, %v5048_v55  ;;  %v3030_v10 = vld [vmem:[#allocation7 + $0x968] sm:$0xff]  ;;  %v3031_v39 = vld [vmem:[#allocation7 + $0x970] sm:$0xff] }
 0x2b8   : > { %v5066_v23 = vadd.f32 %v5058_v37, %v5041_v41  ;;  %v835_v34 = vmul.f32 %v819_v32, %v801_v46  ;;  %v836_v62 = vmul.f32 %v820_v57, %v799_v43  ;;  %v3087_v45 = vmul.f32 %v3071_v20, %v801_v46  ;;  %v4980_v32 = vld [vmem:[#allocation7 + $0x1228] sm:$0xff]  ;;  %v4981_v60 = vld [vmem:[#allocation7 + $0x1230] sm:$0xff]  ;;  %v981_v46 = vpop.permute.xlu0 %980 }
 0x2b9   : > { %v3088_v12 = vmul.f32 %v3072_v61, %v799_v43  ;;  %v1099_v52 = vadd.f32 %v13508_v48, %v1050_v29  ;;  %v3253_v49 = vadd.f32 %v13509_v50, %v3204_v36  ;;  %v703_v13 = vsel %vm699_vm1, %v688_v51, %v13492_v4  ;;  %v917_v26 = vld [vmem:[#allocation7 + $0x128] sm:$0xff] }
 0x2ba   : > { %v5091_v17 = vadd.f32 %v13510_v59, %v5066_v23  ;;  %v851_v27 = vadd.f32 %v835_v34, %v737_v3  ;;  %v852_v41 = vadd.f32 %v836_v62, %v738_v28  ;;  %v3103_v55 = vadd.f32 %v3087_v45, %v3038_v21  ;;  %v13513_v20 = vld [vmem:[#allocation44_spill] sm:$0xff]  ;;  %v918_v3 = vld [vmem:[#allocation7 + $0x130] sm:$0xff] }
 0x2bb   : > { %v3104_v7 = vadd.f32 %v3088_v12, %v3039_v5  ;;  %v9175_v37 = vadd.f32 %v8996_v18, %v1099_v52  ;;  %v9178_v31 = vadd.f32 %v8998_v8, %v3253_v49  ;;  %v705_v4 = vsel %vm699_vm1, %v13513_v20, %v688_v51  ;;  %v3120_v28 = vld [vmem:[#allocation7 + $0xa28] sm:$0xff]  ;;  %v3121_v21 = vld [vmem:[#allocation7 + $0xa30] sm:$0xff]  ;;  %v885_v18 = vpop.permute.xlu1 %884 }
 0x2bc   : > { %v9181_v57 = vadd.f32 %v9006_v40, %v5091_v17  ;;  %v745_v5 = vmul.f32 %v729_v44, %v705_v4  ;;  %v746_v61 = vmul.f32 %v730_v42, %v703_v13  ;;  %v3046_v43 = vmul.f32 %v3030_v10, %v705_v4  ;;  %v13514_v40 = vld [vmem:[#allocation60_spill] sm:$0xff]  ;;  %v828_v34 = vld [vmem:[#allocation7 + $0xf0] sm:$0xff]  ;;  %v13515_v17 = vld [vmem:[#allocation50_spill] sm:$0xff] }
 0x2bd   : > { %13511 = vst [vmem:[#allocation27_spill] sm:$0xff] %v9178_v31  ;;  %v3047_v53 = vmul.f32 %v3031_v39, %v703_v13  ;;  %v4988_v29 = vmul.f32 %v4980_v32, %v705_v4  ;;  %v4989_v36 = vmul.f32 %v4981_v60, %v703_v13  ;;  %v897_v8 = vsel %vm894_vm3, %v883_v33, %v13494_v38  ;;  %v827_v51 = vld [vmem:[#allocation7 + $0xe8] sm:$0xff]  ;;  %v3080_v52 = vld [vmem:[#allocation7 + $0x9f0] sm:$0xff] }
 0x2be   : > { %13512 = vst [vmem:[#allocation16_spill] sm:$0xff] %v9181_v57  ;;  %v899_v23 = vsel %vm894_vm3, %v13514_v40, %v883_v33  ;;  %v934_v45 = vmul.f32 %v918_v3, %v897_v8  ;;  %v3137_v44 = vmul.f32 %v3121_v21, %v897_v8  ;;  %v3079_v48 = vld [vmem:[#allocation7 + $0x9e8] sm:$0xff]  ;;  %v5006_v49 = vld [vmem:[#allocation7 + $0x12b0] sm:$0xff]  ;;  %v800_v59 = vsel %vm796_vm2, %v787_v11, %v13496_v58 }
 0x2bf   : > { %v933_v62 = vmul.f32 %v917_v26, %v899_v23  ;;  %v3136_v12 = vmul.f32 %v3120_v28, %v899_v23  ;;  %v5005_v50 = vld [vmem:[#allocation7 + $0x12a8] sm:$0xff]  ;;  %v802_v38 = vsel %vm796_vm2, %v13515_v17, %v787_v11  ;;  %v1016_v33 = vld [vmem:[#allocation7 + $0x1b0] sm:$0xff]  ;;  %v995_v10 = vsel %vm992_vm4, %v981_v46, %v13498_v56  ;;  %v983_v56 = vpop.permute.xlu1 %982 }
 0x2c0   : > { %v1015_v42 = vld [vmem:[#allocation7 + $0x1a8] sm:$0xff]  ;;  %v997_v39 = vsel %vm992_vm4, %v8898_v47, %v981_v46  ;;  %v950_v32 = vadd.f32 %v934_v45, %v852_v41  ;;  %v3153_v26 = vadd.f32 %v3137_v44, %v3104_v7  ;;  %v843_v20 = vmul.f32 %v827_v51, %v802_v38  ;;  %v3170_v8 = vld [vmem:[#allocation7 + $0xab0] sm:$0xff]  ;;  %v1136_v7 = vpop.permute.xlu0 %1135 }
 0x2c1   : > { %v949_v13 = vadd.f32 %v933_v62, %v851_v27  ;;  %v3152_v60 = vadd.f32 %v3136_v12, %v3103_v55  ;;  %v844_v58 = vmul.f32 %v828_v34, %v800_v59  ;;  %v3095_v4 = vmul.f32 %v3079_v48, %v802_v38  ;;  %v3169_v21 = vld [vmem:[#allocation7 + $0xaa8] sm:$0xff]  ;;  %v926_v27 = vld [vmem:[#allocation7 + $0x170] sm:$0xff] }
 0x2c2   : > { %v3096_v3 = vmul.f32 %v3080_v52, %v800_v59  ;;  %v5013_v28 = vmul.f32 %v5005_v50, %v802_v38  ;;  %v5014_v11 = vmul.f32 %v5006_v49, %v800_v59  ;;  %v1031_v40 = vmul.f32 %v1015_v42, %v997_v39  ;;  %v925_v17 = vld [vmem:[#allocation7 + $0x168] sm:$0xff]  ;;  %v3129_v55 = vld [vmem:[#allocation7 + $0xa70] sm:$0xff] }
 0x2c3   : > { %v1032_v23 = vmul.f32 %v1016_v33, %v995_v10  ;;  %v859_v57 = vadd.f32 %v843_v20, %v745_v5  ;;  %v860_v63 = vadd.f32 %v844_v58, %v746_v61  ;;  %v3111_v31 = vadd.f32 %v3095_v4, %v3046_v43  ;;  %v3128_v41 = vld [vmem:[#allocation7 + $0xa68] sm:$0xff]  ;;  %v5031_v12 = vld [vmem:[#allocation7 + $0x1330] sm:$0xff]  ;;  %v9214_v20 = vpop.permute.xlu1 %1137  ;;  %v13516_v58 = vld [vmem:[#allocation55_spill] sm:$0xff] }
 0x2c4   : > { %v3112_v47 = vadd.f32 %v3096_v3, %v3047_v53  ;;  %v5021_v46 = vadd.f32 %v5013_v28, %v4988_v29  ;;  %v5022_v51 = vadd.f32 %v5014_v11, %v4989_v36  ;;  %v9204_v34 = vadd.f32 %v1031_v40, %v949_v13  ;;  %v5030_v45 = vld [vmem:[#allocation7 + $0x1328] sm:$0xff]  ;;  %v1163_v38 = vld [vmem:[#allocation7 + $0x2b0] sm:$0xff]  ;;  %v1164_v13 = vld [vmem:[#allocation7 + $0x2b8] sm:$0xff] }
 0x2c5   : > { %v1048_v62 = vadd.f32 %v1032_v23, %v950_v32  ;;  %v3185_v44 = vmul.f32 %v3169_v21, %v997_v39  ;;  %v3186_v48 = vmul.f32 %v3170_v8, %v995_v10  ;;  %v898_v5 = vsel %vm894_vm3, %v885_v18, %v13500_v6  ;;  %v3268_v6 = vld [vmem:[#allocation7 + $0xbb0] sm:$0xff]  ;;  %v3269_v32 = vld [vmem:[#allocation7 + $0xbb8] sm:$0xff]  ;;  %v13518_v28 = vld [vmem:[#allocation52_spill] sm:$0xff] }
 0x2c6   : > { %v900_v61 = vsel %vm894_vm3, %v8896_v19, %v885_v18  ;;  %v942_v53 = vmul.f32 %v926_v27, %v898_v5  ;;  %v3145_v29 = vmul.f32 %v3129_v55, %v898_v5  ;;  %v5039_v59 = vmul.f32 %v5031_v12, %v898_v5  ;;  %v1023_v21 = vld [vmem:[#allocation7 + $0x1e8] sm:$0xff]  ;;  %v1024_v8 = vld [vmem:[#allocation7 + $0x1f0] sm:$0xff] }
 0x2c7   : > { %v941_v43 = vmul.f32 %v925_v17, %v900_v61  ;;  %v3144_v52 = vmul.f32 %v3128_v41, %v900_v61  ;;  %v9212_v36 = vadd.f32 %v3185_v44, %v3152_v60  ;;  %v3202_v50 = vadd.f32 %v3186_v48, %v3153_v26  ;;  %v13517_v60 = vld [vmem:[#allocation59_spill] sm:$0xff]  ;;  %v1234_v26 = vpop.permute.xlu0 %1233  ;;  %v3178_v27 = vld [vmem:[#allocation7 + $0xaf0] sm:$0xff]  ;;  %v5055_v41 = vld [vmem:[#allocation7 + $0x13a8] sm:$0xff] }
 0x2c8   : > { %v5038_v49 = vmul.f32 %v5030_v45, %v900_v61  ;;  %v958_v33 = vadd.f32 %v942_v53, %v860_v63  ;;  %v3161_v39 = vadd.f32 %v3145_v29, %v3112_v47  ;;  %v5047_v18 = vadd.f32 %v5039_v59, %v5022_v51  ;;  %v3177_v47 = vld [vmem:[#allocation7 + $0xae8] sm:$0xff]  ;;  %v5056_v55 = vld [vmem:[#allocation7 + $0x13b0] sm:$0xff]  ;;  %v9240_v53 = vpop.permute.xlu1 %1235  ;;  %v3318_v29 = vld [vmem:[#allocation7 + $0xc38] sm:$0xff] }
 0x2c9   : > { %v957_v42 = vadd.f32 %v941_v43, %v859_v57  ;;  %v3160_v10 = vadd.f32 %v3144_v52, %v3111_v31  ;;  %v1097_v4 = vadd.f32 %v13516_v58, %v1048_v62  ;;  %v1098_v3 = vadd.f32 %v13517_v60, %v9130_v30  ;;  %v13519_v51 = vld [vmem:[#allocation36_spill] sm:$0xff]  ;;  %v3317_v52 = vld [vmem:[#allocation7 + $0xc30] sm:$0xff] }
 0x2ca   : > { %v5046_v19 = vadd.f32 %v5038_v49, %v5021_v46  ;;  %v3251_v11 = vadd.f32 %v13518_v28, %v3202_v50  ;;  %v3252_v63 = vadd.f32 %v8841_v24, %v9132_v22  ;;  %v1140_v31 = vsel %vm1139_vm5, %v8929_v9, %v1136_v7  ;;  %v1261_v46 = vld [vmem:[#allocation7 + $0x330] sm:$0xff] }
 0x2cb   : > { %v1154_v57 = vsel %vm1139_vm5, %v1136_v7, %v13450_v2  ;;  %v1179_v40 = vmul.f32 %v1163_v38, %v1140_v31  ;;  %v3284_v17 = vmul.f32 %v3268_v6, %v1140_v31  ;;  %v996_v24 = vsel %vm992_vm4, %v983_v56, %v8826_v1  ;;  %v1262_v2 = vld [vmem:[#allocation7 + $0x338] sm:$0xff] }
 0x2cc   : > { %v1180_v23 = vmul.f32 %v1164_v13, %v1154_v57  ;;  %v3285_v30 = vmul.f32 %v3269_v32, %v1154_v57  ;;  %v998_v22 = vsel %vm992_vm4, %v8954_v54, %v983_v56  ;;  %v1238_v7 = vsel %vm1237_vm6, %v8956_v25, %v1234_v26  ;;  %v1171_v57 = vld [vmem:[#allocation7 + $0x2f0] sm:$0xff] }
 0x2cd   : > { %v1252_v62 = vsel %vm1237_vm6, %v1234_v26, %v13519_v51  ;;  %v1195_v45 = vadd.f32 %v1179_v40, %v1097_v4  ;;  %v3300_v44 = vadd.f32 %v3284_v17, %v3251_v11  ;;  %v1039_v5 = vmul.f32 %v1023_v21, %v998_v22  ;;  %v13520_v11 = vld [vmem:[#allocation84_spill] sm:$0xff]  ;;  %v13524_v21 = vld [vmem:[#allocation54_spill] sm:$0xff]  ;;  %v13525_v40 = vld [vmem:[#allocation73_spill] sm:$0xff] }
 0x2ce   : > { %v1196_v12 = vadd.f32 %v1180_v23, %v1098_v3  ;;  %v3301_v48 = vadd.f32 %v3285_v30, %v3252_v63  ;;  %v1040_v1 = vmul.f32 %v1024_v8, %v996_v24  ;;  %v3193_v61 = vmul.f32 %v3177_v47, %v998_v22  ;;  %v1128_v3 = vpop.permute.xlu0 %1127  ;;  %v3276_v17 = vld [vmem:[#allocation7 + $0xbf0] sm:$0xff] }
 0x2cf   : > { %v3194_v43 = vmul.f32 %v3178_v27, %v996_v24  ;;  %v5063_v54 = vmul.f32 %v5055_v41, %v998_v22  ;;  %v5064_v56 = vmul.f32 %v5056_v55, %v996_v24  ;;  %v1277_v50 = vmul.f32 %v1261_v46, %v1238_v7  ;;  %v3277_v55 = vld [vmem:[#allocation7 + $0xbf8] sm:$0xff]  ;;  %v5106_v24 = vld [vmem:[#allocation7 + $0x14b0] sm:$0xff] }
 0x2d0   : > { %v1278_v49 = vmul.f32 %v1262_v2, %v1252_v62  ;;  %v9242_v59 = vadd.f32 %v1039_v5, %v957_v42  ;;  %v1056_v38 = vadd.f32 %v1040_v1, %v958_v33  ;;  %v9244_v13 = vadd.f32 %v3193_v61, %v3160_v10  ;;  %v13521_v42 = vld [vmem:[#allocation90_spill] sm:$0xff]  ;;  %v13522_v33 = vld [vmem:[#allocation65_spill] sm:$0xff] }
 0x2d1   : > { %v3210_v6 = vadd.f32 %v3194_v43, %v3161_v39  ;;  %v9246_v32 = vadd.f32 %v5063_v54, %v5046_v19  ;;  %v5072_v58 = vadd.f32 %v5064_v56, %v5047_v18  ;;  %v9248_v4 = vadd.f32 %v1277_v50, %v1195_v45  ;;  %v13523_v39 = vld [vmem:[#allocation72_spill] sm:$0xff]  ;;  %v1172_v18 = vld [vmem:[#allocation7 + $0x2f8] sm:$0xff]  ;;  %v13531_v45 = vld [vmem:[#allocation35_spill] sm:$0xff] }
 0x2d2   : > { %v9250_v60 = vadd.f32 %v1278_v49, %v1196_v12  ;;  %v3333_v26 = vmul.f32 %v3317_v52, %v1238_v7  ;;  %v3334_v28 = vmul.f32 %v3318_v29, %v1252_v62  ;;  %v1295_v63 = vadd.f32 %v13520_v11, %v9175_v37  ;;  %v13526_v37 = vld [vmem:[#allocation93_spill] sm:$0xff]  ;;  %v5107_v22 = vld [vmem:[#allocation7 + $0x14b8] sm:$0xff]  ;;  %v1161_v29 = vld [vmem:[#allocation7 + $0x2a0] sm:$0xff]  ;;  %v1332_v49 = vpop.permute.xlu0 %1331 }
 0x2d3   : > { %v1385_v31 = vadd.f32 %v13521_v42, %v9145_v16  ;;  %v1105_v10 = vadd.f32 %v13522_v33, %v1056_v38  ;;  %v1106_v19 = vadd.f32 %v13523_v39, %v9156_v15  ;;  %v3259_v8 = vadd.f32 %v13524_v21, %v3210_v6  ;;  %v13527_v16 = vld [vmem:[#allocation91_spill] sm:$0xff]  ;;  %v9268_v15 = vpop.permute.xlu1 %1129  ;;  %v13528_v46 = vld [vmem:[#allocation74_spill] sm:$0xff]  ;;  %v13529_v7 = vld [vmem:[#allocation77_spill] sm:$0xff] }
 0x2d4   : > { %v3260_v23 = vadd.f32 %v13525_v40, %v9158_v0  ;;  %v9262_v30 = vadd.f32 %v3333_v26, %v3300_v44  ;;  %v9264_v47 = vadd.f32 %v3334_v28, %v3301_v48  ;;  %v1393_v27 = vadd.f32 %v13526_v37, %v1295_v63  ;;  %v13530_v0 = vld [vmem:[#allocation62_spill] sm:$0xff]  ;;  %v13532_v44 = vld [vmem:[#allocation96_spill] sm:$0xff]  ;;  %v3266_v28 = vld [vmem:[#allocation7 + $0xba0] sm:$0xff] }
 0x2d5   : > { %v1483_v41 = vadd.f32 %v13527_v16, %v1385_v31  ;;  %v5097_v2 = vadd.f32 %v13528_v46, %v5072_v58  ;;  %v5098_v51 = vadd.f32 %v13529_v7, %v9166_v35  ;;  %v1141_v62 = vsel %vm1139_vm5, %v13530_v0, %v9214_v20  ;;  %v13533_v35 = vld [vmem:[#allocation25_spill] sm:$0xff]  ;;  %v1162_v50 = vld [vmem:[#allocation7 + $0x2a8] sm:$0xff]  ;;  %v13534_v33 = vld [vmem:[#allocation78_spill] sm:$0xff] }
 0x2d6   : > { %v1155_v12 = vsel %vm1139_vm5, %v9214_v20, %v13531_v45  ;;  %v1491_v48 = vadd.f32 %v13532_v44, %v1393_v27  ;;  %v1187_v5 = vmul.f32 %v1171_v57, %v1141_v62  ;;  %v3292_v61 = vmul.f32 %v3276_v17, %v1141_v62  ;;  %v3267_v20 = vld [vmem:[#allocation7 + $0xba8] sm:$0xff]  ;;  %v1269_v11 = vld [vmem:[#allocation7 + $0x370] sm:$0xff]  ;;  %v1270_v57 = vld [vmem:[#allocation7 + $0x378] sm:$0xff] }
 0x2d7   : > { %v1188_v1 = vmul.f32 %v1172_v18, %v1155_v12  ;;  %v3293_v43 = vmul.f32 %v3277_v55, %v1155_v12  ;;  %v5114_v54 = vmul.f32 %v5106_v24, %v1141_v62  ;;  %v5115_v56 = vmul.f32 %v5107_v22, %v1155_v12  ;;  %v3325_v18 = vld [vmem:[#allocation7 + $0xc70] sm:$0xff]  ;;  %v3326_v21 = vld [vmem:[#allocation7 + $0xc78] sm:$0xff]  ;;  %v9300_v17 = vpop.permute.xlu1 %1333  ;;  %v13538_v7 = vld [vmem:[#allocation99_spill] sm:$0xff] }
 0x2d8   : > { %v1096_v52 = vadd.f32 %v13533_v35, %v9204_v34  ;;  %v7247_v38 = vpack.c.bf16 %v1491_v48, %v1483_v41  ;;  %v1203_v6 = vadd.f32 %v1187_v5, %v1105_v10  ;;  %v3308_v26 = vadd.f32 %v3292_v61, %v3259_v8  ;;  %v13535_v10 = vld [vmem:[#allocation41_spill] sm:$0xff]  ;;  %v5132_v55 = vld [vmem:[#allocation7 + $0x1538] sm:$0xff]  ;;  %v13540_v44 = vld [vmem:[#allocation83_spill] sm:$0xff]  ;;  %v1226_v61 = vpop.permute.xlu0 %1225 }
 0x2d9   : > { %v1204_v58 = vadd.f32 %v1188_v1, %v1106_v19  ;;  %v3309_v63 = vadd.f32 %v3293_v43, %v3260_v23  ;;  %v5122_v42 = vadd.f32 %v5114_v54, %v5097_v2  ;;  %v5123_v31 = vadd.f32 %v5115_v56, %v5098_v51  ;;  %v13536_v8 = vld [vmem:[#allocation85_spill] sm:$0xff]  ;;  %v13537_v23 = vld [vmem:[#allocation39_spill] sm:$0xff]  ;;  %v13539_v45 = vld [vmem:[#allocation38_spill] sm:$0xff] }
 0x2da   : > { %v3250_v39 = vadd.f32 %v13534_v33, %v9212_v36  ;;  %7248 = vmatpush1.bf16.msra.mxu0 %v7247_v38  ;;  %v1142_v34 = vsel %vm1139_vm5, %v1128_v3, %v8929_v9  ;;  %v1144_v19 = vsel %vm1139_vm5, %v13535_v10, %v1128_v3  ;;  %v1239_v40 = vsel %vm1237_vm6, %v13536_v8, %v9240_v53  ;;  %v5131_v41 = vld [vmem:[#allocation7 + $0x1530] sm:$0xff]  ;;  %v1360_v48 = vld [vmem:[#allocation7 + $0x3b8] sm:$0xff] }
 0x2db   : > { %v1253_v36 = vsel %vm1237_vm6, %v9240_v53, %v13537_v23  ;;  %v1177_v37 = vmul.f32 %v1161_v29, %v1144_v19  ;;  %v1178_v27 = vmul.f32 %v1162_v50, %v1142_v34  ;;  %v3282_v16 = vmul.f32 %v3266_v28, %v1144_v19  ;;  %v1359_v2 = vld [vmem:[#allocation7 + $0x3b0] sm:$0xff]  ;;  %v3367_v1 = vld [vmem:[#allocation7 + $0xcb8] sm:$0xff]  ;;  %v1170_v19 = vld [vmem:[#allocation7 + $0x2e8] sm:$0xff] }
 0x2dc   : > { %v3283_v9 = vmul.f32 %v3267_v20, %v1142_v34  ;;  %v1285_v24 = vmul.f32 %v1269_v11, %v1239_v40  ;;  %v1286_v3 = vmul.f32 %v1270_v57, %v1253_v36  ;;  %v3341_v22 = vmul.f32 %v3325_v18, %v1239_v40  ;;  %v3366_v5 = vld [vmem:[#allocation7 + $0xcb0] sm:$0xff]  ;;  %v13542_v38 = vld [vmem:[#allocation82_spill] sm:$0xff]  ;;  %v13543_v20 = vld [vmem:[#allocation40_spill] sm:$0xff]  ;;  %v9329_v57 = vpop.permute.xlu1 %1227 }
 0x2dd   : > { %v3342_v46 = vmul.f32 %v3326_v21, %v1253_v36  ;;  %v9303_v51 = vadd.f32 %v1177_v37, %v13538_v7  ;;  %v9305_v62 = vadd.f32 %v1178_v27, %v1096_v52  ;;  %v9308_v53 = vadd.f32 %v3282_v16, %v13539_v45  ;;  %7178 = vmatmul.mubr.msk.f32.vlgmr.msra.gmra.mrb[8].mxu0 %vm334_vm0, %v13540_v44  ;;  %v13544_v21 = vld [vmem:[#allocation89_spill] sm:$0xff]  ;;  %v13545_v34 = vld [vmem:[#allocation58_spill] sm:$0xff]  ;;  %v3274_v23 = vld [vmem:[#allocation7 + $0xbe0] sm:$0xff] }
 0x2de   : > { %v9310_v12 = vadd.f32 %v3283_v9, %v3250_v39  ;;  %v9314_v43 = vadd.f32 %v1285_v24, %v1203_v6  ;;  %v9316_v54 = vadd.f32 %v1286_v3, %v1204_v58  ;;  %v9318_v56 = vadd.f32 %v3341_v22, %v3308_v26  ;;  %v1169_v26 = vld [vmem:[#allocation7 + $0x2e0] sm:$0xff]  ;;  %v1260_v9 = vld [vmem:[#allocation7 + $0x328] sm:$0xff]  ;;  %v13549_v44 = vld [vmem:[#allocation70_spill] sm:$0xff] }
 0x2df   : > { %v9320_v35 = vadd.f32 %v3342_v46, %v3309_v63  ;;  %v13541_v52 = vmov 0.0   ;;  %v5139_v29 = vmul.f32 %v5131_v41, %v1239_v40  ;;  %v5140_v50 = vmul.f32 %v5132_v55, %v1253_v36  ;;  %v3275_v36 = vld [vmem:[#allocation7 + $0xbe8] sm:$0xff]  ;;  %v5104_v16 = vld [vmem:[#allocation7 + $0x14a0] sm:$0xff]  ;;  %v9367_v55 = vpop.permute.xlu0 %1429 }
 0x2e0   : > { %1591 = vmatprep.mubr.f32.mxu0 %v13541_v52  ;;  %v1336_v28 = vsel %vm1335_vm7, %v13542_v38, %v1332_v49  ;;  %v1350_v11 = vsel %vm1335_vm7, %v1332_v49, %v13543_v20  ;;  %v1104_v10 = vadd.f32 %v13545_v34, %v9242_v59  ;;  %v13546_v49 = vld [vmem:[#allocation34_spill] sm:$0xff]  ;;  %v5105_v59 = vld [vmem:[#allocation7 + $0x14a8] sm:$0xff]  ;;  %v1259_v46 = vld [vmem:[#allocation7 + $0x320] sm:$0xff] }
 0x2e1   : > { %v1375_v6 = vmul.f32 %v1359_v2, %v1336_v28  ;;  %v1376_v33 = vmul.f32 %v1360_v48, %v1350_v11  ;;  %v3382_v58 = vmul.f32 %v3366_v5, %v1336_v28  ;;  %v3383_v39 = vmul.f32 %v3367_v1, %v1350_v11  ;;  %7179 = vmatmul.mubr.msk.f32.gmra.mrb[10].mxu0 %vm334_vm0, %v13544_v21  ;;  %v3315_v45 = vld [vmem:[#allocation7 + $0xc20] sm:$0xff]  ;;  %v13550_v5 = vld [vmem:[#allocation24_spill] sm:$0xff]  ;;  %v1367_v20 = vld [vmem:[#allocation7 + $0x3f0] sm:$0xff] }
 0x2e2   : > { %v9331_v63 = vadd.f32 %v5139_v29, %v5122_v42  ;;  %v9333_v18 = vadd.f32 %v5140_v50, %v5123_v31  ;;  %v3258_v40 = vadd.f32 %v13546_v49, %v9244_v13  ;;  %1739 = vmatprep.mubr.f32.mxu0 %v13541_v52  ;;  %v13547_v13 = vld [vmem:[#allocation79_spill] sm:$0xff]  ;;  %v1242_v48 = vsel %vm1237_vm6, %v13549_v44, %v1226_v61  ;;  %v1368_v11 = vld [vmem:[#allocation7 + $0x3f8] sm:$0xff] }
 0x2e3   : > { %v9342_v37 = vadd.f32 %v1375_v6, %v9248_v4  ;;  %v9345_v42 = vadd.f32 %v1376_v33, %v9250_v60  ;;  %v9348_v31 = vadd.f32 %v3382_v58, %v9262_v30  ;;  %v9351_v27 = vadd.f32 %v3383_v39, %v9264_v47  ;;  %v13548_v60 = vld [vmem:[#allocation18_spill] sm:$0xff]  ;;  %v3374_v6 = vld [vmem:[#allocation7 + $0xcf0] sm:$0xff]  ;;  %v9374_v33 = vpop.permute.xlu1 %1431 }
 0x2e4   : > { %v5096_v41 = vadd.f32 %v13547_v13, %v9246_v32  ;;  %v1143_v4 = vsel %vm1139_vm5, %v9268_v15, %v13530_v0  ;;  %v1145_v30 = vsel %vm1139_vm5, %v13548_v60, %v9268_v15  ;;  %v1240_v47 = vsel %vm1237_vm6, %v1226_v61, %v8956_v25  ;;  %v3316_v0 = vld [vmem:[#allocation7 + $0xc28] sm:$0xff]  ;;  %v13552_v58 = vld [vmem:[#allocation101_spill] sm:$0xff]  ;;  %v3375_v61 = vld [vmem:[#allocation7 + $0xcf8] sm:$0xff]  ;;  %v1324_v60 = vpop.permute.xlu0 %1323 }
 0x2e5   : > { %v1185_v24 = vmul.f32 %v1169_v26, %v1145_v30  ;;  %v1186_v3 = vmul.f32 %v1170_v19, %v1143_v4  ;;  %v3290_v22 = vmul.f32 %v3274_v23, %v1145_v30  ;;  %v3291_v32 = vmul.f32 %v3275_v36, %v1143_v4  ;;  %v13551_v25 = vld [vmem:[#allocation100_spill] sm:$0xff]  ;;  %v5156_v19 = vld [vmem:[#allocation7 + $0x15b0] sm:$0xff] }
 0x2e6   : > { %v5112_v2 = vmul.f32 %v5104_v16, %v1145_v30  ;;  %v5113_v7 = vmul.f32 %v5105_v59, %v1143_v4  ;;  %v1276_v15 = vmul.f32 %v1260_v9, %v1240_v47  ;;  %v1275_v21 = vmul.f32 %v1259_v46, %v1242_v48  ;;  %v13553_v36 = vld [vmem:[#allocation97_spill] sm:$0xff]  ;;  %v13554_v16 = vld [vmem:[#allocation43_spill] sm:$0xff]  ;;  %v1458_v4 = vld [vmem:[#allocation7 + $0x438] sm:$0xff] }
 0x2e7   : > { %v1201_v1 = vadd.f32 %v1185_v24, %v13550_v5  ;;  %v1202_v29 = vadd.f32 %v1186_v3, %v1104_v10  ;;  %v3306_v50 = vadd.f32 %v3290_v22, %v13551_v25  ;;  %v3307_v28 = vadd.f32 %v3291_v32, %v3258_v40  ;;  %v5157_v10 = vld [vmem:[#allocation7 + $0x15b8] sm:$0xff]  ;;  %v1267_v32 = vld [vmem:[#allocation7 + $0x360] sm:$0xff]  ;;  %v1268_v46 = vld [vmem:[#allocation7 + $0x368] sm:$0xff] }
 0x2e8   : > { %v5120_v39 = vadd.f32 %v5112_v2, %v13552_v58  ;;  %v5121_v26 = vadd.f32 %v5113_v7, %v5096_v41  ;;  %v9378_v34 = vadd.f32 %v1276_v15, %v9305_v62  ;;  %v3331_v49 = vmul.f32 %v3315_v45, %v1242_v48  ;;  %v3416_v22 = vld [vmem:[#allocation7 + $0xd38] sm:$0xff]  ;;  %v3324_v45 = vld [vmem:[#allocation7 + $0xc68] sm:$0xff]  ;;  %v1326_v15 = vpop.permute.xlu1 %1325 }
 0x2e9   : > { %v3332_v23 = vmul.f32 %v3316_v0, %v1240_v47  ;;  %v1337_v40 = vsel %vm1335_vm7, %v13553_v36, %v9300_v17  ;;  %v1351_v59 = vsel %vm1335_vm7, %v9300_v17, %v13554_v16  ;;  %v9389_v9 = vadd.f32 %v1275_v21, %v9303_v51  ;;  %v13555_v48 = vld [vmem:[#allocation42_spill] sm:$0xff]  ;;  %v13557_v16 = vld [vmem:[#allocation51_spill] sm:$0xff] }
 0x2ea   : > { %v1383_v62 = vmul.f32 %v1367_v20, %v1337_v40  ;;  %v1384_v13 = vmul.f32 %v1368_v11, %v1351_v59  ;;  %v3390_v41 = vmul.f32 %v3374_v6, %v1337_v40  ;;  %v3347_v30 = vadd.f32 %v3331_v49, %v9308_v53  ;;  %v3323_v53 = vld [vmem:[#allocation7 + $0xc60] sm:$0xff] }
 0x2eb   : > { %v9393_v47 = vadd.f32 %v3332_v23, %v9310_v12  ;;  %v3391_v24 = vmul.f32 %v3375_v61, %v1351_v59  ;;  %v5164_v3 = vmul.f32 %v5156_v19, %v1337_v40  ;;  %v9404_v7 = vmul.f32 %v5157_v10, %v1351_v59  ;;  %v5129_v12 = vld [vmem:[#allocation7 + $0x1520] sm:$0xff]  ;;  %v1358_v19 = vld [vmem:[#allocation7 + $0x3a8] sm:$0xff] }
 0x2ec   : > { %v9396_v17 = vadd.f32 %v1383_v62, %v9314_v43  ;;  %v9399_v51 = vadd.f32 %v1384_v13, %v9316_v54  ;;  %v9402_v2 = vadd.f32 %v3390_v41, %v9318_v56  ;;  %v1448_v43 = vsel %vm1433_vm8, %v9367_v55, %v13555_v48  ;;  %v5130_v54 = vld [vmem:[#allocation7 + $0x1528] sm:$0xff]  ;;  %v1357_v61 = vld [vmem:[#allocation7 + $0x3a0] sm:$0xff]  ;;  %v3415_v48 = vld [vmem:[#allocation7 + $0xd30] sm:$0xff] }
 0x2ed   : > { %v9407_v0 = vadd.f32 %v3391_v24, %v9320_v35  ;;  %v9410_v44 = vadd.f32 %v5164_v3, %v9331_v63  ;;  %v1241_v56 = vsel %vm1237_vm6, %v9329_v57, %v13536_v8  ;;  %v9420_v5 = vmul.f32 %v1458_v4, %v1448_v43  ;;  %v13556_v35 = vld [vmem:[#allocation67_spill] sm:$0xff]  ;;  %v3365_v10 = vld [vmem:[#allocation7 + $0xca8] sm:$0xff]  ;;  %v1466_v24 = vld [vmem:[#allocation7 + $0x478] sm:$0xff] }
 0x2ee   : > { %v9422_v25 = vmul.f32 %v3416_v22, %v1448_v43  ;;  %v1243_v63 = vsel %vm1237_vm6, %v13556_v35, %v9329_v57  ;;  %v1284_v20 = vmul.f32 %v1268_v46, %v1241_v56  ;;  %v3340_v58 = vmul.f32 %v3324_v45, %v1241_v56  ;;  %v3364_v49 = vld [vmem:[#allocation7 + $0xca0] sm:$0xff]  ;;  %v1426_v57 = vpop.permute.xlu0 %1425  ;;  %v3424_v46 = vld [vmem:[#allocation7 + $0xd78] sm:$0xff]  ;;  %v1457_v45 = vld [vmem:[#allocation7 + $0x430] sm:$0xff] }
 0x2ef   : > { %v1283_v11 = vmul.f32 %v1267_v32, %v1243_v63  ;;  %v3339_v6 = vmul.f32 %v3323_v53, %v1243_v63  ;;  %v5137_v21 = vmul.f32 %v5129_v12, %v1243_v63  ;;  %v5138_v8 = vmul.f32 %v5130_v54, %v1241_v56  ;;  %v5182_v53 = vld [vmem:[#allocation7 + $0x1638] sm:$0xff]  ;;  %v1365_v63 = vld [vmem:[#allocation7 + $0x3e0] sm:$0xff] }
 0x2f0   : > { %v1300_v23 = vadd.f32 %v1284_v20, %v1202_v29  ;;  %v1338_v40 = vsel %vm1335_vm7, %v1324_v60, %v13542_v38  ;;  %v1340_v59 = vsel %vm1335_vm7, %v13557_v16, %v1324_v60  ;;  %v3356_v41 = vadd.f32 %v3340_v58, %v3307_v28  ;;  %v13558_v38 = vld [vmem:[#allocation46_spill] sm:$0xff]  ;;  %v3373_v28 = vld [vmem:[#allocation7 + $0xce8] sm:$0xff]  ;;  %v3372_v20 = vld [vmem:[#allocation7 + $0xce0] sm:$0xff] }
 0x2f1   : > { %v1299_v62 = vadd.f32 %v1283_v11, %v1201_v1  ;;  %v3355_v13 = vadd.f32 %v3339_v6, %v3306_v50  ;;  %v5145_v4 = vadd.f32 %v5137_v21, %v5120_v39  ;;  %v9434_v3 = vadd.f32 %v5138_v8, %v5121_v26  ;;  %v1366_v50 = vld [vmem:[#allocation7 + $0x3e8] sm:$0xff]  ;;  %v1428_v26 = vpop.permute.xlu1 %1427  ;;  %v5154_v11 = vld [vmem:[#allocation7 + $0x15a0] sm:$0xff] }
 0x2f2   : > { %v1373_v22 = vmul.f32 %v1357_v61, %v1340_v59  ;;  %v1374_v29 = vmul.f32 %v1358_v19, %v1338_v40  ;;  %v3380_v32 = vmul.f32 %v3364_v49, %v1340_v59  ;;  %v3381_v12 = vmul.f32 %v3365_v10, %v1338_v40  ;;  %v13559_v19 = vld [vmem:[#allocation75_spill] sm:$0xff]  ;;  %v1422_v49 = vpop.permute.xlu0 %1421  ;;  %v1456_v59 = vld [vmem:[#allocation7 + $0x428] sm:$0xff] }
 0x2f3   : > { %v1449_v60 = vsel %vm1433_vm8, %v9374_v33, %v13558_v38  ;;  %v1434_v1 = vsel %vm1433_vm8, %v1426_v57, %v9367_v55  ;;  %v1339_v39 = vsel %vm1335_vm7, %v1326_v15, %v13553_v36  ;;  %v5155_v36 = vld [vmem:[#allocation7 + $0x15a8] sm:$0xff]  ;;  %v1455_v16 = vld [vmem:[#allocation7 + $0x420] sm:$0xff] }
 0x2f4   : > { %v1389_v43 = vadd.f32 %v1373_v22, %v9389_v9  ;;  %v9448_v54 = vadd.f32 %v1374_v29, %v9378_v34  ;;  %v3396_v56 = vadd.f32 %v3380_v32, %v3347_v30  ;;  %v1482_v35 = vmul.f32 %v1466_v24, %v1449_v60  ;;  %v3414_v24 = vld [vmem:[#allocation7 + $0xd28] sm:$0xff] }
 0x2f5   : > { %v9451_v6 = vadd.f32 %v3381_v12, %v9393_v47  ;;  %v9453_v55 = vmul.f32 %v3424_v46, %v1449_v60  ;;  %v9455_v58 = vmul.f32 %v5182_v53, %v1449_v60  ;;  %v1473_v21 = vmul.f32 %v1457_v45, %v1434_v1  ;;  %v3413_v53 = vld [vmem:[#allocation7 + $0xd20] sm:$0xff]  ;;  %v3423_v45 = vld [vmem:[#allocation7 + $0xd70] sm:$0xff] }
 0x2f6   : > { %v3431_v61 = vmul.f32 %v3415_v48, %v1434_v1  ;;  %v1341_v34 = vsel %vm1335_vm7, %v13559_v19, %v1326_v15  ;;  %v1382_v9 = vmul.f32 %v1366_v50, %v1339_v39  ;;  %v3389_v30 = vmul.f32 %v3373_v28, %v1339_v39  ;;  %v1465_v15 = vld [vmem:[#allocation7 + $0x470] sm:$0xff]  ;;  %v1424_v1 = vpop.permute.xlu1 %1423  ;;  %v13561_v50 = vld [vmem:[#allocation76_spill] sm:$0xff]  ;;  %v5179_v19 = vld [vmem:[#allocation7 + $0x1620] sm:$0xff] }
 0x2f7   : > { %v1489_v8 = vadd.f32 %v1473_v21, %v9342_v37  ;;  %v1381_v10 = vmul.f32 %v1365_v63, %v1341_v34  ;;  %v3388_v40 = vmul.f32 %v3372_v20, %v1341_v34  ;;  %v5162_v47 = vmul.f32 %v5154_v11, %v1341_v34  ;;  %v5181_v48 = vld [vmem:[#allocation7 + $0x1630] sm:$0xff]  ;;  %v1463_v63 = vld [vmem:[#allocation7 + $0x460] sm:$0xff]  ;;  %v1464_v20 = vld [vmem:[#allocation7 + $0x468] sm:$0xff] }
 0x2f8   : > { %v9462_v22 = vadd.f32 %v3431_v61, %v9348_v31  ;;  %v1398_v29 = vadd.f32 %v1382_v9, %v1300_v23  ;;  %v3405_v32 = vadd.f32 %v3389_v30, %v3356_v41  ;;  %v9464_v46 = vmul.f32 %v5155_v36, %v1339_v39  ;;  %v3422_v11 = vld [vmem:[#allocation7 + $0xd68] sm:$0xff]  ;;  %v3421_v61 = vld [vmem:[#allocation7 + $0xd60] sm:$0xff] }
 0x2f9   : > { %v1397_v12 = vadd.f32 %v1381_v10, %v1299_v62  ;;  %v3404_v38 = vadd.f32 %v3388_v40, %v3355_v13  ;;  %v9466_v60 = vadd.f32 %v5162_v47, %v5145_v4  ;;  %v1436_v37 = vsel %vm1433_vm8, %v1422_v49, %v1426_v57  ;;  %v5180_v34 = vld [vmem:[#allocation7 + $0x1628] sm:$0xff]  ;;  %v13564_v47 = vld [vmem:[#allocation30_spill] sm:$0xff] }
 0x2fa   : > { %13560 = vst [vmem:[#allocation29_spill] sm:$0xff] %v9462_v22  ;;  %v1438_v31 = vsel %vm1433_vm8, %v13561_v50, %v1422_v49  ;;  %v1472_v23 = vmul.f32 %v1456_v59, %v1436_v37  ;;  %v3430_v41 = vmul.f32 %v3414_v24, %v1436_v37  ;;  %v1435_v28 = vsel %vm1433_vm8, %v1428_v26, %v9374_v33  ;;  %v13569_v37 = vld [vmem:[#allocation86_spill] sm:$0xff] }
 0x2fb   : > { %v1471_v39 = vmul.f32 %v1455_v16, %v1438_v31  ;;  %v3429_v62 = vmul.f32 %v3413_v53, %v1438_v31  ;;  %v1481_v13 = vmul.f32 %v1465_v15, %v1435_v28  ;;  %v3439_v4 = vmul.f32 %v3423_v45, %v1435_v28  ;;  %v13568_v45 = vld [vmem:[#allocation27_spill] sm:$0xff]  ;;  %v13571_v50 = vld [vmem:[#allocation22_spill] sm:$0xff] }
 0x2fc   : > { %v5189_v57 = vmul.f32 %v5181_v48, %v1435_v28  ;;  %v1490_v21 = vadd.f32 %v9420_v5, %v9345_v42  ;;  %v1498_v36 = vadd.f32 %v1482_v35, %v9399_v51  ;;  %v1437_v9 = vsel %vm1433_vm8, %v1424_v1, %v1428_v26  ;;  %v5175_v31 = vld [vmem:[#allocation7 + $0x1600] sm:$0xff] }
 0x2fd   : > { %v1487_v33 = vadd.f32 %v1471_v39, %v1389_v43  ;;  %v9481_v30 = vadd.f32 %v3429_v62, %v3396_v56  ;;  %v1497_v49 = vadd.f32 %v1481_v13, %v9396_v17  ;;  %v9485_v10 = vadd.f32 %v3439_v4, %v9402_v2  ;;  %v7436_v39 = vld [vmem:[#allocation3 + $0x10] sm:$0xff]  ;;  %v13577_v62 = vld [vmem:[#allocation98_spill] sm:$0xff]  ;;  %v13579_v4 = vld [vmem:[#allocation16_spill] sm:$0xff] }
 0x2fe   : > { %v7257_v40 = vpack.c.bf16 %v1498_v36, %v1490_v21  ;;  %v1439_v42 = vsel %vm1433_vm8, %v13564_v47, %v1424_v1  ;;  %v1480_v51 = vmul.f32 %v1464_v20, %v1437_v9  ;;  %v3438_v5 = vmul.f32 %v3422_v11, %v1437_v9  ;;  %v13584_v36 = vld [vmem:[#allocation88_spill] sm:$0xff] }
 0x2ff   : > { %13562 = vst [vmem:[#allocation21_spill] sm:$0xff] %v9481_v30  ;;  %13563 = vst [vmem:[#allocation28_spill] sm:$0xff] %v9485_v10  ;;  %v1479_v35 = vmul.f32 %v1463_v63, %v1439_v42  ;;  %v3437_v16 = vmul.f32 %v3421_v61, %v1439_v42  ;;  %v5187_v59 = vmul.f32 %v5179_v19, %v1439_v42  ;;  %v13580_v63 = vld [vmem:[#allocation87_spill] sm:$0xff] }
 0x300   : > { %v5188_v24 = vmul.f32 %v5180_v34, %v1437_v9  ;;  %7258 = vmatprep.subr.bf16.mxu1 %v7257_v40  ;;  %v7259_v26 = vpack.c.bf16 %v1497_v49, %v1489_v8  ;;  %v1488_v43 = vadd.f32 %v1472_v23, %v9448_v54  ;;  %v1496_v56 = vadd.f32 %v1480_v51, %v1398_v29  ;;  %v13570_v8 = vld [vmem:[#allocation19_spill] sm:$0xff]  ;;  %v13575_v23 = vld [vmem:[#allocation92_spill] sm:$0xff]  ;;  %v9559_v49 = vpop.permute.xlu1 %1512 }
 0x301   : > { %v9493_v17 = vadd.f32 %v9422_v25, %v9351_v27  ;;  %v1495_v2 = vadd.f32 %v1479_v35, %v1397_v12  ;;  %v9495_v53 = vadd.f32 %v3437_v16, %v3404_v38  ;;  %v9499_v15 = vadd.f32 %v9453_v55, %v9407_v0  ;;  %v13574_v38 = vld [vmem:[#allocation94_spill] sm:$0xff]  ;;  %v13585_v34 = vld [vmem:[#allocation95_spill] sm:$0xff] }
 0x302   : > { %v3351_v48 = vadd.f32 %v13569_v37, %v13568_v45  ;;  %7260 = vmatpush1.bf16.msra.mxu1 %v7259_v26  ;;  %v7253_v1 = vpack.c.bf16 %v1496_v56, %v1488_v43  ;;  %v3392_v54 = vadd.f32 %v13571_v50, %v13570_v8  ;;  %v9506_v29 = vadd.f32 %v3430_v41, %v9451_v6 }
 0x303   : > { %13565 = vst [vmem:[#allocation47_spill] sm:$0xff] %v9493_v17  ;;  %13566 = vst [vmem:[#allocation31_spill] sm:$0xff] %v9495_v53  ;;  %v9508_v27 = vadd.f32 %v3438_v5, %v3405_v32  ;;  %v7255_v25 = vpack.c.bf16 %v1495_v2, %v1487_v33  ;;  %v5173_v41 = vadd.f32 %v9404_v7, %v9333_v18 }
 0x304   : > { %13567 = vst [vmem:[#allocation69_spill] sm:$0xff] %v9499_v15  ;;  %13572 = vst [vmem:[#allocation32_spill] sm:$0xff] %v9506_v29  ;;  %v3400_v0 = vadd.f32 %v13574_v38, %v3351_v48  ;;  %7254 = vmatprep.subr.bf16.mxu0 %v7253_v1  ;;  %v9516_v28 = vadd.f32 %v13575_v23, %v3392_v54  ;;  %v5141_v20 = vadd.f32 %v13580_v63, %v13579_v4 }
 0x305   : > { %13573 = vst [vmem:[#allocation49_spill] sm:$0xff] %v9508_v27  ;;  %7184 = vmatmul.mubr.msk.f32.vlgmr.msra.gmra.mrb[12].mxu1 %vm334_vm0, %v7436_v39  ;;  %7256 = vmatpush1.bf16.msra.mxu0 %v7255_v25  ;;  %v5171_v11 = vadd.f32 %v9464_v46, %v9434_v3  ;;  %v9534_v21 = vadd.f32 %v9455_v58, %v5173_v41  ;;  %v7437_v3 = vld [vmem:[#allocation3 + $0x18] sm:$0xff]  ;;  %v9556_v58 = vpop.permute.xlu0 %1507 }
 0x306   : > { %13576 = vst [vmem:[#allocation13_spill] sm:$0xff] %v9516_v28  ;;  %v9526_v13 = vadd.f32 %v13577_v62, %v3400_v0  ;;  %1822 = vmatprep.mubr.f32.mxu1 %v13541_v52  ;;  %v9537_v18 = vadd.f32 %v5189_v57, %v9410_v44  ;;  %v9540_v7 = vadd.f32 %v5187_v59, %v9466_v60 }
 0x307   : > { %13581 = vst [vmem:[#allocation33_spill] sm:$0xff] %v9534_v21  ;;  %v5183_v61 = vmul.f32 %v5175_v31, %v13584_v36  ;;  %v5166_v9 = vadd.f32 %v13585_v34, %v5141_v20  ;;  %v9546_v33 = vadd.f32 %v5188_v24, %v5171_v11 }
 0x308   : > { %13578 = vst [vmem:[#allocation66_spill] sm:$0xff] %v9526_v13  ;;  %13582 = vst [vmem:[#allocation68_spill] sm:$0xff] %v9537_v18  ;;  %7182 = vmatmul.mubr.msk.f32.vlgmr.msra.gmra.mrb[12].mxu0 %vm334_vm0, %v7436_v39 }
 0x309   : > { %13583 = vst [vmem:[#allocation45_spill] sm:$0xff] %v9540_v7  ;;  %13586 = vst [vmem:[#allocation14_spill] sm:$0xff] %v9546_v33  ;;  %7185 = vmatmul.mubr.msk.f32.gmra.mrb[14].mxu1 %vm334_vm0, %v7437_v3  ;;  %1745 = vmatprep.mubr.f32.mxu0 %v13541_v52  ;;  %v9551_v44 = vadd.f32 %v5183_v61, %v5166_v9 }
 0x30a   : > { %2833 = vmatprep.mubr.f32.mxu1 %v13541_v52 }
 0x30b   : > { %13587 = vst [vmem:[#allocation53_spill] sm:$0xff] %v9551_v44 }
 0x30c   : > { %7183 = vmatmul.mubr.msk.f32.gmra.mrb[14].mxu0 %vm334_vm0, %v7437_v3 }
 0x30d   : > { %2756 = vmatprep.mubr.f32.mxu0 %v13541_v52 }
 0x365   : > { %v1664_v46 = vpop.f32.mrb[8].mxu1 }
 0x366   : > { %v1665_v60 = vadd.f32 %v1664_v46, %v9556_v58  ;;  %v1666_v57 = vpop.f32.mrb[9].mxu1 }
 0x367   : > { %v1667_v35 = vadd.f32 %v1666_v57, %v9556_v58 }
 0x368   : > { %v9561_v40 = vmax.f32 %v1665_v60, 0.0 }
 0x369   : > { %v1670_v47 = vpop.f32.mrb[10].mxu1  ;;  %v9597_v16 = vmax.f32 %v1667_v35, 0.0 }
 0x36a   : > { %v1671_v42 = vadd.f32 %v1670_v47, %v9559_v49  ;;  %v1672_v51 = vpop.f32.mrb[11].mxu1  ;;  %1853 = vrot.lane.b32.xlu0 %v9561_v40, %s7564_s9 }
 0x36b   : > { %13588 = vst [vmem:[#allocation44_spill] sm:$0xff] %v9597_v16  ;;  %v1673_v59 = vadd.f32 %v1672_v51, %v9559_v49 }
 0x36c   : > { %v9566_v5 = vmax.f32 %v1671_v42, 0.0 }
 0x36d   : > { %v9604_v24 = vmax.f32 %v1673_v59, 0.0 }
 0x36e   : > { %1855 = vrot.lane.b32.xlu1 %v9566_v5, %s7564_s9  ;;  %1950 = vrot.lane.b32.xlu0 %v9561_v40, %s7563_s25 }
 0x36f   : > { %13589 = vst [vmem:[#allocation60_spill] sm:$0xff] %v9604_v24 }
 0x372   : > { %1952 = vrot.lane.b32.xlu1 %v9566_v5, %s7563_s25  ;;  %2047 = vrot.lane.b32.xlu0 %v9561_v40, %s7565_s10 }
 0x376   : > { %2049 = vrot.lane.b32.xlu1 %v9566_v5, %s7565_s10  ;;  %2144 = vrot.lane.b32.xlu0 %v9561_v40, %s7566_s11 }
 0x37a   : > { %2146 = vrot.lane.b32.xlu1 %v9566_v5, %s7566_s11  ;;  %2290 = vrot.lane.b32.xlu0 %v9561_v40, %s7567_s13 }
 0x37e   : > { %2292 = vrot.lane.b32.xlu1 %v9566_v5, %s7567_s13  ;;  %2387 = vrot.lane.b32.xlu0 %v9561_v40, %s7568_s14 }
 0x382   : > { %2389 = vrot.lane.b32.xlu1 %v9566_v5, %s7568_s14  ;;  %2484 = vrot.lane.b32.xlu0 %v9561_v40, %s7569_s30 }
 0x386   : > { %2486 = vrot.lane.b32.xlu1 %v9566_v5, %s7569_s30  ;;  %2581 = vrot.lane.b32.xlu0 %v9561_v40, %s7570_s21 }
 0x38a   : > { %2583 = vrot.lane.b32.xlu1 %v9566_v5, %s7570_s21  ;;  %1857 = vrot.lane.b32.xlu0 %v9597_v16, %s7564_s9 }
 0x38e   : > { %1859 = vrot.lane.b32.xlu1 %v9604_v24, %s7564_s9  ;;  %1954 = vrot.lane.b32.xlu0 %v9597_v16, %s7563_s25 }
 0x392   : > { %1956 = vrot.lane.b32.xlu1 %v9604_v24, %s7563_s25  ;;  %2051 = vrot.lane.b32.xlu0 %v9597_v16, %s7565_s10 }
 0x396   : > { %2053 = vrot.lane.b32.xlu1 %v9604_v24, %s7565_s10  ;;  %2148 = vrot.lane.b32.xlu0 %v9597_v16, %s7566_s11 }
 0x39a   : > { %2150 = vrot.lane.b32.xlu1 %v9604_v24, %s7566_s11  ;;  %2294 = vrot.lane.b32.xlu0 %v9597_v16, %s7567_s13 }
 0x39e   : > { %2296 = vrot.lane.b32.xlu1 %v9604_v24, %s7567_s13  ;;  %2391 = vrot.lane.b32.xlu0 %v9597_v16, %s7568_s14 }
 0x3a2   : > { %2393 = vrot.lane.b32.xlu1 %v9604_v24, %s7568_s14  ;;  %2488 = vrot.lane.b32.xlu0 %v9597_v16, %s7569_s30 }
 0x3a6   : > { %2490 = vrot.lane.b32.xlu1 %v9604_v24, %s7569_s30  ;;  %2585 = vrot.lane.b32.xlu0 %v9597_v16, %s7570_s21 }
 0x3aa   : > { %2587 = vrot.lane.b32.xlu1 %v9604_v24, %s7570_s21 }
 0x3b0   : > { %v1587_v26 = vpop.f32.mrb[8].mxu0 }
 0x3b1   : > { %v1588_v43 = vadd.f32 %v1587_v26, %v9556_v58  ;;  %v1589_v56 = vpop.f32.mrb[9].mxu0 }
 0x3b2   : > { %v1590_v8 = vadd.f32 %v1589_v56, %v9556_v58 }
 0x3b3   : > { %v9637_v2 = vmax.f32 %v1588_v43, 0.0 }
 0x3b4   : > { %v1593_v45 = vpop.f32.mrb[10].mxu0  ;;  %v9673_v50 = vmax.f32 %v1590_v8, 0.0 }
 0x3b5   : > { %v1594_v37 = vadd.f32 %v1593_v45, %v9559_v49  ;;  %v1595_v48 = vpop.f32.mrb[11].mxu0  ;;  %1845 = vrot.lane.b32.xlu0 %v9637_v2, %s7564_s9 }
 0x3b6   : > { %v1596_v54 = vadd.f32 %v1595_v48, %v9559_v49 }
 0x3b7   : > { %v9642_v1 = vmax.f32 %v1594_v37, 0.0 }
 0x3b8   : > { %v9680_v25 = vmax.f32 %v1596_v54, 0.0 }
 0x3b9   : > { %13590 = vst [vmem:[#allocation50_spill] sm:$0xff] %v9642_v1  ;;  %1847 = vrot.lane.b32.xlu1 %v9642_v1, %s7564_s9  ;;  %1942 = vrot.lane.b32.xlu0 %v9637_v2, %s7563_s25 }
 0x3bd   : > { %1944 = vrot.lane.b32.xlu1 %v9642_v1, %s7563_s25  ;;  %2039 = vrot.lane.b32.xlu0 %v9637_v2, %s7565_s10 }
 0x3c1   : > { %2041 = vrot.lane.b32.xlu1 %v9642_v1, %s7565_s10  ;;  %2136 = vrot.lane.b32.xlu0 %v9637_v2, %s7566_s11 }
 0x3c5   : > { %2138 = vrot.lane.b32.xlu1 %v9642_v1, %s7566_s11  ;;  %2282 = vrot.lane.b32.xlu0 %v9637_v2, %s7567_s13 }
 0x3c9   : > { %2284 = vrot.lane.b32.xlu1 %v9642_v1, %s7567_s13  ;;  %2379 = vrot.lane.b32.xlu0 %v9637_v2, %s7568_s14 }
 0x3cd   : > { %2381 = vrot.lane.b32.xlu1 %v9642_v1, %s7568_s14  ;;  %2476 = vrot.lane.b32.xlu0 %v9637_v2, %s7569_s30 }
 0x3d1   : > { %2478 = vrot.lane.b32.xlu1 %v9642_v1, %s7569_s30  ;;  %2573 = vrot.lane.b32.xlu0 %v9637_v2, %s7570_s21 }
 0x3d5   : > { %2575 = vrot.lane.b32.xlu1 %v9642_v1, %s7570_s21  ;;  %1849 = vrot.lane.b32.xlu0 %v9673_v50, %s7564_s9 }
 0x3d8   : > { %v1818_v38 = vpop.f32.mrb[12].mxu1 }
 0x3d9   : > { %v1820_v0 = vpop.f32.mrb[13].mxu1  ;;  %1851 = vrot.lane.b32.xlu1 %v9680_v25, %s7564_s9  ;;  %1946 = vrot.lane.b32.xlu0 %v9673_v50, %s7563_s25  ;;  %v1819_v4 = vadd.f32 %v1818_v38, %v9556_v58 }
 0x3db   : > { %v9686_v31 = vpop.f32.mrb[12].mxu0  ;;  %v9703_v20 = vmax.f32 %v1819_v4, 0.0 }
 0x3dc   : > { %v1824_v23 = vpop.f32.mrb[14].mxu1  ;;  %v9688_v41 = vpop.f32.mrb[13].mxu0  ;;  %v1742_v53 = vadd.f32 %v9686_v31, %v9556_v58 }
 0x3dd   : > { %v1826_v39 = vpop.f32.mrb[15].mxu1  ;;  %1948 = vrot.lane.b32.xlu1 %v9680_v25, %s7563_s25  ;;  %2043 = vrot.lane.b32.xlu0 %v9673_v50, %s7565_s10  ;;  %13591 = vst [vmem:[#allocation55_spill] sm:$0xff] %v9703_v20  ;;  %v1825_v11 = vadd.f32 %v1824_v23, %v9559_v49  ;;  %v9706_v36 = vpop.permute.xlu0 %1853  ;;  %v1821_v23 = vadd.f32 %v1820_v0, %v9556_v58 }
 0x3de   : > { %v1827_v55 = vadd.f32 %v1826_v39, %v9559_v49  ;;  %v9870_v29 = vmax.f32 %v1742_v53, 0.0 }
 0x3df   : > { %v9694_v62 = vpop.f32.mrb[14].mxu0  ;;  %v9712_v61 = vmax.f32 %v1825_v11, 0.0  ;;  %v9803_v32 = vmax.f32 %v1821_v23, 0.0 }
 0x3e0   : > { %v9697_v63 = vpop.f32.mrb[15].mxu0  ;;  %v9714_v34 = vpop.permute.xlu1 %1855  ;;  %v9814_v0 = vmax.f32 %v1827_v55, 0.0  ;;  %13615 = vst [vmem:[#allocation83_spill] sm:$0xff] %v9870_v29  ;;  %v1748_v27 = vadd.f32 %v9694_v62, %v9559_v49 }
 0x3e1   : > { %2045 = vrot.lane.b32.xlu1 %v9680_v25, %s7565_s10  ;;  %2140 = vrot.lane.b32.xlu0 %v9673_v50, %s7566_s11  ;;  %13592 = vst [vmem:[#allocation59_spill] sm:$0xff] %v9712_v61  ;;  %13593 = vst [vmem:[#allocation52_spill] sm:$0xff] %v9714_v34  ;;  %v9716_v9 = vpop.permute.xlu0 %1950 }
 0x3e2   : > { %13594 = vst [vmem:[#allocation36_spill] sm:$0xff] %v9716_v9  ;;  %13606 = vst [vmem:[#allocation35_spill] sm:$0xff] %v9803_v32  ;;  %v9882_v31 = vmax.f32 %v1748_v27, 0.0 }
 0x3e3   : > { %13608 = vst [vmem:[#allocation25_spill] sm:$0xff] %v9814_v0 }
 0x3e4   : > { %v9722_v3 = vpop.permute.xlu1 %1952  ;;  %13616 = vst [vmem:[#allocation82_spill] sm:$0xff] %v9882_v31 }
 0x3e5   : > { %2142 = vrot.lane.b32.xlu1 %v9680_v25, %s7566_s11  ;;  %1869 = vrot.lane.b32.xlu0 %v9703_v20, %s7564_s9  ;;  %13595 = vst [vmem:[#allocation84_spill] sm:$0xff] %v9722_v3  ;;  %v9724_v46 = vpop.permute.xlu0 %2047 }
 0x3e6   : > { %13596 = vst [vmem:[#allocation90_spill] sm:$0xff] %v9724_v46 }
 0x3e8   : > { %v9730_v60 = vpop.permute.xlu1 %2049 }
 0x3e9   : > { %1871 = vrot.lane.b32.xlu1 %v9712_v61, %s7564_s9  ;;  %1966 = vrot.lane.b32.xlu0 %v9703_v20, %s7563_s25  ;;  %13597 = vst [vmem:[#allocation65_spill] sm:$0xff] %v9730_v60  ;;  %v9732_v57 = vpop.permute.xlu0 %2144 }
 0x3ea   : > { %13598 = vst [vmem:[#allocation72_spill] sm:$0xff] %v9732_v57 }
 0x3ec   : > { %v9738_v47 = vpop.permute.xlu1 %2146 }
 0x3ed   : > { %1968 = vrot.lane.b32.xlu1 %v9712_v61, %s7563_s25  ;;  %2286 = vrot.lane.b32.xlu0 %v9673_v50, %s7567_s13  ;;  %v9740_v42 = vpop.permute.xlu0 %2290 }
 0x3f0   : > { %v9746_v51 = vpop.permute.xlu1 %2292 }
 0x3f1   : > { %2288 = vrot.lane.b32.xlu1 %v9680_v25, %s7567_s13  ;;  %2063 = vrot.lane.b32.xlu0 %v9703_v20, %s7565_s10  ;;  %v9748_v35 = vpop.permute.xlu0 %2387 }
 0x3f4   : > { %v9754_v59 = vpop.permute.xlu1 %2389 }
 0x3f5   : > { %2065 = vrot.lane.b32.xlu1 %v9712_v61, %s7565_s10  ;;  %2383 = vrot.lane.b32.xlu0 %v9673_v50, %s7568_s14  ;;  %v9756_v26 = vpop.permute.xlu0 %2484 }
 0x3f8   : > { %v9762_v43 = vpop.permute.xlu1 %2486 }
 0x3f9   : > { %2385 = vrot.lane.b32.xlu1 %v9680_v25, %s7568_s14  ;;  %2160 = vrot.lane.b32.xlu0 %v9703_v20, %s7566_s11  ;;  %v9764_v56 = vpop.permute.xlu0 %2581 }
 0x3fc   : > { %v9770_v45 = vpop.permute.xlu1 %2583 }
 0x3fd   : > { %2162 = vrot.lane.b32.xlu1 %v9712_v61, %s7566_s11  ;;  %2480 = vrot.lane.b32.xlu0 %v9673_v50, %s7569_s30  ;;  %v9772_v37 = vpop.permute.xlu0 %1857 }
 0x3fe   : > { %13599 = vst [vmem:[#allocation54_spill] sm:$0xff] %v9772_v37 }
 0x400   : > { %v9778_v48 = vpop.permute.xlu1 %1859 }
 0x401   : > { %2482 = vrot.lane.b32.xlu1 %v9680_v25, %s7569_s30  ;;  %2577 = vrot.lane.b32.xlu0 %v9673_v50, %s7570_s21  ;;  %13600 = vst [vmem:[#allocation73_spill] sm:$0xff] %v9778_v48  ;;  %v9780_v8 = vpop.permute.xlu0 %1954 }
 0x402   : > { %13601 = vst [vmem:[#allocation93_spill] sm:$0xff] %v9780_v8 }
 0x404   : > { %v9786_v54 = vpop.permute.xlu1 %1956 }
 0x405   : > { %2579 = vrot.lane.b32.xlu1 %v9680_v25, %s7570_s21  ;;  %2306 = vrot.lane.b32.xlu0 %v9703_v20, %s7567_s13  ;;  %13602 = vst [vmem:[#allocation91_spill] sm:$0xff] %v9786_v54  ;;  %v9788_v38 = vpop.permute.xlu0 %2051  ;;  %v2001_v54 = vld [vmem:[#allocation7 + $0x550] sm:$0xff] }
 0x406   : > { %13603 = vst [vmem:[#allocation74_spill] sm:$0xff] %v9788_v38  ;;  %v1744_v38 = vadd.f32 %v9688_v41, %v9556_v58  ;;  %v2098_v41 = vld [vmem:[#allocation7 + $0x5d0] sm:$0xff] }
 0x408   : > { %v9795_v4 = vpop.permute.xlu1 %2053 }
 0x409   : > { %2308 = vrot.lane.b32.xlu1 %v9712_v61, %s7567_s13  ;;  %2403 = vrot.lane.b32.xlu0 %v9703_v20, %s7568_s14  ;;  %13604 = vst [vmem:[#allocation77_spill] sm:$0xff] %v9795_v4  ;;  %v9797_v11 = vpop.permute.xlu0 %2148  ;;  %v2090_v4 = vld [vmem:[#allocation7 + $0x590] sm:$0xff] }
 0x40a   : > { %13605 = vst [vmem:[#allocation62_spill] sm:$0xff] %v9797_v11 }
 0x40c   : > { %v9806_v6 = vpop.permute.xlu1 %2150 }
 0x40d   : > { %2405 = vrot.lane.b32.xlu1 %v9712_v61, %s7568_s14  ;;  %2500 = vrot.lane.b32.xlu0 %v9703_v20, %s7569_s30  ;;  %13607 = vst [vmem:[#allocation96_spill] sm:$0xff] %v9806_v6  ;;  %v9808_v19 = vpop.permute.xlu0 %2294  ;;  %v1993_v6 = vld [vmem:[#allocation7 + $0x510] sm:$0xff] }
 0x410   : > { %v9816_v12 = vpop.permute.xlu1 %2296 }
 0x411   : > { %2502 = vrot.lane.b32.xlu1 %v9712_v61, %s7569_s30  ;;  %2597 = vrot.lane.b32.xlu0 %v9703_v20, %s7570_s21  ;;  %v9818_v7 = vpop.permute.xlu0 %2391 }
 0x412   : > { %13609 = vst [vmem:[#allocation78_spill] sm:$0xff] %v9818_v7 }
 0x414   : > { %v9824_v39 = vpop.permute.xlu1 %2393 }
 0x415   : > { %2599 = vrot.lane.b32.xlu1 %v9712_v61, %s7570_s21  ;;  %1873 = vrot.lane.b32.xlu0 %v9803_v32, %s7564_s9  ;;  %13610 = vst [vmem:[#allocation41_spill] sm:$0xff] %v9824_v39  ;;  %v9826_v23 = vpop.permute.xlu0 %2488 }
 0x416   : > { %13611 = vst [vmem:[#allocation85_spill] sm:$0xff] %v9826_v23 }
 0x418   : > { %v9832_v55 = vpop.permute.xlu1 %2490 }
 0x419   : > { %1875 = vrot.lane.b32.xlu1 %v9814_v0, %s7564_s9  ;;  %1970 = vrot.lane.b32.xlu0 %v9803_v32, %s7563_s25  ;;  %13612 = vst [vmem:[#allocation39_spill] sm:$0xff] %v9832_v55  ;;  %v9838_v18 = vpop.permute.xlu0 %2585 }
 0x41a   : > { %13613 = vst [vmem:[#allocation99_spill] sm:$0xff] %v9838_v18 }
 0x41c   : > { %v9844_v33 = vpop.permute.xlu1 %2587 }
 0x41d   : > { %1972 = vrot.lane.b32.xlu1 %v9814_v0, %s7563_s25  ;;  %2067 = vrot.lane.b32.xlu0 %v9803_v32, %s7565_s10  ;;  %13614 = vst [vmem:[#allocation38_spill] sm:$0xff] %v9844_v33 }
 0x421   : > { %2069 = vrot.lane.b32.xlu1 %v9814_v0, %s7565_s10  ;;  %2164 = vrot.lane.b32.xlu0 %v9803_v32, %s7566_s11 }
 0x425   : > { %2166 = vrot.lane.b32.xlu1 %v9814_v0, %s7566_s11  ;;  %2310 = vrot.lane.b32.xlu0 %v9803_v32, %s7567_s13 }
 0x427   : > { %v9846_v44 = vpop.permute.xlu0 %1845 }
 0x429   : > { %2312 = vrot.lane.b32.xlu1 %v9814_v0, %s7567_s13  ;;  %2407 = vrot.lane.b32.xlu0 %v9803_v32, %s7568_s14 }
 0x42b   : > { %v9852_v21 = vpop.permute.xlu1 %1847  ;;  %v9854_v30 = vpop.permute.xlu0 %1942 }
 0x42d   : > { %2409 = vrot.lane.b32.xlu1 %v9814_v0, %s7568_s14  ;;  %2504 = vrot.lane.b32.xlu0 %v9803_v32, %s7569_s30 }
 0x42f   : > { %v9862_v22 = vpop.permute.xlu1 %1944  ;;  %v9864_v10 = vpop.permute.xlu0 %2039 }
 0x431   : > { %2506 = vrot.lane.b32.xlu1 %v9814_v0, %s7569_s30  ;;  %2601 = vrot.lane.b32.xlu0 %v9803_v32, %s7570_s21 }
 0x433   : > { %v9874_v28 = vpop.permute.xlu1 %2041  ;;  %v9876_v13 = vpop.permute.xlu0 %2136 }
 0x435   : > { %2603 = vrot.lane.b32.xlu1 %v9814_v0, %s7570_s21  ;;  %2298 = vrot.lane.b32.xlu0 %v9870_v29, %s7567_s13 }
 0x437   : > { %v9884_v17 = vpop.permute.xlu1 %2138  ;;  %v9886_v15 = vpop.permute.xlu0 %2282 }
 0x439   : > { %2300 = vrot.lane.b32.xlu1 %v9882_v31, %s7567_s13  ;;  %2395 = vrot.lane.b32.xlu0 %v9870_v29, %s7568_s14 }
 0x43b   : > { %v9892_v53 = vpop.permute.xlu1 %2284  ;;  %v9894_v62 = vpop.permute.xlu0 %2379 }
 0x43c   : > { %13617 = vst [vmem:[#allocation40_spill] sm:$0xff] %v9892_v53  ;;  %13618 = vst [vmem:[#allocation89_spill] sm:$0xff] %v9894_v62 }
 0x43d   : > { %2397 = vrot.lane.b32.xlu1 %v9882_v31, %s7568_s14  ;;  %2492 = vrot.lane.b32.xlu0 %v9870_v29, %s7569_s30 }
 0x43f   : > { %v9900_v27 = vpop.permute.xlu1 %2381  ;;  %v9902_v61 = vpop.permute.xlu0 %2476 }
 0x440   : > { %13619 = vst [vmem:[#allocation58_spill] sm:$0xff] %v9900_v27  ;;  %13620 = vst [vmem:[#allocation34_spill] sm:$0xff] %v9902_v61 }
 0x441   : > { %2494 = vrot.lane.b32.xlu1 %v9882_v31, %s7569_s30  ;;  %2589 = vrot.lane.b32.xlu0 %v9870_v29, %s7570_s21 }
 0x443   : > { %v9908_v20 = vpop.permute.xlu1 %2478  ;;  %v9910_v52 = vpop.permute.xlu0 %2573 }
 0x444   : > { %13621 = vst [vmem:[#allocation79_spill] sm:$0xff] %v9908_v20  ;;  %13622 = vst [vmem:[#allocation18_spill] sm:$0xff] %v9910_v52 }
 0x445   : > { %2591 = vrot.lane.b32.xlu1 %v9882_v31, %s7570_s21  ;;  %1861 = vrot.lane.b32.xlu0 %v9870_v29, %s7564_s9 }
 0x447   : > { %v9916_v24 = vpop.permute.xlu1 %2575  ;;  %v9918_v16 = vpop.permute.xlu0 %1849 }
 0x448   : > { %13623 = vst [vmem:[#allocation70_spill] sm:$0xff] %v9916_v24  ;;  %v1896_v24 = vld [vmem:[#allocation7 + $0x490] sm:$0xff]  ;;  %v1887_v11 = vsel %vm699_vm1, %v9918_v16, %v9706_v36 }
 0x449   : > { %1863 = vrot.lane.b32.xlu1 %v9882_v31, %s7564_s9  ;;  %1958 = vrot.lane.b32.xlu0 %v9870_v29, %s7563_s25  ;;  %v1912_v62 = vmul.f32 %v1896_v24, %v1887_v11 }
 0x44b   : > { %v9924_v32 = vpop.permute.xlu1 %1851  ;;  %v9926_v0 = vpop.permute.xlu0 %1946 }
 0x44c   : > { %v1984_v52 = vsel %vm796_vm2, %v9926_v0, %v9716_v9  ;;  %v1888_v58 = vsel %vm699_vm1, %v9924_v32, %v9714_v34  ;;  %v1750_v9 = vadd.f32 %v9697_v63, %v9559_v49  ;;  %v2236_v34 = vld [vmem:[#allocation7 + $0x690] sm:$0xff] }
 0x44d   : > { %1960 = vrot.lane.b32.xlu1 %v9882_v31, %s7563_s25  ;;  %2055 = vrot.lane.b32.xlu0 %v9870_v29, %s7565_s10  ;;  %v2009_v20 = vmul.f32 %v1993_v6, %v1984_v52  ;;  %v1904_v6 = vld [vmem:[#allocation7 + $0x4d0] sm:$0xff] }
 0x44e   : > { %v1920_v49 = vmul.f32 %v1904_v6, %v1888_v58  ;;  %v2419_v6 = vsel %vm1237_vm6, %v9748_v35, %v9818_v7  ;;  %v2244_v58 = vld [vmem:[#allocation7 + $0x6d0] sm:$0xff] }
 0x44f   : > { %v9940_v61 = vpop.permute.xlu1 %1948  ;;  %v9942_v27 = vpop.permute.xlu0 %2043  ;;  %v2260_v7 = vmul.f32 %v2244_v58, %v9566_v5  ;;  %v2535_v58 = vld [vmem:[#allocation7 + $0x850] sm:$0xff] }
 0x450   : > { %v1985_v1 = vsel %vm796_vm2, %v9940_v61, %v9722_v3  ;;  %v2081_v53 = vsel %vm894_vm3, %v9942_v27, %v9724_v46  ;;  %v2187_v3 = vld [vmem:[#allocation7 + $0x610] sm:$0xff]  ;;  %v2025_v46 = vadd.f32 %v2009_v20, %v1912_v62 }
 0x451   : > { %v2106_v52 = vmul.f32 %v2090_v4, %v2081_v53  ;;  %2057 = vrot.lane.b32.xlu1 %v9882_v31, %s7565_s10  ;;  %2152 = vrot.lane.b32.xlu0 %v9870_v29, %s7566_s11  ;;  %v2017_v24 = vmul.f32 %v2001_v54, %v1985_v1  ;;  %v9968_v53 = vmax.f32 %v1744_v38, 0.0  ;;  %v2333_v54 = vld [vmem:[#allocation7 + $0x710] sm:$0xff]  ;;  %v2322_v38 = vsel %vm1139_vm5, %v9740_v42, %v9808_v19 }
 0x452   : > { %v2195_v62 = vld [vmem:[#allocation7 + $0x650] sm:$0xff] }
 0x453   : > { %v9964_v4 = vpop.permute.xlu1 %2045  ;;  %v9966_v11 = vpop.permute.xlu0 %2140  ;;  %13624 = vst [vmem:[#allocation24_spill] sm:$0xff] %v9968_v53  ;;  %v2122_v63 = vadd.f32 %v2106_v52, %v2025_v46  ;;  %v2252_v46 = vmul.f32 %v2236_v34, %v9561_v40  ;;  %v2430_v52 = vld [vmem:[#allocation7 + $0x790] sm:$0xff] }
 0x454   : > { %v2082_v8 = vsel %vm894_vm3, %v9964_v4, %v9730_v60  ;;  %v2178_v29 = vsel %vm992_vm4, %v9966_v11, %v9732_v57  ;;  %v9986_v60 = vmax.f32 %v1750_v9, 0.0  ;;  %v2033_v57 = vadd.f32 %v2017_v24, %v1920_v49  ;;  %v2341_v49 = vld [vmem:[#allocation7 + $0x750] sm:$0xff] }
 0x455   : > { %v2114_v1 = vmul.f32 %v2098_v41, %v2082_v8  ;;  %v2203_v20 = vmul.f32 %v2187_v3, %v2178_v29  ;;  %2154 = vrot.lane.b32.xlu1 %v9882_v31, %s7566_s11  ;;  %1865 = vrot.lane.b32.xlu0 %v9968_v53, %s7564_s9  ;;  %v2349_v41 = vmul.f32 %v2333_v54, %v2322_v38  ;;  %v2438_v38 = vld [vmem:[#allocation7 + $0x7d0] sm:$0xff] }
 0x456   : > { %13625 = vst [vmem:[#allocation100_spill] sm:$0xff] %v9986_v60 }
 0x457   : > { %v2219_v8 = vadd.f32 %v2203_v20, %v2122_v63  ;;  %v9989_v29 = vpop.permute.xlu1 %2142  ;;  %v9991_v3 = vpop.permute.xlu0 %1869  ;;  %v2130_v24 = vadd.f32 %v2114_v1, %v2033_v57  ;;  %v2323_v63 = vsel %vm1139_vm5, %v9746_v51, %v9816_v12  ;;  %v2446_v20 = vmul.f32 %v2430_v52, %v2419_v6 }
 0x458   : > { %13626 = vst [vmem:[#allocation101_spill] sm:$0xff] %v9991_v3  ;;  %v2179_v9 = vsel %vm992_vm4, %v9989_v29, %v9738_v47  ;;  %v2357_v52 = vmul.f32 %v2341_v49, %v2323_v63  ;;  %v2632_v63 = vld [vmem:[#allocation7 + $0x8d0] sm:$0xff] }
 0x459   : > { %v2268_v40 = vadd.f32 %v2252_v46, %v2219_v8  ;;  %v2211_v34 = vmul.f32 %v2195_v62, %v2179_v9  ;;  %1867 = vrot.lane.b32.xlu1 %v9986_v60, %s7564_s9  ;;  %1962 = vrot.lane.b32.xlu0 %v9968_v53, %s7563_s25  ;;  %v2420_v62 = vsel %vm1237_vm6, %v9754_v59, %v9824_v39  ;;  %v2527_v46 = vld [vmem:[#allocation7 + $0x810] sm:$0xff] }
 0x45a   : > { %v2516_v8 = vsel %vm1335_vm7, %v9756_v26, %v9826_v23  ;;  %v2517_v9 = vsel %vm1335_vm7, %v9762_v43, %v9832_v55  ;;  %v1992_v55 = vld [vmem:[#allocation7 + $0x508] sm:$0xff] }
 0x45b   : > { %v2365_v31 = vadd.f32 %v2349_v41, %v2268_v40  ;;  %v2227_v54 = vadd.f32 %v2211_v34, %v2130_v24  ;;  %v10010_v57 = vpop.permute.xlu1 %1871  ;;  %v10012_v1 = vpop.permute.xlu0 %1966  ;;  %v2454_v41 = vmul.f32 %v2438_v38, %v2420_v62  ;;  %v2543_v24 = vmul.f32 %v2527_v46, %v2516_v8 }
 0x45c   : > { %13627 = vst [vmem:[#allocation97_spill] sm:$0xff] %v10010_v57  ;;  %13628 = vst [vmem:[#allocation43_spill] sm:$0xff] %v10012_v1 }
 0x45d   : > { %v2462_v6 = vadd.f32 %v2446_v20, %v2365_v31  ;;  %v2276_v5 = vadd.f32 %v2260_v7, %v2227_v54  ;;  %1964 = vrot.lane.b32.xlu1 %v9986_v60, %s7563_s25  ;;  %2059 = vrot.lane.b32.xlu0 %v9968_v53, %s7565_s10  ;;  %v2624_v7 = vld [vmem:[#allocation7 + $0x890] sm:$0xff]  ;;  %v2613_v31 = vsel %vm1433_vm8, %v9764_v56, %v9838_v18 }
 0x45e   : > { %v2614_v20 = vsel %vm1433_vm8, %v9770_v45, %v9844_v33  ;;  %v2551_v54 = vmul.f32 %v2535_v58, %v2517_v9  ;;  %v2640_v46 = vmul.f32 %v2624_v7, %v2613_v31  ;;  %v1986_v58 = vsel %vm796_vm2, %v9854_v30, %v9926_v0  ;;  %v2000_v9 = vld [vmem:[#allocation7 + $0x548] sm:$0xff] }
 0x45f   : > { %v2373_v40 = vadd.f32 %v2357_v52, %v2276_v5  ;;  %v10030_v34 = vpop.permute.xlu1 %1968  ;;  %v10032_v49 = vpop.permute.xlu0 %2286  ;;  %v2559_v62 = vadd.f32 %v2543_v24, %v2462_v6  ;;  %v2648_v8 = vmul.f32 %v2632_v63, %v2614_v20  ;;  %v1987_v6 = vsel %vm796_vm2, %v9862_v22, %v9940_v61  ;;  %v1903_v0 = vld [vmem:[#allocation7 + $0x4c8] sm:$0xff] }
 0x460   : > { %13629 = vst [vmem:[#allocation42_spill] sm:$0xff] %v10030_v34  ;;  %v1889_v7 = vsel %vm699_vm1, %v9846_v44, %v9918_v16  ;;  %v1890_v31 = vsel %vm699_vm1, %v9852_v21, %v9924_v32  ;;  %v2089_v61 = vld [vmem:[#allocation7 + $0x588] sm:$0xff]  ;;  %v2083_v63 = vsel %vm894_vm3, %v9864_v10, %v9942_v27  ;;  %v2008_v16 = vmul.f32 %v1992_v55, %v1986_v58 }
 0x461   : > { %v2470_v38 = vadd.f32 %v2454_v41, %v2373_v40  ;;  %2061 = vrot.lane.b32.xlu1 %v9986_v60, %s7565_s10  ;;  %2156 = vrot.lane.b32.xlu0 %v9968_v53, %s7566_s11  ;;  %v1895_v41 = vld [vmem:[#allocation7 + $0x488] sm:$0xff]  ;;  %v10060_v24 = vadd.f32 %v2640_v46, %v2559_v62  ;;  %v2180_v27 = vsel %vm992_vm4, %v9876_v13, %v9966_v11 }
 0x462   : > { %v2097_v20 = vld [vmem:[#allocation7 + $0x5c8] sm:$0xff]  ;;  %v2181_v55 = vsel %vm992_vm4, %v9884_v17, %v9989_v29  ;;  %v1919_v58 = vmul.f32 %v1903_v0, %v1890_v31  ;;  %v2324_v0 = vsel %vm1139_vm5, %v10032_v49, %v9740_v42 }
 0x463   : > { %v10046_v52 = vpop.permute.xlu1 %2288  ;;  %v10048_v5 = vpop.permute.xlu0 %2063  ;;  %v2567_v18 = vadd.f32 %v2551_v54, %v2470_v38  ;;  %13631 = vst [vmem:[#allocation51_spill] sm:$0xff] %v10060_v24  ;;  %v2016_v54 = vmul.f32 %v2000_v9, %v1987_v6  ;;  %v2186_v46 = vld [vmem:[#allocation7 + $0x608] sm:$0xff]  ;;  %v2105_v9 = vmul.f32 %v2089_v61, %v2083_v63 }
 0x464   : > { %13630 = vst [vmem:[#allocation67_spill] sm:$0xff] %v10048_v5  ;;  %v2243_v31 = vld [vmem:[#allocation7 + $0x6c8] sm:$0xff]  ;;  %v2325_v63 = vsel %vm1139_vm5, %v10046_v52, %v9746_v51 }
 0x465   : > { %2158 = vrot.lane.b32.xlu1 %v9986_v60, %s7566_s11  ;;  %v10062_v40 = vadd.f32 %v2648_v8, %v2567_v18  ;;  %v2084_v18 = vsel %vm894_vm3, %v9874_v28, %v9964_v4  ;;  %2302 = vrot.lane.b32.xlu0 %v9968_v53, %s7567_s13  ;;  %v2194_v8 = vld [vmem:[#allocation7 + $0x648] sm:$0xff]  ;;  %v1911_v4 = vmul.f32 %v1895_v41, %v1889_v7 }
 0x466   : > { %v2113_v6 = vmul.f32 %v2097_v20, %v2084_v18  ;;  %v2032_v24 = vadd.f32 %v2016_v54, %v1919_v58  ;;  %v2210_v11 = vmul.f32 %v2194_v8, %v2181_v55  ;;  %v2235_v41 = vld [vmem:[#allocation7 + $0x688] sm:$0xff] }
 0x467   : > { %13632 = vst [vmem:[#allocation46_spill] sm:$0xff] %v10062_v40  ;;  %v10082_v38 = vpop.permute.xlu1 %2065  ;;  %v10084_v32 = vpop.permute.xlu0 %2383  ;;  %v2024_v62 = vadd.f32 %v2008_v16, %v1911_v4  ;;  %v2202_v40 = vmul.f32 %v2186_v46, %v2180_v27  ;;  %v2332_v7 = vld [vmem:[#allocation7 + $0x708] sm:$0xff]  ;;  %v2251_v46 = vmul.f32 %v2235_v41, %v9673_v50 }
 0x468   : > { %13633 = vst [vmem:[#allocation75_spill] sm:$0xff] %v10082_v38  ;;  %v2129_v29 = vadd.f32 %v2113_v6, %v2032_v24  ;;  %v2340_v61 = vld [vmem:[#allocation7 + $0x748] sm:$0xff]  ;;  %v2421_v42 = vsel %vm1237_vm6, %v10084_v32, %v9748_v35  ;;  %v3461_v6 = vld [vmem:[#allocation5 + $0x30] sm:$0xff] }
 0x469   : > { %2304 = vrot.lane.b32.xlu1 %v9986_v60, %s7567_s13  ;;  %2399 = vrot.lane.b32.xlu0 %v9968_v53, %s7568_s14  ;;  %v2121_v39 = vadd.f32 %v2105_v9, %v2024_v62  ;;  %v2429_v54 = vld [vmem:[#allocation7 + $0x788] sm:$0xff]  ;;  %v2356_v27 = vmul.f32 %v2340_v61, %v2325_v63  ;;  %v3462_v63 = vld [vmem:[#allocation5 + $0x38] sm:$0xff] }
 0x46a   : > { %v2226_v20 = vadd.f32 %v2210_v11, %v2129_v29  ;;  %v2437_v62 = vld [vmem:[#allocation7 + $0x7c8] sm:$0xff]  ;;  %v2445_v50 = vmul.f32 %v2429_v54, %v2421_v42 }
 0x46b   : > { %v10100_v33 = vpop.permute.xlu1 %2385  ;;  %v10102_v23 = vpop.permute.xlu0 %2160  ;;  %v2218_v24 = vadd.f32 %v2202_v40, %v2121_v39  ;;  %v2348_v39 = vmul.f32 %v2332_v7, %v2324_v0  ;;  %v2259_v40 = vmul.f32 %v2243_v31, %v9680_v25  ;;  %v2526_v8 = vld [vmem:[#allocation7 + $0x808] sm:$0xff] }
 0x46c   : > { %v2422_v51 = vsel %vm1237_vm6, %v10100_v33, %v9754_v59  ;;  %v2534_v55 = vld [vmem:[#allocation7 + $0x848] sm:$0xff] }
 0x46d   : > { %2401 = vrot.lane.b32.xlu1 %v9986_v60, %s7568_s14  ;;  %2496 = vrot.lane.b32.xlu0 %v9968_v53, %s7569_s30  ;;  %v2267_v59 = vadd.f32 %v2251_v46, %v2218_v24  ;;  %v2275_v4 = vadd.f32 %v2259_v40, %v2226_v20  ;;  %v2453_v58 = vmul.f32 %v2437_v62, %v2422_v51  ;;  %v2623_v29 = vld [vmem:[#allocation7 + $0x888] sm:$0xff] }
 0x46e   : > { %v2631_v61 = vld [vmem:[#allocation7 + $0x8c8] sm:$0xff] }
 0x46f   : > { %v10116_v18 = vpop.permute.xlu1 %2162  ;;  %v10118_v16 = vpop.permute.xlu0 %2480  ;;  %v2364_v41 = vadd.f32 %v2348_v39, %v2267_v59  ;;  %v2372_v7 = vadd.f32 %v2356_v27, %v2275_v4 }
 0x470   : > { %13634 = vst [vmem:[#allocation76_spill] sm:$0xff] %v10116_v18  ;;  %v2518_v35 = vsel %vm1335_vm7, %v10118_v16, %v9756_v26 }
 0x471   : > { %2498 = vrot.lane.b32.xlu1 %v9986_v60, %s7569_s30  ;;  %2593 = vrot.lane.b32.xlu0 %v9968_v53, %s7570_s21  ;;  %v2542_v0 = vmul.f32 %v2526_v8, %v2518_v35  ;;  %v2461_v24 = vadd.f32 %v2445_v50, %v2364_v41  ;;  %v2469_v20 = vadd.f32 %v2453_v58, %v2372_v7  ;;  %v1894_v41 = vld [vmem:[#allocation7 + $0x480] sm:$0xff]  ;;  %v2006_v53 = vld [vmem:[#allocation7 + $0x578] sm:$0xff] }
 0x473   : > { %v10138_v9 = vpop.permute.xlu1 %2482  ;;  %v10140_v25 = vpop.permute.xlu0 %2577  ;;  %v2558_v62 = vadd.f32 %v2542_v0, %v2461_v24  ;;  %v2088_v0 = vld [vmem:[#allocation7 + $0x580] sm:$0xff] }
 0x474   : > { %v2519_v11 = vsel %vm1335_vm7, %v10138_v9, %v9762_v43  ;;  %v2615_v26 = vsel %vm1433_vm8, %v10140_v25, %v9764_v56  ;;  %v1999_v24 = vld [vmem:[#allocation7 + $0x540] sm:$0xff] }
 0x475   : > { %v2550_v31 = vmul.f32 %v2534_v55, %v2519_v11  ;;  %2595 = vrot.lane.b32.xlu1 %v9986_v60, %s7570_s21  ;;  %3465 = vperm.xlu0 %7434, %v3461_v6   ;;  %v2639_v54 = vmul.f32 %v2623_v29, %v2615_v26  ;;  %v1991_v29 = vld [vmem:[#allocation7 + $0x500] sm:$0xff]  ;;  %v13650_v60 = vld [vmem:[#allocation84_spill] sm:$0xff] }
 0x477   : > { %v10152_v43 = vpop.permute.xlu1 %2579  ;;  %v10154_v42 = vpop.permute.xlu0 %2306  ;;  %v2566_v51 = vadd.f32 %v2550_v31, %v2469_v20  ;;  %v2655_v27 = vadd.f32 %v2639_v54, %v2558_v62 }
 0x478   : > { %13635 = vst [vmem:[#allocation30_spill] sm:$0xff] %v10154_v42  ;;  %v2616_v56 = vsel %vm1433_vm8, %v10152_v43, %v9770_v45  ;;  %v2525_v42 = vld [vmem:[#allocation7 + $0x800] sm:$0xff] }
 0x479   : > { %v2647_v46 = vmul.f32 %v2631_v61, %v2616_v56  ;;  %3470 = vperm.xlu1 %7435, %v3462_v63  }
 0x47b   : > { %v10160_v39 = vpop.permute.xlu1 %2308  ;;  %v10162_v40 = vpop.permute.xlu0 %2403  ;;  %v2663_v8 = vadd.f32 %v2647_v46, %v2566_v51  ;;  %v2096_v51 = vld [vmem:[#allocation7 + $0x5c0] sm:$0xff] }
 0x47c   : > { %13636 = vst [vmem:[#allocation27_spill] sm:$0xff] %v10160_v39  ;;  %13637 = vst [vmem:[#allocation86_spill] sm:$0xff] %v10162_v40  ;;  %v2185_v46 = vld [vmem:[#allocation7 + $0x600] sm:$0xff] }
 0x47d   : > { %v7261_v35 = vpack.c.bf16 %v2663_v8, %v2655_v27  ;;  %v13649_v40 = vld [vmem:[#allocation91_spill] sm:$0xff] }
 0x47f   : > { %v10164_v55 = vpop.permute.xlu1 %2405  ;;  %7262 = vmatprep.subr.bf16.mxu0 %v7261_v35  ;;  %v10166_v59 = vpop.permute.xlu0 %2500 }
 0x480   : > { %13638 = vst [vmem:[#allocation19_spill] sm:$0xff] %v10164_v55  ;;  %13639 = vst [vmem:[#allocation22_spill] sm:$0xff] %v10166_v59  ;;  %v2002_v55 = vld [vmem:[#allocation7 + $0x558] sm:$0xff] }
 0x483   : > { %v10168_v4 = vpop.permute.xlu1 %2502  ;;  %v10170_v50 = vpop.permute.xlu0 %2597 }
 0x484   : > { %13640 = vst [vmem:[#allocation94_spill] sm:$0xff] %v10168_v4  ;;  %13641 = vst [vmem:[#allocation92_spill] sm:$0xff] %v10170_v50  ;;  %v2242_v50 = vld [vmem:[#allocation7 + $0x6c0] sm:$0xff] }
 0x487   : > { %v10172_v45 = vpop.permute.xlu1 %2599  ;;  %v10174_v58 = vpop.permute.xlu0 %1873 }
 0x488   : > { %13642 = vst [vmem:[#allocation98_spill] sm:$0xff] %v10172_v45  ;;  %v1891_v7 = vsel %vm699_vm1, %v10174_v58, %v9846_v44  ;;  %v1902_v44 = vld [vmem:[#allocation7 + $0x4c0] sm:$0xff] }
 0x489   : > { %v1910_v54 = vmul.f32 %v1894_v41, %v1891_v7  ;;  %v2331_v41 = vld [vmem:[#allocation7 + $0x700] sm:$0xff] }
 0x48b   : > { %v10176_v6 = vpop.permute.xlu1 %1875  ;;  %v10178_v11 = vpop.permute.xlu0 %1970 }
 0x48c   : > { %v1988_v26 = vsel %vm796_vm2, %v10178_v11, %v9854_v30  ;;  %v1892_v62 = vsel %vm699_vm1, %v10176_v6, %v9852_v21 }
 0x48d   : > { %v2007_v31 = vmul.f32 %v1991_v29, %v1988_v26  ;;  %v2234_v26 = vld [vmem:[#allocation7 + $0x680] sm:$0xff]  ;;  %v1918_v7 = vmul.f32 %v1902_v44, %v1892_v62  ;;  %v13644_v62 = vld [vmem:[#allocation93_spill] sm:$0xff] }
 0x48e   : > { %v2250_v45 = vmul.f32 %v2234_v26, %v9637_v2  ;;  %v13646_v26 = vld [vmem:[#allocation89_spill] sm:$0xff] }
 0x48f   : > { %v10188_v61 = vpop.permute.xlu1 %1972  ;;  %v10190_v63 = vpop.permute.xlu0 %2067  ;;  %v2023_v27 = vadd.f32 %v2007_v31, %v1910_v54 }
 0x490   : > { %v1989_v20 = vsel %vm796_vm2, %v10188_v61, %v9862_v22  ;;  %v2085_v30 = vsel %vm894_vm3, %v10190_v63, %v9864_v10  ;;  %v2326_v10 = vsel %vm1139_vm5, %v9886_v15, %v10032_v49  ;;  %v1885_v49 = vsel %vm699_vm1, %v9706_v36, %v9772_v37 }
 0x491   : > { %v2104_v56 = vmul.f32 %v2088_v0, %v2085_v30  ;;  %v2015_v8 = vmul.f32 %v1999_v24, %v1989_v20  ;;  %v2193_v20 = vld [vmem:[#allocation7 + $0x640] sm:$0xff]  ;;  %v1897_v30 = vld [vmem:[#allocation7 + $0x498] sm:$0xff]  ;;  %v2347_v36 = vmul.f32 %v2331_v41, %v2326_v10  ;;  %v13647_v10 = vld [vmem:[#allocation40_spill] sm:$0xff] }
 0x492   : > { %v2327_v41 = vsel %vm1139_vm5, %v13647_v10, %v10046_v52 }
 0x493   : > { %v10204_v35 = vpop.permute.xlu1 %2069  ;;  %v10206_v22 = vpop.permute.xlu0 %2164  ;;  %v2120_v0 = vadd.f32 %v2104_v56, %v2023_v27  ;;  %v2031_v54 = vadd.f32 %v2015_v8, %v1918_v7  ;;  %v13643_v56 = vld [vmem:[#allocation52_spill] sm:$0xff]  ;;  %v1905_v27 = vld [vmem:[#allocation7 + $0x4d8] sm:$0xff] }
 0x494   : > { %v2086_v29 = vsel %vm894_vm3, %v10204_v35, %v9874_v28  ;;  %v2182_v21 = vsel %vm992_vm4, %v10206_v22, %v9876_v13  ;;  %v1886_v44 = vsel %vm699_vm1, %v13643_v56, %v9778_v48  ;;  %v1994_v8 = vld [vmem:[#allocation7 + $0x518] sm:$0xff]  ;;  %v10245_v56 = vmul.f32 %v1897_v30, %v1885_v49 }
 0x495   : > { %v2112_v31 = vmul.f32 %v2096_v51, %v2086_v29  ;;  %v2201_v24 = vmul.f32 %v2185_v46, %v2182_v21  ;;  %v13645_v51 = vld [vmem:[#allocation36_spill] sm:$0xff]  ;;  %v2428_v29 = vld [vmem:[#allocation7 + $0x780] sm:$0xff]  ;;  %v2423_v21 = vsel %vm1237_vm6, %v13646_v26, %v10084_v32  ;;  %v1983_v48 = vsel %vm796_vm2, %v13650_v60, %v13649_v40  ;;  %v2091_v32 = vld [vmem:[#allocation7 + $0x598] sm:$0xff] }
 0x496   : > { %v1982_v46 = vsel %vm796_vm2, %v13645_v51, %v13644_v62  ;;  %v2339_v51 = vld [vmem:[#allocation7 + $0x740] sm:$0xff]  ;;  %v10264_v52 = vmul.f32 %v1905_v27, %v1886_v44  ;;  %v13653_v60 = vld [vmem:[#allocation58_spill] sm:$0xff] }
 0x497   : > { %v2217_v28 = vadd.f32 %v2201_v24, %v2120_v0  ;;  %v10225_v4 = vpop.permute.xlu1 %2166  ;;  %v10227_v13 = vpop.permute.xlu0 %2310  ;;  %v2128_v7 = vadd.f32 %v2112_v31, %v2031_v54  ;;  %v13651_v31 = vld [vmem:[#allocation74_spill] sm:$0xff]  ;;  %v2424_v37 = vsel %vm1237_vm6, %v13653_v60, %v10100_v33  ;;  %v2355_v39 = vmul.f32 %v2339_v51, %v2327_v41  ;;  %v13655_v44 = vld [vmem:[#allocation79_spill] sm:$0xff] }
 0x498   : > { %v2183_v2 = vsel %vm992_vm4, %v10225_v4, %v9884_v17  ;;  %v13648_v17 = vld [vmem:[#allocation50_spill] sm:$0xff] }
 0x499   : > { %v2266_v0 = vadd.f32 %v2250_v45, %v2217_v28  ;;  %v2209_v24 = vmul.f32 %v2193_v20, %v2183_v2  ;;  %v2258_v59 = vmul.f32 %v2242_v50, %v13648_v17  ;;  %v13652_v45 = vld [vmem:[#allocation90_spill] sm:$0xff]  ;;  %v10266_v50 = vmul.f32 %v1994_v8, %v1982_v46  ;;  %v2436_v17 = vld [vmem:[#allocation7 + $0x7c0] sm:$0xff] }
 0x49a   : > { %v2079_v20 = vsel %vm894_vm3, %v13652_v45, %v13651_v31  ;;  %v2444_v2 = vmul.f32 %v2428_v29, %v2423_v21  ;;  %v2521_v46 = vsel %vm1335_vm7, %v13655_v44, %v10138_v9  ;;  %v2018_v8 = vmul.f32 %v2002_v55, %v1983_v48  ;;  %v13656_v21 = vld [vmem:[#allocation77_spill] sm:$0xff]  ;;  %v13658_v41 = vld [vmem:[#allocation62_spill] sm:$0xff]  ;;  %v13659_v45 = vld [vmem:[#allocation72_spill] sm:$0xff] }
 0x49b   : > { %v2363_v30 = vadd.f32 %v2347_v36, %v2266_v0  ;;  %v2225_v49 = vadd.f32 %v2209_v24, %v2128_v7  ;;  %v10260_v54 = vpop.permute.xlu1 %2312  ;;  %v10262_v28 = vpop.permute.xlu0 %2407  ;;  %v13654_v36 = vld [vmem:[#allocation34_spill] sm:$0xff]  ;;  %v2533_v0 = vld [vmem:[#allocation7 + $0x840] sm:$0xff]  ;;  %v2107_v29 = vmul.f32 %v2091_v32, %v2079_v20  ;;  %v13657_v24 = vld [vmem:[#allocation65_spill] sm:$0xff]  ;;  %v2452_v31 = vmul.f32 %v2436_v17, %v2424_v37 }
 0x49c   : > { %v2520_v7 = vsel %vm1335_vm7, %v13654_v36, %v10118_v16  ;;  %v2080_v33 = vsel %vm894_vm3, %v13657_v24, %v13656_v21  ;;  %v2176_v16 = vsel %vm992_vm4, %v13659_v45, %v13658_v41  ;;  %v1975_v9 = vsel %vm796_vm2, %v10030_v34, %v10188_v61  ;;  %v2630_v37 = vld [vmem:[#allocation7 + $0x8c0] sm:$0xff]  ;;  %v13661_v17 = vld [vmem:[#allocation70_spill] sm:$0xff] }
 0x49d   : > { %v2274_v27 = vadd.f32 %v2258_v59, %v2225_v49  ;;  %v2460_v51 = vadd.f32 %v2444_v2, %v2363_v30  ;;  %v2541_v32 = vmul.f32 %v2525_v42, %v2520_v7  ;;  %v2549_v20 = vmul.f32 %v2533_v0, %v2521_v46  ;;  %v2622_v30 = vld [vmem:[#allocation7 + $0x880] sm:$0xff]  ;;  %v13660_v49 = vld [vmem:[#allocation18_spill] sm:$0xff] }
 0x49e   : > { %v2617_v2 = vsel %vm1433_vm8, %v13660_v49, %v10140_v25  ;;  %v2618_v24 = vsel %vm1433_vm8, %v13661_v17, %v10152_v43  ;;  %v1909_v61 = vld [vmem:[#allocation7 + $0x4f8] sm:$0xff]  ;;  %v1974_v7 = vsel %vm796_vm2, %v10012_v1, %v10178_v11  ;;  %v2072_v25 = vsel %vm894_vm3, %v10082_v38, %v10204_v35  ;;  %v13662_v1 = vld [vmem:[#allocation96_spill] sm:$0xff] }
 0x49f   : > { %v2371_v48 = vadd.f32 %v2355_v39, %v2274_v27  ;;  %v10292_v55 = vpop.permute.xlu1 %2409  ;;  %v10294_v59 = vpop.permute.xlu0 %2504  ;;  %v1878_v39 = vsel %vm699_vm1, %v10010_v57, %v10176_v6  ;;  %v1998_v42 = vld [vmem:[#allocation7 + $0x538] sm:$0xff]  ;;  %v1877_v6 = vsel %vm699_vm1, %v9991_v3, %v10174_v58  ;;  %v2022_v45 = vmul.f32 %v2006_v53, %v1975_v9 }
 0x4a0   : > { %v2103_v0 = vld [vmem:[#allocation7 + $0x5f8] sm:$0xff]  ;;  %v2071_v11 = vsel %vm894_vm3, %v10048_v5, %v10190_v63  ;;  %v2557_v57 = vadd.f32 %v2541_v32, %v2460_v51  ;;  %v2177_v35 = vsel %vm992_vm4, %v9738_v47, %v13662_v1  ;;  %v2169_v58 = vsel %vm992_vm4, %v10116_v18, %v10225_v4 }
 0x4a1   : > { %v2468_v46 = vadd.f32 %v2452_v31, %v2371_v48  ;;  %v2099_v43 = vld [vmem:[#allocation7 + $0x5d8] sm:$0xff]  ;;  %v2638_v31 = vmul.f32 %v2622_v30, %v2617_v2  ;;  %v2646_v51 = vmul.f32 %v2630_v37, %v2618_v24  ;;  %v1925_v32 = vmul.f32 %v1909_v61, %v1878_v39 }
 0x4a2   : > { %v1901_v27 = vld [vmem:[#allocation7 + $0x4b8] sm:$0xff]  ;;  %v2014_v5 = vmul.f32 %v1998_v42, %v1974_v7  ;;  %v2119_v41 = vmul.f32 %v2103_v0, %v2072_v25  ;;  %v2115_v21 = vmul.f32 %v2099_v43, %v2080_v33  ;;  %v2168_v4 = vsel %vm992_vm4, %v10102_v23, %v10206_v22 }
 0x4a3   : > { %v2095_v34 = vld [vmem:[#allocation7 + $0x5b8] sm:$0xff]  ;;  %v10332_v53 = vpop.permute.xlu1 %2506  ;;  %v10334_v9 = vpop.permute.xlu0 %2601  ;;  %v2565_v38 = vadd.f32 %v2549_v20, %v2468_v46  ;;  %v1917_v47 = vmul.f32 %v1901_v27, %v1877_v6  ;;  %v2038_v18 = vadd.f32 %v2022_v45, %v1925_v32  ;;  %v2654_v40 = vadd.f32 %v2638_v31, %v2557_v57  ;;  %v13666_v6 = vld [vmem:[#allocation44_spill] sm:$0xff] }
 0x4a4   : > { %v2200_v48 = vld [vmem:[#allocation7 + $0x678] sm:$0xff]  ;;  %v2111_v30 = vmul.f32 %v2095_v34, %v2071_v11  ;;  %v2026_v20 = vadd.f32 %v10266_v50, %v10245_v56  ;;  %v2034_v37 = vadd.f32 %v2018_v8, %v10264_v52  ;;  %v2329_v50 = vsel %vm1139_vm5, %v10260_v54, %v13647_v10  ;;  %v13663_v8 = vld [vmem:[#allocation25_spill] sm:$0xff]  ;;  %v13667_v10 = vld [vmem:[#allocation60_spill] sm:$0xff] }
 0x4a5   : > { %v2188_v3 = vld [vmem:[#allocation7 + $0x618] sm:$0xff]  ;;  %v2216_v1 = vmul.f32 %v2200_v48, %v2169_v58  ;;  %v2662_v62 = vadd.f32 %v2646_v51, %v2565_v38  ;;  %v2030_v39 = vadd.f32 %v2014_v5, %v1917_v47  ;;  %v2135_v42 = vadd.f32 %v2119_v41, %v2038_v18 }
 0x4a6   : > { %v2196_v63 = vld [vmem:[#allocation7 + $0x658] sm:$0xff]  ;;  %v2204_v24 = vmul.f32 %v2188_v3, %v2176_v16  ;;  %v2123_v22 = vadd.f32 %v2107_v29, %v2026_v20  ;;  %v2131_v46 = vadd.f32 %v2115_v21, %v2034_v37  ;;  %v13665_v21 = vld [vmem:[#allocation35_spill] sm:$0xff]  ;;  %v2328_v16 = vsel %vm1139_vm5, %v10227_v13, %v9886_v15 }
 0x4a7   : > { %v2192_v2 = vld [vmem:[#allocation7 + $0x638] sm:$0xff]  ;;  %v2212_v61 = vmul.f32 %v2196_v63, %v2177_v35  ;;  %v10343_v33 = vpop.permute.xlu1 %2603  ;;  %v10345_v34 = vpop.permute.xlu0 %2298  ;;  %v7263_v0 = vpack.c.bf16 %v2662_v62, %v2654_v40  ;;  %v2127_v57 = vadd.f32 %v2111_v30, %v2030_v39  ;;  %v2232_v38 = vadd.f32 %v2216_v1, %v2135_v42  ;;  %v10356_v1 = vld [vmem:[#allocation3 + $0x20] sm:$0xff] }
 0x4a8   : > { %v2208_v7 = vmul.f32 %v2192_v2, %v2168_v4  ;;  %v2249_v25 = vld [vmem:[#allocation7 + $0x6f8] sm:$0xff]  ;;  %v2220_v52 = vadd.f32 %v2204_v24, %v2123_v22  ;;  %13664 = vst [vmem:[#allocation16_spill] sm:$0xff] %v10356_v1  ;;  %v2320_v63 = vsel %vm1139_vm5, %v9808_v19, %v10345_v34  ;;  %v13668_v32 = vmov 0.0  }
 0x4a9   : > { %v2241_v43 = vld [vmem:[#allocation7 + $0x6b8] sm:$0xff]  ;;  %7264 = vmatpush1.bf16.msra.mxu0 %v7263_v0  ;;  %v2228_v40 = vadd.f32 %v2212_v61, %v2131_v46  ;;  %v2265_v29 = vmul.f32 %v2249_v25, %v13663_v8  ;;  %v2425_v30 = vsel %vm1237_vm6, %v10262_v28, %v13646_v26  ;;  %v2426_v19 = vsel %vm1237_vm6, %v10292_v55, %v13653_v60 }
 0x4aa   : > { %v2237_v27 = vld [vmem:[#allocation7 + $0x698] sm:$0xff]  ;;  %v2224_v62 = vadd.f32 %v2208_v7, %v2127_v57  ;;  %v2257_v41 = vmul.f32 %v2241_v43, %v13665_v21  ;;  %v13672_v7 = vld [vmem:[#allocation41_spill] sm:$0xff]  ;;  %v2523_v25 = vsel %vm1335_vm7, %v10332_v53, %v13655_v44  ;;  %v2619_v44 = vsel %vm1433_vm8, %v10334_v9, %v13660_v49  ;;  %v13677_v49 = vld [vmem:[#allocation99_spill] sm:$0xff] }
 0x4ab   : > { %v2245_v56 = vld [vmem:[#allocation7 + $0x6d8] sm:$0xff]  ;;  %v10351_v5 = vpop.permute.xlu1 %2300  ;;  %v10353_v18 = vpop.permute.xlu0 %2395  ;;  %v2253_v45 = vmul.f32 %v2237_v27, %v13666_v6  ;;  %v2281_v31 = vadd.f32 %v2265_v29, %v2232_v38 }
 0x4ac   : > { %v2346_v3 = vld [vmem:[#allocation7 + $0x778] sm:$0xff]  ;;  %v2261_v11 = vmul.f32 %v2245_v56, %v13667_v10  ;;  %7186 = vmatmul.mubr.msk.f32.vlgmr.msra.gmra.mrb[16].mxu0 %vm334_vm0, %v10356_v1  ;;  %v2321_v15 = vsel %vm1139_vm5, %v9816_v12, %v10351_v5  ;;  %v2273_v12 = vadd.f32 %v2257_v41, %v2224_v62  ;;  %v2522_v62 = vsel %vm1335_vm7, %v10294_v59, %v13654_v36  ;;  %v13676_v36 = vld [vmem:[#allocation39_spill] sm:$0xff] }
 0x4ad   : > { %v2338_v35 = vld [vmem:[#allocation7 + $0x738] sm:$0xff]  ;;  %v2362_v48 = vmul.f32 %v2346_v3, %v2329_v50  ;;  %2762 = vmatprep.mubr.f32.mxu0 %v13668_v32  ;;  %v2269_v4 = vadd.f32 %v2253_v45, %v2220_v52  ;;  %v13673_v52 = vld [vmem:[#allocation85_spill] sm:$0xff]  ;;  %v2620_v45 = vsel %vm1433_vm8, %v10343_v33, %v13661_v17 }
 0x4ae   : > { %v2334_v58 = vld [vmem:[#allocation7 + $0x718] sm:$0xff]  ;;  %v2277_v24 = vadd.f32 %v2261_v11, %v2228_v40  ;;  %v2354_v60 = vmul.f32 %v2338_v35, %v2328_v16 }
 0x4af   : > { %v2342_v51 = vld [vmem:[#allocation7 + $0x758] sm:$0xff]  ;;  %v10384_v20 = vpop.permute.xlu1 %2397  ;;  %v10386_v37 = vpop.permute.xlu0 %2492  ;;  %v2350_v46 = vmul.f32 %v2334_v58, %v2320_v63  ;;  %v2378_v38 = vadd.f32 %v2362_v48, %v2281_v31  ;;  %v10428_v31 = vld [vmem:[#allocation3 + $0x28] sm:$0xff] }
 0x4b0   : > { %v2435_v47 = vld [vmem:[#allocation7 + $0x7b8] sm:$0xff]  ;;  %13669 = vst [vmem:[#allocation87_spill] sm:$0xff] %v10384_v20  ;;  %13670 = vst [vmem:[#allocation88_spill] sm:$0xff] %v10386_v37  ;;  %v2418_v0 = vsel %vm1237_vm6, %v13672_v7, %v10384_v20  ;;  %v2358_v57 = vmul.f32 %v2342_v51, %v2321_v15  ;;  %v2514_v3 = vsel %vm1335_vm7, %v13673_v52, %v10386_v37  ;;  %v2189_v37 = vld [vmem:[#allocation7 + $0x620] sm:$0xff] }
 0x4b1   : > { %v2443_v2 = vld [vmem:[#allocation7 + $0x7f8] sm:$0xff]  ;;  %v2451_v43 = vmul.f32 %v2435_v47, %v2425_v30  ;;  %13678 = vst [vmem:[#allocation36_spill] sm:$0xff] %v10428_v31  ;;  %v2366_v58 = vadd.f32 %v2350_v46, %v2269_v4  ;;  %v2370_v17 = vadd.f32 %v2354_v60, %v2273_v12 }
 0x4b2   : > { %v2431_v61 = vld [vmem:[#allocation7 + $0x798] sm:$0xff]  ;;  %v2459_v27 = vmul.f32 %v2443_v2, %v2426_v19  ;;  %v2374_v63 = vadd.f32 %v2358_v57, %v2277_v24 }
 0x4b3   : > { %v13671_v39 = vld [vmem:[#allocation78_spill] sm:$0xff]  ;;  %v10412_v21 = vpop.permute.xlu1 %2494  ;;  %v10414_v41 = vpop.permute.xlu0 %2589  ;;  %v2467_v4 = vadd.f32 %v2451_v43, %v2370_v17  ;;  %v13686_v17 = vld [vmem:[#allocation83_spill] sm:$0xff] }
 0x4b4   : > { %v2417_v42 = vsel %vm1237_vm6, %v13671_v39, %v10353_v18  ;;  %v2439_v26 = vld [vmem:[#allocation7 + $0x7d8] sm:$0xff]  ;;  %13674 = vst [vmem:[#allocation95_spill] sm:$0xff] %v10412_v21  ;;  %13675 = vst [vmem:[#allocation52_spill] sm:$0xff] %v10414_v41  ;;  %v2515_v10 = vsel %vm1335_vm7, %v13676_v36, %v10412_v21  ;;  %v2611_v35 = vsel %vm1433_vm8, %v13677_v49, %v10414_v41  ;;  %7187 = vmatmul.mubr.msk.f32.gmra.mrb[16].mxu0 %vm334_vm0, %v10428_v31  ;;  %v2246_v49 = vld [vmem:[#allocation7 + $0x6e0] sm:$0xff] }
 0x4b5   : > { %v2540_v22 = vld [vmem:[#allocation7 + $0x878] sm:$0xff]  ;;  %v2447_v8 = vmul.f32 %v2431_v61, %v2417_v42  ;;  %v2455_v29 = vmul.f32 %v2439_v26, %v2418_v0  ;;  %v2475_v47 = vadd.f32 %v2459_v27, %v2378_v38  ;;  %2910 = vmatprep.mubr.f32.mxu0 %v13668_v32 }
 0x4b6   : > { %v2528_v56 = vld [vmem:[#allocation7 + $0x818] sm:$0xff]  ;;  %v2556_v16 = vmul.f32 %v2540_v22, %v2523_v25 }
 0x4b7   : > { %v2536_v50 = vld [vmem:[#allocation7 + $0x858] sm:$0xff]  ;;  %v2544_v51 = vmul.f32 %v2528_v56, %v2514_v3  ;;  %v2463_v61 = vadd.f32 %v2447_v8, %v2366_v58  ;;  %v2471_v39 = vadd.f32 %v2455_v29, %v2374_v63  ;;  %v10433_v26 = vpop.permute.xlu1 %2591  ;;  %v10435_v7 = vpop.permute.xlu0 %1861  ;;  %v13682_v29 = vld [vmem:[#allocation51_spill] sm:$0xff]  ;;  %v13684_v58 = vld [vmem:[#allocation93_spill] sm:$0xff] }
 0x4b8   : > { %v2532_v40 = vld [vmem:[#allocation7 + $0x838] sm:$0xff]  ;;  %v2552_v15 = vmul.f32 %v2536_v50, %v2515_v10  ;;  %13679 = vst [vmem:[#allocation89_spill] sm:$0xff] %v10433_v26  ;;  %v2572_v60 = vadd.f32 %v2556_v16, %v2475_v47  ;;  %v2248_v10 = vld [vmem:[#allocation7 + $0x6f0] sm:$0xff] }
 0x4b9   : > { %v2637_v6 = vld [vmem:[#allocation7 + $0x8f8] sm:$0xff]  ;;  %v2548_v30 = vmul.f32 %v2532_v40, %v2522_v62  ;;  %v2560_v22 = vadd.f32 %v2544_v51, %v2463_v61  ;;  %v13685_v51 = vld [vmem:[#allocation55_spill] sm:$0xff] }
 0x4ba   : > { %v2625_v11 = vld [vmem:[#allocation7 + $0x898] sm:$0xff]  ;;  %v2653_v19 = vmul.f32 %v2637_v6, %v2620_v45  ;;  %v2568_v25 = vadd.f32 %v2552_v15, %v2471_v39  ;;  %v2240_v6 = vld [vmem:[#allocation7 + $0x6b0] sm:$0xff]  ;;  %v2238_v45 = vld [vmem:[#allocation7 + $0x6a0] sm:$0xff] }
 0x4bb   : > { %v2629_v48 = vld [vmem:[#allocation7 + $0x8b8] sm:$0xff]  ;;  %v2641_v42 = vmul.f32 %v2625_v11, %v2611_v35  ;;  %v2564_v57 = vadd.f32 %v2548_v30, %v2467_v4  ;;  %v10441_v38 = vpop.permute.xlu1 %1863  ;;  %v10443_v27 = vpop.permute.xlu0 %1958  ;;  %v2239_v11 = vld [vmem:[#allocation7 + $0x6a8] sm:$0xff]  ;;  %v10464_v15 = vmul.f32 %v2240_v6, %v13685_v51  ;;  %v10467_v47 = vmul.f32 %v2238_v45, %v13686_v17  ;;  %v13687_v61 = vld [vmem:[#allocation91_spill] sm:$0xff] }
 0x4bc   : > { %v2633_v2 = vld [vmem:[#allocation7 + $0x8d8] sm:$0xff]  ;;  %v2645_v24 = vmul.f32 %v2629_v48, %v2619_v44  ;;  %v2669_v3 = vadd.f32 %v2653_v19, %v2572_v60  ;;  %v1995_v48 = vld [vmem:[#allocation7 + $0x520] sm:$0xff]  ;;  %v1980_v63 = vsel %vm796_vm2, %v13684_v58, %v10443_v27  ;;  %v2247_v30 = vld [vmem:[#allocation7 + $0x6e8] sm:$0xff] }
 0x4bd   : > { %v13680_v0 = vld [vmem:[#allocation38_spill] sm:$0xff]  ;;  %v2657_v56 = vadd.f32 %v2641_v42, %v2560_v22  ;;  %v2003_v19 = vld [vmem:[#allocation7 + $0x560] sm:$0xff]  ;;  %v2011_v6 = vmul.f32 %v1995_v48, %v1980_v63  ;;  %v13697_v58 = vld [vmem:[#allocation100_spill] sm:$0xff] }
 0x4be   : > { %v2612_v12 = vsel %vm1433_vm8, %v13680_v0, %v10433_v26  ;;  %v2661_v43 = vadd.f32 %v2645_v24, %v2564_v57  ;;  %v13681_v8 = vld [vmem:[#allocation46_spill] sm:$0xff]  ;;  %v13688_v42 = vld [vmem:[#allocation59_spill] sm:$0xff]  ;;  %v13689_v24 = vld [vmem:[#allocation24_spill] sm:$0xff]  ;;  %v10509_v51 = vmul.f32 %v2247_v30, %v13697_v58 }
 0x4bf   : > { %v2649_v46 = vmul.f32 %v2633_v2, %v2612_v12  ;;  %v10445_v40 = vpop.permute.xlu1 %1960  ;;  %v10447_v44 = vpop.permute.xlu0 %2055  ;;  %v13683_v16 = vpack.c.bf16 %v13681_v8, %v13682_v29  ;;  %v2337_v2 = vld [vmem:[#allocation7 + $0x730] sm:$0xff]  ;;  %v10474_v4 = vmul.f32 %v2248_v10, %v13688_v42  ;;  %v10477_v0 = vmul.f32 %v2239_v11, %v13689_v24  ;;  %v13690_v12 = vld [vmem:[#allocation82_spill] sm:$0xff]  ;;  %v13692_v57 = vld [vmem:[#allocation27_spill] sm:$0xff] }
 0x4c0   : > { %v7273_v62 = vpack.c.bf16 %v2669_v3, %v2661_v43  ;;  %v1981_v39 = vsel %vm796_vm2, %v13687_v61, %v10445_v40  ;;  %v10480_v60 = vmul.f32 %v2246_v49, %v13690_v12  ;;  %v13691_v22 = vld [vmem:[#allocation30_spill] sm:$0xff]  ;;  %v2092_v43 = vld [vmem:[#allocation7 + $0x5a0] sm:$0xff]  ;;  %v13696_v10 = vld [vmem:[#allocation77_spill] sm:$0xff] }
 0x4c1   : > { %v2665_v52 = vadd.f32 %v2649_v46, %v2568_v25  ;;  %v2314_v25 = vsel %vm1139_vm5, %v13691_v22, %v10227_v13  ;;  %v2345_v46 = vld [vmem:[#allocation7 + $0x770] sm:$0xff]  ;;  %v13693_v3 = vld [vmem:[#allocation54_spill] sm:$0xff]  ;;  %v1906_v13 = vld [vmem:[#allocation7 + $0x4e0] sm:$0xff]  ;;  %v2019_v30 = vmul.f32 %v2003_v19, %v1981_v39 }
 0x4c2   : > { %v2100_v45 = vld [vmem:[#allocation7 + $0x5e0] sm:$0xff]  ;;  %v2434_v17 = vld [vmem:[#allocation7 + $0x7b0] sm:$0xff]  ;;  %v13698_v61 = vld [vmem:[#allocation86_spill] sm:$0xff] }
 0x4c3   : > { %v7265_v50 = vpack.c.bf16 %v2665_v52, %v2657_v56  ;;  %v10452_v36 = vpop.permute.xlu1 %2057  ;;  %v10456_v35 = vpop.permute.xlu0 %2152  ;;  %v2315_v56 = vsel %vm1139_vm5, %v13692_v57, %v10260_v54  ;;  %v1898_v52 = vld [vmem:[#allocation7 + $0x4a0] sm:$0xff]  ;;  %v2411_v42 = vsel %vm1237_vm6, %v13698_v61, %v10262_v28  ;;  %v2442_v24 = vld [vmem:[#allocation7 + $0x7f0] sm:$0xff]  ;;  %v13701_v26 = vld [vmem:[#allocation94_spill] sm:$0xff] }
 0x4c4   : > { %v2078_v11 = vsel %vm894_vm3, %v13696_v10, %v10452_v36  ;;  %v13699_v12 = vld [vmem:[#allocation19_spill] sm:$0xff]  ;;  %v2531_v63 = vld [vmem:[#allocation7 + $0x830] sm:$0xff]  ;;  %v10525_v10 = vmul.f32 %v2345_v46, %v2315_v56  ;;  %v2509_v41 = vsel %vm1335_vm7, %v13701_v26, %v10332_v53  ;;  %v13702_v20 = vld [vmem:[#allocation62_spill] sm:$0xff]  ;;  %v10537_v19 = vmul.f32 %v2434_v17, %v2411_v42 }
 0x4c5   : > { %7266 = vmatprep.subr.bf16.mxu1 %v7265_v50  ;;  %v1883_v50 = vsel %vm699_vm1, %v13693_v3, %v10435_v7  ;;  %v2412_v48 = vsel %vm1237_vm6, %v13699_v12, %v10292_v55  ;;  %v13700_v3 = vld [vmem:[#allocation22_spill] sm:$0xff]  ;;  %v2539_v28 = vld [vmem:[#allocation7 + $0x870] sm:$0xff]  ;;  %v2116_v21 = vmul.f32 %v2100_v45, %v2078_v11  ;;  %v1996_v53 = vld [vmem:[#allocation7 + $0x528] sm:$0xff] }
 0x4c6   : > { %7268 = vmatpush1.bf16.msra.mxu1 %v13683_v16  ;;  %v13695_v16 = vld [vmem:[#allocation73_spill] sm:$0xff]  ;;  %v1914_v58 = vmul.f32 %v1898_v52, %v1883_v50  ;;  %v10539_v39 = vmul.f32 %v2442_v24, %v2412_v48  ;;  %v13703_v52 = vld [vmem:[#allocation92_spill] sm:$0xff] }
 0x4c7   : > { %7274 = vmatprep.subr.bf16.mxu1 %v7273_v62  ;;  %v13694_v62 = vld [vmem:[#allocation74_spill] sm:$0xff]  ;;  %v10498_v29 = vpop.permute.xlu1 %2154  ;;  %v1884_v54 = vsel %vm699_vm1, %v13695_v16, %v10441_v38  ;;  %v1866_v49 = vpop.permute.xlu0 %1865  ;;  %v10523_v16 = vmul.f32 %v2337_v2, %v2314_v25  ;;  %v1899_v17 = vld [vmem:[#allocation7 + $0x4a8] sm:$0xff]  ;;  %v1900_v42 = vld [vmem:[#allocation7 + $0x4b0] sm:$0xff] }
 0x4c8   : > { %v2077_v8 = vsel %vm894_vm3, %v13694_v62, %v10447_v44  ;;  %v2508_v62 = vsel %vm1335_vm7, %v13700_v3, %v10294_v59  ;;  %v1922_v55 = vmul.f32 %v1906_v13, %v1884_v54  ;;  %v2174_v59 = vsel %vm992_vm4, %v13702_v20, %v10456_v35  ;;  %v2004_v24 = vld [vmem:[#allocation7 + $0x568] sm:$0xff] }
 0x4c9   : > { %7188 = vmatmul.mubr.msk.f32.vlgmr.msra.gmra.mrb[16].mxu1 %vm334_vm0, %v10356_v1  ;;  %v2108_v1 = vmul.f32 %v2092_v43, %v2077_v8  ;;  %v10541_v25 = vmul.f32 %v2531_v63, %v2508_v62  ;;  %v2027_v46 = vadd.f32 %v2011_v6, %v1914_v58  ;;  %v10548_v20 = vsel %vm1433_vm8, %v13703_v52, %v10334_v9  ;;  %v1997_v43 = vld [vmem:[#allocation7 + $0x530] sm:$0xff]  ;;  %v13704_v8 = vld [vmem:[#allocation43_spill] sm:$0xff] }
 0x4ca   : > { %2839 = vmatprep.mubr.f32.mxu1 %v13668_v32  ;;  %v2035_v50 = vadd.f32 %v2019_v30, %v1922_v55  ;;  %v10556_v6 = vmul.f32 %v2539_v28, %v2509_v41  ;;  %v2205_v11 = vmul.f32 %v2189_v37, %v2174_v59  ;;  %v1881_v9 = vsel %vm699_vm1, %v10435_v7, %v1866_v49  ;;  %v13705_v63 = vld [vmem:[#allocation101_spill] sm:$0xff]  ;;  %v1907_v30 = vld [vmem:[#allocation7 + $0x4e8] sm:$0xff]  ;;  %v2197_v52 = vld [vmem:[#allocation7 + $0x660] sm:$0xff] }
 0x4cb   : > { %v1868_v2 = vpop.permute.xlu1 %1867  ;;  %v1963_v56 = vpop.permute.xlu0 %1962  ;;  %v2124_v45 = vadd.f32 %v2108_v1, %v2027_v46  ;;  %v1879_v62 = vsel %vm699_vm1, %v1866_v49, %v13705_v63  ;;  %v2094_v58 = vld [vmem:[#allocation7 + $0x5b0] sm:$0xff]  ;;  %v13707_v46 = vld [vmem:[#allocation42_spill] sm:$0xff] }
 0x4cc   : > { %v1976_v13 = vsel %vm796_vm2, %v1963_v56, %v13704_v8  ;;  %v1978_v54 = vsel %vm796_vm2, %v10443_v27, %v1963_v56  ;;  %v10561_v48 = vadd.f32 %v2116_v21, %v2035_v50  ;;  %v1882_v41 = vsel %vm699_vm1, %v10441_v38, %v1868_v2  ;;  %v2093_v27 = vld [vmem:[#allocation7 + $0x5a8] sm:$0xff]  ;;  %v1908_v28 = vld [vmem:[#allocation7 + $0x4f0] sm:$0xff]  ;;  %v13708_v8 = vld [vmem:[#allocation67_spill] sm:$0xff] }
 0x4cd   : > { %v2012_v1 = vmul.f32 %v1996_v53, %v1978_v54  ;;  %v13706_v55 = vld [vmem:[#allocation97_spill] sm:$0xff]  ;;  %v2013_v21 = vmul.f32 %v1997_v43, %v1976_v13  ;;  %v1915_v53 = vmul.f32 %v1899_v17, %v1881_v9  ;;  %v1916_v43 = vmul.f32 %v1900_v42, %v1879_v62  ;;  %v13710_v42 = vld [vmem:[#allocation75_spill] sm:$0xff] }
 0x4ce   : > { %v1880_v7 = vsel %vm699_vm1, %v1868_v2, %v13706_v55  ;;  %v2005_v59 = vld [vmem:[#allocation7 + $0x570] sm:$0xff]  ;;  %v1923_v13 = vmul.f32 %v1907_v30, %v1882_v41 }
 0x4cf   : > { %v1965_v37 = vpop.permute.xlu1 %1964  ;;  %v2060_v38 = vpop.permute.xlu0 %2059  ;;  %v1924_v17 = vmul.f32 %v1908_v28, %v1880_v7  ;;  %v2028_v9 = vadd.f32 %v2012_v1, %v1915_v53  ;;  %v2029_v26 = vadd.f32 %v2013_v21, %v1916_v43  ;;  %v2628_v53 = vld [vmem:[#allocation7 + $0x8b0] sm:$0xff] }
 0x4d0   : > { %v1977_v49 = vsel %vm796_vm2, %v1965_v37, %v13707_v46  ;;  %v1979_v56 = vsel %vm796_vm2, %v10445_v40, %v1965_v37  ;;  %v2073_v54 = vsel %vm894_vm3, %v2060_v38, %v13708_v8  ;;  %v2075_v2 = vsel %vm894_vm3, %v10447_v44, %v2060_v38  ;;  %v2101_v46 = vld [vmem:[#allocation7 + $0x5e8] sm:$0xff]  ;;  %v2191_v8 = vld [vmem:[#allocation7 + $0x630] sm:$0xff] }
 0x4d1   : > { %7189 = vmatmul.mubr.msk.f32.gmra.mrb[16].mxu1 %vm334_vm0, %v10428_v31  ;;  %v2020_v50 = vmul.f32 %v2004_v24, %v1979_v56  ;;  %v2109_v63 = vmul.f32 %v2093_v27, %v2075_v2  ;;  %v2110_v55 = vmul.f32 %v2094_v58, %v2073_v54  ;;  %v2102_v31 = vld [vmem:[#allocation7 + $0x5f0] sm:$0xff]  ;;  %v2021_v24 = vmul.f32 %v2005_v59, %v1977_v49  ;;  %v2190_v56 = vld [vmem:[#allocation7 + $0x628] sm:$0xff] }
 0x4d2   : > { %2987 = vmatprep.mubr.f32.mxu1 %v13668_v32  ;;  %v13709_v32 = vld [vmem:[#allocation96_spill] sm:$0xff]  ;;  %v2199_v38 = vld [vmem:[#allocation7 + $0x670] sm:$0xff] }
 0x4d3   : > { %v2175_v40 = vsel %vm992_vm4, %v13709_v32, %v10498_v29  ;;  %v2062_v37 = vpop.permute.xlu1 %2061  ;;  %v2036_v44 = vadd.f32 %v2020_v50, %v1923_v13  ;;  %v2157_v41 = vpop.permute.xlu0 %2156  ;;  %v2125_v28 = vadd.f32 %v2109_v63, %v2028_v9  ;;  %v2126_v7 = vadd.f32 %v2110_v55, %v2029_v26  ;;  %v2198_v49 = vld [vmem:[#allocation7 + $0x668] sm:$0xff] }
 0x4d4   : > { %v2074_v62 = vsel %vm894_vm3, %v2062_v37, %v13710_v42  ;;  %v2076_v30 = vsel %vm894_vm3, %v10452_v36, %v2062_v37  ;;  %v2170_v1 = vsel %vm992_vm4, %v2157_v41, %v10102_v23  ;;  %v2172_v58 = vsel %vm992_vm4, %v10456_v35, %v2157_v41  ;;  %v2335_v37 = vld [vmem:[#allocation7 + $0x720] sm:$0xff] }
 0x4d5   : > { %v2117_v27 = vmul.f32 %v2101_v46, %v2076_v30  ;;  %v2118_v32 = vmul.f32 %v2102_v31, %v2074_v62  ;;  %v2206_v21 = vmul.f32 %v2190_v56, %v2172_v58  ;;  %v2207_v59 = vmul.f32 %v2191_v8, %v2170_v1  ;;  %v13711_v46 = vld [vmem:[#allocation76_spill] sm:$0xff]  ;;  %v2636_v62 = vld [vmem:[#allocation7 + $0x8f0] sm:$0xff]  ;;  %v2432_v58 = vld [vmem:[#allocation7 + $0x7a0] sm:$0xff] }
 0x4d6   : > { %v2221_v50 = vadd.f32 %v2205_v11, %v2124_v45  ;;  %v2213_v36 = vmul.f32 %v2197_v52, %v2175_v40  ;;  %v2037_v54 = vadd.f32 %v2021_v24, %v1924_v17  ;;  %v10610_v45 = vmul.f32 %v2628_v53, %v10548_v20  ;;  %v13712_v11 = vld [vmem:[#allocation98_spill] sm:$0xff]  ;;  %v2344_v20 = vld [vmem:[#allocation7 + $0x768] sm:$0xff] }
 0x4d7   : > { %v2133_v2 = vadd.f32 %v2117_v27, %v2036_v44  ;;  %v2159_v31 = vpop.permute.xlu1 %2158  ;;  %v2222_v43 = vadd.f32 %v2206_v21, %v2125_v28  ;;  %v2223_v13 = vadd.f32 %v2207_v59, %v2126_v7  ;;  %v2303_v35 = vpop.permute.xlu0 %2302  ;;  %v2606_v40 = vsel %vm1433_vm8, %v13712_v11, %v10343_v33  ;;  %v2433_v28 = vld [vmem:[#allocation7 + $0x7a8] sm:$0xff] }
 0x4d8   : > { %v2171_v23 = vsel %vm992_vm4, %v2159_v31, %v13711_v46  ;;  %v2173_v26 = vsel %vm992_vm4, %v10498_v29, %v2159_v31  ;;  %v2134_v63 = vadd.f32 %v2118_v32, %v2037_v54  ;;  %v2318_v52 = vsel %vm1139_vm5, %v10345_v34, %v2303_v35  ;;  %v2336_v29 = vld [vmem:[#allocation7 + $0x728] sm:$0xff] }
 0x4d9   : > { %v2214_v55 = vmul.f32 %v2198_v49, %v2173_v26  ;;  %v2215_v9 = vmul.f32 %v2199_v38, %v2171_v23  ;;  %v2272_v17 = vadd.f32 %v10464_v15, %v2223_v13  ;;  %v2316_v24 = vsel %vm1139_vm5, %v2303_v35, %v13691_v22  ;;  %v2343_v15 = vld [vmem:[#allocation7 + $0x760] sm:$0xff]  ;;  %v2441_v53 = vld [vmem:[#allocation7 + $0x7e8] sm:$0xff] }
 0x4da   : > { %v2229_v56 = vadd.f32 %v2213_v36, %v10561_v48  ;;  %v2270_v34 = vadd.f32 %v10467_v47, %v2221_v50  ;;  %v2271_v33 = vadd.f32 %v10477_v0, %v2222_v43  ;;  %v2351_v41 = vmul.f32 %v2335_v37, %v2318_v52  ;;  %v2530_v31 = vld [vmem:[#allocation7 + $0x828] sm:$0xff]  ;;  %v2537_v35 = vld [vmem:[#allocation7 + $0x860] sm:$0xff] }
 0x4db   : > { %v2230_v8 = vadd.f32 %v2214_v55, %v2133_v2  ;;  %v2231_v44 = vadd.f32 %v2215_v9, %v2134_v63  ;;  %v2305_v42 = vpop.permute.xlu1 %2304  ;;  %v2369_v30 = vadd.f32 %v10523_v16, %v2272_v17  ;;  %v2400_v22 = vpop.permute.xlu0 %2399  ;;  %v2352_v32 = vmul.f32 %v2336_v29, %v2316_v24  ;;  %v2538_v63 = vld [vmem:[#allocation7 + $0x868] sm:$0xff]  ;;  %v13715_v17 = vld [vmem:[#allocation94_spill] sm:$0xff]  ;;  %v13716_v24 = vld [vmem:[#allocation95_spill] sm:$0xff] }
 0x4dc   : > { %v2317_v27 = vsel %vm1139_vm5, %v2305_v42, %v13692_v57  ;;  %v2319_v47 = vsel %vm1139_vm5, %v10351_v5, %v2305_v42  ;;  %v2413_v7 = vsel %vm1237_vm6, %v2400_v22, %v13698_v61  ;;  %v2652_v57 = vmul.f32 %v2636_v62, %v2606_v40  ;;  %v2440_v5 = vld [vmem:[#allocation7 + $0x7e0] sm:$0xff] }
 0x4dd   : > { %v2280_v48 = vadd.f32 %v10474_v4, %v2231_v44  ;;  %v2279_v1 = vadd.f32 %v10509_v51, %v2230_v8  ;;  %v2466_v16 = vadd.f32 %v10537_v19, %v2369_v30  ;;  %v2360_v0 = vmul.f32 %v2344_v20, %v2317_v27  ;;  %v13713_v61 = vld [vmem:[#allocation87_spill] sm:$0xff]  ;;  %v2627_v8 = vld [vmem:[#allocation7 + $0x8a8] sm:$0xff] }
 0x4de   : > { %v2415_v4 = vsel %vm1237_vm6, %v10353_v18, %v2400_v22  ;;  %v2278_v21 = vadd.f32 %v10480_v60, %v2229_v56  ;;  %v2359_v59 = vmul.f32 %v2343_v15, %v2319_v47  ;;  %v2367_v38 = vadd.f32 %v2351_v41, %v2270_v34  ;;  %v2529_v18 = vld [vmem:[#allocation7 + $0x820] sm:$0xff]  ;;  %v13718_v41 = vld [vmem:[#allocation52_spill] sm:$0xff] }
 0x4df   : > { %v2377_v51 = vadd.f32 %v10525_v10, %v2280_v48  ;;  %v2402_v49 = vpop.permute.xlu1 %2401  ;;  %v2448_v19 = vmul.f32 %v2432_v58, %v2415_v4  ;;  %v2497_v54 = vpop.permute.xlu0 %2496  ;;  %v2368_v2 = vadd.f32 %v2352_v32, %v2271_v33  ;;  %v2449_v60 = vmul.f32 %v2433_v28, %v2413_v7  ;;  %v2626_v56 = vld [vmem:[#allocation7 + $0x8a0] sm:$0xff]  ;;  %v2635_v22 = vld [vmem:[#allocation7 + $0x8e8] sm:$0xff]  ;;  %v13719_v28 = vld [vmem:[#allocation89_spill] sm:$0xff] }
 0x4e0   : > { %v2414_v50 = vsel %vm1237_vm6, %v2402_v49, %v13699_v12  ;;  %v2416_v36 = vsel %vm1237_vm6, %v13713_v61, %v2402_v49  ;;  %v2563_v43 = vadd.f32 %v10541_v25, %v2466_v16  ;;  %v2376_v13 = vadd.f32 %v2360_v0, %v2279_v1  ;;  %v13714_v12 = vld [vmem:[#allocation88_spill] sm:$0xff]  ;;  %v2634_v27 = vld [vmem:[#allocation7 + $0x8e0] sm:$0xff] }
 0x4e1   : > { %v2474_v10 = vadd.f32 %v10539_v39, %v2377_v51  ;;  %v2456_v46 = vmul.f32 %v2440_v5, %v2416_v36  ;;  %v2510_v23 = vsel %vm1335_vm7, %v2497_v54, %v13700_v3  ;;  %v2512_v26 = vsel %vm1335_vm7, %v13714_v12, %v2497_v54  ;;  %v13723_v36 = vld [vmem:[#allocation16_spill] sm:$0xff]  ;;  %v13724_v54 = vld [vmem:[#allocation37_spill] sm:$0xff] }
 0x4e2   : > { %v2375_v55 = vadd.f32 %v2359_v59, %v2278_v21  ;;  %v2457_v9 = vmul.f32 %v2441_v53, %v2414_v50  ;;  %v2545_v39 = vmul.f32 %v2529_v18, %v2512_v26  ;;  %v2464_v40 = vadd.f32 %v2448_v19, %v2367_v38  ;;  %v13720_v38 = vld [vmem:[#allocation80_spill] sm:$0xff]  ;;  %v13721_v19 = vld [vmem:[#allocation57_spill] sm:$0xff]  ;;  %v13734_v26 = vld [vmem:[#allocation66_spill] sm:$0xff] }
 0x4e3   : > { %v2499_v37 = vpop.permute.xlu1 %2498  ;;  %v2571_v52 = vadd.f32 %v10556_v6, %v2474_v10  ;;  %v2546_v25 = vmul.f32 %v2530_v31, %v2510_v23  ;;  %v2594_v44 = vpop.permute.xlu0 %2593  ;;  %v2465_v34 = vadd.f32 %v2449_v60, %v2368_v2  ;;  %v2660_v62 = vadd.f32 %v10610_v45, %v2563_v43  ;;  %v13717_v6 = vld [vmem:[#allocation92_spill] sm:$0xff]  ;;  %v13728_v31 = vld [vmem:[#allocation69_spill] sm:$0xff]  ;;  %v13729_v43 = vld [vmem:[#allocation47_spill] sm:$0xff] }
 0x4e4   : > { %v2511_v29 = vsel %vm1335_vm7, %v2499_v37, %v13715_v17  ;;  %v2513_v3 = vsel %vm1335_vm7, %v13716_v24, %v2499_v37  ;;  %v2472_v30 = vadd.f32 %v2456_v46, %v2375_v55  ;;  %v2607_v33 = vsel %vm1433_vm8, %v2594_v44, %v13717_v6  ;;  %v13725_v10 = vld [vmem:[#allocation64_spill] sm:$0xff]  ;;  %v13731_v46 = vld [vmem:[#allocation61_spill] sm:$0xff]  ;;  %v13732_v23 = vld [vmem:[#allocation63_spill] sm:$0xff] }
 0x4e5   : > { %v2553_v20 = vmul.f32 %v2537_v35, %v2513_v3  ;;  %v2554_v42 = vmul.f32 %v2538_v63, %v2511_v29  ;;  %v2609_v15 = vsel %vm1433_vm8, %v13718_v41, %v2594_v44  ;;  %v2668_v48 = vadd.f32 %v2652_v57, %v2571_v52  ;;  %v13735_v35 = vld [vmem:[#allocation13_spill] sm:$0xff]  ;;  %v13737_v55 = vld [vmem:[#allocation36_spill] sm:$0xff]  ;;  %v3459_v29 = vld [vmem:[#allocation3 + $0x38] sm:$0xff] }
 0x4e6   : > { %v2473_v32 = vadd.f32 %v2457_v9, %v2376_v13  ;;  %v2561_v1 = vadd.f32 %v2545_v39, %v2464_v40  ;;  %v2642_v47 = vmul.f32 %v2626_v56, %v2609_v15  ;;  %v2643_v58 = vmul.f32 %v2627_v8, %v2607_v33  ;;  %v13738_v9 = vld [vmem:[#allocation49_spill] sm:$0xff]  ;;  %v13739_v39 = vld [vmem:[#allocation32_spill] sm:$0xff]  ;;  %v13744_v24 = vld [vmem:[#allocation31_spill] sm:$0xff] }
 0x4e7   : > { %v2596_v16 = vpop.permute.xlu1 %2595  ;;  %v2562_v0 = vadd.f32 %v2546_v25, %v2465_v34  ;;  %v7275_v4 = vpack.c.bf16 %v2668_v48, %v2660_v62  ;;  %v2569_v51 = vadd.f32 %v2553_v20, %v2472_v30  ;;  %v13722_v53 = vpack.c.bf16 %v13720_v38, %v13721_v19  ;;  %v3458_v52 = vld [vmem:[#allocation3 + $0x30] sm:$0xff]  ;;  %v13741_v40 = vld [vmem:[#allocation28_spill] sm:$0xff] }
 0x4e8   : > { %v2608_v45 = vsel %vm1433_vm8, %v2596_v16, %v13712_v11  ;;  %v2610_v7 = vsel %vm1433_vm8, %v13719_v28, %v2596_v16  ;;  %v2570_v21 = vadd.f32 %v2554_v42, %v2473_v32  ;;  %v2658_v57 = vadd.f32 %v2642_v47, %v2561_v1  ;;  %v13742_v25 = vld [vmem:[#allocation29_spill] sm:$0xff] }
 0x4e9   : > { %v2650_v59 = vmul.f32 %v2634_v27, %v2610_v7  ;;  %v2651_v5 = vmul.f32 %v2635_v22, %v2608_v45  ;;  %7276 = vmatpush1.bf16.msra.mxu1 %v7275_v4  ;;  %v2659_v50 = vadd.f32 %v2643_v58, %v2562_v0  ;;  %v13726_v2 = vpack.c.bf16 %v13724_v54, %v13725_v10  ;;  %v13745_v3 = vld [vmem:[#allocation21_spill] sm:$0xff] }
 0x4ea   : > { %7282 = vmatprep.subr.bf16.mxu1 %v13722_v53  ;;  %v13727_v60 = vmov 0.0   ;;  %v13730_v13 = vpack.c.bf16 %v13728_v31, %v13729_v43  ;;  %v13733_v12 = vpack.c.bf16 %v13731_v46, %v13732_v23  ;;  %v13736_v63 = vpack.c.bf16 %v13734_v26, %v13735_v35 }
 0x4eb   : > { %v2666_v49 = vadd.f32 %v2650_v59, %v2569_v51  ;;  %v2667_v61 = vadd.f32 %v2651_v5, %v2570_v21  ;;  %v13740_v37 = vpack.c.bf16 %v13738_v9, %v13739_v39  ;;  %v13743_v17 = vpack.c.bf16 %v13741_v40, %v13742_v25 }
 0x4ec   : > { %7192 = vmatmul.mubr.msk.f32.vlgmr.msra.gmra.mrb[18].mxu1 %vm334_vm0, %v13723_v36  ;;  %v13746_v56 = vpack.c.bf16 %v13744_v24, %v13745_v3 }
 0x4ed   : > { %v7269_v11 = vpack.c.bf16 %v2667_v61, %v2659_v50  ;;  %v7271_v18 = vpack.c.bf16 %v2666_v49, %v2658_v57  ;;  %7284 = vmatpush1.bf16.msra.mxu1 %v13726_v2  ;;  %2993 = vmatprep.mubr.f32.mxu1 %v13727_v60 }
 0x4ee   : > { %7290 = vmatprep.subr.bf16.mxu1 %v13730_v13 }
 0x4ef   : > { %7270 = vmatprep.subr.bf16.mxu0 %v7269_v11 }
 0x4f0   : > { %7272 = vmatpush1.bf16.msra.mxu0 %v7271_v18 }
 0x4f1   : > { %7278 = vmatprep.subr.bf16.mxu0 %v13733_v12 }
 0x4f3   : > { %7190 = vmatmul.mubr.msk.f32.vlgmr.msra.gmra.mrb[18].mxu0 %vm334_vm0, %v13723_v36 }
 0x4f4   : > { %7280 = vmatpush1.bf16.msra.mxu0 %v13736_v63  ;;  %2916 = vmatprep.mubr.f32.mxu0 %v13727_v60  ;;  %v10739_v30 = vpop.permute.xlu0 %3465 }
 0x4f5   : > { %7193 = vmatmul.mubr.msk.f32.gmra.mrb[18].mxu1 %vm334_vm0, %v13737_v55  ;;  %7286 = vmatprep.subr.bf16.mxu0 %v13740_v37 }
 0x4f6   : > { %3620 = vmatprep.mubr.f32.mxu1 %v13727_v60 }
 0x4f8   : > { %v10748_v48 = vpop.permute.xlu1 %3470 }
 0x4f9   : > { %7196 = vmatmul.mubr.msk.f32.vlgmr.msra.gmra.mrb[20].mxu1 %vm334_vm0, %v3458_v52 }
 0x4fa   : > { %7292 = vmatpush1.bf16.msra.mxu1 %v13743_v17  ;;  %3626 = vmatprep.mubr.f32.mxu1 %v13727_v60 }
 0x4fb   : > { %7191 = vmatmul.mubr.msk.f32.gmra.mrb[18].mxu0 %vm334_vm0, %v13737_v55 }
 0x4fc   : > { %3543 = vmatprep.mubr.f32.mxu0 %v13727_v60 }
 0x4fd   : > { %7197 = vmatmul.mubr.msk.f32.gmra.mrb[22].mxu1 %vm334_vm0, %v3459_v29 }
 0x4fe   : > { %3774 = vmatprep.mubr.f32.mxu1 %v13727_v60 }
 0x4ff   : > { %7194 = vmatmul.mubr.msk.f32.vlgmr.msra.gmra.mrb[20].mxu0 %vm334_vm0, %v3458_v52 }
 0x500   : > { %7288 = vmatpush1.bf16.msra.mxu0 %v13746_v56  ;;  %3549 = vmatprep.mubr.f32.mxu0 %v13727_v60 }
 0x501   : > { %7200 = vmatmul.mubr.msk.f32.vlgmr.msra.gmra.mrb[24].mxu1 %vm334_vm0, %v3458_v52 }
 0x502   : > { %3780 = vmatprep.mubr.f32.mxu1 %v13727_v60 }
 0x503   : > { %7195 = vmatmul.mubr.msk.f32.gmra.mrb[22].mxu0 %vm334_vm0, %v3459_v29 }
 0x504   : > { %3697 = vmatprep.mubr.f32.mxu0 %v13727_v60 }
 0x505   : > { %7201 = vmatmul.mubr.msk.f32.gmra.mrb[26].mxu1 %vm334_vm0, %v3459_v29 }
 0x506   : > { %4791 = vmatprep.mubr.f32.mxu1 %v13727_v60 }
 0x507   : > { %7198 = vmatmul.mubr.msk.f32.vlgmr.msra.gmra.mrb[24].mxu0 %vm334_vm0, %v3458_v52 }
 0x508   : > { %3703 = vmatprep.mubr.f32.mxu0 %v13727_v60 }
 0x50b   : > { %7199 = vmatmul.mubr.msk.f32.gmra.mrb[26].mxu0 %vm334_vm0, %v3459_v29 }
 0x50c   : > { %4714 = vmatprep.mubr.f32.mxu0 %v13727_v60 }
 0x587   : > { %v10727_v8 = vpop.f32.mrb[16].mxu0 }
 0x588   : > { %13747 = vst [vmem:[#allocation40_spill] sm:$0xff] %v10727_v8  ;;  %v10729_v44 = vpop.f32.mrb[17].mxu0 }
 0x589   : > { %13748 = vst [vmem:[#allocation50_spill] sm:$0xff] %v10729_v44 }
 0x5a4   : > { %v10731_v34 = vpop.f32.mrb[16].mxu1 }
 0x5a5   : > { %13749 = vst [vmem:[#allocation84_spill] sm:$0xff] %v10731_v34  ;;  %v10733_v20 = vpop.f32.mrb[17].mxu1 }
 0x5a6   : > { %13750 = vst [vmem:[#allocation90_spill] sm:$0xff] %v10733_v20 }
 0x5c8   : > { %v10735_v42 = vpop.f32.mrb[18].mxu1 }
 0x5c9   : > { %13751 = vst [vmem:[#allocation58_spill] sm:$0xff] %v10735_v42  ;;  %v10737_v62 = vpop.f32.mrb[19].mxu1 }
 0x5ca   : > { %13752 = vst [vmem:[#allocation34_spill] sm:$0xff] %v10737_v62 }
 0x5cc   : > { %v3622_v6 = vpop.f32.mrb[20].mxu1 }
 0x5cd   : > { %v3623_v33 = vadd.f32 %v3622_v6, %v10739_v30  ;;  %v3624_v41 = vpop.f32.mrb[21].mxu1 }
 0x5ce   : > { %v10742_v15 = vpop.f32.mrb[18].mxu0  ;;  %v3625_v38 = vadd.f32 %v3624_v41, %v10739_v30 }
 0x5cf   : > { %13753 = vst [vmem:[#allocation79_spill] sm:$0xff] %v10742_v15  ;;  %v10744_v27 = vmax.f32 %v3623_v33, 0.0  ;;  %v10746_v22 = vpop.f32.mrb[19].mxu0 }
 0x5d0   : > { %13754 = vst [vmem:[#allocation65_spill] sm:$0xff] %v10746_v22  ;;  %v3628_v32 = vpop.f32.mrb[22].mxu1  ;;  %v10802_v19 = vmax.f32 %v3625_v38, 0.0 }
 0x5d1   : > { %v3629_v1 = vadd.f32 %v3628_v32, %v10748_v48  ;;  %v3630_v47 = vpop.f32.mrb[23].mxu1  ;;  %3811 = vrot.lane.b32.xlu0 %v10744_v27, %s7564_s9 }
 0x5d2   : > { %v3545_v58 = vpop.f32.mrb[20].mxu0  ;;  %13755 = vst [vmem:[#allocation72_spill] sm:$0xff] %v10802_v19  ;;  %v3631_v53 = vadd.f32 %v3630_v47, %v10748_v48 }
 0x5d3   : > { %v10753_v16 = vmax.f32 %v3629_v1, 0.0  ;;  %v10755_v0 = vpop.f32.mrb[21].mxu0  ;;  %v3546_v61 = vadd.f32 %v3545_v58, %v10739_v30 }
 0x5d4   : > { %v10757_v45 = vpop.f32.mrb[24].mxu1  ;;  %v10809_v50 = vmax.f32 %v3631_v53, 0.0  ;;  %v3548_v54 = vadd.f32 %v10755_v0, %v10739_v30 }
 0x5d5   : > { %v10759_v28 = vpop.f32.mrb[25].mxu1  ;;  %3813 = vrot.lane.b32.xlu1 %v10753_v16, %s7564_s9  ;;  %3908 = vrot.lane.b32.xlu0 %v10744_v27, %s7563_s25  ;;  %v10820_v36 = vmax.f32 %v3546_v61, 0.0  ;;  %v3777_v23 = vadd.f32 %v10757_v45, %v10739_v30 }
 0x5d6   : > { %v3551_v7 = vpop.f32.mrb[22].mxu0  ;;  %13756 = vst [vmem:[#allocation18_spill] sm:$0xff] %v10809_v50  ;;  %v10879_v10 = vmax.f32 %v3548_v54, 0.0  ;;  %v3779_v32 = vadd.f32 %v10759_v28, %v10739_v30 }
 0x5d7   : > { %v3553_v4 = vpop.f32.mrb[23].mxu0  ;;  %13757 = vst [vmem:[#allocation70_spill] sm:$0xff] %v10820_v36  ;;  %v3552_v11 = vadd.f32 %v3551_v7, %v10748_v48  ;;  %v10928_v35 = vmax.f32 %v3777_v23, 0.0 }
 0x5d8   : > { %v10765_v51 = vpop.f32.mrb[26].mxu1  ;;  %v3554_v2 = vadd.f32 %v3553_v4, %v10748_v48  ;;  %v11000_v58 = vmax.f32 %v3779_v32, 0.0 }
 0x5d9   : > { %v10767_v21 = vpop.f32.mrb[27].mxu1  ;;  %3910 = vrot.lane.b32.xlu1 %v10753_v16, %s7563_s25  ;;  %4005 = vrot.lane.b32.xlu0 %v10744_v27, %s7565_s10  ;;  %v10827_v18 = vmax.f32 %v3552_v11, 0.0  ;;  %13764 = vst [vmem:[#allocation85_spill] sm:$0xff] %v10928_v35  ;;  %v3783_v63 = vadd.f32 %v10765_v51, %v10748_v48 }
 0x5da   : > { %v10773_v59 = vpop.f32.mrb[24].mxu0  ;;  %v10886_v31 = vmax.f32 %v3554_v2, 0.0  ;;  %13772 = vst [vmem:[#allocation83_spill] sm:$0xff] %v11000_v58  ;;  %v3785_v0 = vadd.f32 %v10767_v21, %v10748_v48 }
 0x5db   : > { %v10775_v5 = vpop.f32.mrb[25].mxu0  ;;  %13758 = vst [vmem:[#allocation25_spill] sm:$0xff] %v10827_v18  ;;  %v10940_v39 = vmax.f32 %v3783_v63, 0.0  ;;  %v3700_v53 = vadd.f32 %v10773_v59, %v10739_v30 }
 0x5dc   : > { %v11012_v28 = vmax.f32 %v3785_v0, 0.0 }
 0x5dd   : > { %4007 = vrot.lane.b32.xlu1 %v10753_v16, %s7565_s10  ;;  %4102 = vrot.lane.b32.xlu0 %v10744_v27, %s7566_s11  ;;  %13766 = vst [vmem:[#allocation99_spill] sm:$0xff] %v10940_v39  ;;  %v11040_v54 = vmax.f32 %v3700_v53, 0.0 }
 0x5de   : > { %v10781_v57 = vpop.f32.mrb[26].mxu0  ;;  %13774 = vst [vmem:[#allocation59_spill] sm:$0xff] %v11012_v28 }
 0x5df   : > { %v10783_v49 = vpop.f32.mrb[27].mxu0  ;;  %13778 = vst [vmem:[#allocation27_spill] sm:$0xff] %v11040_v54  ;;  %v3706_v2 = vadd.f32 %v10781_v57, %v10748_v48 }
 0x5e1   : > { %4104 = vrot.lane.b32.xlu1 %v10753_v16, %s7566_s11  ;;  %4248 = vrot.lane.b32.xlu0 %v10744_v27, %s7567_s13  ;;  %v11052_v59 = vmax.f32 %v3706_v2, 0.0 }
 0x5e3   : > { %13779 = vst [vmem:[#allocation54_spill] sm:$0xff] %v11052_v59 }
 0x5e5   : > { %4250 = vrot.lane.b32.xlu1 %v10753_v16, %s7567_s13  ;;  %4345 = vrot.lane.b32.xlu0 %v10744_v27, %s7568_s14 }
 0x5e9   : > { %4347 = vrot.lane.b32.xlu1 %v10753_v16, %s7568_s14  ;;  %4442 = vrot.lane.b32.xlu0 %v10744_v27, %s7569_s30 }
 0x5ed   : > { %4444 = vrot.lane.b32.xlu1 %v10753_v16, %s7569_s30  ;;  %4539 = vrot.lane.b32.xlu0 %v10744_v27, %s7570_s21 }
 0x5f1   : > { %4541 = vrot.lane.b32.xlu1 %v10753_v16, %s7570_s21  ;;  %3815 = vrot.lane.b32.xlu0 %v10802_v19, %s7564_s9 }
 0x5f5   : > { %3817 = vrot.lane.b32.xlu1 %v10809_v50, %s7564_s9  ;;  %3912 = vrot.lane.b32.xlu0 %v10802_v19, %s7563_s25 }
 0x5f9   : > { %3914 = vrot.lane.b32.xlu1 %v10809_v50, %s7563_s25  ;;  %4009 = vrot.lane.b32.xlu0 %v10802_v19, %s7565_s10 }
 0x5fd   : > { %4011 = vrot.lane.b32.xlu1 %v10809_v50, %s7565_s10  ;;  %3803 = vrot.lane.b32.xlu0 %v10820_v36, %s7564_s9 }
 0x601   : > { %3805 = vrot.lane.b32.xlu1 %v10827_v18, %s7564_s9  ;;  %3900 = vrot.lane.b32.xlu0 %v10820_v36, %s7563_s25 }
 0x605   : > { %3902 = vrot.lane.b32.xlu1 %v10827_v18, %s7563_s25  ;;  %4106 = vrot.lane.b32.xlu0 %v10802_v19, %s7566_s11 }
 0x609   : > { %4108 = vrot.lane.b32.xlu1 %v10809_v50, %s7566_s11  ;;  %3997 = vrot.lane.b32.xlu0 %v10820_v36, %s7565_s10 }
 0x60d   : > { %3999 = vrot.lane.b32.xlu1 %v10827_v18, %s7565_s10  ;;  %4094 = vrot.lane.b32.xlu0 %v10820_v36, %s7566_s11 }
 0x611   : > { %4096 = vrot.lane.b32.xlu1 %v10827_v18, %s7566_s11  ;;  %4252 = vrot.lane.b32.xlu0 %v10802_v19, %s7567_s13 }
 0x615   : > { %4254 = vrot.lane.b32.xlu1 %v10809_v50, %s7567_s13  ;;  %4349 = vrot.lane.b32.xlu0 %v10802_v19, %s7568_s14 }
 0x619   : > { %4351 = vrot.lane.b32.xlu1 %v10809_v50, %s7568_s14  ;;  %4240 = vrot.lane.b32.xlu0 %v10820_v36, %s7567_s13 }
 0x61d   : > { %4242 = vrot.lane.b32.xlu1 %v10827_v18, %s7567_s13  ;;  %4446 = vrot.lane.b32.xlu0 %v10802_v19, %s7569_s30 }
 0x621   : > { %4448 = vrot.lane.b32.xlu1 %v10809_v50, %s7569_s30  ;;  %4337 = vrot.lane.b32.xlu0 %v10820_v36, %s7568_s14 }
 0x625   : > { %4339 = vrot.lane.b32.xlu1 %v10827_v18, %s7568_s14  ;;  %4543 = vrot.lane.b32.xlu0 %v10802_v19, %s7570_s21 }
 0x629   : > { %4545 = vrot.lane.b32.xlu1 %v10809_v50, %s7570_s21  ;;  %4434 = vrot.lane.b32.xlu0 %v10820_v36, %s7569_s30 }
 0x62d   : > { %4436 = vrot.lane.b32.xlu1 %v10827_v18, %s7569_s30  ;;  %4531 = vrot.lane.b32.xlu0 %v10820_v36, %s7570_s21  ;;  %v3959_v36 = vld [vmem:[#allocation7 + $0xe50] sm:$0xff] }
 0x631   : > { %4533 = vrot.lane.b32.xlu1 %v10827_v18, %s7570_s21  ;;  %3807 = vrot.lane.b32.xlu0 %v10879_v10, %s7564_s9 }
 0x635   : > { %3809 = vrot.lane.b32.xlu1 %v10886_v31, %s7564_s9  ;;  %3904 = vrot.lane.b32.xlu0 %v10879_v10, %s7563_s25 }
 0x639   : > { %3906 = vrot.lane.b32.xlu1 %v10886_v31, %s7563_s25  ;;  %4001 = vrot.lane.b32.xlu0 %v10879_v10, %s7565_s10 }
 0x63d   : > { %4003 = vrot.lane.b32.xlu1 %v10886_v31, %s7565_s10  ;;  %4098 = vrot.lane.b32.xlu0 %v10879_v10, %s7566_s11 }
 0x641   : > { %4100 = vrot.lane.b32.xlu1 %v10886_v31, %s7566_s11  ;;  %4244 = vrot.lane.b32.xlu0 %v10879_v10, %s7567_s13 }
 0x643   : > { %v10904_v43 = vpop.permute.xlu0 %3811 }
 0x644   : > { %13759 = vst [vmem:[#allocation35_spill] sm:$0xff] %v10904_v43 }
 0x645   : > { %4246 = vrot.lane.b32.xlu1 %v10886_v31, %s7567_s13  ;;  %4341 = vrot.lane.b32.xlu0 %v10879_v10, %s7568_s14 }
 0x647   : > { %v10910_v13 = vpop.permute.xlu1 %3813  ;;  %v10912_v46 = vpop.permute.xlu0 %3908 }
 0x648   : > { %13760 = vst [vmem:[#allocation44_spill] sm:$0xff] %v10910_v13  ;;  %13761 = vst [vmem:[#allocation60_spill] sm:$0xff] %v10912_v46 }
 0x649   : > { %4343 = vrot.lane.b32.xlu1 %v10886_v31, %s7568_s14  ;;  %4438 = vrot.lane.b32.xlu0 %v10879_v10, %s7569_s30 }
 0x64b   : > { %v10920_v12 = vpop.permute.xlu1 %3910  ;;  %v10922_v26 = vpop.permute.xlu0 %4005 }
 0x64c   : > { %13762 = vst [vmem:[#allocation78_spill] sm:$0xff] %v10920_v12  ;;  %13763 = vst [vmem:[#allocation41_spill] sm:$0xff] %v10922_v26 }
 0x64d   : > { %4440 = vrot.lane.b32.xlu1 %v10886_v31, %s7569_s30  ;;  %4535 = vrot.lane.b32.xlu0 %v10879_v10, %s7570_s21 }
 0x64f   : > { %v10932_v55 = vpop.permute.xlu1 %4007  ;;  %v10934_v9 = vpop.permute.xlu0 %4102 }
 0x650   : > { %13765 = vst [vmem:[#allocation39_spill] sm:$0xff] %v10934_v9 }
 0x651   : > { %4537 = vrot.lane.b32.xlu1 %v10886_v31, %s7570_s21  ;;  %3827 = vrot.lane.b32.xlu0 %v10928_v35, %s7564_s9 }
 0x653   : > { %v10942_v37 = vpop.permute.xlu1 %4104  ;;  %v10944_v52 = vpop.permute.xlu0 %4248 }
 0x655   : > { %3829 = vrot.lane.b32.xlu1 %v10940_v39, %s7564_s9  ;;  %3924 = vrot.lane.b32.xlu0 %v10928_v35, %s7563_s25 }
 0x657   : > { %v10950_v40 = vpop.permute.xlu1 %4250  ;;  %v10952_v25 = vpop.permute.xlu0 %4345 }
 0x659   : > { %3926 = vrot.lane.b32.xlu1 %v10940_v39, %s7563_s25  ;;  %4021 = vrot.lane.b32.xlu0 %v10928_v35, %s7565_s10 }
 0x65b   : > { %v10958_v17 = vpop.permute.xlu1 %4347  ;;  %v10960_v29 = vpop.permute.xlu0 %4442 }
 0x65d   : > { %4023 = vrot.lane.b32.xlu1 %v10940_v39, %s7565_s10  ;;  %4118 = vrot.lane.b32.xlu0 %v10928_v35, %s7566_s11 }
 0x65f   : > { %v10966_v24 = vpop.permute.xlu1 %4444  ;;  %v10968_v3 = vpop.permute.xlu0 %4539 }
 0x661   : > { %4120 = vrot.lane.b32.xlu1 %v10940_v39, %s7566_s11  ;;  %4264 = vrot.lane.b32.xlu0 %v10928_v35, %s7567_s13 }
 0x663   : > { %v10974_v56 = vpop.permute.xlu1 %4541  ;;  %v10976_v6 = vpop.permute.xlu0 %3815 }
 0x664   : > { %13767 = vst [vmem:[#allocation38_spill] sm:$0xff] %v10976_v6 }
 0x665   : > { %4266 = vrot.lane.b32.xlu1 %v10940_v39, %s7567_s13  ;;  %4361 = vrot.lane.b32.xlu0 %v10928_v35, %s7568_s14 }
 0x667   : > { %v10982_v33 = vpop.permute.xlu1 %3817  ;;  %v10984_v41 = vpop.permute.xlu0 %3912 }
 0x668   : > { %13768 = vst [vmem:[#allocation46_spill] sm:$0xff] %v10982_v33  ;;  %13769 = vst [vmem:[#allocation51_spill] sm:$0xff] %v10984_v41  ;;  %v3950_v33 = vld [vmem:[#allocation7 + $0xe08] sm:$0xff] }
 0x669   : > { %4363 = vrot.lane.b32.xlu1 %v10940_v39, %s7568_s14  ;;  %4458 = vrot.lane.b32.xlu0 %v10928_v35, %s7569_s30 }
 0x66b   : > { %v10992_v1 = vpop.permute.xlu1 %3914  ;;  %v10994_v47 = vpop.permute.xlu0 %4009 }
 0x66c   : > { %13770 = vst [vmem:[#allocation93_spill] sm:$0xff] %v10992_v1  ;;  %13771 = vst [vmem:[#allocation55_spill] sm:$0xff] %v10994_v47 }
 0x66d   : > { %4460 = vrot.lane.b32.xlu1 %v10940_v39, %s7569_s30  ;;  %4555 = vrot.lane.b32.xlu0 %v10928_v35, %s7570_s21 }
 0x66f   : > { %v11004_v45 = vpop.permute.xlu1 %4011  ;;  %v11006_v7 = vpop.permute.xlu0 %3803 }
 0x670   : > { %13773 = vst [vmem:[#allocation91_spill] sm:$0xff] %v11004_v45  ;;  %v3862_v45 = vld [vmem:[#allocation7 + $0xdd0] sm:$0xff] }
 0x671   : > { %4557 = vrot.lane.b32.xlu1 %v10940_v39, %s7570_s21  ;;  %3831 = vrot.lane.b32.xlu0 %v11000_v58, %s7564_s9 }
 0x673   : > { %v11014_v4 = vpop.permute.xlu1 %3805  ;;  %v11016_v51 = vpop.permute.xlu0 %3900 }
 0x675   : > { %3833 = vrot.lane.b32.xlu1 %v11012_v28, %s7564_s9  ;;  %3928 = vrot.lane.b32.xlu0 %v11000_v58, %s7563_s25 }
 0x677   : > { %v11022_v21 = vpop.permute.xlu1 %3902  ;;  %v11024_v38 = vpop.permute.xlu0 %4106 }
 0x678   : > { %13775 = vst [vmem:[#allocation24_spill] sm:$0xff] %v11022_v21  ;;  %13776 = vst [vmem:[#allocation82_spill] sm:$0xff] %v11024_v38 }
 0x679   : > { %3930 = vrot.lane.b32.xlu1 %v11012_v28, %s7563_s25  ;;  %4025 = vrot.lane.b32.xlu0 %v11000_v58, %s7565_s10 }
 0x67b   : > { %v11032_v61 = vpop.permute.xlu1 %4108  ;;  %v11034_v11 = vpop.permute.xlu0 %3997 }
 0x67c   : > { %13777 = vst [vmem:[#allocation30_spill] sm:$0xff] %v11032_v61  ;;  %v3854_v61 = vld [vmem:[#allocation7 + $0xd90] sm:$0xff] }
 0x67d   : > { %4027 = vrot.lane.b32.xlu1 %v11012_v28, %s7565_s10  ;;  %4122 = vrot.lane.b32.xlu0 %v11000_v58, %s7566_s11 }
 0x67f   : > { %v11044_v23 = vpop.permute.xlu1 %3999  ;;  %v11046_v63 = vpop.permute.xlu0 %4094 }
 0x681   : > { %4124 = vrot.lane.b32.xlu1 %v11012_v28, %s7566_s11  ;;  %4256 = vrot.lane.b32.xlu0 %v11040_v54, %s7567_s13 }
 0x683   : > { %v11054_v32 = vpop.permute.xlu1 %4096  ;;  %v11056_v0 = vpop.permute.xlu0 %4252 }
 0x684   : > { %13780 = vst [vmem:[#allocation74_spill] sm:$0xff] %v11056_v0 }
 0x685   : > { %4258 = vrot.lane.b32.xlu1 %v11052_v59, %s7567_s13  ;;  %4353 = vrot.lane.b32.xlu0 %v11040_v54, %s7568_s14 }
 0x687   : > { %v11062_v57 = vpop.permute.xlu1 %4254  ;;  %v11064_v53 = vpop.permute.xlu0 %4349 }
 0x689   : > { %4355 = vrot.lane.b32.xlu1 %v11052_v59, %s7568_s14  ;;  %4450 = vrot.lane.b32.xlu0 %v11040_v54, %s7569_s30 }
 0x68b   : > { %v11070_v2 = vpop.permute.xlu1 %4351  ;;  %v11072_v62 = vpop.permute.xlu0 %4240 }
 0x68c   : > { %13781 = vst [vmem:[#allocation73_spill] sm:$0xff] %v11072_v62 }
 0x68d   : > { %4452 = vrot.lane.b32.xlu1 %v11052_v59, %s7569_s30  ;;  %4547 = vrot.lane.b32.xlu0 %v11040_v54, %s7570_s21 }
 0x68f   : > { %v11078_v42 = vpop.permute.xlu1 %4242  ;;  %v11080_v22 = vpop.permute.xlu0 %4446 }
 0x690   : > { %13782 = vst [vmem:[#allocation77_spill] sm:$0xff] %v11078_v42 }
 0x691   : > { %4549 = vrot.lane.b32.xlu1 %v11052_v59, %s7570_s21  ;;  %3819 = vrot.lane.b32.xlu0 %v11040_v54, %s7564_s9 }
 0x693   : > { %v11086_v15 = vpop.permute.xlu1 %4448  ;;  %v11088_v20 = vpop.permute.xlu0 %4337 }
 0x694   : > { %13783 = vst [vmem:[#allocation100_spill] sm:$0xff] %v11088_v20  ;;  %v4194_v20 = vld [vmem:[#allocation7 + $0xf90] sm:$0xff] }
 0x695   : > { %3821 = vrot.lane.b32.xlu1 %v11052_v59, %s7564_s9  ;;  %3916 = vrot.lane.b32.xlu0 %v11040_v54, %s7563_s25 }
 0x697   : > { %v11094_v34 = vpop.permute.xlu1 %4339  ;;  %v11096_v44 = vpop.permute.xlu0 %4543 }
 0x698   : > { %13784 = vst [vmem:[#allocation86_spill] sm:$0xff] %v11094_v34 }
 0x699   : > { %3918 = vrot.lane.b32.xlu1 %v11052_v59, %s7563_s25  ;;  %4013 = vrot.lane.b32.xlu0 %v11040_v54, %s7565_s10 }
 0x69b   : > { %v11102_v8 = vpop.permute.xlu1 %4545  ;;  %v11104_v39 = vpop.permute.xlu0 %4434 }
 0x69c   : > { %13785 = vst [vmem:[#allocation19_spill] sm:$0xff] %v11104_v39 }
 0x69d   : > { %4015 = vrot.lane.b32.xlu1 %v11052_v59, %s7565_s10  ;;  %4110 = vrot.lane.b32.xlu0 %v11040_v54, %s7566_s11 }
 0x69f   : > { %v11110_v35 = vpop.permute.xlu1 %4436  ;;  %v11112_v60 = vpop.permute.xlu0 %4531 }
 0x6a0   : > { %13786 = vst [vmem:[#allocation22_spill] sm:$0xff] %v11110_v35  ;;  %13787 = vst [vmem:[#allocation62_spill] sm:$0xff] %v11112_v60  ;;  %v3702_v60 = vadd.f32 %v10775_v5, %v10739_v30  ;;  %v3951_v35 = vld [vmem:[#allocation7 + $0xe10] sm:$0xff]  ;;  %v3853_v5 = vld [vmem:[#allocation7 + $0xd88] sm:$0xff] }
 0x6a1   : > { %4112 = vrot.lane.b32.xlu1 %v11052_v59, %s7566_s11  ;;  %4268 = vrot.lane.b32.xlu0 %v11000_v58, %s7567_s13  ;;  %v4048_v30 = vld [vmem:[#allocation7 + $0xe90] sm:$0xff] }
 0x6a2   : > { %v11145_v41 = vmax.f32 %v3702_v60, 0.0 }
 0x6a3   : > { %v11118_v34 = vpop.permute.xlu1 %4533  ;;  %v3808_v42 = vpop.permute.xlu0 %3807 }
 0x6a4   : > { %13788 = vst [vmem:[#allocation43_spill] sm:$0xff] %v11118_v34  ;;  %v3708_v34 = vadd.f32 %v10783_v49, %v10748_v48  ;;  %v3845_v38 = vsel %vm699_vm1, %v3808_v42, %v10904_v43  ;;  %v3847_v62 = vsel %vm699_vm1, %v11006_v7, %v3808_v42  ;;  %13789 = vst [vmem:[#allocation101_spill] sm:$0xff] %v11145_v41 }
 0x6a5   : > { %4270 = vrot.lane.b32.xlu1 %v11012_v28, %s7567_s13  ;;  %4365 = vrot.lane.b32.xlu0 %v11000_v58, %s7568_s14 }
 0x6a7   : > { %v3810_v54 = vpop.permute.xlu1 %3809  ;;  %v3905_v39 = vpop.permute.xlu0 %3904 }
 0x6a8   : > { %v3942_v59 = vsel %vm796_vm2, %v3905_v39, %v10912_v46  ;;  %v3846_v48 = vsel %vm699_vm1, %v3810_v54, %v10910_v13  ;;  %v4210_v46 = vmul.f32 %v4194_v20, %v10744_v27  ;;  %v3944_v18 = vsel %vm796_vm2, %v11016_v51, %v3905_v39  ;;  %v3958_v20 = vld [vmem:[#allocation7 + $0xe48] sm:$0xff] }
 0x6a9   : > { %4367 = vrot.lane.b32.xlu1 %v11012_v28, %s7568_s14  ;;  %4462 = vrot.lane.b32.xlu0 %v11000_v58, %s7569_s30  ;;  %v3967_v49 = vmul.f32 %v3951_v35, %v3942_v59  ;;  %v11156_v59 = vmax.f32 %v3708_v34, 0.0  ;;  %v3870_v13 = vmul.f32 %v3854_v61, %v3845_v38  ;;  %v4280_v39 = vsel %vm1139_vm5, %v10944_v52, %v11056_v0  ;;  %v4056_v61 = vld [vmem:[#allocation7 + $0xed0] sm:$0xff] }
 0x6aa   : > { %v3848_v34 = vsel %vm699_vm1, %v11014_v4, %v3810_v54  ;;  %v3878_v38 = vmul.f32 %v3862_v45, %v3846_v48  ;;  %v4055_v54 = vld [vmem:[#allocation7 + $0xec8] sm:$0xff] }
 0x6ab   : > { %v3907_v47 = vpop.permute.xlu1 %3906  ;;  %v4002_v1 = vpop.permute.xlu0 %4001  ;;  %13790 = vst [vmem:[#allocation97_spill] sm:$0xff] %v11156_v59  ;;  %v3983_v50 = vadd.f32 %v3967_v49, %v3870_v13 }
 0x6ac   : > { %v3943_v42 = vsel %vm796_vm2, %v3907_v47, %v10920_v12  ;;  %v4039_v35 = vsel %vm894_vm3, %v4002_v1, %v10922_v26  ;;  %v3945_v60 = vsel %vm796_vm2, %v11022_v21, %v3907_v47  ;;  %v3869_v12 = vmul.f32 %v3853_v5, %v3847_v62  ;;  %v4145_v47 = vld [vmem:[#allocation7 + $0xf10] sm:$0xff]  ;;  %v4047_v21 = vld [vmem:[#allocation7 + $0xe88] sm:$0xff] }
 0x6ad   : > { %v4064_v27 = vmul.f32 %v4048_v30, %v4039_v35  ;;  %4464 = vrot.lane.b32.xlu1 %v11012_v28, %s7569_s30  ;;  %4559 = vrot.lane.b32.xlu0 %v11000_v58, %s7570_s21  ;;  %v4291_v30 = vld [vmem:[#allocation7 + $0x1010] sm:$0xff]  ;;  %v3861_v35 = vld [vmem:[#allocation7 + $0xdc8] sm:$0xff]  ;;  %v3966_v26 = vmul.f32 %v3950_v33, %v3944_v18  ;;  %v3975_v19 = vmul.f32 %v3959_v36, %v3943_v42 }
 0x6ae   : > { %v4041_v62 = vsel %vm894_vm3, %v11034_v11, %v4002_v1  ;;  %v3974_v43 = vmul.f32 %v3958_v20, %v3945_v60  ;;  %v4144_v33 = vld [vmem:[#allocation7 + $0xf08] sm:$0xff]  ;;  %v4307_v42 = vmul.f32 %v4291_v30, %v4280_v39  ;;  %v4377_v20 = vsel %vm1237_vm6, %v10952_v25, %v11064_v53 }
 0x6af   : > { %v4004_v5 = vpop.permute.xlu1 %4003  ;;  %v4099_v0 = vpop.permute.xlu0 %4098  ;;  %v4080_v18 = vadd.f32 %v4064_v27, %v3983_v50  ;;  %v3877_v60 = vmul.f32 %v3861_v35, %v3848_v34  ;;  %v4152_v50 = vld [vmem:[#allocation7 + $0xf48] sm:$0xff]  ;;  %v4153_v27 = vld [vmem:[#allocation7 + $0xf50] sm:$0xff] }
 0x6b0   : > { %v4040_v45 = vsel %vm894_vm3, %v4004_v5, %v10932_v55  ;;  %v4042_v48 = vsel %vm894_vm3, %v11044_v23, %v4004_v5  ;;  %v4136_v36 = vsel %vm992_vm4, %v4099_v0, %v10934_v9  ;;  %v4138_v1 = vsel %vm992_vm4, %v11046_v63, %v4099_v0  ;;  %v4388_v35 = vld [vmem:[#allocation7 + $0x1090] sm:$0xff] }
 0x6b1   : > { %v4072_v13 = vmul.f32 %v4056_v61, %v4040_v45  ;;  %v4161_v49 = vmul.f32 %v4145_v47, %v4136_v36  ;;  %4561 = vrot.lane.b32.xlu1 %v11012_v28, %s7570_s21  ;;  %v4063_v5 = vmul.f32 %v4047_v21, %v4041_v62  ;;  %3823 = vrot.lane.b32.xlu0 %v11145_v41, %s7564_s9  ;;  %v4202_v36 = vld [vmem:[#allocation7 + $0xfd0] sm:$0xff]  ;;  %v4193_v28 = vld [vmem:[#allocation7 + $0xf88] sm:$0xff] }
 0x6b2   : > { %v3982_v61 = vadd.f32 %v3966_v26, %v3869_v12  ;;  %v3991_v45 = vadd.f32 %v3975_v19, %v3878_v38  ;;  %v4071_v0 = vmul.f32 %v4055_v54, %v4042_v48  ;;  %v3990_v30 = vadd.f32 %v3974_v43, %v3877_v60  ;;  %v4299_v62 = vld [vmem:[#allocation7 + $0x1050] sm:$0xff] }
 0x6b3   : > { %v4177_v47 = vadd.f32 %v4161_v49, %v4080_v18  ;;  %v4101_v58 = vpop.permute.xlu1 %4100  ;;  %v11195_v39 = vpop.permute.xlu0 %4244  ;;  %v4160_v9 = vmul.f32 %v4144_v33, %v4138_v1  ;;  %v4281_v43 = vsel %vm1139_vm5, %v10950_v40, %v11062_v57  ;;  %v4218_v48 = vmul.f32 %v4202_v36, %v10753_v16 }
 0x6b4   : > { %v4137_v21 = vsel %vm992_vm4, %v4101_v58, %v10942_v37  ;;  %v4139_v34 = vsel %vm992_vm4, %v11054_v32, %v4101_v58  ;;  %v4088_v12 = vadd.f32 %v4072_v13, %v3991_v45  ;;  %v4079_v54 = vadd.f32 %v4063_v5, %v3982_v61  ;;  %v4396_v58 = vld [vmem:[#allocation7 + $0x10d0] sm:$0xff] }
 0x6b5   : > { %v4226_v19 = vadd.f32 %v4210_v46, %v4177_v47  ;;  %v4168_v26 = vmul.f32 %v4152_v50, %v4139_v34  ;;  %v4169_v38 = vmul.f32 %v4153_v27, %v4137_v21  ;;  %3825 = vrot.lane.b32.xlu1 %v11156_v59, %s7564_s9  ;;  %v4209_v18 = vmul.f32 %v4193_v28, %v10879_v10  ;;  %v4201_v46 = vld [vmem:[#allocation7 + $0xfc8] sm:$0xff]  ;;  %v4485_v50 = vld [vmem:[#allocation7 + $0x1110] sm:$0xff] }
 0x6b6   : > { %3920 = vrot.lane.b32.xlu0 %v11145_v41, %s7563_s25  ;;  %v4378_v13 = vsel %vm1237_vm6, %v10958_v17, %v11070_v2  ;;  %v4087_v33 = vadd.f32 %v4071_v0, %v3990_v30  ;;  %v4404_v16 = vmul.f32 %v4388_v35, %v4377_v20  ;;  %v4474_v10 = vsel %vm1335_vm7, %v10960_v29, %v11080_v22  ;;  %v4493_v28 = vld [vmem:[#allocation7 + $0x1150] sm:$0xff]  ;;  %v4290_v30 = vld [vmem:[#allocation7 + $0x1008] sm:$0xff] }
 0x6b7   : > { %v4323_v1 = vadd.f32 %v4307_v42, %v4226_v19  ;;  %v4185_v49 = vadd.f32 %v4169_v38, %v4088_v12  ;;  %v11217_v60 = vpop.permute.xlu1 %4246  ;;  %v11219_v5 = vpop.permute.xlu0 %4341  ;;  %v4475_v27 = vsel %vm1335_vm7, %v10966_v24, %v11086_v15  ;;  %v4176_v61 = vadd.f32 %v4160_v9, %v4079_v54  ;;  %v4298_v34 = vld [vmem:[#allocation7 + $0x1048] sm:$0xff] }
 0x6b8   : > { %v4315_v42 = vmul.f32 %v4299_v62, %v4281_v43  ;;  %v4184_v45 = vadd.f32 %v4168_v26, %v4087_v33  ;;  %v4217_v47 = vmul.f32 %v4201_v46, %v10886_v31  ;;  %v4412_v20 = vmul.f32 %v4396_v58, %v4378_v13  ;;  %v4387_v62 = vld [vmem:[#allocation7 + $0x1088] sm:$0xff]  ;;  %v4582_v46 = vld [vmem:[#allocation7 + $0x1190] sm:$0xff] }
 0x6b9   : > { %v4234_v0 = vadd.f32 %v4218_v48, %v4185_v49  ;;  %3922 = vrot.lane.b32.xlu1 %v11156_v59, %s7563_s25  ;;  %v4420_v36 = vadd.f32 %v4404_v16, %v4323_v1  ;;  %v4282_v21 = vsel %vm1139_vm5, %v11195_v39, %v10944_v52  ;;  %v4283_v9 = vsel %vm1139_vm5, %v11217_v60, %v10950_v40  ;;  %v4395_v54 = vld [vmem:[#allocation7 + $0x10c8] sm:$0xff]  ;;  %v4590_v58 = vld [vmem:[#allocation7 + $0x11d0] sm:$0xff] }
 0x6ba   : > { %4017 = vrot.lane.b32.xlu0 %v11145_v41, %s7565_s10  ;;  %v4501_v31 = vmul.f32 %v4485_v50, %v4474_v10  ;;  %v4509_v35 = vmul.f32 %v4493_v28, %v4475_v27  ;;  %v4571_v12 = vsel %vm1433_vm8, %v10968_v3, %v11096_v44  ;;  %v4572_v40 = vsel %vm1433_vm8, %v10974_v56, %v11102_v8  ;;  %v4492_v16 = vld [vmem:[#allocation7 + $0x1148] sm:$0xff] }
 0x6bb   : > { %v4331_v19 = vadd.f32 %v4315_v42, %v4234_v0  ;;  %v11246_v26 = vpop.permute.xlu1 %4343  ;;  %v11248_v52 = vpop.permute.xlu0 %4438  ;;  %v4225_v38 = vadd.f32 %v4209_v18, %v4176_v61  ;;  %v4379_v43 = vsel %vm1237_vm6, %v11219_v5, %v10952_v25  ;;  %v4306_v33 = vmul.f32 %v4290_v30, %v4282_v21  ;;  %v4484_v18 = vld [vmem:[#allocation7 + $0x1108] sm:$0xff] }
 0x6bc   : > { %v4380_v48 = vsel %vm1237_vm6, %v11246_v26, %v10958_v17  ;;  %v4233_v1 = vadd.f32 %v4217_v47, %v4184_v45  ;;  %v4314_v49 = vmul.f32 %v4298_v34, %v4283_v9  ;;  %v4476_v25 = vsel %vm1335_vm7, %v11248_v52, %v10960_v29  ;;  %v4581_v29 = vld [vmem:[#allocation7 + $0x1188] sm:$0xff] }
 0x6bd   : > { %v4428_v13 = vadd.f32 %v4412_v20, %v4331_v19  ;;  %4019 = vrot.lane.b32.xlu1 %v11156_v59, %s7565_s10  ;;  %v4517_v17 = vadd.f32 %v4501_v31, %v4420_v36  ;;  %v4403_v50 = vmul.f32 %v4387_v62, %v4379_v43  ;;  %v4411_v10 = vmul.f32 %v4395_v54, %v4380_v48  ;;  %v4589_v34 = vld [vmem:[#allocation7 + $0x11c8] sm:$0xff] }
 0x6be   : > { %4114 = vrot.lane.b32.xlu0 %v11145_v41, %s7566_s11  ;;  %v4598_v42 = vmul.f32 %v4582_v46, %v4571_v12  ;;  %v4606_v45 = vmul.f32 %v4590_v58, %v4572_v40  ;;  %v4322_v20 = vadd.f32 %v4306_v33, %v4225_v38  ;;  %v4330_v36 = vadd.f32 %v4314_v49, %v4233_v1  ;;  %v3957_v38 = vld [vmem:[#allocation7 + $0xe40] sm:$0xff] }
 0x6bf   : > { %v11270_v28 = vpop.permute.xlu1 %4440  ;;  %v11272_v27 = vpop.permute.xlu0 %4535  ;;  %v4525_v61 = vadd.f32 %v4509_v35, %v4428_v13  ;;  %v4500_v30 = vmul.f32 %v4484_v18, %v4476_v25  ;;  %v5202_v25 = vld [vmem:[#allocation5 + $0x50] sm:$0xff] }
 0x6c0   : > { %v4477_v0 = vsel %vm1335_vm7, %v11270_v28, %v10966_v24  ;;  %v4573_v47 = vsel %vm1433_vm8, %v11272_v27, %v10968_v3  ;;  %v11286_v9 = vadd.f32 %v4598_v42, %v4517_v17  ;;  %v4419_v31 = vadd.f32 %v4403_v50, %v4322_v20 }
 0x6c1   : > { %v4508_v21 = vmul.f32 %v4492_v16, %v4477_v0  ;;  %4116 = vrot.lane.b32.xlu1 %v11156_v59, %s7566_s11  ;;  %v11288_v24 = vadd.f32 %v4606_v45, %v4525_v61  ;;  %v4427_v35 = vadd.f32 %v4411_v10, %v4330_v36  ;;  %v4597_v12 = vmul.f32 %v4581_v29, %v4573_v47  ;;  %v2674_v16 = vld [vmem:[#allocation5 + $0x20] sm:$0xff]  ;;  %v2675_v10 = vld [vmem:[#allocation5 + $0x28] sm:$0xff] }
 0x6c2   : > { %4260 = vrot.lane.b32.xlu0 %v11145_v41, %s7567_s13  ;;  %v4516_v62 = vadd.f32 %v4500_v30, %v4419_v31 }
 0x6c3   : > { %v11290_v19 = vpop.permute.xlu1 %4537  ;;  %v11292_v3 = vpop.permute.xlu0 %3827  ;;  %v4524_v43 = vadd.f32 %v4508_v21, %v4427_v35  ;;  %v4192_v35 = vld [vmem:[#allocation7 + $0xf80] sm:$0xff] }
 0x6c4   : > { %13791 = vst [vmem:[#allocation42_spill] sm:$0xff] %v11292_v3  ;;  %v4574_v40 = vsel %vm1433_vm8, %v11290_v19, %v10974_v56  ;;  %v4613_v58 = vadd.f32 %v4597_v12, %v4516_v62  ;;  %v4195_v12 = vld [vmem:[#allocation7 + $0xf98] sm:$0xff]  ;;  %v3852_v62 = vld [vmem:[#allocation7 + $0xd80] sm:$0xff] }
 0x6c5   : > { %v4605_v54 = vmul.f32 %v4589_v34, %v4574_v40  ;;  %4262 = vrot.lane.b32.xlu1 %v11156_v59, %s7567_s13  ;;  %v3949_v34 = vld [vmem:[#allocation7 + $0xe00] sm:$0xff]  ;;  %v4203_v40 = vld [vmem:[#allocation7 + $0xfd8] sm:$0xff] }
 0x6c6   : > { %4357 = vrot.lane.b32.xlu0 %v11145_v41, %s7568_s14  ;;  %v4146_v3 = vld [vmem:[#allocation7 + $0xf18] sm:$0xff] }
 0x6c7   : > { %v11304_v48 = vpop.permute.xlu1 %3829  ;;  %v11306_v46 = vpop.permute.xlu0 %3924  ;;  %v4621_v13 = vadd.f32 %v4605_v54, %v4524_v43  ;;  %v4046_v54 = vld [vmem:[#allocation7 + $0xe80] sm:$0xff] }
 0x6c8   : > { %13792 = vst [vmem:[#allocation67_spill] sm:$0xff] %v11304_v48 }
 0x6c9   : > { %4359 = vrot.lane.b32.xlu1 %v11156_v59, %s7568_s14  ;;  %v7293_v56 = vpack.c.bf16 %v4621_v13, %v4613_v58  ;;  %v4200_v58 = vld [vmem:[#allocation7 + $0xfc0] sm:$0xff]  ;;  %v3855_v13 = vld [vmem:[#allocation7 + $0xd98] sm:$0xff] }
 0x6ca   : > { %4454 = vrot.lane.b32.xlu0 %v11145_v41, %s7569_s30 }
 0x6cb   : > { %v11312_v33 = vpop.permute.xlu1 %3926  ;;  %7294 = vmatprep.subr.bf16.mxu0 %v7293_v56  ;;  %v11314_v1 = vpop.permute.xlu0 %4021  ;;  %v13808_v56 = vld [vmem:[#allocation35_spill] sm:$0xff] }
 0x6cc   : > { %13793 = vst [vmem:[#allocation96_spill] sm:$0xff] %v11312_v33  ;;  %13794 = vst [vmem:[#allocation75_spill] sm:$0xff] %v11314_v1  ;;  %v13828_v33 = vld [vmem:[#allocation39_spill] sm:$0xff] }
 0x6cd   : > { %4456 = vrot.lane.b32.xlu1 %v11156_v59, %s7569_s30 }
 0x6ce   : > { %4551 = vrot.lane.b32.xlu0 %v11145_v41, %s7570_s21  ;;  %v13814_v41 = vld [vmem:[#allocation70_spill] sm:$0xff] }
 0x6cf   : > { %v11320_v49 = vpop.permute.xlu1 %4023  ;;  %v11322_v18 = vpop.permute.xlu0 %4118 }
 0x6d0   : > { %13795 = vst [vmem:[#allocation76_spill] sm:$0xff] %v11320_v49  ;;  %13796 = vst [vmem:[#allocation98_spill] sm:$0xff] %v11322_v18  ;;  %v13818_v18 = vld [vmem:[#allocation51_spill] sm:$0xff] }
 0x6d1   : > { %4553 = vrot.lane.b32.xlu1 %v11156_v59, %s7570_s21  ;;  %v13825_v49 = vld [vmem:[#allocation91_spill] sm:$0xff] }
 0x6d2   : > { %5205 = vperm.xlu0 %7434, %v5202_v25   ;;  %v3843_v25 = vsel %vm699_vm1, %v13808_v56, %v10976_v6  ;;  %v13813_v56 = vld [vmem:[#allocation18_spill] sm:$0xff]  ;;  %v4038_v48 = vsel %vm894_vm3, %v10932_v55, %v13825_v49 }
 0x6d3   : > { %v11326_v17 = vpop.permute.xlu1 %4120  ;;  %v11328_v50 = vpop.permute.xlu0 %4264  ;;  %v13816_v6 = vld [vmem:[#allocation46_spill] sm:$0xff] }
 0x6d4   : > { %13797 = vst [vmem:[#allocation87_spill] sm:$0xff] %v11326_v17  ;;  %13798 = vst [vmem:[#allocation88_spill] sm:$0xff] %v11328_v50  ;;  %v13817_v17 = vld [vmem:[#allocation44_spill] sm:$0xff] }
 0x6d5   : > { %2678 = vperm.xlu1 %7435, %v2674_v16  }
 0x6d6   : > { %2683 = vperm.xlu0 %7434, %v2675_v10  }
 0x6d7   : > { %v11330_v61 = vpop.permute.xlu1 %4266  ;;  %v11332_v42 = vpop.permute.xlu0 %4361 }
 0x6d8   : > { %13799 = vst [vmem:[#allocation94_spill] sm:$0xff] %v11330_v61  ;;  %13800 = vst [vmem:[#allocation95_spill] sm:$0xff] %v11332_v42  ;;  %v4208_v42 = vmul.f32 %v4192_v35, %v13814_v41  ;;  %v13815_v61 = vld [vmem:[#allocation25_spill] sm:$0xff]  ;;  %v4054_v35 = vld [vmem:[#allocation7 + $0xec0] sm:$0xff] }
 0x6d9   : > { %v11382_v50 = vmul.f32 %v4200_v58, %v13815_v61  ;;  %v4143_v61 = vld [vmem:[#allocation7 + $0xf00] sm:$0xff]  ;;  %v13821_v58 = vld [vmem:[#allocation78_spill] sm:$0xff] }
 0x6db   : > { %v11334_v45 = vpop.permute.xlu1 %4363  ;;  %v11336_v0 = vpop.permute.xlu0 %4458 }
 0x6dc   : > { %13801 = vst [vmem:[#allocation92_spill] sm:$0xff] %v11334_v45  ;;  %13802 = vst [vmem:[#allocation52_spill] sm:$0xff] %v11336_v0 }
 0x6df   : > { %v11338_v29 = vpop.permute.xlu1 %4460  ;;  %v11340_v47 = vpop.permute.xlu0 %4555 }
 0x6e0   : > { %13803 = vst [vmem:[#allocation89_spill] sm:$0xff] %v11338_v29  ;;  %13804 = vst [vmem:[#allocation80_spill] sm:$0xff] %v11340_v47  ;;  %v13812_v29 = vld [vmem:[#allocation72_spill] sm:$0xff] }
 0x6e1   : > { %v11375_v0 = vmul.f32 %v4195_v12, %v13812_v29  ;;  %v13819_v29 = vld [vmem:[#allocation60_spill] sm:$0xff] }
 0x6e2   : > { %v3940_v12 = vsel %vm796_vm2, %v13819_v29, %v13818_v18 }
 0x6e3   : > { %v11342_v20 = vpop.permute.xlu1 %4557  ;;  %v11344_v36 = vpop.permute.xlu0 %3831 }
 0x6e4   : > { %13805 = vst [vmem:[#allocation57_spill] sm:$0xff] %v11342_v20  ;;  %13806 = vst [vmem:[#allocation16_spill] sm:$0xff] %v11344_v36  ;;  %v3849_v43 = vsel %vm699_vm1, %v11344_v36, %v11006_v7  ;;  %v13811_v20 = vld [vmem:[#allocation24_spill] sm:$0xff]  ;;  %v13827_v36 = vld [vmem:[#allocation82_spill] sm:$0xff] }
 0x6e5   : > { %v3868_v45 = vmul.f32 %v3852_v62, %v3849_v43  ;;  %v3952_v62 = vld [vmem:[#allocation7 + $0xe18] sm:$0xff] }
 0x6e6   : > { %v3960_v43 = vld [vmem:[#allocation7 + $0xe58] sm:$0xff]  ;;  %v3968_v1 = vmul.f32 %v3952_v62, %v3940_v12 }
 0x6e7   : > { %v11346_v30 = vpop.permute.xlu1 %3833  ;;  %v11348_v21 = vpop.permute.xlu0 %3928 }
 0x6e8   : > { %13807 = vst [vmem:[#allocation37_spill] sm:$0xff] %v11346_v30  ;;  %v3946_v31 = vsel %vm796_vm2, %v11348_v21, %v11016_v51  ;;  %v3850_v41 = vsel %vm699_vm1, %v11346_v30, %v11014_v4  ;;  %v13826_v30 = vld [vmem:[#allocation73_spill] sm:$0xff] }
 0x6e9   : > { %v3965_v16 = vmul.f32 %v3949_v34, %v3946_v31  ;;  %v11378_v34 = vmul.f32 %v4203_v40, %v13813_v56  ;;  %v3863_v31 = vld [vmem:[#allocation7 + $0xdd8] sm:$0xff]  ;;  %v3860_v40 = vld [vmem:[#allocation7 + $0xdc0] sm:$0xff] }
 0x6eb   : > { %v11362_v10 = vpop.permute.xlu1 %3930  ;;  %v11364_v51 = vpop.permute.xlu0 %4025  ;;  %v3981_v29 = vadd.f32 %v3965_v16, %v3868_v45  ;;  %v4289_v16 = vld [vmem:[#allocation7 + $0x1000] sm:$0xff] }
 0x6ec   : > { %13809 = vst [vmem:[#allocation64_spill] sm:$0xff] %v11362_v10  ;;  %13810 = vst [vmem:[#allocation69_spill] sm:$0xff] %v11364_v51  ;;  %v3947_v47 = vsel %vm796_vm2, %v11362_v10, %v13811_v20  ;;  %v4043_v7 = vsel %vm894_vm3, %v11364_v51, %v11034_v11  ;;  %v3871_v20 = vmul.f32 %v3855_v13, %v3843_v25  ;;  %v4049_v13 = vld [vmem:[#allocation7 + $0xe98] sm:$0xff]  ;;  %v13822_v25 = vld [vmem:[#allocation55_spill] sm:$0xff] }
 0x6ed   : > { %v4062_v59 = vmul.f32 %v4046_v54, %v4043_v7  ;;  %v3844_v11 = vsel %vm699_vm1, %v13817_v17, %v13816_v6  ;;  %v13820_v54 = vld [vmem:[#allocation93_spill] sm:$0xff]  ;;  %v3973_v6 = vmul.f32 %v3957_v38, %v3947_v47  ;;  %v4057_v47 = vld [vmem:[#allocation7 + $0xed8] sm:$0xff] }
 0x6ee   : > { %v3941_v17 = vsel %vm796_vm2, %v13821_v58, %v13820_v54  ;;  %v13823_v7 = vld [vmem:[#allocation41_spill] sm:$0xff]  ;;  %v4284_v58 = vsel %vm1139_vm5, %v13826_v30, %v11195_v39  ;;  %v3879_v54 = vmul.f32 %v3863_v31, %v3844_v11  ;;  %v4151_v30 = vld [vmem:[#allocation7 + $0xf40] sm:$0xff]  ;;  %v13829_v10 = vld [vmem:[#allocation30_spill] sm:$0xff]  ;;  %v4073_v11 = vmul.f32 %v4057_v47, %v4038_v48 }
 0x6ef   : > { %v4037_v56 = vsel %vm894_vm3, %v13823_v7, %v13822_v25  ;;  %v11404_v18 = vpop.permute.xlu1 %4027  ;;  %v11406_v4 = vpop.permute.xlu0 %4122  ;;  %v3876_v7 = vmul.f32 %v3860_v40, %v3850_v41  ;;  %v4078_v25 = vadd.f32 %v4062_v59, %v3981_v29  ;;  %v3976_v51 = vmul.f32 %v3960_v43, %v3941_v17 }
 0x6f0   : > { %13824 = vst [vmem:[#allocation47_spill] sm:$0xff] %v11404_v18  ;;  %v4044_v45 = vsel %vm894_vm3, %v11404_v18, %v11044_v23  ;;  %v4140_v38 = vsel %vm992_vm4, %v11406_v4, %v11046_v63  ;;  %v4065_v39 = vmul.f32 %v4049_v13, %v4037_v56  ;;  %v4134_v23 = vsel %vm992_vm4, %v13828_v33, %v13827_v36  ;;  %v4154_v18 = vld [vmem:[#allocation7 + $0xf58] sm:$0xff] }
 0x6f1   : > { %v4070_v55 = vmul.f32 %v4054_v35, %v4044_v45  ;;  %v4159_v49 = vmul.f32 %v4143_v61, %v4140_v38  ;;  %v4135_v63 = vsel %vm992_vm4, %v10942_v37, %v13829_v10  ;;  %v3989_v59 = vadd.f32 %v3973_v6, %v3876_v7  ;;  %v4386_v35 = vld [vmem:[#allocation7 + $0x1080] sm:$0xff]  ;;  %v13830_v61 = vld [vmem:[#allocation100_spill] sm:$0xff]  ;;  %v13831_v6 = vld [vmem:[#allocation77_spill] sm:$0xff] }
 0x6f2   : > { %v4305_v12 = vmul.f32 %v4289_v16, %v4284_v58  ;;  %v4381_v33 = vsel %vm1237_vm6, %v13830_v61, %v11219_v5  ;;  %v4297_v37 = vld [vmem:[#allocation7 + $0x1040] sm:$0xff]  ;;  %v3984_v13 = vadd.f32 %v3968_v1, %v3871_v20  ;;  %v4162_v56 = vmul.f32 %v4146_v3, %v4134_v23  ;;  %v13832_v45 = vld [vmem:[#allocation86_spill] sm:$0xff] }
 0x6f3   : > { %v4175_v40 = vadd.f32 %v4159_v49, %v4078_v25  ;;  %v11432_v41 = vpop.permute.xlu1 %4124  ;;  %v11434_v31 = vpop.permute.xlu0 %4256  ;;  %v4285_v49 = vsel %vm1139_vm5, %v13831_v6, %v11217_v60  ;;  %v4086_v43 = vadd.f32 %v4070_v55, %v3989_v59  ;;  %v3992_v25 = vadd.f32 %v3976_v51, %v3879_v54  ;;  %v4394_v5 = vld [vmem:[#allocation7 + $0x10c0] sm:$0xff]  ;;  %v4292_v54 = vld [vmem:[#allocation7 + $0x1018] sm:$0xff] }
 0x6f4   : > { %v4141_v62 = vsel %vm992_vm4, %v11432_v41, %v11054_v32  ;;  %v4170_v29 = vmul.f32 %v4154_v18, %v4135_v63  ;;  %v4402_v58 = vmul.f32 %v4386_v35, %v4381_v33  ;;  %v4382_v32 = vsel %vm1237_vm6, %v13832_v45, %v11246_v26  ;;  %v4483_v1 = vld [vmem:[#allocation7 + $0x1100] sm:$0xff]  ;;  %v13834_v26 = vld [vmem:[#allocation74_spill] sm:$0xff] }
 0x6f5   : > { %v4224_v48 = vadd.f32 %v4208_v42, %v4175_v40  ;;  %v4167_v17 = vmul.f32 %v4151_v30, %v4141_v62  ;;  %v4081_v60 = vadd.f32 %v4065_v39, %v3984_v13  ;;  %v4089_v42 = vadd.f32 %v4073_v11, %v3992_v25  ;;  %v13833_v3 = vld [vmem:[#allocation19_spill] sm:$0xff]  ;;  %v4300_v23 = vld [vmem:[#allocation7 + $0x1058] sm:$0xff] }
 0x6f6   : > { %v4313_v30 = vmul.f32 %v4297_v37, %v4285_v49  ;;  %v4478_v18 = vsel %vm1335_vm7, %v13833_v3, %v11248_v52  ;;  %v4278_v55 = vsel %vm1139_vm5, %v13834_v26, %v11434_v31  ;;  %v4410_v40 = vmul.f32 %v4394_v5, %v4382_v32  ;;  %v4491_v11 = vld [vmem:[#allocation7 + $0x1140] sm:$0xff]  ;;  %v13835_v52 = vld [vmem:[#allocation22_spill] sm:$0xff] }
 0x6f7   : > { %v4321_v38 = vadd.f32 %v4305_v12, %v4224_v48  ;;  %v4183_v47 = vadd.f32 %v4167_v17, %v4086_v43  ;;  %v11452_v16 = vpop.permute.xlu1 %4258  ;;  %v11454_v7 = vpop.permute.xlu0 %4353  ;;  %v4178_v63 = vadd.f32 %v4162_v56, %v4081_v60  ;;  %v4186_v59 = vadd.f32 %v4170_v29, %v4089_v42  ;;  %v4580_v35 = vld [vmem:[#allocation7 + $0x1180] sm:$0xff]  ;;  %v13836_v33 = vld [vmem:[#allocation62_spill] sm:$0xff] }
 0x6f8   : > { %v4279_v39 = vsel %vm1139_vm5, %v11062_v57, %v11452_v16  ;;  %v4499_v12 = vmul.f32 %v4483_v1, %v4478_v18  ;;  %v4575_v62 = vsel %vm1433_vm8, %v13836_v33, %v11272_v27  ;;  %v13837_v37 = vld [vmem:[#allocation43_spill] sm:$0xff]  ;;  %v4308_v13 = vmul.f32 %v4292_v54, %v4278_v55  ;;  %v4389_v25 = vld [vmem:[#allocation7 + $0x1098] sm:$0xff] }
 0x6f9   : > { %v4418_v51 = vadd.f32 %v4402_v58, %v4321_v38  ;;  %v4232_v20 = vadd.f32 %v11382_v50, %v4183_v47  ;;  %v4479_v50 = vsel %vm1335_vm7, %v13835_v52, %v11270_v28  ;;  %v4576_v57 = vsel %vm1433_vm8, %v13837_v37, %v11290_v19  ;;  %v4588_v17 = vld [vmem:[#allocation7 + $0x11c0] sm:$0xff]  ;;  %v4397_v27 = vld [vmem:[#allocation7 + $0x10d8] sm:$0xff] }
 0x6fa   : > { %v4316_v28 = vmul.f32 %v4300_v23, %v4279_v39  ;;  %v4375_v56 = vsel %vm1237_vm6, %v11064_v53, %v11454_v7  ;;  %v4507_v29 = vmul.f32 %v4491_v11, %v4479_v50  ;;  %v4596_v32 = vmul.f32 %v4580_v35, %v4575_v62  ;;  %v4486_v60 = vld [vmem:[#allocation7 + $0x1118] sm:$0xff] }
 0x6fb   : > { %v4329_v49 = vadd.f32 %v4313_v30, %v4232_v20  ;;  %v11481_v43 = vpop.permute.xlu1 %4355  ;;  %v11483_v48 = vpop.permute.xlu0 %4450  ;;  %v4515_v5 = vadd.f32 %v4499_v12, %v4418_v51  ;;  %v4227_v38 = vadd.f32 %v11375_v0, %v4178_v63  ;;  %v4235_v47 = vadd.f32 %v11378_v34, %v4186_v59  ;;  %v4494_v42 = vld [vmem:[#allocation7 + $0x1158] sm:$0xff] }
 0x6fc   : > { %13838 = vst [vmem:[#allocation61_spill] sm:$0xff] %v11481_v43  ;;  %13839 = vst [vmem:[#allocation63_spill] sm:$0xff] %v11483_v48  ;;  %v4376_v19 = vsel %vm1237_vm6, %v11070_v2, %v11481_v43  ;;  %v4472_v53 = vsel %vm1335_vm7, %v11080_v22, %v11483_v48  ;;  %v4604_v30 = vmul.f32 %v4588_v17, %v4576_v57  ;;  %v4583_v34 = vld [vmem:[#allocation7 + $0x1198] sm:$0xff]  ;;  %v13868_v48 = vld [vmem:[#allocation85_spill] sm:$0xff] }
 0x6fd   : > { %v4426_v58 = vadd.f32 %v4410_v40, %v4329_v49  ;;  %v4405_v1 = vmul.f32 %v4389_v25, %v4375_v56  ;;  %v4413_v18 = vmul.f32 %v4397_v27, %v4376_v19  ;;  %v4324_v54 = vadd.f32 %v4308_v13, %v4227_v38  ;;  %v4591_v59 = vld [vmem:[#allocation7 + $0x11d8] sm:$0xff]  ;;  %v11523_v56 = vld [vmem:[#allocation3 + $0x40] sm:$0xff] }
 0x6fe   : > { %v4332_v26 = vadd.f32 %v4316_v28, %v4235_v47  ;;  %v4502_v55 = vmul.f32 %v4486_v60, %v4472_v53  ;;  %v4612_v39 = vadd.f32 %v4596_v32, %v4515_v5  ;;  %13843 = vst [vmem:[#allocation49_spill] sm:$0xff] %v11523_v56  ;;  %v13844_v19 = vmov 0.0   ;;  %v3964_v38 = vld [vmem:[#allocation7 + $0xe78] sm:$0xff]  ;;  %v13846_v47 = vld [vmem:[#allocation64_spill] sm:$0xff] }
 0x6ff   : > { %v11499_v20 = vpop.permute.xlu1 %4452  ;;  %v11501_v2 = vpop.permute.xlu0 %4547  ;;  %v4523_v51 = vadd.f32 %v4507_v29, %v4426_v58  ;;  %v4421_v40 = vadd.f32 %v4405_v1, %v4324_v54  ;;  %v3956_v58 = vld [vmem:[#allocation7 + $0xe38] sm:$0xff]  ;;  %v3932_v5 = vsel %vm796_vm2, %v11306_v46, %v11348_v21  ;;  %v13845_v32 = vpack.c.bf16 %v11288_v24, %v11286_v9  ;;  %v13847_v60 = vld [vmem:[#allocation96_spill] sm:$0xff]  ;;  %v13850_v54 = vld [vmem:[#allocation69_spill] sm:$0xff] }
 0x700   : > { %13840 = vst [vmem:[#allocation66_spill] sm:$0xff] %v11499_v20  ;;  %13841 = vst [vmem:[#allocation13_spill] sm:$0xff] %v11501_v2  ;;  %v4473_v0 = vsel %vm1335_vm7, %v11086_v15, %v11499_v20  ;;  %v4569_v22 = vsel %vm1433_vm8, %v11096_v44, %v11501_v2  ;;  %v4429_v11 = vadd.f32 %v4413_v18, %v4332_v26  ;;  %v13849_v1 = vld [vmem:[#allocation42_spill] sm:$0xff]  ;;  %v13851_v26 = vld [vmem:[#allocation75_spill] sm:$0xff] }
 0x701   : > { %v4510_v23 = vmul.f32 %v4494_v42, %v4473_v0  ;;  %v4620_v63 = vadd.f32 %v4604_v30, %v4523_v51  ;;  %v4599_v50 = vmul.f32 %v4583_v34, %v4569_v22  ;;  %v4518_v57 = vadd.f32 %v4502_v55, %v4421_v40  ;;  %v3859_v42 = vld [vmem:[#allocation7 + $0xdb8] sm:$0xff]  ;;  %v13848_v30 = vld [vmem:[#allocation16_spill] sm:$0xff]  ;;  %v13852_v24 = vld [vmem:[#allocation37_spill] sm:$0xff] }
 0x702   : > { %v3933_v53 = vsel %vm796_vm2, %v13847_v60, %v13846_v47  ;;  %v3835_v18 = vsel %vm699_vm1, %v13849_v1, %v13848_v30  ;;  %v4053_v51 = vld [vmem:[#allocation7 + $0xeb8] sm:$0xff]  ;;  %v4029_v21 = vsel %vm894_vm3, %v13851_v26, %v13850_v54  ;;  %v13853_v0 = vld [vmem:[#allocation67_spill] sm:$0xff]  ;;  %v3972_v22 = vmul.f32 %v3956_v58, %v3932_v5 }
 0x703   : > { %v11511_v12 = vpop.permute.xlu1 %4549  ;;  %v11513_v35 = vpop.permute.xlu0 %3819  ;;  %v7295_v62 = vpack.c.bf16 %v4620_v63, %v4612_v39  ;;  %v4526_v44 = vadd.f32 %v4510_v23, %v4429_v11  ;;  %v4615_v28 = vadd.f32 %v4599_v50, %v4518_v57  ;;  %v3867_v9 = vld [vmem:[#allocation7 + $0xdf8] sm:$0xff]  ;;  %v3836_v34 = vsel %vm699_vm1, %v13853_v0, %v13852_v24  ;;  %v13854_v23 = vld [vmem:[#allocation47_spill] sm:$0xff]  ;;  %v13855_v39 = vld [vmem:[#allocation76_spill] sm:$0xff] }
 0x704   : > { %13842 = vst [vmem:[#allocation36_spill] sm:$0xff] %v11511_v12  ;;  %v4570_v15 = vsel %vm1433_vm8, %v11102_v8, %v11511_v12  ;;  %v4061_v55 = vld [vmem:[#allocation7 + $0xef8] sm:$0xff]  ;;  %v4030_v63 = vsel %vm894_vm3, %v13855_v39, %v13854_v23  ;;  %v11565_v11 = vld [vmem:[#allocation3 + $0x48] sm:$0xff]  ;;  %v3980_v50 = vmul.f32 %v3964_v38, %v3933_v53  ;;  %v3883_v58 = vmul.f32 %v3867_v9, %v3836_v34  ;;  %v3953_v34 = vld [vmem:[#allocation7 + $0xe20] sm:$0xff] }
 0x705   : > { %v4607_v49 = vmul.f32 %v4591_v59, %v4570_v15  ;;  %7296 = vmatpush1.bf16.msra.mxu0 %v7295_v62  ;;  %13856 = vst [vmem:[#allocation32_spill] sm:$0xff] %v11565_v11  ;;  %v4150_v62 = vld [vmem:[#allocation7 + $0xf38] sm:$0xff]  ;;  %v4077_v5 = vmul.f32 %v4061_v55, %v4030_v63  ;;  %v13860_v23 = vld [vmem:[#allocation83_spill] sm:$0xff] }
 0x706   : > { %v13857_v15 = vld [vmem:[#allocation98_spill] sm:$0xff]  ;;  %v3996_v53 = vadd.f32 %v3980_v50, %v3883_v58  ;;  %v3856_v50 = vld [vmem:[#allocation7 + $0xda0] sm:$0xff] }
 0x707   : > { %v11519_v17 = vpop.permute.xlu1 %3821  ;;  %v11521_v13 = vpop.permute.xlu0 %3916  ;;  %v4623_v25 = vadd.f32 %v4607_v49, %v4526_v44  ;;  %v4126_v57 = vsel %vm992_vm4, %v13857_v15, %v11406_v4  ;;  %v3875_v44 = vmul.f32 %v3859_v42, %v3835_v18  ;;  %v4069_v49 = vmul.f32 %v4053_v51, %v4029_v21  ;;  %v4199_v51 = vld [vmem:[#allocation7 + $0xfb8] sm:$0xff]  ;;  %v3864_v58 = vld [vmem:[#allocation7 + $0xde0] sm:$0xff] }
 0x708   : > { %7202 = vmatmul.mubr.msk.f32.vlgmr.msra.gmra.mrb[28].mxu0 %vm334_vm0, %v11523_v56  ;;  %v4166_v38 = vmul.f32 %v4150_v62, %v4126_v57  ;;  %v4093_v18 = vadd.f32 %v4077_v5, %v3996_v53  ;;  %v4207_v21 = vld [vmem:[#allocation7 + $0xff8] sm:$0xff]  ;;  %v4215_v63 = vmul.f32 %v4199_v51, %v13860_v23  ;;  %v13864_v53 = vld [vmem:[#allocation93_spill] sm:$0xff]  ;;  %v4050_v23 = vld [vmem:[#allocation7 + $0xea0] sm:$0xff] }
 0x709   : > { %v7297_v27 = vpack.c.bf16 %v4623_v25, %v4615_v28  ;;  %4720 = vmatprep.mubr.f32.mxu0 %v13844_v19  ;;  %v4158_v28 = vld [vmem:[#allocation7 + $0xf78] sm:$0xff]  ;;  %v13858_v25 = vld [vmem:[#allocation87_spill] sm:$0xff]  ;;  %v13865_v51 = vld [vmem:[#allocation73_spill] sm:$0xff] }
 0x70a   : > { %v13861_v62 = vld [vmem:[#allocation38_spill] sm:$0xff]  ;;  %v4147_v12 = vld [vmem:[#allocation7 + $0xf20] sm:$0xff] }
 0x70b   : > { %v11528_v29 = vpop.permute.xlu1 %3918  ;;  %7298 = vmatprep.subr.bf16.mxu1 %v7297_v27  ;;  %v11530_v8 = vpop.permute.xlu0 %4013  ;;  %v4127_v27 = vsel %vm992_vm4, %v13858_v25, %v11432_v41  ;;  %v3841_v57 = vsel %vm699_vm1, %v13861_v62, %v11513_v35  ;;  %v13863_v5 = vld [vmem:[#allocation46_spill] sm:$0xff]  ;;  %v13866_v62 = vld [vmem:[#allocation55_spill] sm:$0xff] }
 0x70c   : > { %7300 = vmatpush1.bf16.msra.mxu1 %v13845_v32  ;;  %v3988_v32 = vadd.f32 %v3972_v22, %v3875_v44  ;;  %v4174_v30 = vmul.f32 %v4158_v28, %v4127_v27  ;;  %v13859_v22 = vld [vmem:[#allocation51_spill] sm:$0xff]  ;;  %v4304_v28 = vld [vmem:[#allocation7 + $0x1078] sm:$0xff] }
 0x70d   : > { %v3938_v55 = vsel %vm796_vm2, %v13859_v22, %v11521_v13  ;;  %v13862_v44 = vld [vmem:[#allocation59_spill] sm:$0xff] }
 0x70e   : > { %v4085_v42 = vadd.f32 %v4069_v49, %v3988_v32  ;;  %v4190_v9 = vadd.f32 %v4174_v30, %v4093_v18  ;;  %v4223_v49 = vmul.f32 %v4207_v21, %v13862_v44  ;;  %v3842_v32 = vsel %vm699_vm1, %v13863_v5, %v11519_v17  ;;  %v4296_v18 = vld [vmem:[#allocation7 + $0x1038] sm:$0xff]  ;;  %v4155_v20 = vld [vmem:[#allocation7 + $0xf60] sm:$0xff] }
 0x70f   : > { %v11559_v59 = vpop.permute.xlu1 %4015  ;;  %v11561_v40 = vpop.permute.xlu0 %4110  ;;  %7204 = vmatmul.mubr.msk.f32.vlgmr.msra.gmra.mrb[28].mxu1 %vm334_vm0, %v11523_v56  ;;  %v3939_v30 = vsel %vm796_vm2, %v13864_v53, %v11528_v29  ;;  %v3969_v22 = vmul.f32 %v3953_v34, %v3938_v55  ;;  %v4035_v44 = vsel %vm894_vm3, %v13866_v62, %v11530_v8  ;;  %v3872_v53 = vmul.f32 %v3856_v50, %v3841_v57  ;;  %v4393_v56 = vld [vmem:[#allocation7 + $0x10b8] sm:$0xff] }
 0x710   : > { %4797 = vmatprep.mubr.f32.mxu1 %v13844_v19  ;;  %7203 = vmatmul.mubr.msk.f32.gmra.mrb[28].mxu0 %vm334_vm0, %v11565_v11  ;;  %v4182_v54 = vadd.f32 %v4166_v38, %v4085_v42  ;;  %v3961_v38 = vld [vmem:[#allocation7 + $0xe60] sm:$0xff]  ;;  %v4239_v5 = vadd.f32 %v4223_v49, %v4190_v9  ;;  %v3880_v49 = vmul.f32 %v3864_v58, %v3842_v32  ;;  %v4498_v57 = vld [vmem:[#allocation7 + $0x1178] sm:$0xff] }
 0x711   : > { %4868 = vmatprep.mubr.f32.mxu0 %v13844_v19  ;;  %v3977_v62 = vmul.f32 %v3961_v38, %v3939_v30  ;;  %v4066_v2 = vmul.f32 %v4050_v23, %v4035_v44  ;;  %v3985_v32 = vadd.f32 %v3969_v22, %v3872_v53  ;;  %v4587_v44 = vld [vmem:[#allocation7 + $0x11b8] sm:$0xff] }
 0x712   : > { %v4231_v42 = vadd.f32 %v4215_v63, %v4182_v54 }
 0x713   : > { %v11579_v4 = vpop.permute.xlu1 %4112  ;;  %v11581_v47 = vpop.permute.xlu0 %4268  ;;  %v3993_v22 = vadd.f32 %v3977_v62, %v3880_v49  ;;  %v4197_v49 = vld [vmem:[#allocation7 + $0xfa8] sm:$0xff] }
 0x714   : > { %v4286_v21 = vsel %vm1139_vm5, %v11581_v47, %v13865_v51  ;;  %v4058_v51 = vld [vmem:[#allocation7 + $0xee0] sm:$0xff] }
 0x715   : > { %v4312_v50 = vmul.f32 %v4296_v18, %v4286_v21 }
 0x717   : > { %v11583_v24 = vpop.permute.xlu1 %4270  ;;  %v11585_v41 = vpop.permute.xlu0 %4365  ;;  %7205 = vmatmul.mubr.msk.f32.gmra.mrb[28].mxu1 %vm334_vm0, %v11565_v11  ;;  %v4401_v11 = vld [vmem:[#allocation7 + $0x10f8] sm:$0xff] }
 0x718   : > { %4945 = vmatprep.mubr.f32.mxu1 %v13844_v19  ;;  %v4287_v27 = vsel %vm1139_vm5, %v11583_v24, %v13831_v6  ;;  %v13867_v19 = vld [vmem:[#allocation91_spill] sm:$0xff]  ;;  %v4383_v9 = vsel %vm1237_vm6, %v11585_v41, %v13830_v61 }
 0x719   : > { %v4036_v34 = vsel %vm894_vm3, %v13867_v19, %v11559_v59  ;;  %v4320_v55 = vmul.f32 %v4304_v28, %v4287_v27  ;;  %v4133_v19 = vsel %vm992_vm4, %v13829_v10, %v11579_v4  ;;  %v4490_v27 = vld [vmem:[#allocation7 + $0x1138] sm:$0xff]  ;;  %v4409_v38 = vmul.f32 %v4393_v56, %v4383_v9  ;;  %v4198_v10 = vld [vmem:[#allocation7 + $0xfb0] sm:$0xff] }
 0x71a   : > { %v4328_v56 = vadd.f32 %v4312_v50, %v4231_v42  ;;  %v11663_v43 = vmul.f32 %v4198_v10, %v13868_v48  ;;  %v4196_v42 = vld [vmem:[#allocation7 + $0xfa0] sm:$0xff]  ;;  %v13869_v50 = vld [vmem:[#allocation88_spill] sm:$0xff] }
 0x71b   : > { %v11616_v6 = vpop.permute.xlu1 %4367  ;;  %v11626_v63 = vpop.permute.xlu0 %4462  ;;  %v4336_v21 = vadd.f32 %v4320_v55, %v4239_v5  ;;  %v4272_v48 = vsel %vm1139_vm5, %v13869_v50, %v11581_v47 }
 0x71c   : > { %v4384_v54 = vsel %vm1237_vm6, %v11616_v6, %v13832_v45  ;;  %v4132_v45 = vsel %vm992_vm4, %v13827_v36, %v11561_v40  ;;  %v4480_v61 = vsel %vm1335_vm7, %v11626_v63, %v13833_v3  ;;  %v4074_v36 = vmul.f32 %v4058_v51, %v4036_v34  ;;  %v4595_v51 = vld [vmem:[#allocation7 + $0x11f8] sm:$0xff] }
 0x71d   : > { %v4417_v28 = vmul.f32 %v4401_v11, %v4384_v54  ;;  %v4163_v11 = vmul.f32 %v4147_v12, %v4132_v45  ;;  %v4171_v54 = vmul.f32 %v4155_v20, %v4133_v19  ;;  %v4506_v53 = vmul.f32 %v4490_v27, %v4480_v61  ;;  %v4206_v12 = vld [vmem:[#allocation7 + $0xff0] sm:$0xff]  ;;  %v4205_v27 = vld [vmem:[#allocation7 + $0xfe8] sm:$0xff] }
 0x71e   : > { %v4082_v34 = vadd.f32 %v4066_v2, %v3985_v32  ;;  %v4090_v5 = vadd.f32 %v4074_v36, %v3993_v22  ;;  %v4425_v55 = vadd.f32 %v4409_v38, %v4328_v56  ;;  %v4295_v2 = vld [vmem:[#allocation7 + $0x1030] sm:$0xff]  ;;  %v13870_v36 = vld [vmem:[#allocation94_spill] sm:$0xff] }
 0x71f   : > { %v11648_v58 = vpop.permute.xlu1 %4464  ;;  %v11654_v18 = vpop.permute.xlu0 %4559  ;;  %v4433_v9 = vadd.f32 %v4417_v28, %v4336_v21  ;;  %v4204_v28 = vld [vmem:[#allocation7 + $0xfe0] sm:$0xff]  ;;  %v4303_v32 = vld [vmem:[#allocation7 + $0x1070] sm:$0xff] }
 0x720   : > { %v4481_v30 = vsel %vm1335_vm7, %v11648_v58, %v13835_v52  ;;  %v4577_v3 = vsel %vm1433_vm8, %v11654_v18, %v13836_v33  ;;  %v4179_v62 = vadd.f32 %v4163_v11, %v4082_v34  ;;  %v4187_v61 = vadd.f32 %v4171_v54, %v4090_v5  ;;  %v4392_v11 = vld [vmem:[#allocation7 + $0x10b0] sm:$0xff]  ;;  %v13872_v21 = vld [vmem:[#allocation95_spill] sm:$0xff] }
 0x721   : > { %v4514_v23 = vmul.f32 %v4498_v57, %v4481_v30  ;;  %v4603_v45 = vmul.f32 %v4587_v44, %v4577_v3  ;;  %v4522_v38 = vadd.f32 %v4506_v53, %v4425_v55  ;;  %v13871_v30 = vld [vmem:[#allocation99_spill] sm:$0xff]  ;;  %v4369_v47 = vsel %vm1237_vm6, %v13872_v21, %v11585_v41  ;;  %v13874_v54 = vld [vmem:[#allocation101_spill] sm:$0xff] }
 0x722   : > { %v11678_v10 = vmul.f32 %v4206_v12, %v13871_v30  ;;  %v13873_v3 = vld [vmem:[#allocation27_spill] sm:$0xff]  ;;  %v11686_v56 = vmul.f32 %v4197_v49, %v13874_v54  ;;  %v13876_v5 = vld [vmem:[#allocation97_spill] sm:$0xff] }
 0x723   : > { %v11660_v52 = vpop.permute.xlu1 %4561  ;;  %v3824_v20 = vpop.permute.xlu0 %3823  ;;  %v4530_v57 = vadd.f32 %v4514_v23, %v4433_v9  ;;  %v4212_v22 = vmul.f32 %v4196_v42, %v13873_v3  ;;  %v4619_v34 = vadd.f32 %v4603_v45, %v4522_v38  ;;  %v13875_v9 = vld [vmem:[#allocation54_spill] sm:$0xff]  ;;  %v11692_v55 = vmul.f32 %v4205_v27, %v13876_v5  ;;  %v3955_v41 = vld [vmem:[#allocation7 + $0xe30] sm:$0xff]  ;;  %v3857_v45 = vld [vmem:[#allocation7 + $0xda8] sm:$0xff] }
 0x724   : > { %v4578_v33 = vsel %vm1433_vm8, %v11660_v52, %v13837_v37  ;;  %v4273_v37 = vsel %vm1139_vm5, %v13870_v36, %v11583_v24  ;;  %v3954_v24 = vld [vmem:[#allocation7 + $0xe28] sm:$0xff]  ;;  %v4220_v12 = vmul.f32 %v4204_v28, %v13875_v9  ;;  %v4060_v5 = vld [vmem:[#allocation7 + $0xef0] sm:$0xff] }
 0x725   : > { %v4611_v19 = vmul.f32 %v4595_v51, %v4578_v33  ;;  %v11688_v51 = vmul.f32 %v4295_v2, %v4272_v48  ;;  %v11694_v33 = vmul.f32 %v4303_v32, %v4273_v37  ;;  %v11702_v2 = vadd.f32 %v4212_v22, %v4179_v62  ;;  %v3962_v28 = vld [vmem:[#allocation7 + $0xe68] sm:$0xff]  ;;  %v3963_v22 = vld [vmem:[#allocation7 + $0xe70] sm:$0xff] }
 0x726   : > { %v11704_v48 = vmul.f32 %v4392_v11, %v4369_v47  ;;  %v11709_v32 = vadd.f32 %v4220_v12, %v4187_v61  ;;  %v3865_v62 = vld [vmem:[#allocation7 + $0xde8] sm:$0xff]  ;;  %v4052_v47 = vld [vmem:[#allocation7 + $0xeb0] sm:$0xff] }
 0x727   : > { %v3826_v23 = vpop.permute.xlu1 %3825  ;;  %v4627_v44 = vadd.f32 %v4611_v19, %v4530_v57  ;;  %v3858_v57 = vld [vmem:[#allocation7 + $0xdb0] sm:$0xff]  ;;  %v3839_v19 = vsel %vm699_vm1, %v11513_v35, %v3824_v20  ;;  %v4051_v11 = vld [vmem:[#allocation7 + $0xea8] sm:$0xff] }
 0x728   : > { %v3921_v53 = vpop.permute.xlu0 %3920  ;;  %v3840_v38 = vsel %vm699_vm1, %v11519_v17, %v3826_v23  ;;  %v4400_v61 = vld [vmem:[#allocation7 + $0x10f0] sm:$0xff]  ;;  %v3838_v3 = vsel %vm699_vm1, %v3826_v23, %v13853_v0  ;;  %v3873_v54 = vmul.f32 %v3857_v45, %v3839_v19  ;;  %v4059_v12 = vld [vmem:[#allocation7 + $0xee8] sm:$0xff] }
 0x729   : > { %v3934_v42 = vsel %vm796_vm2, %v3921_v53, %v11306_v46  ;;  %v3936_v49 = vsel %vm796_vm2, %v11521_v13, %v3921_v53  ;;  %v7305_v27 = vpack.c.bf16 %v4627_v44, %v4619_v34  ;;  %v13877_v46 = vld [vmem:[#allocation92_spill] sm:$0xff]  ;;  %v3837_v13 = vsel %vm699_vm1, %v3824_v20, %v13849_v1  ;;  %v3866_v44 = vld [vmem:[#allocation7 + $0xdf0] sm:$0xff] }
 0x72a   : > { %v4370_v37 = vsel %vm1237_vm6, %v13877_v46, %v11616_v6  ;;  %v3970_v30 = vmul.f32 %v3954_v24, %v3936_v49  ;;  %v3971_v6 = vmul.f32 %v3955_v41, %v3934_v42  ;;  %v3874_v23 = vmul.f32 %v3858_v57, %v3837_v13  ;;  %v4148_v19 = vld [vmem:[#allocation7 + $0xf28] sm:$0xff] }
 0x72b   : > { %v3923_v35 = vpop.permute.xlu1 %3922  ;;  %7306 = vmatprep.subr.bf16.mxu1 %v7305_v27  ;;  %v3881_v34 = vmul.f32 %v3865_v62, %v3840_v38  ;;  %v11736_v41 = vmul.f32 %v4400_v61, %v4370_v37 }
 0x72c   : > { %v3935_v1 = vsel %vm796_vm2, %v3923_v35, %v13847_v60  ;;  %v3937_v17 = vsel %vm796_vm2, %v11528_v29, %v3923_v35  ;;  %v4018_v20 = vpop.permute.xlu0 %4017  ;;  %v3882_v29 = vmul.f32 %v3866_v44, %v3838_v3  ;;  %v3986_v42 = vadd.f32 %v3970_v30, %v3873_v54  ;;  %v4157_v44 = vld [vmem:[#allocation7 + $0xf70] sm:$0xff] }
 0x72d   : > { %v3978_v24 = vmul.f32 %v3962_v28, %v3937_v17  ;;  %v4031_v53 = vsel %vm894_vm3, %v4018_v20, %v13851_v26  ;;  %v4033_v0 = vsel %vm894_vm3, %v11530_v8, %v4018_v20  ;;  %v3979_v49 = vmul.f32 %v3963_v22, %v3935_v1  ;;  %v4149_v28 = vld [vmem:[#allocation7 + $0xf30] sm:$0xff] }
 0x72e   : > { %v4067_v9 = vmul.f32 %v4051_v11, %v4033_v0  ;;  %v4068_v60 = vmul.f32 %v4052_v47, %v4031_v53  ;;  %v3987_v27 = vadd.f32 %v3971_v6, %v3874_v23  ;;  %v4489_v3 = vld [vmem:[#allocation7 + $0x1130] sm:$0xff] }
 0x72f   : > { %v4020_v45 = vpop.permute.xlu1 %4019  ;;  %v3994_v26 = vadd.f32 %v3978_v24, %v3881_v34  ;;  %v4497_v22 = vld [vmem:[#allocation7 + $0x1170] sm:$0xff]  ;;  %v3995_v17 = vadd.f32 %v3979_v49, %v3882_v29 }
 0x730   : > { %v4032_v8 = vsel %vm894_vm3, %v4020_v45, %v13855_v39  ;;  %v4034_v57 = vsel %vm894_vm3, %v11559_v59, %v4020_v45  ;;  %v4115_v13 = vpop.permute.xlu0 %4114  ;;  %v4083_v35 = vadd.f32 %v4067_v9, %v3986_v42  ;;  %v4084_v11 = vadd.f32 %v4068_v60, %v3987_v27  ;;  %v4156_v39 = vld [vmem:[#allocation7 + $0xf68] sm:$0xff]  ;;  %v13879_v1 = vld [vmem:[#allocation89_spill] sm:$0xff]  ;;  %v4293_v60 = vld [vmem:[#allocation7 + $0x1020] sm:$0xff] }
 0x731   : > { %v4075_v62 = vmul.f32 %v4059_v12, %v4034_v57  ;;  %v4076_v37 = vmul.f32 %v4060_v5, %v4032_v8  ;;  %v4128_v38 = vsel %vm992_vm4, %v4115_v13, %v13857_v15  ;;  %v4130_v30 = vsel %vm992_vm4, %v11561_v40, %v4115_v13  ;;  %v13878_v59 = vld [vmem:[#allocation52_spill] sm:$0xff]  ;;  %v13881_v45 = vld [vmem:[#allocation57_spill] sm:$0xff] }
 0x732   : > { %v4164_v47 = vmul.f32 %v4148_v19, %v4130_v30  ;;  %v4165_v61 = vmul.f32 %v4149_v28, %v4128_v38  ;;  %v4466_v6 = vsel %vm1335_vm7, %v13878_v59, %v11626_v63  ;;  %v4467_v15 = vsel %vm1335_vm7, %v13879_v1, %v11648_v58  ;;  %v4294_v42 = vld [vmem:[#allocation7 + $0x1028] sm:$0xff]  ;;  %v4594_v8 = vld [vmem:[#allocation7 + $0x11f0] sm:$0xff] }
 0x733   : > { %v4091_v40 = vadd.f32 %v4075_v62, %v3994_v26  ;;  %v4117_v20 = vpop.permute.xlu1 %4116  ;;  %v4092_v23 = vadd.f32 %v4076_v37, %v3995_v17  ;;  %v4505_v12 = vmul.f32 %v4489_v3, %v4466_v6  ;;  %v4513_v5 = vmul.f32 %v4497_v22, %v4467_v15  ;;  %v4302_v27 = vld [vmem:[#allocation7 + $0x1068] sm:$0xff]  ;;  %v4301_v62 = vld [vmem:[#allocation7 + $0x1060] sm:$0xff] }
 0x734   : > { %v4180_v54 = vadd.f32 %v4164_v47, %v4083_v35  ;;  %v4181_v24 = vadd.f32 %v4165_v61, %v4084_v11  ;;  %v4129_v53 = vsel %vm992_vm4, %v4117_v20, %v13858_v25  ;;  %v4131_v0 = vsel %vm992_vm4, %v11579_v4, %v4117_v20  ;;  %v4261_v63 = vpop.permute.xlu0 %4260  ;;  %v13880_v4 = vld [vmem:[#allocation80_spill] sm:$0xff]  ;;  %v4390_v11 = vld [vmem:[#allocation7 + $0x10a0] sm:$0xff] }
 0x735   : > { %v4172_v34 = vmul.f32 %v4156_v39, %v4131_v0  ;;  %v4173_v9 = vmul.f32 %v4157_v44, %v4129_v53  ;;  %v4276_v58 = vsel %vm1139_vm5, %v11434_v31, %v4261_v63  ;;  %v4274_v25 = vsel %vm1139_vm5, %v4261_v63, %v13869_v50  ;;  %v4391_v47 = vld [vmem:[#allocation7 + $0x10a8] sm:$0xff]  ;;  %v4398_v3 = vld [vmem:[#allocation7 + $0x10e0] sm:$0xff] }
 0x736   : > { %v4230_v29 = vadd.f32 %v11663_v43, %v4181_v24  ;;  %v4563_v49 = vsel %vm1433_vm8, %v13880_v4, %v11654_v18  ;;  %v4564_v19 = vsel %vm1433_vm8, %v13881_v45, %v11660_v52  ;;  %v4586_v43 = vld [vmem:[#allocation7 + $0x11b0] sm:$0xff]  ;;  %v4229_v50 = vadd.f32 %v11686_v56, %v4180_v54  ;;  %v4399_v22 = vld [vmem:[#allocation7 + $0x10e8] sm:$0xff] }
 0x737   : > { %v4188_v31 = vadd.f32 %v4172_v34, %v4091_v40  ;;  %v4189_v28 = vadd.f32 %v4173_v9, %v4092_v23  ;;  %v4263_v26 = vpop.permute.xlu1 %4262  ;;  %v4309_v13 = vmul.f32 %v4293_v60, %v4276_v58  ;;  %v4310_v52 = vmul.f32 %v4294_v42, %v4274_v25  ;;  %v4488_v24 = vld [vmem:[#allocation7 + $0x1128] sm:$0xff]  ;;  %v13883_v23 = vld [vmem:[#allocation63_spill] sm:$0xff] }
 0x738   : > { %v4327_v57 = vadd.f32 %v11688_v51, %v4230_v29  ;;  %v4275_v18 = vsel %vm1139_vm5, %v4263_v26, %v13870_v36  ;;  %v4358_v37 = vpop.permute.xlu0 %4357  ;;  %v4277_v35 = vsel %vm1139_vm5, %v11452_v16, %v4263_v26  ;;  %v4610_v39 = vmul.f32 %v4594_v8, %v4564_v19  ;;  %v4495_v34 = vld [vmem:[#allocation7 + $0x1160] sm:$0xff]  ;;  %v4496_v9 = vld [vmem:[#allocation7 + $0x1168] sm:$0xff]  ;;  %v13884_v19 = vld [vmem:[#allocation66_spill] sm:$0xff] }
 0x739   : > { %v4238_v38 = vadd.f32 %v11678_v10, %v4189_v28  ;;  %v4237_v30 = vadd.f32 %v11692_v55, %v4188_v31  ;;  %v4318_v56 = vmul.f32 %v4302_v27, %v4275_v18  ;;  %v4371_v61 = vsel %vm1237_vm6, %v4358_v37, %v13872_v21  ;;  %v13882_v21 = vld [vmem:[#allocation61_spill] sm:$0xff]  ;;  %v4584_v31 = vld [vmem:[#allocation7 + $0x11a0] sm:$0xff]  ;;  %v4585_v28 = vld [vmem:[#allocation7 + $0x11a8] sm:$0xff] }
 0x73a   : > { %v4424_v51 = vadd.f32 %v11704_v48, %v4327_v57  ;;  %v4373_v36 = vsel %vm1237_vm6, %v11454_v7, %v4358_v37  ;;  %v4602_v10 = vmul.f32 %v4586_v43, %v4563_v49  ;;  %v4317_v44 = vmul.f32 %v4301_v62, %v4277_v35  ;;  %v4487_v7 = vld [vmem:[#allocation7 + $0x1120] sm:$0xff]  ;;  %v4593_v62 = vld [vmem:[#allocation7 + $0x11e8] sm:$0xff] }
 0x73b   : > { %v4335_v55 = vadd.f32 %v11694_v33, %v4238_v38  ;;  %v4360_v16 = vpop.permute.xlu1 %4359  ;;  %v4325_v6 = vadd.f32 %v4309_v13, %v11702_v2  ;;  %v4406_v48 = vmul.f32 %v4390_v11, %v4373_v36  ;;  %v4326_v33 = vadd.f32 %v4310_v52, %v4229_v50  ;;  %v13885_v50 = vld [vmem:[#allocation13_spill] sm:$0xff]  ;;  %v4592_v13 = vld [vmem:[#allocation7 + $0x11e0] sm:$0xff] }
 0x73c   : > { %v4372_v15 = vsel %vm1237_vm6, %v4360_v16, %v13877_v46  ;;  %v4374_v17 = vsel %vm1237_vm6, %v13882_v21, %v4360_v16  ;;  %v4455_v40 = vpop.permute.xlu0 %4454  ;;  %v4407_v54 = vmul.f32 %v4391_v47, %v4371_v61  ;;  %v4521_v53 = vadd.f32 %v4505_v12, %v4424_v51 }
 0x73d   : > { %v4432_v20 = vadd.f32 %v11736_v41, %v4335_v55  ;;  %v4334_v0 = vadd.f32 %v4318_v56, %v4237_v30  ;;  %v4414_v2 = vmul.f32 %v4398_v3, %v4374_v17  ;;  %v4468_v63 = vsel %vm1335_vm7, %v4455_v40, %v13878_v59  ;;  %v13886_v56 = vld [vmem:[#allocation36_spill] sm:$0xff]  ;;  %v13887_v3 = vld [vmem:[#allocation81_spill] sm:$0xff] }
 0x73e   : > { %v4470_v46 = vsel %vm1335_vm7, %v13883_v23, %v4455_v40  ;;  %v4333_v60 = vadd.f32 %v4317_v44, %v11709_v32  ;;  %v4415_v58 = vmul.f32 %v4399_v22, %v4372_v15  ;;  %v4422_v25 = vadd.f32 %v4406_v48, %v4325_v6  ;;  %v13888_v48 = vld [vmem:[#allocation49_spill] sm:$0xff]  ;;  %v13889_v15 = vld [vmem:[#allocation26_spill] sm:$0xff]  ;;  %v13898_v23 = vld [vmem:[#allocation40_spill] sm:$0xff] }
 0x73f   : > { %v4503_v41 = vmul.f32 %v4487_v7, %v4470_v46  ;;  %v4457_v29 = vpop.permute.xlu1 %4456  ;;  %v4529_v42 = vadd.f32 %v4513_v5, %v4432_v20  ;;  %v4504_v12 = vmul.f32 %v4488_v24, %v4468_v63  ;;  %v4423_v26 = vadd.f32 %v4407_v54, %v4326_v33  ;;  %v13891_v17 = vld [vmem:[#allocation33_spill] sm:$0xff]  ;;  %v13892_v7 = vld [vmem:[#allocation71_spill] sm:$0xff]  ;;  %v13894_v20 = vld [vmem:[#allocation32_spill] sm:$0xff] }
 0x740   : > { %v4469_v49 = vsel %vm1335_vm7, %v4457_v29, %v13879_v1  ;;  %v4471_v59 = vsel %vm1335_vm7, %v13884_v19, %v4457_v29  ;;  %v4552_v27 = vpop.permute.xlu0 %4551  ;;  %v4618_v8 = vadd.f32 %v4602_v10, %v4521_v53  ;;  %v4430_v57 = vadd.f32 %v4414_v2, %v4333_v60  ;;  %v13893_v40 = vld [vmem:[#allocation53_spill] sm:$0xff]  ;;  %v13896_v54 = vld [vmem:[#allocation14_spill] sm:$0xff]  ;;  %v13897_v2 = vld [vmem:[#allocation68_spill] sm:$0xff] }
 0x741   : > { %v4511_v43 = vmul.f32 %v4495_v34, %v4471_v59  ;;  %v4512_v32 = vmul.f32 %v4496_v9, %v4469_v49  ;;  %v4565_v5 = vsel %vm1433_vm8, %v4552_v27, %v13880_v4  ;;  %v4567_v1 = vsel %vm1433_vm8, %v13885_v50, %v4552_v27  ;;  %v5200_v24 = vld [vmem:[#allocation3 + $0x50] sm:$0xff]  ;;  %v13899_v34 = vld [vmem:[#allocation50_spill] sm:$0xff]  ;;  %v13900_v60 = vld [vmem:[#allocation84_spill] sm:$0xff] }
 0x742   : > { %v4626_v18 = vadd.f32 %v4610_v39, %v4529_v42  ;;  %v4431_v37 = vadd.f32 %v4415_v58, %v4334_v0  ;;  %v4519_v38 = vadd.f32 %v4503_v41, %v4422_v25  ;;  %v4600_v52 = vmul.f32 %v4584_v31, %v4567_v1  ;;  %v13901_v41 = vld [vmem:[#allocation90_spill] sm:$0xff]  ;;  %v13902_v42 = vld [vmem:[#allocation79_spill] sm:$0xff] }
 0x743   : > { %v4601_v30 = vmul.f32 %v4585_v28, %v4565_v5  ;;  %v4554_v35 = vpop.permute.xlu1 %4553  ;;  %v4520_v11 = vadd.f32 %v4504_v12, %v4423_v26  ;;  %v4527_v61 = vadd.f32 %v4511_v43, %v4430_v57  ;;  %v13890_v21 = vmov 0.0   ;;  %v13903_v12 = vld [vmem:[#allocation65_spill] sm:$0xff]  ;;  %v13904_v19 = vld [vmem:[#allocation58_spill] sm:$0xff] }
 0x744   : > { %v4566_v51 = vsel %vm1433_vm8, %v4554_v35, %v13881_v45  ;;  %v4568_v4 = vsel %vm1433_vm8, %v13886_v56, %v4554_v35  ;;  %v7307_v47 = vpack.c.bf16 %v4626_v18, %v4618_v8  ;;  %v4528_v36 = vadd.f32 %v4512_v32, %v4431_v37  ;;  %v13905_v31 = vld [vmem:[#allocation34_spill] sm:$0xff]  ;;  %v13906_v43 = vld [vmem:[#allocation45_spill] sm:$0xff] }
 0x745   : > { %v4608_v10 = vmul.f32 %v4592_v13, %v4568_v4  ;;  %v4609_v55 = vmul.f32 %v4593_v62, %v4566_v51  ;;  %v4616_v39 = vadd.f32 %v4600_v52, %v4519_v38  ;;  %v4617_v16 = vadd.f32 %v4601_v30, %v4520_v11 }
 0x746   : > { %7308 = vmatpush1.bf16.msra.mxu1 %v7307_v47 }
 0x747   : > { %v4624_v44 = vadd.f32 %v4608_v10, %v4527_v61  ;;  %5283 = vmatprep.subr.mxu1 %v13887_v3  ;;  %v4625_v6 = vadd.f32 %v4609_v55, %v4528_v36 }
 0x749   : > { %7208 = vmatmul.mubr.msk.f32.vlgmr.msra.gmra.mrb[30].mxu1 %vm334_vm0, %v13888_v48  ;;  %v7301_v45 = vpack.c.bf16 %v4625_v6, %v4617_v16  ;;  %v7303_v22 = vpack.c.bf16 %v4624_v44, %v4616_v39 }
 0x74a   : > { %5284 = vmatpush1.msra.mxu1 %v13889_v15  ;;  %4951 = vmatprep.mubr.f32.mxu1 %v13890_v21 }
 0x74b   : > { %5425 = vmatprep.subr.mxu1 %v13891_v17  ;;  %7302 = vmatprep.subr.bf16.mxu0 %v7301_v45 }
 0x74c   : > { %7304 = vmatpush1.bf16.msra.mxu0 %v7303_v22 }
 0x74d   : > { %5212 = vmatprep.subr.mxu0 %v13892_v7 }
 0x74f   : > { %7206 = vmatmul.mubr.msk.f32.vlgmr.msra.gmra.mrb[30].mxu0 %vm334_vm0, %v13888_v48 }
 0x750   : > { %5213 = vmatpush1.msra.mxu0 %v13893_v40  ;;  %4874 = vmatprep.mubr.f32.mxu0 %v13890_v21 }
 0x751   : > { %7209 = vmatmul.mubr.msk.f32.gmra.mrb[30].mxu1 %vm334_vm0, %v13894_v20  ;;  %v11843_v33 = vpop.permute.xlu0 %5205  ;;  %5354 = vmatprep.subr.mxu0 %v13896_v54 }
 0x752   : > { %13895 = vst [vmem:[#allocation28_spill] sm:$0xff] %v11843_v33  ;;  %5347 = vmatprep.mubr.f32.mxu1 %v13890_v21  ;;  %v6447_v33 = vld [vmem:[#allocation7 + $0x1d28] sm:$0xff] }
 0x754   : > { %v2679_v53 = vpop.permute.xlu1 %2678 }
 0x755   : > { %7211 = vmatmul.mubr.msk.f32.vlgmr.msra.gmra.mrb[32].mxu1 %vm5208_vm9, %v5200_v24  ;;  %v2684_v0 = vpop.permute.xlu0 %2683 }
 0x756   : > { %5426 = vmatpush1.msra.mxu1 %v13897_v2  ;;  %v7309_v63 = vadd.f32 %v2684_v0, %v2679_v53  ;;  %5489 = vmatprep.mubr.f32.mxu1 %v13890_v21  ;;  %v6443_v2 = vld [vmem:[#allocation7 + $0x1d08] sm:$0xff] }
 0x757   : > { %7207 = vmatmul.mubr.msk.f32.gmra.mrb[30].mxu0 %vm334_vm0, %v13894_v20  ;;  %vm6582_vm0 = vcmp.lt.s32.totalorder %v8126_v14, 96 }
 0x758   : > { %v7310_v46 = vadd.f32 %v7309_v63, %v13898_v23  ;;  %v7312_v9 = vadd.f32 %v7309_v63, %v13899_v34  ;;  %v7314_v58 = vadd.f32 %v7309_v63, %v13900_v60  ;;  %v7316_v29 = vadd.f32 %v7309_v63, %v13901_v41  ;;  %5276 = vmatprep.mubr.f32.mxu0 %v13890_v21  ;;  %v6445_v34 = vld [vmem:[#allocation7 + $0x1d18] sm:$0xff]  ;;  %v6319_v41 = vld [vmem:[#allocation7 + $0x1b90] sm:$0xff] }
 0x759   : > { %v7318_v25 = vadd.f32 %v7309_v63, %v13902_v42  ;;  %v7320_v49 = vadd.f32 %v7309_v63, %v13903_v12  ;;  %v7322_v59 = vadd.f32 %v7309_v63, %v13904_v19  ;;  %v7324_v28 = vadd.f32 %v7309_v63, %v13905_v31  ;;  %7213 = vmatmul.mubr.msk.f32.vlgmr.msra.gmra.mrb[34].mxu1 %vm5208_vm9, %v5200_v24  ;;  %v6269_v19 = vld [vmem:[#allocation7 + $0x1b10] sm:$0xff] }
 0x75a   : > { %3008 = vst [vmem:[%s11864_s15] sm:$0xff] %v7310_v46  ;;  %3009 = vst [vmem:[%s11864_s15 + $0x8] sm:$0xff] %v7312_v9  ;;  %v11870_v27 = vmax.f32 %v7310_v46, 0.0  ;;  %v11872_v26 = vmax.f32 %v7312_v9, 0.0  ;;  %6068 = vmatprep.mubr.f32.mxu1 %v13890_v21  ;;  %v11886_v32 = vmax.f32 %v7314_v58, 0.0  ;;  %v11888_v8 = vmax.f32 %v7316_v29, 0.0  ;;  %v6444_v46 = vld [vmem:[#allocation7 + $0x1d10] sm:$0xff] }
 0x75b   : > { %3010 = vst [vmem:[%s11864_s15 + $0x10] sm:$0xff] %v7314_v58  ;;  %3011 = vst [vmem:[%s11864_s15 + $0x18] sm:$0xff] %v7316_v29  ;;  %7210 = vmatmul.mubr.msk.f32.vlgmr.msra.gmra.mrb[32].mxu0 %vm5208_vm9, %v5200_v24  ;;  %v11900_v57 = vmax.f32 %v7324_v28, 0.0  ;;  %v11909_v5 = vmax.f32 %v7320_v49, 0.0  ;;  %v11914_v50 = vmax.f32 %v7318_v25, 0.0  ;;  %v11919_v1 = vmax.f32 %v7322_v59, 0.0 }
 0x75c   : > { %3012 = vst [vmem:[%s11864_s15 + $0x20] sm:$0xff] %v7318_v25  ;;  %3013 = vst [vmem:[%s11864_s15 + $0x28] sm:$0xff] %v7320_v49  ;;  %6243 = vrot.lane.b32.xlu0 %v11872_v26, %s7571_s27  ;;  %6241 = vrot.lane.b32.xlu1 %v11870_v27, %s7571_s27  ;;  %v6442_v9 = vld [vmem:[#allocation7 + $0x1d00] sm:$0xff]  ;;  %v12037_v60 = vmul.f32 %v6443_v2, %v11872_v26  ;;  %v6320_v29 = vld [vmem:[#allocation7 + $0x1b98] sm:$0xff]  ;;  %v12045_v12 = vmul.f32 %v6444_v46, %v11886_v32 }
 0x75d   : > { %3014 = vst [vmem:[%s11864_s15 + $0x30] sm:$0xff] %v7322_v59  ;;  %3015 = vst [vmem:[%s11864_s15 + $0x38] sm:$0xff] %v7324_v28  ;;  %5355 = vmatpush1.msra.mxu0 %v13906_v43  ;;  %5418 = vmatprep.mubr.f32.mxu0 %v13890_v21  ;;  %v6446_v58 = vld [vmem:[#allocation7 + $0x1d20] sm:$0xff]  ;;  %v12048_v49 = vmul.f32 %v6445_v34, %v11888_v8  ;;  %v6270_v59 = vld [vmem:[#allocation7 + $0x1b18] sm:$0xff] }
 0x75e   : > { %13907 = vst [vmem:[#allocation29_spill] sm:$0xff] %v11919_v1  ;;  %13916 = vst [vmem:[#allocation44_spill] sm:$0xff] %v12037_v60  ;;  %v6369_v34 = vld [vmem:[#allocation7 + $0x1c10] sm:$0xff] }
 0x75f   : > { %7212 = vmatmul.mubr.msk.f32.vlgmr.msra.gmra.mrb[34].mxu0 %vm5208_vm9, %v5200_v24 }
 0x760   : > { %6247 = vrot.lane.b32.xlu0 %v11888_v8, %s7571_s27  ;;  %6245 = vrot.lane.b32.xlu1 %v11886_v32, %s7571_s27 }
 0x761   : > { %5997 = vmatprep.mubr.f32.mxu0 %v13890_v21 }
 0x764   : > { %6293 = vrot.lane.b32.xlu0 %v11872_v26, %s7572_s12  ;;  %6291 = vrot.lane.b32.xlu1 %v11870_v27, %s7572_s12 }
 0x768   : > { %6297 = vrot.lane.b32.xlu0 %v11888_v8, %s7572_s12  ;;  %6295 = vrot.lane.b32.xlu1 %v11886_v32, %s7572_s12 }
 0x76c   : > { %6255 = vrot.lane.b32.xlu0 %v11900_v57, %s7571_s27  ;;  %6305 = vrot.lane.b32.xlu1 %v11900_v57, %s7572_s12 }
 0x770   : > { %6341 = vrot.lane.b32.xlu0 %v11870_v27, %s7573_s20  ;;  %6343 = vrot.lane.b32.xlu1 %v11872_v26, %s7573_s20 }
 0x774   : > { %6345 = vrot.lane.b32.xlu0 %v11886_v32, %s7573_s20  ;;  %6347 = vrot.lane.b32.xlu1 %v11888_v8, %s7573_s20 }
 0x778   : > { %6251 = vrot.lane.b32.xlu0 %v11909_v5, %s7571_s27  ;;  %6355 = vrot.lane.b32.xlu1 %v11900_v57, %s7573_s20 }
 0x77c   : > { %6299 = vrot.lane.b32.xlu0 %v11914_v50, %s7572_s12  ;;  %6249 = vrot.lane.b32.xlu1 %v11914_v50, %s7571_s27 }
 0x780   : > { %6303 = vrot.lane.b32.xlu0 %v11919_v1, %s7572_s12  ;;  %6253 = vrot.lane.b32.xlu1 %v11919_v1, %s7571_s27 }
 0x784   : > { %6393 = vrot.lane.b32.xlu0 %v11872_v26, %s7574_s29  ;;  %6301 = vrot.lane.b32.xlu1 %v11909_v5, %s7572_s12 }
 0x788   : > { %6397 = vrot.lane.b32.xlu0 %v11888_v8, %s7574_s29  ;;  %6391 = vrot.lane.b32.xlu1 %v11870_v27, %s7574_s29 }
 0x78c   : > { %6405 = vrot.lane.b32.xlu0 %v11900_v57, %s7574_s29  ;;  %6395 = vrot.lane.b32.xlu1 %v11886_v32, %s7574_s29 }
 0x790   : > { %6349 = vrot.lane.b32.xlu0 %v11914_v50, %s7573_s20  ;;  %6351 = vrot.lane.b32.xlu1 %v11909_v5, %s7573_s20 }
 0x794   : > { %6353 = vrot.lane.b32.xlu0 %v11919_v1, %s7573_s20  ;;  %6399 = vrot.lane.b32.xlu1 %v11914_v50, %s7574_s29 }
 0x798   : > { %6401 = vrot.lane.b32.xlu0 %v11909_v5, %s7574_s29  ;;  %6403 = vrot.lane.b32.xlu1 %v11919_v1, %s7574_s29 }
 0x79c   : > { %6468 = vrot.lane.b32.xlu0 %v11872_v26, %s7575_s5  ;;  %6470 = vrot.lane.b32.xlu1 %v11886_v32, %s7575_s5 }
 0x7a0   : > { %6472 = vrot.lane.b32.xlu0 %v11888_v8, %s7575_s5  ;;  %6474 = vrot.lane.b32.xlu1 %v11914_v50, %s7575_s5 }
 0x7a4   : > { %6466 = vrot.lane.b32.xlu0 %v11870_v27, %s7575_s5  ;;  %6520 = vrot.lane.b32.xlu1 %v11886_v32, %s7576_s7 }
 0x7a8   : > { %6518 = vrot.lane.b32.xlu0 %v11872_v26, %s7576_s7  ;;  %6524 = vrot.lane.b32.xlu1 %v11914_v50, %s7576_s7 }
 0x7ac   : > { %6522 = vrot.lane.b32.xlu0 %v11888_v8, %s7576_s7  ;;  %6476 = vrot.lane.b32.xlu1 %v11909_v5, %s7575_s5 }
 0x7b0   : > { %6516 = vrot.lane.b32.xlu0 %v11870_v27, %s7576_s7  ;;  %6480 = vrot.lane.b32.xlu1 %v11900_v57, %s7575_s5 }
 0x7b4   : > { %6478 = vrot.lane.b32.xlu0 %v11919_v1, %s7575_s5  ;;  %6570 = vrot.lane.b32.xlu1 %v11886_v32, %s7577_s8 }
 0x7b8   : > { %6568 = vrot.lane.b32.xlu0 %v11872_v26, %s7577_s8  ;;  %6574 = vrot.lane.b32.xlu1 %v11914_v50, %s7577_s8 }
 0x7bc   : > { %6572 = vrot.lane.b32.xlu0 %v11888_v8, %s7577_s8  ;;  %6526 = vrot.lane.b32.xlu1 %v11909_v5, %s7576_s7 }
 0x7c0   : > { %6566 = vrot.lane.b32.xlu0 %v11870_v27, %s7577_s8  ;;  %6530 = vrot.lane.b32.xlu1 %v11900_v57, %s7576_s7 }
 0x7c4   : > { %6528 = vrot.lane.b32.xlu0 %v11919_v1, %s7576_s7  ;;  %6620 = vrot.lane.b32.xlu1 %v11886_v32, %s7578_s23 }
 0x7c8   : > { %6618 = vrot.lane.b32.xlu0 %v11872_v26, %s7578_s23  ;;  %6624 = vrot.lane.b32.xlu1 %v11914_v50, %s7578_s23  ;;  %v6318_v26 = vld [vmem:[#allocation7 + $0x1b88] sm:$0xff] }
 0x7cc   : > { %6622 = vrot.lane.b32.xlu0 %v11888_v8, %s7578_s23  ;;  %v12064_v8 = vmul.f32 %v6442_v9, %v11870_v27  ;;  %v6268_v9 = vld [vmem:[#allocation7 + $0x1b08] sm:$0xff] }
 0x7ce   : > { %v11970_v13 = vpop.permute.xlu0 %6243  ;;  %v11972_v62 = vpop.permute.xlu1 %6241 }
 0x7d0   : > { %6616 = vrot.lane.b32.xlu0 %v11870_v27, %s7578_s23 }
 0x7d2   : > { %v11976_v18 = vpop.permute.xlu0 %6247  ;;  %v6246_v37 = vpop.permute.xlu1 %6245 }
 0x7d3   : > { %v6262_v31 = vsel %vm6257_vm11, %v6246_v37, %v11976_v18  ;;  %v6263_v28 = vsel %vm6257_vm11, %v11970_v13, %v6246_v37  ;;  %v12070_v37 = vmul.f32 %v6446_v58, %v11914_v50 }
 0x7d4   : > { %v6277_v50 = vmul.f32 %v6269_v19, %v6263_v28  ;;  %v6278_v58 = vmul.f32 %v6270_v59, %v6262_v31  ;;  %v6317_v28 = vld [vmem:[#allocation7 + $0x1b80] sm:$0xff] }
 0x7d5   : > { %13917 = vst [vmem:[#allocation60_spill] sm:$0xff] %v12070_v37  ;;  %v6367_v37 = vld [vmem:[#allocation7 + $0x1c00] sm:$0xff] }
 0x7d6   : > { %v6294_v38 = vpop.permute.xlu0 %6293  ;;  %v11978_v52 = vpop.permute.xlu1 %6291 }
 0x7d7   : > { %v6314_v43 = vsel %vm6307_vm10, %v11978_v52, %v6294_v38 }
 0x7da   : > { %v11980_v30 = vpop.permute.xlu0 %6297  ;;  %v6296_v35 = vpop.permute.xlu1 %6295 }
 0x7db   : > { %v6312_v42 = vsel %vm6307_vm10, %v6296_v35, %v11980_v30  ;;  %v6313_v25 = vsel %vm6307_vm10, %v6294_v38, %v6296_v35 }
 0x7dc   : > { %v6327_v2 = vmul.f32 %v6319_v41, %v6313_v25  ;;  %v6328_v46 = vmul.f32 %v6320_v29, %v6312_v42  ;;  %v6326_v41 = vmul.f32 %v6318_v26, %v6314_v43  ;;  %v6267_v29 = vld [vmem:[#allocation7 + $0x1b00] sm:$0xff] }
 0x7de   : > { %v11982_v11 = vpop.permute.xlu0 %6255  ;;  %v11984_v51 = vpop.permute.xlu1 %6305  ;;  %v6335_v21 = vadd.f32 %v6327_v2, %v6277_v50  ;;  %v6336_v1 = vadd.f32 %v6328_v46, %v6278_v58 }
 0x7df   : > { %v6265_v42 = vsel %vm6257_vm11, %v11982_v11, %v11972_v62 }
 0x7e0   : > { %v6275_v46 = vmul.f32 %v6267_v29, %v6265_v42  ;;  %v6494_v42 = vld [vmem:[#allocation7 + $0x1d90] sm:$0xff] }
 0x7e2   : > { %v11986_v56 = vpop.permute.xlu0 %6341  ;;  %v11988_v4 = vpop.permute.xlu1 %6343 }
 0x7e3   : > { %v11990_v47 = vpop.f32.mrb[28].mxu0  ;;  %v6364_v25 = vsel %vm6357_vm12, %v11986_v56, %v11988_v4 }
 0x7e4   : > { %13908 = vst [vmem:[#allocation31_spill] sm:$0xff] %v11990_v47  ;;  %v11992_v61 = vpop.f32.mrb[29].mxu0 }
 0x7e5   : > { %13909 = vst [vmem:[#allocation21_spill] sm:$0xff] %v11992_v61  ;;  %v6420_v61 = vld [vmem:[#allocation7 + $0x1c98] sm:$0xff] }
 0x7e6   : > { %v6346_v36 = vpop.permute.xlu0 %6345  ;;  %v11994_v10 = vpop.permute.xlu1 %6347 }
 0x7e7   : > { %v6363_v38 = vsel %vm6357_vm12, %v11988_v4, %v6346_v36  ;;  %v6362_v27 = vsel %vm6357_vm12, %v6346_v36, %v11994_v10  ;;  %v6315_v36 = vsel %vm6307_vm10, %v11984_v51, %v11978_v52 }
 0x7e8   : > { %v6377_v26 = vmul.f32 %v6369_v34, %v6363_v38  ;;  %v6321_v34 = vld [vmem:[#allocation7 + $0x1ba0] sm:$0xff] }
 0x7e9   : > { %v6271_v38 = vld [vmem:[#allocation7 + $0x1b20] sm:$0xff] }
 0x7ea   : > { %v11996_v55 = vpop.permute.xlu0 %6251  ;;  %v11998_v39 = vpop.permute.xlu1 %6355 }
 0x7eb   : > { %v12000_v44 = vpop.f32.mrb[28].mxu1 }
 0x7ec   : > { %13910 = vst [vmem:[#allocation35_spill] sm:$0xff] %v12000_v44  ;;  %v12002_v3 = vpop.f32.mrb[29].mxu1  ;;  %v6264_v44 = vsel %vm6257_vm11, %v11972_v62, %v11970_v13  ;;  %v6419_v13 = vld [vmem:[#allocation7 + $0x1c90] sm:$0xff]  ;;  %v6368_v62 = vld [vmem:[#allocation7 + $0x1c08] sm:$0xff] }
 0x7ed   : > { %13911 = vst [vmem:[#allocation24_spill] sm:$0xff] %v12002_v3  ;;  %v6370_v3 = vld [vmem:[#allocation7 + $0x1c18] sm:$0xff]  ;;  %v6276_v47 = vmul.f32 %v6268_v9, %v6264_v44  ;;  %v6376_v9 = vmul.f32 %v6368_v62, %v6364_v25 }
 0x7ee   : > { %v12004_v16 = vpop.permute.xlu0 %6299  ;;  %v12006_v6 = vpop.permute.xlu1 %6249  ;;  %v6378_v43 = vmul.f32 %v6370_v3, %v6362_v27  ;;  %v6365_v3 = vsel %vm6357_vm12, %v11998_v39, %v11986_v56  ;;  %v6325_v27 = vmul.f32 %v6317_v28, %v6315_v36  ;;  %v6272_v36 = vld [vmem:[#allocation7 + $0x1b28] sm:$0xff] }
 0x7ef   : > { %v6261_v44 = vsel %vm6257_vm11, %v11976_v18, %v12006_v6  ;;  %v6334_v60 = vadd.f32 %v6326_v41, %v6276_v47  ;;  %v6375_v18 = vmul.f32 %v6367_v37, %v6365_v3  ;;  %v6495_v47 = vld [vmem:[#allocation7 + $0x1d98] sm:$0xff]  ;;  %v12135_v37 = vmul.f32 %v6447_v33, %v11909_v5 }
 0x7f0   : > { %v6279_v29 = vmul.f32 %v6271_v38, %v6261_v44  ;;  %v6333_v25 = vadd.f32 %v6325_v27, %v6275_v46  ;;  %v6544_v38 = vld [vmem:[#allocation7 + $0x1e10] sm:$0xff]  ;;  %v6274_v46 = vld [vmem:[#allocation7 + $0x1b38] sm:$0xff] }
 0x7f2   : > { %v12008_v48 = vpop.permute.xlu0 %6303  ;;  %v12010_v45 = vpop.permute.xlu1 %6253 }
 0x7f6   : > { %v12012_v22 = vpop.permute.xlu0 %6393  ;;  %v12014_v15 = vpop.permute.xlu1 %6301 }
 0x7fa   : > { %v12016_v17 = vpop.permute.xlu0 %6397  ;;  %v12018_v7 = vpop.permute.xlu1 %6391 }
 0x7fb   : > { %v6414_v33 = vsel %vm6407_vm13, %v12018_v7, %v12012_v22 }
 0x7fe   : > { %v12020_v40 = vpop.permute.xlu0 %6405  ;;  %v6396_v20 = vpop.permute.xlu1 %6395 }
 0x7ff   : > { %v6413_v19 = vsel %vm6407_vm13, %v12012_v22, %v6396_v20  ;;  %v6412_v52 = vsel %vm6407_vm13, %v6396_v20, %v12016_v17  ;;  %v6311_v20 = vsel %vm6307_vm10, %v11980_v30, %v12004_v16  ;;  %v6417_v30 = vld [vmem:[#allocation7 + $0x1c80] sm:$0xff]  ;;  %v6259_v22 = vsel %vm6257_vm11, %v11996_v55, %v12010_v45 }
 0x800   : > { %v6427_v2 = vmul.f32 %v6419_v13, %v6413_v19  ;;  %v6428_v50 = vmul.f32 %v6420_v61, %v6412_v52  ;;  %v6329_v13 = vmul.f32 %v6321_v34, %v6311_v20  ;;  %v6384_v19 = vadd.f32 %v6376_v9, %v6334_v60  ;;  %v6492_v34 = vld [vmem:[#allocation7 + $0x1d80] sm:$0xff] }
 0x802   : > { %v12022_v54 = vpop.permute.xlu0 %6349  ;;  %v12024_v24 = vpop.permute.xlu1 %6351  ;;  %v12153_v52 = vadd.f32 %v6329_v13, %v6279_v29 }
 0x803   : > { %13912 = vst [vmem:[#allocation72_spill] sm:$0xff] %v12024_v24  ;;  %v6386_v24 = vadd.f32 %v6378_v43, %v6336_v1  ;;  %v6324_v43 = vld [vmem:[#allocation7 + $0x1bb8] sm:$0xff] }
 0x805   : > { %v6436_v62 = vadd.f32 %v6428_v50, %v6386_v24  ;;  %v6383_v24 = vadd.f32 %v6375_v18, %v6333_v25 }
 0x806   : > { %v12026_v53 = vpop.permute.xlu0 %6353  ;;  %v12028_v0 = vpop.permute.xlu1 %6399 }
 0x807   : > { %13913 = vst [vmem:[#allocation18_spill] sm:$0xff] %v12026_v53  ;;  %v6415_v53 = vsel %vm6407_vm13, %v12020_v40, %v12018_v7  ;;  %v6461_v9 = vadd.f32 %v12048_v49, %v6436_v62 }
 0x808   : > { %v6425_v28 = vmul.f32 %v6417_v30, %v6415_v53 }
 0x80a   : > { %v12030_v63 = vpop.permute.xlu0 %6401  ;;  %v12032_v23 = vpop.permute.xlu1 %6403 }
 0x80b   : > { %13914 = vst [vmem:[#allocation70_spill] sm:$0xff] %v12030_v63  ;;  %13915 = vst [vmem:[#allocation25_spill] sm:$0xff] %v12032_v23  ;;  %v6449_v63 = vld [vmem:[#allocation7 + $0x1d38] sm:$0xff]  ;;  %v6385_v23 = vadd.f32 %v6377_v26, %v6335_v21  ;;  %v6260_v21 = vsel %vm6257_vm11, %v12006_v6, %v11996_v55  ;;  %v6308_v6 = vsel %vm6307_vm10, %v12008_v48, %v11984_v51 }
 0x80c   : > { %v12132_v41 = vmul.f32 %v6449_v63, %v11900_v57  ;;  %v12151_v60 = vmul.f32 %v6272_v36, %v6260_v21  ;;  %v6258_v51 = vsel %vm6257_vm11, %v12010_v45, %v11982_v11  ;;  %v6332_v44 = vmul.f32 %v6324_v43, %v6308_v6 }
 0x80d   : > { %v6435_v1 = vadd.f32 %v6427_v2, %v6385_v23  ;;  %v6418_v23 = vld [vmem:[#allocation7 + $0x1c88] sm:$0xff]  ;;  %v6273_v2 = vld [vmem:[#allocation7 + $0x1b30] sm:$0xff]  ;;  %v6433_v11 = vadd.f32 %v6425_v28, %v6383_v24  ;;  %v6282_v36 = vmul.f32 %v6274_v46, %v6258_v51  ;;  %v6310_v21 = vsel %vm6307_vm10, %v12004_v16, %v12014_v15 }
 0x80e   : > { %v12059_v32 = vpop.permute.xlu0 %6468  ;;  %v12061_v35 = vpop.permute.xlu1 %6470  ;;  %v6426_v27 = vmul.f32 %v6418_v23, %v6414_v33  ;;  %v12180_v49 = vmul.f32 %v6273_v2, %v6259_v22  ;;  %v6421_v33 = vld [vmem:[#allocation7 + $0x1ca0] sm:$0xff]  ;;  %v6411_v16 = vsel %vm6407_vm13, %v12016_v17, %v12028_v0  ;;  %v13918_v51 = vld [vmem:[#allocation18_spill] sm:$0xff] }
 0x80f   : > { %v6460_v7 = vadd.f32 %v12045_v12, %v6435_v1  ;;  %v6542_v1 = vld [vmem:[#allocation7 + $0x1e00] sm:$0xff]  ;;  %v6458_v28 = vadd.f32 %v12064_v8, %v6433_v11  ;;  %v6358_v17 = vsel %vm6357_vm12, %v13918_v51, %v11998_v39  ;;  %v6372_v39 = vld [vmem:[#allocation7 + $0x1c28] sm:$0xff]  ;;  %v6429_v46 = vmul.f32 %v6421_v33, %v6411_v16 }
 0x810   : > { %v6434_v25 = vadd.f32 %v6426_v27, %v6384_v19  ;;  %v6424_v27 = vld [vmem:[#allocation7 + $0x1cb8] sm:$0xff]  ;;  %v6593_v16 = vld [vmem:[#allocation7 + $0x1e88] sm:$0xff] }
 0x812   : > { %v6473_v59 = vpop.permute.xlu0 %6472  ;;  %v12097_v31 = vpop.permute.xlu1 %6474 }
 0x813   : > { %v6486_v4 = vsel %vm6482_vm14, %v6473_v59, %v12097_v31  ;;  %v6487_v61 = vsel %vm6482_vm14, %v12061_v35, %v6473_v59 }
 0x814   : > { %v6502_v63 = vmul.f32 %v6494_v42, %v6487_v61  ;;  %v6503_v3 = vmul.f32 %v6495_v47, %v6486_v4  ;;  %v6545_v4 = vld [vmem:[#allocation7 + $0x1e18] sm:$0xff]  ;;  %v6322_v47 = vld [vmem:[#allocation7 + $0x1ba8] sm:$0xff] }
 0x816   : > { %v12118_v58 = vpop.permute.xlu0 %6466  ;;  %v6521_v56 = vpop.permute.xlu1 %6520  ;;  %v6510_v55 = vadd.f32 %v6502_v63, %v6460_v7  ;;  %v6511_v13 = vadd.f32 %v6503_v3, %v6461_v9  ;;  %v6493_v63 = vld [vmem:[#allocation7 + $0x1d88] sm:$0xff]  ;;  %v6374_v3 = vld [vmem:[#allocation7 + $0x1c38] sm:$0xff] }
 0x817   : > { %v6489_v20 = vsel %vm6482_vm14, %v12118_v58, %v12059_v32 }
 0x818   : > { %v6500_v29 = vmul.f32 %v6492_v34, %v6489_v20  ;;  %v13920_v20 = vld [vmem:[#allocation72_spill] sm:$0xff] }
 0x81a   : > { %v6519_v26 = vpop.permute.xlu0 %6518  ;;  %v12137_v59 = vpop.permute.xlu1 %6524  ;;  %v6508_v22 = vadd.f32 %v6500_v29, %v6458_v28  ;;  %v13924_v28 = vld [vmem:[#allocation28_spill] sm:$0xff] }
 0x81b   : > { %v12149_v53 = vsel %vm6532_vm15, %v6519_v26, %v6521_v56 }
 0x81e   : > { %v6523_v50 = vpop.permute.xlu0 %6522  ;;  %v6477_v30 = vpop.permute.xlu1 %6476 }
 0x81f   : > { %v6536_v45 = vsel %vm6532_vm15, %v6523_v50, %v12137_v59  ;;  %v6537_v12 = vsel %vm6532_vm15, %v6521_v56, %v6523_v50  ;;  %v12177_v18 = vsel %vm6482_vm14, %v12097_v31, %v6477_v30  ;;  %v6371_v56 = vld [vmem:[#allocation7 + $0x1c20] sm:$0xff]  ;;  %v6361_v31 = vsel %vm6357_vm12, %v11994_v10, %v12022_v54 }
 0x820   : > { %v6552_v42 = vmul.f32 %v6544_v38, %v6537_v12  ;;  %v6553_v61 = vmul.f32 %v6545_v4, %v6536_v45  ;;  %v6488_v10 = vsel %vm6482_vm14, %v12059_v32, %v12061_v35  ;;  %v6379_v24 = vmul.f32 %v6371_v56, %v6361_v31  ;;  %v6323_v35 = vld [vmem:[#allocation7 + $0x1bb0] sm:$0xff]  ;;  %v6543_v4 = vld [vmem:[#allocation7 + $0x1e08] sm:$0xff] }
 0x821   : > { %v6340_v32 = vadd.f32 %v6332_v44, %v6282_v36  ;;  %v6360_v38 = vsel %vm6357_vm12, %v12022_v54, %v13920_v20  ;;  %v13922_v44 = vld [vmem:[#allocation25_spill] sm:$0xff]  ;;  %v6501_v9 = vmul.f32 %v6493_v63, %v6488_v10  ;;  %v6359_v54 = vsel %vm6357_vm12, %v13920_v20, %v13918_v51  ;;  %v6422_v10 = vld [vmem:[#allocation7 + $0x1ca8] sm:$0xff] }
 0x822   : > { %v12191_v62 = vadd.f32 %v6552_v42, %v6510_v55  ;;  %v12193_v43 = vadd.f32 %v6553_v61, %v6511_v13  ;;  %v12195_v6 = vpop.permute.xlu0 %6516  ;;  %v6481_v23 = vpop.permute.xlu1 %6480  ;;  %v6408_v11 = vsel %vm6407_vm13, %v13922_v44, %v12020_v40  ;;  %v6373_v55 = vld [vmem:[#allocation7 + $0x1c30] sm:$0xff]  ;;  %v6382_v45 = vmul.f32 %v6374_v3, %v6358_v17  ;;  %v13923_v42 = vld [vmem:[#allocation44_spill] sm:$0xff] }
 0x823   : > { %v6539_v8 = vsel %vm6532_vm15, %v12195_v6, %v6519_v26  ;;  %v12211_v19 = vsel %vm6482_vm14, %v6481_v23, %v12118_v58  ;;  %v6309_v26 = vsel %vm6307_vm10, %v12014_v15, %v12008_v48  ;;  %v6330_v58 = vmul.f32 %v6322_v47, %v6310_v21  ;;  %v6496_v47 = vld [vmem:[#allocation7 + $0x1da0] sm:$0xff]  ;;  %v6423_v3 = vld [vmem:[#allocation7 + $0x1cb0] sm:$0xff] }
 0x824   : > { %v6550_v7 = vmul.f32 %v6542_v1, %v6539_v8  ;;  %v12217_v34 = vpop.f32.mrb[30].mxu1  ;;  %v6331_v40 = vmul.f32 %v6323_v35, %v6309_v26  ;;  %v6387_v29 = vadd.f32 %v6379_v24, %v12153_v52  ;;  %v6459_v61 = vadd.f32 %v13923_v42, %v6434_v25  ;;  %v13925_v8 = vld [vmem:[#allocation70_spill] sm:$0xff] }
 0x825   : > { %13919 = vst [vmem:[#allocation78_spill] sm:$0xff] %v12217_v34  ;;  %v12227_v2 = vpop.f32.mrb[31].mxu1  ;;  %v6551_v36 = vmul.f32 %v6543_v4, %v12149_v53  ;;  %v6338_v56 = vadd.f32 %v6330_v58, %v12151_v60  ;;  %v6380_v31 = vmul.f32 %v6372_v39, %v6360_v38  ;;  %v6432_v1 = vmul.f32 %v6424_v27, %v6408_v11  ;;  %v6499_v58 = vld [vmem:[#allocation7 + $0x1db8] sm:$0xff]  ;;  %v5578_v34 = vld [vmem:[#allocation7 + $0x1700] sm:$0xff] }
 0x826   : > { %13921 = vst [vmem:[#allocation41_spill] sm:$0xff] %v12227_v2  ;;  %v12233_v50 = vadd.f32 %v6550_v7, %v6508_v22  ;;  %v6479_v48 = vpop.permute.xlu0 %6478  ;;  %v6571_v15 = vpop.permute.xlu1 %6570  ;;  %v6437_v63 = vadd.f32 %v6429_v46, %v6387_v29  ;;  %v6410_v52 = vsel %vm6407_vm13, %v12028_v0, %v13925_v8  ;;  %v6509_v53 = vadd.f32 %v6501_v9, %v6459_v61 }
 0x827   : > { %v12241_v12 = vsel %vm6482_vm14, %v6479_v48, %v6481_v23  ;;  %v12245_v13 = vsel %vm6482_vm14, %v6477_v30, %v6479_v48  ;;  %v6381_v30 = vmul.f32 %v6373_v55, %v6359_v54  ;;  %v6390_v60 = vadd.f32 %v6382_v45, %v6340_v32  ;;  %v13929_v48 = vld [vmem:[#allocation60_spill] sm:$0xff]  ;;  %v6448_v54 = vld [vmem:[#allocation7 + $0x1d30] sm:$0xff] }
 0x828   : > { %v5349_v21 = vpop.f32.mrb[32].mxu1  ;;  %v6409_v51 = vsel %vm6407_vm13, %v13925_v8, %v13922_v44  ;;  %v6339_v0 = vadd.f32 %v6331_v40, %v12180_v49  ;;  %v6559_v35 = vadd.f32 %v6551_v36, %v6509_v53  ;;  %v6504_v26 = vmul.f32 %v6496_v47, %v12177_v18  ;;  %v6594_v49 = vld [vmem:[#allocation7 + $0x1e90] sm:$0xff]  ;;  %v6595_v44 = vld [vmem:[#allocation7 + $0x1e98] sm:$0xff]  ;;  %v6546_v18 = vld [vmem:[#allocation7 + $0x1e20] sm:$0xff] }
 0x829   : > { %v5350_v23 = vadd.f32 %v5349_v21, %v13924_v28  ;;  %v12252_v33 = vpop.f32.mrb[33].mxu1  ;;  %v6388_v4 = vadd.f32 %v6380_v31, %v6338_v56  ;;  %v6430_v39 = vmul.f32 %v6422_v10, %v6410_v52  ;;  %v6440_v46 = vadd.f32 %v6432_v1, %v6390_v60  ;;  %v6497_v1 = vld [vmem:[#allocation7 + $0x1da8] sm:$0xff]  ;;  %v13930_v10 = vld [vmem:[#allocation29_spill] sm:$0xff] }
 0x82a   : > { %v6569_v25 = vpop.permute.xlu0 %6568  ;;  %v12258_v24 = vpop.permute.xlu1 %6574  ;;  %v6389_v11 = vadd.f32 %v6381_v30, %v6339_v0  ;;  %v6431_v9 = vmul.f32 %v6423_v3, %v6409_v51  ;;  %v6462_v55 = vadd.f32 %v13929_v48, %v6437_v63  ;;  %v6507_v42 = vmul.f32 %v6499_v58, %v12211_v19  ;;  %v6498_v52 = vld [vmem:[#allocation7 + $0x1db0] sm:$0xff] }
 0x82b   : > { %13926 = vst [vmem:[#allocation82_spill] sm:$0xff] %v12258_v24  ;;  %v12264_v17 = vmax.f32 %v5350_v23, 0.0  ;;  %v6588_v22 = vsel %vm6582_vm0, %v6569_v25, %v6571_v15  ;;  %v12268_v7 = vpop.f32.mrb[30].mxu0  ;;  %v6438_v19 = vadd.f32 %v6430_v39, %v6388_v4  ;;  %v6465_v63 = vadd.f32 %v12132_v41, %v6440_v46 }
 0x82c   : > { %13927 = vst [vmem:[#allocation39_spill] sm:$0xff] %v12268_v7  ;;  %v6601_v32 = vmul.f32 %v6593_v16, %v6588_v22  ;;  %v12272_v20 = vpop.f32.mrb[34].mxu1  ;;  %v12274_v38 = vpop.f32.mrb[31].mxu0  ;;  %v6512_v31 = vadd.f32 %v6504_v26, %v6462_v55  ;;  %v6456_v8 = vmul.f32 %v6448_v54, %v13930_v10  ;;  %v6439_v53 = vadd.f32 %v6431_v9, %v6389_v11  ;;  %v5529_v7 = vld [vmem:[#allocation7 + $0x1680] sm:$0xff] }
 0x82d   : > { %13928 = vst [vmem:[#allocation30_spill] sm:$0xff] %v12274_v38  ;;  %v12276_v27 = vpop.f32.mrb[35].mxu1  ;;  %5655 = vrot.lane.b32.xlu0 %v12264_v17, %s7566_s11  ;;  %5508 = vrot.lane.b32.xlu1 %v12264_v17, %s7564_s9  ;;  %v6515_v0 = vadd.f32 %v6507_v42, %v6465_v63  ;;  %vm6632_vm10 = vcmp.lt.s32.totalorder %v8126_v14, 94 }
 0x82e   : > { %v12283_v45 = vadd.f32 %v6601_v32, %v6559_v35  ;;  %v6573_v40 = vpop.permute.xlu0 %6572  ;;  %v6527_v29 = vpop.permute.xlu1 %6526  ;;  %v5352_v35 = vadd.f32 %v12252_v33, %v13924_v28  ;;  %v6506_v32 = vmul.f32 %v6498_v52, %v12241_v12  ;;  %v6547_v33 = vld [vmem:[#allocation7 + $0x1e28] sm:$0xff] }
 0x82f   : > { %v6586_v61 = vsel %vm6582_vm0, %v6573_v40, %v12258_v24  ;;  %v6587_v36 = vsel %vm6582_vm0, %v6571_v15, %v6573_v40  ;;  %v6535_v21 = vsel %vm6532_vm15, %v12137_v59, %v6527_v29  ;;  %v12294_v56 = vpop.f32.mrb[32].mxu0  ;;  %v6592_v59 = vld [vmem:[#allocation7 + $0x1e80] sm:$0xff]  ;;  %v6549_v15 = vld [vmem:[#allocation7 + $0x1e38] sm:$0xff] }
 0x830   : > { %v6602_v47 = vmul.f32 %v6594_v49, %v6587_v36  ;;  %v6603_v23 = vmul.f32 %v6595_v44, %v6586_v61  ;;  %v6554_v16 = vmul.f32 %v6546_v18, %v6535_v21  ;;  %v12296_v30 = vpop.f32.mrb[33].mxu0  ;;  %v6464_v49 = vadd.f32 %v6456_v8, %v6439_v53 }
 0x831   : > { %5729 = vrot.lane.b32.xlu0 %v12264_v17, %s7567_s13  ;;  %5557 = vrot.lane.b32.xlu1 %v12264_v17, %s7563_s25  ;;  %v12332_v18 = vmax.f32 %v5352_v35, 0.0 }
 0x832   : > { %v6610_v60 = vadd.f32 %v6602_v47, %v12191_v62  ;;  %v6611_v3 = vadd.f32 %v6603_v23, %v12193_v43  ;;  %v12306_v51 = vadd.f32 %v6554_v16, %v6512_v31  ;;  %v12308_v22 = vpop.permute.xlu0 %6566  ;;  %v6531_v41 = vpop.permute.xlu1 %6530  ;;  %v6505_v43 = vmul.f32 %v6497_v1, %v12245_v13  ;;  %v6644_v31 = vld [vmem:[#allocation7 + $0x1f10] sm:$0xff]  ;;  %v6645_v1 = vld [vmem:[#allocation7 + $0x1f18] sm:$0xff] }
 0x833   : > { %13932 = vst [vmem:[#allocation77_spill] sm:$0xff] %v12308_v22  ;;  %v6589_v26 = vsel %vm6582_vm0, %v12308_v22, %v6569_v25  ;;  %v6540_v58 = vsel %vm6532_vm15, %v6531_v41, %v12195_v6  ;;  %v12318_v62 = vpop.f32.mrb[34].mxu0  ;;  %v6548_v25 = vld [vmem:[#allocation7 + $0x1e30] sm:$0xff]  ;;  %v6463_v6 = vadd.f32 %v12135_v37, %v6438_v19  ;;  %13934 = vst [vmem:[#allocation19_spill] sm:$0xff] %v12332_v18  ;;  %v5579_v22 = vld [vmem:[#allocation7 + $0x1708] sm:$0xff] }
 0x834   : > { %13931 = vst [vmem:[#allocation100_spill] sm:$0xff] %v12306_v51  ;;  %v6600_v4 = vmul.f32 %v6592_v59, %v6589_v26  ;;  %v6557_v39 = vmul.f32 %v6549_v15, %v6540_v58  ;;  %v12322_v46 = vpop.f32.mrb[35].mxu0  ;;  %v6514_v55 = vadd.f32 %v6506_v32, %v6464_v49  ;;  %v6642_v59 = vld [vmem:[#allocation7 + $0x1f00] sm:$0xff] }
 0x835   : > { %5827 = vrot.lane.b32.xlu0 %v12264_v17, %s7569_s30  ;;  %5606 = vrot.lane.b32.xlu1 %v12264_v17, %s7565_s10  ;;  %v6513_v48 = vadd.f32 %v6505_v43, %v6463_v6  ;;  %v5281_v43 = vadd.f32 %v12296_v30, %v13924_v28  ;;  %v5421_v30 = vadd.f32 %v12318_v62, %v13924_v28  ;;  %v5627_v51 = vld [vmem:[#allocation7 + $0x1780] sm:$0xff] }
 0x836   : > { %v6608_v44 = vadd.f32 %v6600_v4, %v12233_v50  ;;  %v12330_v13 = vadd.f32 %v6557_v39, %v6515_v0  ;;  %v6529_v12 = vpop.permute.xlu0 %6528  ;;  %v6621_v40 = vpop.permute.xlu1 %6620  ;;  %v6643_v50 = vld [vmem:[#allocation7 + $0x1f08] sm:$0xff]  ;;  %v5423_v62 = vadd.f32 %v12322_v46, %v13924_v28 }
 0x837   : > { %v6533_v11 = vsel %vm6532_vm15, %v6529_v12, %v6531_v41  ;;  %v6534_v9 = vsel %vm6532_vm15, %v6527_v29, %v6529_v12  ;;  %v12464_v32 = vmax.f32 %v5421_v30, 0.0 }
 0x838   : > { %13933 = vst [vmem:[#allocation86_spill] sm:$0xff] %v12330_v13  ;;  %v6555_v54 = vmul.f32 %v6547_v33, %v6534_v9  ;;  %v6556_v37 = vmul.f32 %v6548_v25, %v6533_v11  ;;  %v12484_v4 = vmax.f32 %v5423_v62, 0.0  ;;  %v4633_v9 = vld [vmem:[#allocation5 + $0x48] sm:$0xff] }
 0x839   : > { %5510 = vrot.lane.b32.xlu0 %v12332_v18, %s7564_s9  ;;  %5778 = vrot.lane.b32.xlu1 %v12264_v17, %s7568_s14  ;;  %13944 = vst [vmem:[#allocation75_spill] sm:$0xff] %v12464_v32 }
 0x83a   : > { %v12343_v42 = vadd.f32 %v6555_v54, %v6513_v48  ;;  %v12345_v61 = vadd.f32 %v6556_v37, %v6514_v55  ;;  %v6619_v36 = vpop.permute.xlu0 %6618  ;;  %v12353_v47 = vpop.permute.xlu1 %6624  ;;  %13945 = vst [vmem:[#allocation37_spill] sm:$0xff] %v12484_v4 }
 0x83b   : > { %v6638_v29 = vsel %vm6632_vm10, %v6619_v36, %v6621_v40  ;;  %13937 = vst [vmem:[#allocation62_spill] sm:$0xff] %v12353_v47 }
 0x83c   : > { %13935 = vst [vmem:[#allocation74_spill] sm:$0xff] %v12343_v42  ;;  %13936 = vst [vmem:[#allocation22_spill] sm:$0xff] %v12345_v61  ;;  %v6651_v21 = vmul.f32 %v6643_v50, %v6638_v29  ;;  %v5924_v29 = vld [vmem:[#allocation5 + $0x60] sm:$0xff]  ;;  %v5703_v61 = vld [vmem:[#allocation7 + $0x1890] sm:$0xff] }
 0x83d   : > { %5559 = vrot.lane.b32.xlu0 %v12332_v18, %s7563_s25  ;;  %5876 = vrot.lane.b32.xlu1 %v12264_v17, %s7570_s21  ;;  %v5702_v42 = vld [vmem:[#allocation7 + $0x1888] sm:$0xff] }
 0x83e   : > { %v6623_v23 = vpop.permute.xlu0 %6622  ;;  %v12356_v16 = vadd.f32 %v6651_v21, %v12283_v45 }
 0x83f   : > { %v6636_v19 = vsel %vm6632_vm10, %v6623_v23, %v12353_v47  ;;  %v6637_v63 = vsel %vm6632_vm10, %v6621_v40, %v6623_v23  ;;  %v4632_v40 = vld [vmem:[#allocation5 + $0x40] sm:$0xff]  ;;  %v5581_v47 = vld [vmem:[#allocation7 + $0x1718] sm:$0xff] }
 0x840   : > { %13938 = vst [vmem:[#allocation43_spill] sm:$0xff] %v12356_v16  ;;  %v6652_v8 = vmul.f32 %v6644_v31, %v6637_v63  ;;  %v6653_v52 = vmul.f32 %v6645_v1, %v6636_v19 }
 0x841   : > { %5608 = vrot.lane.b32.xlu0 %v12332_v18, %s7565_s10  ;;  %5657 = vrot.lane.b32.xlu1 %v12332_v18, %s7566_s11 }
 0x842   : > { %v12367_v15 = vadd.f32 %v6652_v8, %v6610_v60  ;;  %v12369_v45 = vpop.permute.xlu0 %6616  ;;  %v12371_v53 = vadd.f32 %v6653_v52, %v6611_v3  ;;  %v5492_v60 = vadd.f32 %v12272_v20, %v13924_v28  ;;  %v5494_v20 = vadd.f32 %v12276_v27, %v13924_v28 }
 0x843   : > { %13940 = vst [vmem:[#allocation96_spill] sm:$0xff] %v12369_v45  ;;  %v6639_v41 = vsel %vm6632_vm10, %v12369_v45, %v6619_v36  ;;  %v5279_v27 = vadd.f32 %v12294_v56, %v13924_v28  ;;  %v12440_v56 = vmax.f32 %v5281_v43, 0.0 }
 0x844   : > { %13939 = vst [vmem:[#allocation64_spill] sm:$0xff] %v12367_v15  ;;  %13941 = vst [vmem:[#allocation16_spill] sm:$0xff] %v12371_v53  ;;  %v6650_v0 = vmul.f32 %v6642_v59, %v6639_v41  ;;  %v12388_v3 = vmax.f32 %v5492_v60, 0.0  ;;  %v12408_v26 = vmax.f32 %v5494_v20, 0.0 }
 0x845   : > { %5780 = vrot.lane.b32.xlu0 %v12332_v18, %s7568_s14  ;;  %5731 = vrot.lane.b32.xlu1 %v12332_v18, %s7567_s13  ;;  %v12428_v58 = vmax.f32 %v5279_v27, 0.0 }
 0x846   : > { %v12380_v35 = vadd.f32 %v6650_v0, %v6608_v44  ;;  %13943 = vst [vmem:[#allocation69_spill] sm:$0xff] %v12388_v3 }
 0x848   : > { %13942 = vst [vmem:[#allocation42_spill] sm:$0xff] %v12380_v35 }
 0x849   : > { %5878 = vrot.lane.b32.xlu0 %v12332_v18, %s7570_s21  ;;  %5829 = vrot.lane.b32.xlu1 %v12332_v18, %s7569_s30  ;;  %v5677_v18 = vld [vmem:[#allocation7 + $0x1808] sm:$0xff] }
 0x84d   : > { %5516 = vrot.lane.b32.xlu0 %v12388_v3, %s7564_s9  ;;  %5565 = vrot.lane.b32.xlu1 %v12388_v3, %s7563_s25 }
 0x851   : > { %5663 = vrot.lane.b32.xlu0 %v12388_v3, %s7566_s11  ;;  %5614 = vrot.lane.b32.xlu1 %v12388_v3, %s7565_s10 }
 0x855   : > { %5786 = vrot.lane.b32.xlu0 %v12388_v3, %s7568_s14  ;;  %5737 = vrot.lane.b32.xlu1 %v12388_v3, %s7567_s13 }
 0x859   : > { %5884 = vrot.lane.b32.xlu0 %v12388_v3, %s7570_s21  ;;  %5835 = vrot.lane.b32.xlu1 %v12388_v3, %s7569_s30 }
 0x85d   : > { %5567 = vrot.lane.b32.xlu0 %v12408_v26, %s7563_s25  ;;  %5518 = vrot.lane.b32.xlu1 %v12408_v26, %s7564_s9 }
 0x861   : > { %5665 = vrot.lane.b32.xlu0 %v12408_v26, %s7566_s11  ;;  %5616 = vrot.lane.b32.xlu1 %v12408_v26, %s7565_s10 }
 0x865   : > { %5739 = vrot.lane.b32.xlu0 %v12408_v26, %s7567_s13  ;;  %5788 = vrot.lane.b32.xlu1 %v12408_v26, %s7568_s14 }
 0x869   : > { %5837 = vrot.lane.b32.xlu0 %v12408_v26, %s7569_s30  ;;  %5886 = vrot.lane.b32.xlu1 %v12408_v26, %s7570_s21 }
 0x86d   : > { %5651 = vrot.lane.b32.xlu0 %v12428_v58, %s7566_s11  ;;  %5504 = vrot.lane.b32.xlu1 %v12428_v58, %s7564_s9 }
 0x871   : > { %5774 = vrot.lane.b32.xlu0 %v12428_v58, %s7568_s14  ;;  %5553 = vrot.lane.b32.xlu1 %v12428_v58, %s7563_s25 }
 0x875   : > { %5506 = vrot.lane.b32.xlu0 %v12440_v56, %s7564_s9  ;;  %5602 = vrot.lane.b32.xlu1 %v12428_v58, %s7565_s10 }
 0x879   : > { %5555 = vrot.lane.b32.xlu0 %v12440_v56, %s7563_s25  ;;  %5725 = vrot.lane.b32.xlu1 %v12428_v58, %s7567_s13 }
 0x87d   : > { %5604 = vrot.lane.b32.xlu0 %v12440_v56, %s7565_s10  ;;  %5823 = vrot.lane.b32.xlu1 %v12428_v58, %s7569_s30 }
 0x881   : > { %5776 = vrot.lane.b32.xlu0 %v12440_v56, %s7568_s14  ;;  %5872 = vrot.lane.b32.xlu1 %v12428_v58, %s7570_s21 }
 0x885   : > { %5874 = vrot.lane.b32.xlu0 %v12440_v56, %s7570_s21  ;;  %5653 = vrot.lane.b32.xlu1 %v12440_v56, %s7566_s11 }
 0x889   : > { %5512 = vrot.lane.b32.xlu0 %v12464_v32, %s7564_s9  ;;  %5727 = vrot.lane.b32.xlu1 %v12440_v56, %s7567_s13 }
 0x88d   : > { %5659 = vrot.lane.b32.xlu0 %v12464_v32, %s7566_s11  ;;  %5825 = vrot.lane.b32.xlu1 %v12440_v56, %s7569_s30 }
 0x891   : > { %5733 = vrot.lane.b32.xlu0 %v12464_v32, %s7567_s13  ;;  %5561 = vrot.lane.b32.xlu1 %v12464_v32, %s7563_s25 }
 0x895   : > { %5831 = vrot.lane.b32.xlu0 %v12464_v32, %s7569_s30  ;;  %5610 = vrot.lane.b32.xlu1 %v12464_v32, %s7565_s10 }
 0x899   : > { %5563 = vrot.lane.b32.xlu0 %v12484_v4, %s7563_s25  ;;  %5782 = vrot.lane.b32.xlu1 %v12464_v32, %s7568_s14  ;;  %s12947_s25 = scalar_lea.vmem (%p14001_p6), %s13024_s4, %s7228_s17 }
 0x89d   : > { %5612 = vrot.lane.b32.xlu0 %v12484_v4, %s7565_s10  ;;  %5880 = vrot.lane.b32.xlu1 %v12464_v32, %s7570_s21  ;;  %v12600_v32 = vmul.f32 %v5703_v61, %v12264_v17  ;;  %v5585_v17 = vld [vmem:[#allocation7 + $0x1738] sm:$0xff] }
 0x89f   : > { %v12494_v28 = vpop.permute.xlu0 %5655  ;;  %v12496_v39 = vpop.permute.xlu1 %5508 }
 0x8a1   : > { %5735 = vrot.lane.b32.xlu0 %v12484_v4, %s7567_s13  ;;  %5514 = vrot.lane.b32.xlu1 %v12484_v4, %s7564_s9 }
 0x8a3   : > { %v12502_v46 = vpop.permute.xlu0 %5729  ;;  %v12504_v33 = vpop.permute.xlu1 %5557 }
 0x8a5   : > { %5833 = vrot.lane.b32.xlu0 %v12484_v4, %s7569_s30  ;;  %5661 = vrot.lane.b32.xlu1 %v12484_v4, %s7566_s11 }
 0x8a7   : > { %v12510_v25 = vpop.permute.xlu0 %5827  ;;  %v12512_v6 = vpop.permute.xlu1 %5606 }
 0x8a9   : > { %6578 = vrot.lane.b32.xlu0 %v13930_v10, %s7577_s8  ;;  %6576 = vrot.lane.b32.xlu1 %v11909_v5, %s7577_s8 }
 0x8ab   : > { %v12518_v49 = vpop.permute.xlu0 %5510  ;;  %v12520_v44 = vpop.permute.xlu1 %5778 }
 0x8ac   : > { %13946 = vst [vmem:[#allocation67_spill] sm:$0xff] %v12518_v49 }
 0x8ad   : > { %6626 = vrot.lane.b32.xlu0 %v11909_v5, %s7578_s23  ;;  %5784 = vrot.lane.b32.xlu1 %v12484_v4, %s7568_s14  ;;  %v6669_v5 = vld [vmem:[#allocation5 + $0x70] sm:$0xff] }
 0x8af   : > { %v12526_v12 = vpop.permute.xlu0 %5559  ;;  %v12528_v11 = vpop.permute.xlu1 %5876 }
 0x8b0   : > { %13947 = vst [vmem:[#allocation47_spill] sm:$0xff] %v12526_v12  ;;  %v5573_v24 = vsel %vm796_vm2, %v12504_v33, %v12526_v12 }
 0x8b1   : > { %6630 = vrot.lane.b32.xlu0 %v11900_v57, %s7578_s23  ;;  %5882 = vrot.lane.b32.xlu1 %v12484_v4, %s7570_s21  ;;  %v5530_v4 = vld [vmem:[#allocation7 + $0x1688] sm:$0xff] }
 0x8b3   : > { %v12534_v48 = vpop.permute.xlu0 %5608  ;;  %v12536_v55 = vpop.permute.xlu1 %5657 }
 0x8b5   : > { %4641 = vperm.xlu0 %7434, %v4633_v9   ;;  %6580 = vrot.lane.b32.xlu1 %v11900_v57, %s7577_s8 }
 0x8b7   : > { %v12540_v54 = vpop.permute.xlu0 %5780  ;;  %v12542_v37 = vpop.permute.xlu1 %5731 }
 0x8b9   : > { %6672 = vperm.xlu0 %7434, %v6669_v5   ;;  %6628 = vrot.lane.b32.xlu1 %v13930_v10, %s7578_s23 }
 0x8bb   : > { %v12546_v50 = vpop.permute.xlu0 %5878  ;;  %v12548_v36 = vpop.permute.xlu1 %5829 }
 0x8bc   : > { %13948 = vst [vmem:[#allocation76_spill] sm:$0xff] %v12546_v50  ;;  %13949 = vst [vmem:[#allocation98_spill] sm:$0xff] %v12548_v36  ;;  %v5676_v50 = vld [vmem:[#allocation7 + $0x1800] sm:$0xff] }
 0x8bd   : > { %4636 = vperm.xlu1 %7435, %v4632_v40  }
 0x8bf   : > { %v12550_v21 = vpop.permute.xlu0 %5516  ;;  %v12552_v31 = vpop.permute.xlu1 %5565 }
 0x8c0   : > { %13950 = vst [vmem:[#allocation87_spill] sm:$0xff] %v12550_v21  ;;  %13951 = vst [vmem:[#allocation51_spill] sm:$0xff] %v12552_v31 }
 0x8c1   : > { %5927 = vperm.xlu1 %7435, %v5924_v29  }
 0x8c3   : > { %v12554_v57 = vpop.permute.xlu0 %5663  ;;  %v12556_v1 = vpop.permute.xlu1 %5614 }
 0x8c7   : > { %v12558_v23 = vpop.permute.xlu0 %5786  ;;  %v12560_v19 = vpop.permute.xlu1 %5737 }
 0x8c8   : > { %13952 = vst [vmem:[#allocation83_spill] sm:$0xff] %v12558_v23  ;;  %13953 = vst [vmem:[#allocation38_spill] sm:$0xff] %v12560_v19  ;;  %v5628_v23 = vld [vmem:[#allocation7 + $0x1788] sm:$0xff] }
 0x8cb   : > { %v12562_v10 = vpop.permute.xlu0 %5884  ;;  %v12564_v63 = vpop.permute.xlu1 %5835 }
 0x8cc   : > { %13954 = vst [vmem:[#allocation59_spill] sm:$0xff] %v12562_v10  ;;  %13955 = vst [vmem:[#allocation46_spill] sm:$0xff] %v12564_v63 }
 0x8cf   : > { %v5568_v8 = vpop.permute.xlu0 %5567  ;;  %v5519_v52 = vpop.permute.xlu1 %5518 }
 0x8d0   : > { %v5569_v61 = vsel %vm796_vm2, %v12552_v31, %v5568_v8 }
 0x8d3   : > { %v12566_v59 = vpop.permute.xlu0 %5665  ;;  %v12568_v41 = vpop.permute.xlu1 %5616 }
 0x8d7   : > { %v12570_v0 = vpop.permute.xlu0 %5739  ;;  %v12572_v60 = vpop.permute.xlu1 %5788 }
 0x8db   : > { %v12574_v20 = vpop.permute.xlu0 %5837  ;;  %v12576_v27 = vpop.permute.xlu1 %5886 }
 0x8dc   : > { %13956 = vst [vmem:[#allocation93_spill] sm:$0xff] %v12576_v27  ;;  %v5629_v27 = vld [vmem:[#allocation7 + $0x1790] sm:$0xff] }
 0x8df   : > { %v12578_v43 = vpop.permute.xlu0 %5651  ;;  %v5505_v30 = vpop.permute.xlu1 %5504 }
 0x8e0   : > { %v5527_v35 = vsel %vm699_vm1, %v5519_v52, %v5505_v30 }
 0x8e1   : > { %v5537_v10 = vmul.f32 %v5529_v7, %v5527_v35  ;;  %v12611_v7 = vmul.f32 %v5702_v42, %v12440_v56  ;;  %v5520_v35 = vsel %vm699_vm1, %v12550_v21, %v5519_v52  ;;  %v5674_v42 = vsel %vm992_vm4, %v12566_v59, %v12578_v43  ;;  %v5580_v56 = vld [vmem:[#allocation7 + $0x1710] sm:$0xff] }
 0x8e2   : > { %v5531_v52 = vld [vmem:[#allocation7 + $0x1690] sm:$0xff] }
 0x8e3   : > { %v12580_v62 = vpop.permute.xlu0 %5774  ;;  %v5554_v9 = vpop.permute.xlu1 %5553 }
 0x8e4   : > { %v5576_v38 = vsel %vm796_vm2, %v5568_v8, %v5554_v9 }
 0x8e5   : > { %v5586_v15 = vmul.f32 %v5578_v34, %v5576_v38  ;;  %v5701_v34 = vld [vmem:[#allocation7 + $0x1880] sm:$0xff]  ;;  %v5524_v38 = vsel %vm699_vm1, %v12496_v39, %v12518_v49 }
 0x8e6   : > { %v5709_v31 = vmul.f32 %v5701_v34, %v12428_v58  ;;  %v5618_v58 = vsel %vm894_vm3, %v12556_v1, %v12568_v41 }
 0x8e7   : > { %v5507_v5 = vpop.permute.xlu0 %5506  ;;  %v5603_v40 = vpop.permute.xlu1 %5602  ;;  %v5594_v3 = vadd.f32 %v5586_v15, %v5537_v10  ;;  %v5593_v10 = vmul.f32 %v5585_v17, %v5569_v61  ;;  %v12655_v17 = vsel %vm992_vm4, %v12494_v28, %v12536_v55 }
 0x8e8   : > { %v5625_v16 = vsel %vm894_vm3, %v12568_v41, %v5603_v40 }
 0x8e9   : > { %v5635_v63 = vmul.f32 %v5627_v51, %v5625_v16  ;;  %v5532_v51 = vld [vmem:[#allocation7 + $0x1698] sm:$0xff] }
 0x8ea   : > { %v5536_v16 = vld [vmem:[#allocation7 + $0x16b8] sm:$0xff] }
 0x8eb   : > { %v5556_v29 = vpop.permute.xlu0 %5555  ;;  %v12582_v2 = vpop.permute.xlu1 %5725  ;;  %v5544_v21 = vmul.f32 %v5536_v16, %v5520_v35  ;;  %v5750_v35 = vld [vmem:[#allocation7 + $0x1900] sm:$0xff] }
 0x8ec   : > { %v5575_v45 = vsel %vm796_vm2, %v5554_v9, %v5556_v29  ;;  %v5526_v9 = vsel %vm699_vm1, %v5505_v30, %v5507_v5  ;;  %v5574_v8 = vsel %vm796_vm2, %v5556_v29, %v12504_v33  ;;  %v5634_v33 = vld [vmem:[#allocation7 + $0x17b8] sm:$0xff]  ;;  %v5684_v29 = vmul.f32 %v5676_v50, %v5674_v42  ;;  %v5751_v42 = vld [vmem:[#allocation7 + $0x1908] sm:$0xff] }
 0x8ed   : > { %v5587_v30 = vmul.f32 %v5579_v22, %v5575_v45  ;;  %v5525_v22 = vsel %vm699_vm1, %v5507_v5, %v12496_v39  ;;  %v5538_v15 = vmul.f32 %v5530_v4, %v5526_v9  ;;  %v5540_v45 = vmul.f32 %v5532_v51, %v5524_v38  ;;  %v5678_v5 = vld [vmem:[#allocation7 + $0x1810] sm:$0xff] }
 0x8ee   : > { %v5588_v39 = vmul.f32 %v5580_v56, %v5574_v8  ;;  %v5622_v51 = vsel %vm894_vm3, %v12512_v6, %v12534_v48  ;;  %v5601_v61 = vadd.f32 %v5593_v10, %v5544_v21  ;;  %v5642_v16 = vmul.f32 %v5634_v33, %v5618_v58  ;;  %v5799_v8 = vld [vmem:[#allocation7 + $0x1980] sm:$0xff] }
 0x8ef   : > { %v5605_v13 = vpop.permute.xlu0 %5604  ;;  %v12591_v53 = vpop.permute.xlu1 %5823  ;;  %v5595_v4 = vadd.f32 %v5587_v30, %v5538_v15  ;;  %v5630_v30 = vld [vmem:[#allocation7 + $0x1798] sm:$0xff] }
 0x8f0   : > { %v5624_v19 = vsel %vm894_vm3, %v5603_v40, %v5605_v13  ;;  %v5589_v40 = vmul.f32 %v5581_v47, %v5573_v24  ;;  %v5643_v24 = vadd.f32 %v5635_v63, %v5594_v3  ;;  %v5623_v36 = vsel %vm894_vm3, %v5605_v13, %v12512_v6 }
 0x8f1   : > { %v5636_v47 = vmul.f32 %v5628_v23, %v5624_v19  ;;  %v5539_v63 = vmul.f32 %v5531_v52, %v5525_v22  ;;  %v5637_v9 = vmul.f32 %v5629_v27, %v5623_v36  ;;  %v5638_v10 = vmul.f32 %v5630_v30, %v5622_v51  ;;  %v5757_v51 = vld [vmem:[#allocation7 + $0x1938] sm:$0xff] }
 0x8f2   : > { %v12639_v19 = vadd.f32 %v5589_v40, %v5540_v45  ;;  %v5692_v38 = vadd.f32 %v5684_v29, %v5643_v24  ;;  %v5650_v58 = vadd.f32 %v5642_v16, %v5601_v61  ;;  %v5748_v61 = vsel %vm1139_vm5, %v12570_v0, %v12582_v2  ;;  %v5898_v16 = vld [vmem:[#allocation7 + $0x1a88] sm:$0xff] }
 0x8f3   : > { %v5777_v49 = vpop.permute.xlu0 %5776  ;;  %v12619_v12 = vpop.permute.xlu1 %5872  ;;  %v5644_v41 = vadd.f32 %v5636_v47, %v5595_v4  ;;  %v5596_v36 = vadd.f32 %v5588_v39, %v5539_v63  ;;  %v5848_v39 = vld [vmem:[#allocation7 + $0x1a00] sm:$0xff] }
 0x8f4   : > { %v5795_v21 = vsel %vm1237_vm6, %v5777_v49, %v12520_v44  ;;  %v5796_v52 = vsel %vm1237_vm6, %v12580_v62, %v5777_v49  ;;  %v5717_v47 = vadd.f32 %v5709_v31, %v5692_v38 }
 0x8f5   : > { %v5645_v15 = vadd.f32 %v5637_v9, %v5596_v36  ;;  %v5807_v4 = vmul.f32 %v5799_v8, %v5796_v52  ;;  %v5752_v36 = vld [vmem:[#allocation7 + $0x1910] sm:$0xff]  ;;  %v5646_v8 = vadd.f32 %v5638_v10, %v12639_v19  ;;  %v5704_v10 = vld [vmem:[#allocation7 + $0x1898] sm:$0xff] }
 0x8f7   : > { %v5875_v3 = vpop.permute.xlu0 %5874  ;;  %v5654_v23 = vpop.permute.xlu1 %5653 }
 0x8f8   : > { %v5672_v13 = vsel %vm992_vm4, %v5654_v23, %v12494_v28  ;;  %v5673_v34 = vsel %vm992_vm4, %v12578_v43, %v5654_v23  ;;  %v5683_v43 = vld [vmem:[#allocation7 + $0x1838] sm:$0xff]  ;;  %v5800_v28 = vld [vmem:[#allocation7 + $0x1988] sm:$0xff] }
 0x8f9   : > { %v5685_v50 = vmul.f32 %v5677_v18, %v5673_v34  ;;  %v5667_v18 = vsel %vm992_vm4, %v12554_v57, %v12566_v59  ;;  %v5686_v27 = vmul.f32 %v5678_v5, %v5672_v13  ;;  %v5808_v49 = vmul.f32 %v5800_v28, %v5795_v21  ;;  %v5849_v13 = vld [vmem:[#allocation7 + $0x1a08] sm:$0xff] }
 0x8fa   : > { %v5691_v33 = vmul.f32 %v5683_v43, %v5667_v18  ;;  %v5679_v18 = vld [vmem:[#allocation7 + $0x1818] sm:$0xff] }
 0x8fb   : > { %v5693_v40 = vadd.f32 %v5685_v50, %v5644_v41  ;;  %v12661_v6 = vpop.permute.xlu0 %5512  ;;  %v5728_v56 = vpop.permute.xlu1 %5727  ;;  %v5694_v23 = vadd.f32 %v5686_v27, %v5645_v15  ;;  %v5897_v41 = vld [vmem:[#allocation7 + $0x1a80] sm:$0xff]  ;;  %v5708_v50 = vld [vmem:[#allocation7 + $0x18b8] sm:$0xff]  ;;  %v5745_v27 = vsel %vm1139_vm5, %v12502_v46, %v12542_v37 }
 0x8fc   : > { %v5746_v59 = vsel %vm1139_vm5, %v5728_v56, %v12502_v46  ;;  %v5747_v22 = vsel %vm1139_vm5, %v12582_v2, %v5728_v56  ;;  %v5687_v46 = vmul.f32 %v5679_v18, %v12655_v17  ;;  %v5797_v17 = vsel %vm1237_vm6, %v12572_v60, %v12580_v62  ;;  %v5850_v62 = vld [vmem:[#allocation7 + $0x1a10] sm:$0xff] }
 0x8fd   : > { %v5718_v24 = vadd.f32 %v12611_v7, %v5693_v40  ;;  %v5758_v45 = vmul.f32 %v5750_v35, %v5747_v22  ;;  %v5759_v29 = vmul.f32 %v5751_v42, %v5746_v59  ;;  %v5894_v7 = vsel %vm1433_vm8, %v12619_v12, %v5875_v3 }
 0x8fe   : > { %v5893_v35 = vsel %vm1433_vm8, %v5875_v3, %v12528_v11  ;;  %v5699_v40 = vadd.f32 %v5691_v33, %v5650_v58  ;;  %v5905_v2 = vmul.f32 %v5897_v41, %v5894_v7  ;;  %v5719_v28 = vadd.f32 %v12600_v32, %v5694_v23  ;;  %v5801_v33 = vld [vmem:[#allocation7 + $0x1990] sm:$0xff]  ;;  %v5753_v58 = vld [vmem:[#allocation7 + $0x1918] sm:$0xff]  ;;  %v13957_v7 = vld [vmem:[#allocation19_spill] sm:$0xff] }
 0x8ff   : > { %v5766_v63 = vadd.f32 %v5758_v45, %v5717_v47  ;;  %v12676_v5 = vpop.permute.xlu0 %5659  ;;  %v5826_v34 = vpop.permute.xlu1 %5825  ;;  %v5767_v31 = vadd.f32 %v5759_v29, %v5718_v24  ;;  %v5716_v59 = vmul.f32 %v5708_v50, %v12408_v26  ;;  %v5765_v22 = vmul.f32 %v5757_v51, %v5748_v61  ;;  %v5855_v41 = vld [vmem:[#allocation7 + $0x1a38] sm:$0xff] }
 0x900   : > { %v5844_v38 = vsel %vm1335_vm7, %v5826_v34, %v12510_v25  ;;  %v5845_v9 = vsel %vm1335_vm7, %v12591_v53, %v5826_v34  ;;  %v5906_v15 = vmul.f32 %v5898_v16, %v5893_v35  ;;  %v5760_v47 = vmul.f32 %v5752_v36, %v5745_v27  ;;  %v5802_v61 = vld [vmem:[#allocation7 + $0x1998] sm:$0xff]  ;;  %v13959_v35 = vld [vmem:[#allocation93_spill] sm:$0xff] }
 0x901   : > { %v5815_v30 = vadd.f32 %v5807_v4, %v5766_v63  ;;  %v5856_v43 = vmul.f32 %v5848_v39, %v5845_v9  ;;  %v5816_v42 = vadd.f32 %v5808_v49, %v5767_v31  ;;  %v5857_v56 = vmul.f32 %v5849_v13, %v5844_v38  ;;  %v5806_v4 = vld [vmem:[#allocation7 + $0x19b8] sm:$0xff]  ;;  %v12720_v63 = vld [vmem:[#allocation3 + $0x60] sm:$0xff] }
 0x902   : > { %v5794_v32 = vsel %vm1237_vm6, %v12520_v44, %v12540_v54  ;;  %v5724_v19 = vadd.f32 %v5716_v59, %v5699_v40  ;;  %v5695_v39 = vadd.f32 %v5687_v46, %v5646_v8  ;;  %v5768_v49 = vadd.f32 %v5760_v47, %v5719_v28  ;;  %v13958_v9 = vld [vmem:[#allocation98_spill] sm:$0xff]  ;;  %v13961_v59 = vld [vmem:[#allocation76_spill] sm:$0xff]  ;;  %v5582_v46 = vld [vmem:[#allocation7 + $0x1720] sm:$0xff] }
 0x903   : > { %v5864_v21 = vadd.f32 %v5856_v43, %v5815_v30  ;;  %v12700_v52 = vpop.permute.xlu0 %5733  ;;  %v12702_v3 = vpop.permute.xlu1 %5561  ;;  %v5865_v24 = vadd.f32 %v5857_v56, %v5816_v42  ;;  %v5809_v34 = vmul.f32 %v5801_v33, %v5794_v32  ;;  %v5712_v31 = vmul.f32 %v5704_v10, %v13957_v7  ;;  %v5904_v16 = vld [vmem:[#allocation7 + $0x1ab8] sm:$0xff]  ;;  %v13962_v47 = vld [vmem:[#allocation47_spill] sm:$0xff]  ;;  %v5584_v7 = vld [vmem:[#allocation7 + $0x1730] sm:$0xff] }
 0x904   : > { %v5744_v26 = vsel %vm1139_vm5, %v12542_v37, %v12700_v52  ;;  %v5773_v13 = vadd.f32 %v5765_v22, %v5724_v19  ;;  %v5846_v37 = vsel %vm1335_vm7, %v12574_v20, %v12591_v53  ;;  %v5843_v50 = vsel %vm1335_vm7, %v12510_v25, %v13958_v9  ;;  %v5851_v42 = vld [vmem:[#allocation7 + $0x1a18] sm:$0xff] }
 0x905   : > { %v5913_v45 = vadd.f32 %v5905_v2, %v5864_v21  ;;  %v5914_v29 = vadd.f32 %v5906_v15, %v5865_v24  ;;  %v5761_v38 = vmul.f32 %v5753_v58, %v5744_v26  ;;  %v5814_v51 = vmul.f32 %v5806_v4, %v5797_v17  ;;  %v5899_v21 = vld [vmem:[#allocation7 + $0x1a90] sm:$0xff]  ;;  %v5900_v24 = vld [vmem:[#allocation7 + $0x1a98] sm:$0xff]  ;;  %v5533_v26 = vld [vmem:[#allocation7 + $0x16a0] sm:$0xff] }
 0x906   : > { %v5895_v53 = vsel %vm1433_vm8, %v13959_v35, %v12619_v12  ;;  %v5817_v30 = vadd.f32 %v5809_v34, %v5768_v49  ;;  %v5720_v43 = vadd.f32 %v5712_v31, %v5695_v39  ;;  %v13960_v27 = vmov 0.0   ;;  %v5631_v17 = vld [vmem:[#allocation7 + $0x17a0] sm:$0xff] }
 0x907   : > { %v12718_v23 = vpop.permute.xlu0 %5831  ;;  %v5611_v44 = vpop.permute.xlu1 %5610  ;;  %5933 = vmatprep.subr.mxu0 %v5914_v29  ;;  %v5822_v40 = vadd.f32 %v5814_v51, %v5773_v13  ;;  %v5863_v25 = vmul.f32 %v5855_v41, %v5846_v37  ;;  %v5858_v8 = vmul.f32 %v5850_v62, %v5843_v50  ;;  %v5892_v22 = vsel %vm1433_vm8, %v12528_v11, %v13961_v59  ;;  %v13963_v29 = vld [vmem:[#allocation67_spill] sm:$0xff]  ;;  %v5583_v13 = vld [vmem:[#allocation7 + $0x1728] sm:$0xff]  ;;  %v5535_v50 = vld [vmem:[#allocation7 + $0x16b0] sm:$0xff] }
 0x908   : > { %5934 = vmatpush1.msra.mxu0 %v5913_v45  ;;  %v5842_v56 = vsel %vm1335_vm7, %v13958_v9, %v12718_v23  ;;  %v5769_v2 = vadd.f32 %v5761_v38, %v5720_v43  ;;  %v5912_v15 = vmul.f32 %v5904_v16, %v5895_v53  ;;  %v5572_v45 = vsel %vm796_vm2, %v13962_v47, %v12702_v3  ;;  %v13964_v31 = vld [vmem:[#allocation51_spill] sm:$0xff]  ;;  %v5534_v9 = vld [vmem:[#allocation7 + $0x16a8] sm:$0xff] }
 0x909   : > { %7214 = vmatmul.mubr.msk.f32.vlgmr.msra.gmra.mrb[36].mxu0 %vm5208_vm9, %v12720_v63  ;;  %v5859_v33 = vmul.f32 %v5851_v42, %v5842_v56  ;;  %v5866_v10 = vadd.f32 %v5858_v8, %v5817_v30  ;;  %v5871_v58 = vadd.f32 %v5863_v25, %v5822_v40  ;;  %v5523_v11 = vsel %vm699_vm1, %v13963_v29, %v12661_v6  ;;  %v5632_v16 = vld [vmem:[#allocation7 + $0x17a8] sm:$0xff]  ;;  %v5633_v42 = vld [vmem:[#allocation7 + $0x17b0] sm:$0xff] }
 0x90a   : > { %6139 = vmatprep.mubr.f32.mxu0 %v13960_v27  ;;  %v5907_v4 = vmul.f32 %v5899_v21, %v5892_v22  ;;  %v5621_v49 = vsel %vm894_vm3, %v12534_v48, %v5611_v44  ;;  %v5590_v37 = vmul.f32 %v5582_v46, %v5572_v45  ;;  %v5670_v21 = vsel %vm992_vm4, %v12536_v55, %v12676_v5  ;;  %v5707_v22 = vld [vmem:[#allocation7 + $0x18b0] sm:$0xff] }
 0x90b   : > { %v5564_v18 = vpop.permute.xlu0 %5563  ;;  %v12737_v36 = vpop.permute.xlu1 %5782  ;;  %v5920_v51 = vadd.f32 %v5912_v15, %v5871_v58  ;;  %v5639_v25 = vmul.f32 %v5631_v17, %v5621_v49  ;;  %v5680_v15 = vld [vmem:[#allocation7 + $0x1820] sm:$0xff] }
 0x90c   : > { %v5793_v12 = vsel %vm1237_vm6, %v12540_v54, %v12737_v36  ;;  %v5570_v38 = vsel %vm796_vm2, %v5564_v18, %v13964_v31  ;;  %v5571_v62 = vsel %vm796_vm2, %v12702_v3, %v5564_v18  ;;  %v5915_v40 = vadd.f32 %v5907_v4, %v5866_v10  ;;  %v5706_v10 = vld [vmem:[#allocation7 + $0x18a8] sm:$0xff]  ;;  %v13966_v4 = vld [vmem:[#allocation69_spill] sm:$0xff] }
 0x90d   : > { %v5810_v28 = vmul.f32 %v5802_v61, %v5793_v12  ;;  %v5541_v61 = vmul.f32 %v5533_v26, %v5523_v11  ;;  %v13965_v12 = vld [vmem:[#allocation87_spill] sm:$0xff]  ;;  %v5591_v8 = vmul.f32 %v5583_v13, %v5571_v62  ;;  %v5688_v11 = vmul.f32 %v5680_v15, %v5670_v21 }
 0x90e   : > { %v5715_v17 = vmul.f32 %v5707_v22, %v13966_v4 }
 0x90f   : > { %v5818_v32 = vadd.f32 %v5810_v28, %v5769_v2  ;;  %v5613_v54 = vpop.permute.xlu0 %5612  ;;  %v12756_v19 = vpop.permute.xlu1 %5880 }
 0x910   : > { %v5891_v39 = vsel %vm1433_vm8, %v13961_v59, %v12756_v19  ;;  %v5620_v48 = vsel %vm894_vm3, %v5611_v44, %v5613_v54  ;;  %v5619_v56 = vsel %vm894_vm3, %v5613_v54, %v12556_v1  ;;  %v5592_v44 = vmul.f32 %v5584_v7, %v5570_v38  ;;  %v5754_v7 = vld [vmem:[#allocation7 + $0x1920] sm:$0xff]  ;;  %v13969_v38 = vld [vmem:[#allocation37_spill] sm:$0xff] }
 0x911   : > { %v5908_v34 = vmul.f32 %v5900_v24, %v5891_v39  ;;  %v5867_v41 = vadd.f32 %v5859_v33, %v5818_v32  ;;  %v5598_v59 = vadd.f32 %v5590_v37, %v5541_v61  ;;  %v5640_v1 = vmul.f32 %v5632_v16, %v5620_v48  ;;  %v5682_v33 = vld [vmem:[#allocation7 + $0x1830] sm:$0xff]  ;;  %v5705_v39 = vld [vmem:[#allocation7 + $0x18a0] sm:$0xff]  ;;  %v5755_v16 = vld [vmem:[#allocation7 + $0x1928] sm:$0xff] }
 0x912   : > { %v5641_v24 = vmul.f32 %v5633_v42, %v5619_v56  ;;  %v13968_v37 = vld [vmem:[#allocation83_spill] sm:$0xff]  ;;  %v5714_v62 = vmul.f32 %v5706_v10, %v13969_v38  ;;  %v5804_v56 = vld [vmem:[#allocation7 + $0x19a8] sm:$0xff]  ;;  %v6598_v38 = vld [vmem:[#allocation7 + $0x1eb0] sm:$0xff] }
 0x913   : > { %v5736_v53 = vpop.permute.xlu0 %5735  ;;  %v5515_v30 = vpop.permute.xlu1 %5514  ;;  %v5916_v43 = vadd.f32 %v5908_v34, %v5867_v41  ;;  %v5647_v54 = vadd.f32 %v5639_v25, %v5598_v59  ;;  %v5756_v34 = vld [vmem:[#allocation7 + $0x1930] sm:$0xff]  ;;  %v13967_v41 = vld [vmem:[#allocation38_spill] sm:$0xff]  ;;  %v5852_v59 = vld [vmem:[#allocation7 + $0x1a20] sm:$0xff] }
 0x914   : > { %v5521_v3 = vsel %vm699_vm1, %v5515_v30, %v13965_v12  ;;  %v5522_v18 = vsel %vm699_vm1, %v12661_v6, %v5515_v30  ;;  %v5681_v6 = vld [vmem:[#allocation7 + $0x1828] sm:$0xff]  ;;  %v5743_v31 = vsel %vm1139_vm5, %v12700_v52, %v5736_v53 }
 0x915   : > { %v5542_v2 = vmul.f32 %v5534_v9, %v5522_v18  ;;  %v5543_v28 = vmul.f32 %v5535_v50, %v5521_v3  ;;  %6004 = vmatprep.subr.mxu1 %v5916_v43  ;;  %v5696_v61 = vadd.f32 %v5688_v11, %v5647_v54  ;;  %v5762_v25 = vmul.f32 %v5754_v7, %v5743_v31  ;;  %v13971_v3 = vld [vmem:[#allocation46_spill] sm:$0xff] }
 0x916   : > { %6005 = vmatpush1.msra.mxu1 %v5915_v40  ;;  %v5839_v18 = vsel %vm1335_vm7, %v13971_v3, %v12574_v20 }
 0x917   : > { %v5599_v46 = vadd.f32 %v5591_v8, %v5542_v2  ;;  %v5600_v47 = vadd.f32 %v5592_v44, %v5543_v28  ;;  %v5834_v45 = vpop.permute.xlu0 %5833  ;;  %7215 = vmatmul.mubr.msk.f32.vlgmr.msra.gmra.mrb[36].mxu1 %vm5208_vm9, %v12720_v63  ;;  %6146 = vmatprep.subr.mxu1 %v5920_v51  ;;  %v5662_v32 = vpop.permute.xlu1 %5661  ;;  %v5805_v51 = vld [vmem:[#allocation7 + $0x19b0] sm:$0xff]  ;;  %v5803_v2 = vld [vmem:[#allocation7 + $0x19a0] sm:$0xff] }
 0x918   : > { %v5668_v55 = vsel %vm992_vm4, %v5662_v32, %v12554_v57  ;;  %v5669_v58 = vsel %vm992_vm4, %v12676_v5, %v5662_v32  ;;  %6210 = vmatprep.mubr.f32.mxu1 %v13960_v27  ;;  %v5741_v57 = vsel %vm1139_vm5, %v13967_v41, %v12570_v0  ;;  %v5790_v5 = vsel %vm1237_vm6, %v13968_v37, %v12572_v60  ;;  %v13970_v60 = vld [vmem:[#allocation75_spill] sm:$0xff]  ;;  %v5854_v28 = vld [vmem:[#allocation7 + $0x1a30] sm:$0xff] }
 0x919   : > { %v5648_v26 = vadd.f32 %v5640_v1, %v5599_v46  ;;  %v5649_v29 = vadd.f32 %v5641_v24, %v5600_v47  ;;  %v5689_v49 = vmul.f32 %v5681_v6, %v5669_v58  ;;  %v5690_v13 = vmul.f32 %v5682_v33, %v5668_v55  ;;  %v5853_v24 = vld [vmem:[#allocation7 + $0x1a28] sm:$0xff]  ;;  %v5903_v33 = vld [vmem:[#allocation7 + $0x1ab0] sm:$0xff]  ;;  %v13972_v32 = vld [vmem:[#allocation59_spill] sm:$0xff] }
 0x91a   : > { %v5742_v0 = vsel %vm1139_vm5, %v5736_v53, %v13967_v41  ;;  %v5713_v43 = vmul.f32 %v5705_v39, %v13970_v60  ;;  %v5764_v40 = vmul.f32 %v5756_v34, %v5741_v57  ;;  %v5813_v12 = vmul.f32 %v5805_v51, %v5790_v5  ;;  %v5901_v58 = vld [vmem:[#allocation7 + $0x1aa0] sm:$0xff] }
 0x91b   : > { %v12812_v9 = vpop.permute.xlu0 %6578  ;;  %v6577_v50 = vpop.permute.xlu1 %6576  ;;  %v5697_v48 = vadd.f32 %v5689_v49, %v5648_v26  ;;  %v5698_v30 = vadd.f32 %v5690_v13, %v5649_v29  ;;  %v5763_v8 = vmul.f32 %v5755_v16, %v5742_v0  ;;  %v5841_v1 = vsel %vm1335_vm7, %v12718_v23, %v5834_v45  ;;  %v5902_v26 = vld [vmem:[#allocation7 + $0x1aa8] sm:$0xff]  ;;  %v13973_v16 = vld [vmem:[#allocation82_spill] sm:$0xff] }
 0x91c   : > { %v5721_v21 = vadd.f32 %v5713_v43, %v5696_v61  ;;  %v5840_v20 = vsel %vm1335_vm7, %v5834_v45, %v13971_v3  ;;  %v5888_v23 = vsel %vm1433_vm8, %v13972_v32, %v13959_v35  ;;  %v5862_v29 = vmul.f32 %v5854_v28, %v5839_v18  ;;  %v6597_v45 = vld [vmem:[#allocation7 + $0x1ea8] sm:$0xff]  ;;  %v6596_v61 = vld [vmem:[#allocation7 + $0x1ea0] sm:$0xff] }
 0x91d   : > { %v5722_v42 = vadd.f32 %v5714_v62, %v5697_v48  ;;  %v5723_v52 = vadd.f32 %v5715_v17, %v5698_v30  ;;  %v5860_v11 = vmul.f32 %v5852_v59, %v5841_v1  ;;  %v6584_v39 = vsel %vm6582_vm0, %v6577_v50, %v12812_v9  ;;  %v6599_v62 = vld [vmem:[#allocation7 + $0x1eb8] sm:$0xff]  ;;  %v6647_v59 = vld [vmem:[#allocation7 + $0x1f28] sm:$0xff]  ;;  %v6648_v1 = vld [vmem:[#allocation7 + $0x1f30] sm:$0xff] }
 0x91e   : > { %v5770_v54 = vadd.f32 %v5762_v25, %v5721_v21  ;;  %v5861_v17 = vmul.f32 %v5853_v24, %v5840_v20  ;;  %v5911_v41 = vmul.f32 %v5903_v33, %v5888_v23  ;;  %v6605_v7 = vmul.f32 %v6597_v45, %v6584_v39  ;;  %v13974_v48 = vld [vmem:[#allocation62_spill] sm:$0xff]  ;;  %v6646_v25 = vld [vmem:[#allocation7 + $0x1f20] sm:$0xff]  ;;  %v13978_v21 = vld [vmem:[#allocation16_spill] sm:$0xff] }
 0x91f   : > { %v12822_v44 = vpop.permute.xlu0 %6626  ;;  %v5785_v53 = vpop.permute.xlu1 %5784  ;;  %v5772_v22 = vadd.f32 %v5764_v40, %v5723_v52  ;;  %v5771_v46 = vadd.f32 %v5763_v8, %v5722_v42  ;;  %v6585_v0 = vsel %vm6582_vm0, %v13973_v16, %v6577_v50  ;;  %v6649_v42 = vld [vmem:[#allocation7 + $0x1f38] sm:$0xff]  ;;  %v13980_v20 = vld [vmem:[#allocation64_spill] sm:$0xff] }
 0x920   : > { %v5791_v15 = vsel %vm1237_vm6, %v5785_v53, %v13968_v37  ;;  %v5792_v47 = vsel %vm1237_vm6, %v12737_v36, %v5785_v53  ;;  %v6635_v30 = vsel %vm6632_vm10, %v13974_v48, %v12822_v44  ;;  %v13977_v53 = vld [vmem:[#allocation74_spill] sm:$0xff] }
 0x921   : > { %v5812_v6 = vmul.f32 %v5804_v56, %v5791_v15  ;;  %v5821_v10 = vadd.f32 %v5813_v12, %v5772_v22  ;;  %v5811_v55 = vmul.f32 %v5803_v2, %v5792_v47  ;;  %v13976_v12 = vld [vmem:[#allocation77_spill] sm:$0xff]  ;;  %v6604_v2 = vmul.f32 %v6596_v61, %v6585_v0  ;;  %v13979_v15 = vld [vmem:[#allocation86_spill] sm:$0xff] }
 0x922   : > { %v6613_v28 = vadd.f32 %v6605_v7, %v13977_v53  ;;  %v6654_v22 = vmul.f32 %v6646_v25, %v6635_v30  ;;  %v6667_v47 = vld [vmem:[#allocation3 + $0x70] sm:$0xff] }
 0x923   : > { %v5820_v36 = vadd.f32 %v5812_v6, %v5771_v46  ;;  %v5883_v4 = vpop.permute.xlu1 %5882  ;;  %v5819_v49 = vadd.f32 %v5811_v55, %v5770_v54  ;;  %v6631_v13 = vpop.permute.xlu0 %6630  ;;  %v5870_v5 = vadd.f32 %v5862_v29, %v5821_v10  ;;  %v13981_v6 = vld [vmem:[#allocation22_spill] sm:$0xff]  ;;  %v13982_v55 = vld [vmem:[#allocation43_spill] sm:$0xff] }
 0x924   : > { %v5889_v35 = vsel %vm1433_vm8, %v5883_v4, %v13972_v32  ;;  %v5890_v34 = vsel %vm1433_vm8, %v12756_v19, %v5883_v4  ;;  %v13975_v19 = vld [vmem:[#allocation96_spill] sm:$0xff]  ;;  %v13985_v4 = vld [vmem:[#allocation31_spill] sm:$0xff] }
 0x925   : > { %v5909_v57 = vmul.f32 %v5901_v58, %v5890_v34  ;;  %v5910_v37 = vmul.f32 %v5902_v26, %v5889_v35  ;;  %v5868_v31 = vadd.f32 %v5860_v11, %v5819_v49  ;;  %v5869_v51 = vadd.f32 %v5861_v17, %v5820_v36  ;;  %v13983_v26 = vld [vmem:[#allocation100_spill] sm:$0xff]  ;;  %v13984_v11 = vld [vmem:[#allocation42_spill] sm:$0xff]  ;;  %v13986_v49 = vld [vmem:[#allocation21_spill] sm:$0xff] }
 0x926   : > { %v6640_v60 = vsel %vm6632_vm10, %v6631_v13, %v13975_v19  ;;  %v5919_v43 = vadd.f32 %v5911_v41, %v5870_v5  ;;  %v6612_v29 = vadd.f32 %v6604_v2, %v13983_v26  ;;  %v13987_v35 = vld [vmem:[#allocation35_spill] sm:$0xff]  ;;  %v13990_v5 = vld [vmem:[#allocation30_spill] sm:$0xff]  ;;  %v13993_v19 = vld [vmem:[#allocation12_spill] sm:$0xff] }
 0x927   : > { %v6581_v40 = vpop.permute.xlu1 %6580  ;;  %v5917_v52 = vadd.f32 %v5909_v57, %v5868_v31  ;;  %v5918_v3 = vadd.f32 %v5910_v37, %v5869_v51  ;;  %v13989_v57 = vld [vmem:[#allocation39_spill] sm:$0xff]  ;;  %v13991_v31 = vld [vmem:[#allocation78_spill] sm:$0xff] }
 0x928   : > { %v6583_v56 = vsel %vm6582_vm0, %v12812_v9, %v6581_v40  ;;  %v6590_v50 = vsel %vm6582_vm0, %v6581_v40, %v13976_v12  ;;  %6147 = vmatpush1.msra.mxu1 %v5919_v43  ;;  %v6657_v9 = vmul.f32 %v6649_v42, %v6640_v60  ;;  %v13994_v43 = vld [vmem:[#allocation17_spill] sm:$0xff]  ;;  %v13995_v12 = vld [vmem:[#allocation11_spill] sm:$0xff] }
 0x929   : > { %v6606_v18 = vmul.f32 %v6598_v38, %v6583_v56  ;;  %v6607_v8 = vmul.f32 %v6599_v62, %v6590_v50  ;;  %7217 = vmatmul.mubr.msk.f32.vlgmr.msra.gmra.mrb[38].mxu1 %vm5208_vm9, %v12720_v63  ;;  %6749 = vmatprep.subr.mxu1 %v13978_v21  ;;  %v13992_v62 = vld [vmem:[#allocation41_spill] sm:$0xff] }
 0x92a   : > { %6075 = vmatprep.subr.mxu0 %v5918_v3  ;;  %6750 = vmatpush1.msra.mxu1 %v13980_v20  ;;  %v13996_v3 = vld [vmem:[#allocation15_spill] sm:$0xff] }
 0x92b   : > { %v6615_v24 = vadd.f32 %v6607_v8, %v13979_v15  ;;  %v6629_v46 = vpop.permute.xlu1 %6628  ;;  %v6614_v33 = vadd.f32 %v6606_v18, %v13981_v6  ;;  %6076 = vmatpush1.msra.mxu0 %v5917_v52  ;;  %6813 = vmatprep.mubr.f32.mxu1 %v13960_v27 }
 0x92c   : > { %v6633_v32 = vsel %vm6632_vm10, %v6629_v46, %v6631_v13  ;;  %v6634_v23 = vsel %vm6632_vm10, %v12822_v44, %v6629_v46  ;;  %7216 = vmatmul.mubr.msk.f32.vlgmr.msra.gmra.mrb[38].mxu0 %vm5208_vm9, %v12720_v63  ;;  %6678 = vmatprep.subr.mxu0 %v13982_v55  ;;  %v6662_v44 = vadd.f32 %v6654_v22, %v6612_v29 }
 0x92d   : > { %v6655_v54 = vmul.f32 %v6647_v59, %v6634_v23  ;;  %v6656_v10 = vmul.f32 %v6648_v1, %v6633_v32  ;;  %v6665_v58 = vadd.f32 %v6657_v9, %v6615_v24  ;;  %6679 = vmatpush1.msra.mxu0 %v13984_v11  ;;  %7219 = vmatmul.mubr.msk.f32.vlgmr.msra.gmra.mrb[40].mxu1 %vm5208_vm9, %v6667_v47  ;;  %v13997_v59 = vld [vmem:[#allocation20_spill] sm:$0xff]  ;;  %v13999_v32 = vld [vmem:[#allocation23_spill] sm:$0xff] }
 0x92e   : > { %6742 = vmatprep.mubr.f32.mxu0 %v13960_v27  ;;  %6955 = vmatprep.mubr.f32.mxu1 %v13960_v27  ;;  %v13998_v9 = vld [vmem:[#allocation48_spill] sm:$0xff] }
 0x92f   : > { %v6664_v45 = vadd.f32 %v6656_v10, %v6614_v33  ;;  %6891 = vmatprep.subr.mxu1 %v6665_v58  ;;  %v6663_v14 = vadd.f32 %v6655_v54, %v6613_v28  ;;  %v14000_v10 = vld [vmem:[#allocation56_spill] sm:$0xff] }
 0x930   : > { %7218 = vmatmul.mubr.msk.f32.vlgmr.msra.gmra.mrb[40].mxu0 %vm5208_vm9, %v6667_v47 }
 0x931   : > { %6820 = vmatprep.subr.mxu0 %v6663_v14  ;;  %6892 = vmatpush1.msra.mxu1 %v6664_v45 }
 0x932   : > { %6821 = vmatpush1.msra.mxu0 %v6662_v44  ;;  %6884 = vmatprep.mubr.f32.mxu0 %v13960_v27  ;;  %v13988_v27 = vld [vmem:[#allocation24_spill] sm:$0xff] }
 0x933   : > { %7221 = vmatmul.mubr.msk.f32.vlgmr.msra.gmra.mrb[42].mxu1 %vm5208_vm9, %v6667_v47 }
 0x934   : > { %7220 = vmatmul.mubr.msk.f32.vlgmr.msra.gmra.mrb[42].mxu0 %vm5208_vm9, %v6667_v47  ;;  %v4642_v63 = vpop.permute.xlu0 %4641 }
 0x938   : > { %v6673_v21 = vpop.permute.xlu0 %6672 }
 0x93c   : > { %v4637_v39 = vpop.permute.xlu1 %4636 }
 0x93d   : > { %v7325_v36 = vadd.f32 %v4642_v63, %v4637_v39 }
 0x93f   : > { %v7326_v17 = vadd.f32 %v7325_v36, %v13985_v4  ;;  %v7328_v13 = vadd.f32 %v7325_v36, %v13986_v49  ;;  %v7330_v34 = vadd.f32 %v7325_v36, %v13987_v35  ;;  %v7332_v41 = vadd.f32 %v7325_v36, %v13988_v27 }
 0x940   : > { %v7334_v37 = vadd.f32 %v7325_v36, %v13989_v57  ;;  %v7336_v7 = vadd.f32 %v7325_v36, %v13990_v5  ;;  %v7338_v38 = vadd.f32 %v7325_v36, %v13991_v31  ;;  %v7340_v51 = vadd.f32 %v7325_v36, %v13992_v62  ;;  %v5928_v61 = vpop.permute.xlu1 %5927  ;;  %v7000_v5 = vld [vmem:[%s11864_s15] sm:$0xff] (%p14001_p6)  ;;  %v7004_v31 = vld [vmem:[%s11864_s15 + $0x10] sm:$0xff] (%p14001_p6) }
 0x941   : > { %4966 = vst [vmem:[%s11864_s15 + $0x40] sm:$0xff] %v7326_v17  ;;  %4967 = vst [vmem:[%s11864_s15 + $0x48] sm:$0xff] %v7328_v13  ;;  %v7008_v62 = vld [vmem:[%s11864_s15 + $0x20] sm:$0xff] (%p14001_p6) }
 0x942   : > { %4968 = vst [vmem:[%s11864_s15 + $0x50] sm:$0xff] %v7330_v34  ;;  %4969 = vst [vmem:[%s11864_s15 + $0x58] sm:$0xff] %v7332_v41 }
 0x943   : > { %4970 = vst [vmem:[%s11864_s15 + $0x60] sm:$0xff] %v7334_v37  ;;  %4971 = vst [vmem:[%s11864_s15 + $0x68] sm:$0xff] %v7336_v7  ;;  %v7002_v7 = vld [vmem:[%s11864_s15 + $0x8] sm:$0xff] (%p14001_p6) }
 0x944   : > { %4972 = vst [vmem:[%s11864_s15 + $0x70] sm:$0xff] %v7338_v38  ;;  %4973 = vst [vmem:[%s11864_s15 + $0x78] sm:$0xff] %v7340_v51  ;;  %v7006_v38 = vld [vmem:[%s11864_s15 + $0x18] sm:$0xff] (%p14001_p6)  ;;  %v7010_v51 = vld [vmem:[%s11864_s15 + $0x28] sm:$0xff] (%p14001_p6) }
 0x945   : > { %7001 = vst [vmem:[%s12947_s25] sm:$0xff] (%p14001_p6), %v7000_v5  ;;  %7003 = vst [vmem:[%s12947_s25 + $0x8] sm:$0xff] (%p14001_p6), %v7002_v7 }
 0x946   : > { %7005 = vst [vmem:[%s12947_s25 + $0x10] sm:$0xff] (%p14001_p6), %v7004_v31  ;;  %7007 = vst [vmem:[%s12947_s25 + $0x18] sm:$0xff] (%p14001_p6), %v7006_v38 }
 0x947   : > { %7009 = vst [vmem:[%s12947_s25 + $0x20] sm:$0xff] (%p14001_p6), %v7008_v62  ;;  %7011 = vst [vmem:[%s12947_s25 + $0x28] sm:$0xff] (%p14001_p6), %v7010_v51 }
 0x9dc   : > { %v5999_v16 = vpop.f32.mrb[36].mxu0 }
 0x9dd   : > { %v6000_v0 = vadd.f32 %v5999_v16, %v5928_v61  ;;  %v6001_v48 = vpop.f32.mrb[37].mxu0  ;;  %v7014_v16 = vld [vmem:[%s11864_s15 + $0x38] sm:$0xff] (%p14001_p6) }
 0x9de   : > { %v6002_v30 = vadd.f32 %v6001_v48, %v5928_v61  ;;  %7015 = vst [vmem:[%s12947_s25 + $0x38] sm:$0xff] (%p14001_p6), %v7014_v16  ;;  %v7018_v48 = vld [vmem:[%s11864_s15 + $0x48] sm:$0xff] (%p14001_p6) }
 0x9df   : > { %v6217_v60 = vadd.f32 %v6000_v0, %v13993_v19  ;;  %v7016_v0 = vld [vmem:[%s11864_s15 + $0x40] sm:$0xff] (%p14001_p6)  ;;  %7019 = vst [vmem:[%s12947_s25 + $0x88] sm:$0xff] (%p14001_p6), %v7018_v48 }
 0x9e0   : > { %v6218_v40 = vadd.f32 %v6002_v30, %v13994_v43  ;;  %7017 = vst [vmem:[%s12947_s25 + $0x80] sm:$0xff] (%p14001_p6), %v7016_v0  ;;  %v7020_v30 = vld [vmem:[%s11864_s15 + $0x50] sm:$0xff] (%p14001_p6) }
 0x9e1   : > { %6225 = vst [vmem:[%s11864_s15 + $0x80] sm:$0xff] %v6217_v60  ;;  %7021 = vst [vmem:[%s12947_s25 + $0x90] sm:$0xff] (%p14001_p6), %v7020_v30  ;;  %v7024_v60 = vld [vmem:[%s11864_s15 + $0x60] sm:$0xff] (%p14001_p6) }
 0x9e2   : > { %6226 = vst [vmem:[%s11864_s15 + $0x88] sm:$0xff] %v6218_v40  ;;  %v7028_v40 = vld [vmem:[%s11864_s15 + $0x70] sm:$0xff] (%p14001_p6)  ;;  %7025 = vst [vmem:[%s12947_s25 + $0xa0] sm:$0xff] (%p14001_p6), %v7024_v60 }
 0x9e3   : > { %7029 = vst [vmem:[%s12947_s25 + $0xb0] sm:$0xff] (%p14001_p6), %v7028_v40 }
 0x9ea   : > { %v6070_v25 = vpop.f32.mrb[36].mxu1 }
 0x9eb   : > { %v6071_v42 = vadd.f32 %v6070_v25, %v5928_v61  ;;  %v6072_v52 = vpop.f32.mrb[37].mxu1  ;;  %v7030_v25 = vld [vmem:[%s11864_s15 + $0x78] sm:$0xff] (%p14001_p6) }
 0x9ec   : > { %v6073_v56 = vadd.f32 %v6072_v52, %v5928_v61  ;;  %v7034_v52 = vld [vmem:[%s11864_s15 + $0x88] sm:$0xff] (%p14001_p6)  ;;  %7031 = vst [vmem:[%s12947_s25 + $0xb8] sm:$0xff] (%p14001_p6), %v7030_v25 }
 0x9ed   : > { %v6219_v50 = vadd.f32 %v6071_v42, %v13995_v12  ;;  %v7032_v42 = vld [vmem:[%s11864_s15 + $0x80] sm:$0xff] (%p14001_p6)  ;;  %7035 = vst [vmem:[%s12947_s25 + $0x108] sm:$0xff] (%p14001_p6), %v7034_v52 }
 0x9ee   : > { %v6220_v18 = vadd.f32 %v6073_v56, %v13996_v3  ;;  %7033 = vst [vmem:[%s12947_s25 + $0x100] sm:$0xff] (%p14001_p6), %v7032_v42 }
 0x9ef   : > { %6227 = vst [vmem:[%s11864_s15 + $0x90] sm:$0xff] %v6219_v50 }
 0x9f0   : > { %6228 = vst [vmem:[%s11864_s15 + $0x98] sm:$0xff] %v6220_v18 }
 0x9f6   : > { %v7036_v56 = vld [vmem:[%s11864_s15 + $0x90] sm:$0xff] (%p14001_p6) }
 0x9f7   : > { %7037 = vst [vmem:[%s12947_s25 + $0x110] sm:$0xff] (%p14001_p6), %v7036_v56 }
 0x9fc   : > { %v6212_v8 = vpop.f32.mrb[38].mxu1 }
 0x9fd   : > { %v6213_v2 = vadd.f32 %v6212_v8, %v5928_v61  ;;  %v6214_v53 = vpop.f32.mrb[39].mxu1 }
 0x9fe   : > { %v6215_v28 = vadd.f32 %v6214_v53, %v5928_v61 }
 0x9ff   : > { %v6223_v1 = vadd.f32 %v6213_v2, %v13997_v59  ;;  %v6141_v22 = vpop.f32.mrb[38].mxu0 }
 0xa00   : > { %v6224_v15 = vadd.f32 %v6215_v28, %v13998_v9  ;;  %v6142_v24 = vadd.f32 %v6141_v22, %v5928_v61  ;;  %v6143_v20 = vpop.f32.mrb[39].mxu0  ;;  %v6815_v46 = vpop.f32.mrb[40].mxu1 }
 0xa01   : > { %6231 = vst [vmem:[%s11864_s15 + $0xb0] sm:$0xff] %v6223_v1  ;;  %v6144_v47 = vadd.f32 %v6143_v20, %v5928_v61  ;;  %v6816_v6 = vadd.f32 %v6815_v46, %v6673_v21  ;;  %v6817_v33 = vpop.f32.mrb[41].mxu1  ;;  %v7012_v61 = vld [vmem:[%s11864_s15 + $0x30] sm:$0xff] (%p14001_p6) }
 0xa02   : > { %6232 = vst [vmem:[%s11864_s15 + $0xb8] sm:$0xff] %v6224_v15  ;;  %v6221_v23 = vadd.f32 %v6142_v24, %v13999_v32  ;;  %v6818_v54 = vadd.f32 %v6817_v33, %v6673_v21  ;;  %7013 = vst [vmem:[%s12947_s25 + $0x30] sm:$0xff] (%p14001_p6), %v7012_v61 }
 0xa03   : > { %v6222_v55 = vadd.f32 %v6144_v47, %v14000_v10  ;;  %v6964_v58 = vadd.f32 %v6816_v6, %v13995_v12  ;;  %v6744_v26 = vpop.f32.mrb[40].mxu0  ;;  %v7038_v12 = vld [vmem:[%s11864_s15 + $0x98] sm:$0xff] (%p14001_p6) }
 0xa04   : > { %6229 = vst [vmem:[%s11864_s15 + $0xa0] sm:$0xff] %v6221_v23  ;;  %v6965_v29 = vadd.f32 %v6818_v54, %v13996_v3  ;;  %v6745_v11 = vadd.f32 %v6744_v26, %v6673_v21  ;;  %v6746_v45 = vpop.f32.mrb[41].mxu0  ;;  %7039 = vst [vmem:[%s12947_s25 + $0x118] sm:$0xff] (%p14001_p6), %v7038_v12 }
 0xa05   : > { %6230 = vst [vmem:[%s11864_s15 + $0xa8] sm:$0xff] %v6222_v55  ;;  %6972 = vst [vmem:[%s11864_s15 + $0xd0] sm:$0xff] %v6964_v58  ;;  %v6747_v14 = vadd.f32 %v6746_v45, %v6673_v21 }
 0xa06   : > { %v6957_v44 = vpop.f32.mrb[42].mxu1  ;;  %6973 = vst [vmem:[%s11864_s15 + $0xd8] sm:$0xff] %v6965_v29  ;;  %v6962_v63 = vadd.f32 %v6745_v11, %v13993_v19  ;;  %v7022_v19 = vld [vmem:[%s11864_s15 + $0x58] sm:$0xff] (%p14001_p6) }
 0xa07   : > { %v6958_v39 = vadd.f32 %v6957_v44, %v6673_v21  ;;  %v6959_v36 = vpop.f32.mrb[43].mxu1  ;;  %v6963_v4 = vadd.f32 %v6747_v14, %v13994_v43  ;;  %v6886_v17 = vpop.f32.mrb[42].mxu0  ;;  %6984 = sbr.rel (!%p14001_p6) target bundleno = 2582 (0xa16), region = 75  ;;  %7023 = vst [vmem:[%s12947_s25 + $0x98] sm:$0xff] (%p14001_p6), %v7022_v19  ;;  %v7026_v43 = vld [vmem:[%s11864_s15 + $0x68] sm:$0xff] (%p14001_p6) }
 0xa08   : > { %v6960_v49 = vadd.f32 %v6959_v36, %v6673_v21  ;;  %6970 = vst [vmem:[%s11864_s15 + $0xc0] sm:$0xff] %v6962_v63  ;;  %v6887_v35 = vadd.f32 %v6886_v17, %v6673_v21  ;;  %v6888_v34 = vpop.f32.mrb[43].mxu0  ;;  %7027 = vst [vmem:[%s12947_s25 + $0xa8] sm:$0xff] (%p14001_p6), %v7026_v43  ;;  %v7044_v18 = vld [vmem:[%s11864_s15 + $0xb0] sm:$0xff] (%p14001_p6) }
 0xa09   : > { %v6968_v13 = vadd.f32 %v6958_v39, %v13997_v59  ;;  %6971 = vst [vmem:[%s11864_s15 + $0xc8] sm:$0xff] %v6963_v4  ;;  %v6889_v41 = vadd.f32 %v6888_v34, %v6673_v21  ;;  %v7046_v8 = vld [vmem:[%s11864_s15 + $0xb8] sm:$0xff] (%p14001_p6)  ;;  %7045 = vst [vmem:[%s12947_s25 + $0x130] sm:$0xff] (%p14001_p6), %v7044_v18 }
 0xa0a   : > { %v6969_v27 = vadd.f32 %v6960_v49, %v13998_v9  ;;  %v6966_v57 = vadd.f32 %v6887_v35, %v13999_v32  ;;  %7047 = vst [vmem:[%s12947_s25 + $0x138] sm:$0xff] (%p14001_p6), %v7046_v8 }
 0xa0b   : > { %6976 = vst [vmem:[%s11864_s15 + $0xf0] sm:$0xff] %v6968_v13  ;;  %v6967_v37 = vadd.f32 %v6889_v41, %v14000_v10  ;;  %v7040_v50 = vld [vmem:[%s11864_s15 + $0xa0] sm:$0xff] (%p14001_p6) }
 0xa0c   : > { %6977 = vst [vmem:[%s11864_s15 + $0xf8] sm:$0xff] %v6969_v27  ;;  %6974 = vst [vmem:[%s11864_s15 + $0xe0] sm:$0xff] %v6966_v57  ;;  %v7042_v3 = vld [vmem:[%s11864_s15 + $0xa8] sm:$0xff] (%p14001_p6)  ;;  %v7052_v28 = vld [vmem:[%s11864_s15 + $0xd0] sm:$0xff] (%p14001_p6) }
 0xa0d   : > { %6975 = vst [vmem:[%s11864_s15 + $0xe8] sm:$0xff] %v6967_v37  ;;  %7041 = vst [vmem:[%s12947_s25 + $0x120] sm:$0xff] (%p14001_p6), %v7040_v50  ;;  %v7054_v21 = vld [vmem:[%s11864_s15 + $0xd8] sm:$0xff] (%p14001_p6) }
 0xa0e   : > { %7043 = vst [vmem:[%s12947_s25 + $0x128] sm:$0xff] %v7042_v3  ;;  %7053 = vst [vmem:[%s12947_s25 + $0x190] sm:$0xff] %v7052_v28 }
 0xa0f   : > { %v7048_v2 = vld [vmem:[%s11864_s15 + $0xc0] sm:$0xff]  ;;  %7055 = vst [vmem:[%s12947_s25 + $0x198] sm:$0xff] %v7054_v21 }
 0xa10   : > { %v7050_v53 = vld [vmem:[%s11864_s15 + $0xc8] sm:$0xff]  ;;  %7049 = vst [vmem:[%s12947_s25 + $0x180] sm:$0xff] %v7048_v2 }
 0xa11   : > { %7051 = vst [vmem:[%s12947_s25 + $0x188] sm:$0xff] %v7050_v53 }
 0xa12   : > { %v7060_v22 = vld [vmem:[%s11864_s15 + $0xf0] sm:$0xff] }
 0xa13   : > { %v7056_v59 = vld [vmem:[%s11864_s15 + $0xe0] sm:$0xff]  ;;  %v7062_v9 = vld [vmem:[%s11864_s15 + $0xf8] sm:$0xff]  ;;  %7061 = vst [vmem:[%s12947_s25 + $0x1b0] sm:$0xff] %v7060_v22 }
 0xa14   : > { %v7058_v1 = vld [vmem:[%s11864_s15 + $0xe8] sm:$0xff]  ;;  %7057 = vst [vmem:[%s12947_s25 + $0x1a0] sm:$0xff] %v7056_v59  ;;  %7063 = vst [vmem:[%s12947_s25 + $0x1b8] sm:$0xff] %v7062_v9 }
 0xa15   : > { %7059 = vst [vmem:[%s12947_s25 + $0x1a8] sm:$0xff] %v7058_v1 }
 0xa16 PF: > { %p13_p7 = scmp.ge.s32.totalorder %s7623_s19, 4   ;;  %s14002_s15 = smov %s7548_s16 }
 0xa17   : > { %s14003_s16 = smov %s7633_s22  ;;  %s14004_s17 = smov %s7623_s19 }
 0xa18   :  { %15 = sbr.rel (!%p13_p7) target bundleno = 3 (0x3), region = 206 }
 0xa1f   :  { %7079 = vsyncpa [#allocation4], 1 }
 0xa20   :  { %7081 = vsyncpa [#allocation4 + $0x1], 1 }
 0xa21   :  { %7082 = vsyncpa [#allocation6], 1 }

</bundles_post_ra>
